<compile_context>
chip_gen: v7x
topology: tpu7x:2x2x1
jax: 0.10.0
libtpu: 0.0.40
codegen_flags: <defaults>
</compile_context>

<pallas_src>
import math
from functools import partial

import jax
import jax.numpy as jnp
from jax import lax
from jax.experimental import pallas as pl
from jax.experimental.pallas import tpu as pltpu


def _round_up(v, m):
    return (v + m - 1) // m * m


def _vmem_limit(nbytes):
    # actual footprint * 2 headroom, clamped to [32 MiB, 64 MiB] (v7x physical).
    return int(min(max(2 * nbytes + (2 << 20), 32 << 20), 64 << 20))


# --------------------------------------------------------------------------
# Pallas kernel 1: tiled matmul, bias folded into the k==0 accumulator init,
# f32 VMEM accumulation, bf16 (or f32) output.  Used for ConvTranspose2d.
# --------------------------------------------------------------------------
def _matmul_bias_kernel(x_ref, w_ref, b_ref, o_ref, acc_ref):
    @pl.when(pl.program_id(2) == 0)
    def _():
        # bias-initialized accumulator: no separate zero pass, no bias pass.
        acc_ref[...] = jnp.broadcast_to(b_ref[...], acc_ref.shape)

    acc_ref[...] += jnp.dot(x_ref[...], w_ref[...],
                            preferred_element_type=jnp.float32)

    @pl.when(pl.program_id(2) == pl.num_programs(2) - 1)
    def _():
        o_ref[...] = acc_ref[...].astype(o_ref.dtype)


def matmul_bias(x_bf16, w_bf16, b_f32, out_dtype=jnp.bfloat16):
    """(x @ w) + b ; x:(M,K) bf16, w:(K,N) bf16, b:(N,) f32 -> (M,N) out_dtype."""
    M, K = x_bf16.shape
    Ncol = w_bf16.shape[1]
    tm = min(256, _round_up(M, 8))
    tn = min(512, _round_up(Ncol, 128))        # 512 keeps v6e/v7x 256-wide MXU full
    tk = K if K <= 512 else 512
    Mp, Kp, Np = _round_up(M, tm), _round_up(K, tk), _round_up(Ncol, tn)

    xp = jnp.pad(x_bf16, ((0, Mp - M), (0, Kp - K)))
    wp = jnp.pad(w_bf16, ((0, Kp - K), (0, Np - Ncol)))
    bp = jnp.pad(b_f32.astype(jnp.float32), (0, Np - Ncol)).reshape(1, Np)

    osz = jnp.dtype(out_dtype).itemsize
    vmem = _vmem_limit(2 * (tm * tk * 2 + tk * tn * 2 + tn * 4 + tm * tn * osz)
                       + tm * tn * 4)

    out = pl.pallas_call(
        _matmul_bias_kernel,
        out_shape=jax.ShapeDtypeStruct((Mp, Np), out_dtype),
        grid_spec=pltpu.PrefetchScalarGridSpec(
            num_scalar_prefetch=0,
            grid=(Mp // tm, Np // tn, Kp // tk),
            in_specs=[
                pl.BlockSpec((tm, tk), lambda i, j, k: (i, k)),
                pl.BlockSpec((tk, tn), lambda i, j, k: (k, j)),
                pl.BlockSpec((1, tn), lambda i, j, k: (0, j)),
            ],
            out_specs=pl.BlockSpec((tm, tn), lambda i, j, k: (i, j)),
            scratch_shapes=[pltpu.VMEM((tm, tn), jnp.float32)],
        ),
        compiler_params=pltpu.CompilerParams(
            dimension_semantics=("parallel", "parallel", "arbitrary"),
            vmem_limit_bytes=vmem),
    )(xp, wp, bp)
    return out[:M, :Ncol]


# --------------------------------------------------------------------------
# Pallas kernel 2: fused conv3x3 (pad=1) + GroupNorm(8) + GELU, one batch
# element per grid step.  Padding and im2col are built in VMEM; one deep-K
# (9*Cin) bf16 MXU matmul; f32 epilogue; flat (H*W, Cout) output (no reshape).
# --------------------------------------------------------------------------
def _conv3x3_gn_gelu_kernel(x_ref, w_ref, b_ref, g_ref, bt_ref, A_ref, o_ref,
                            xpad_ref, col_ref, *, H, W, Cin, Cout, eps):
    # x_ref  : (1, H, W, Cin)   bf16 (unpadded)
    # w_ref  : (9*Cin, Cout)    bf16, rows ordered (di, dj, ci)
    # b_ref, g_ref, bt_ref : (1, Cout) f32
    # A_ref  : (Cout, Cout) f32  group-averaging matrix  (mask / (H*W*cg))
    # xpad_ref : (H+2, W+2, Cin) bf16 scratch  (padding built in VMEM)
    # col_ref  : (H, W, 9*Cin)   bf16 scratch  (im2col tile)

    # In-VMEM zero pad (removes the HBM pad pass between conv layers).
    xpad_ref[...] = jnp.zeros_like(xpad_ref)
    xpad_ref[1:H + 1, 1:W + 1, :] = x_ref[0]

    # Build the 9-tap im2col tile once: pure window-to-window copies
    # (no per-tap strided reshape), then one matmul with K = 9*Cin.
    for t in range(9):
        di, dj = divmod(t, 3)
        col_ref[:, :, t * Cin:(t + 1) * Cin] = xpad_ref[di:di + H, dj:dj + W, :]

    lhs = col_ref[...].reshape(H * W, 9 * Cin)
    h = jnp.dot(lhs, w_ref[...], preferred_element_type=jnp.float32)
    h = h + b_ref[...]                                     # conv output, f32

    # GroupNorm: per-channel column sums (XLU), group means via a tiny
    # (1,Cout)x(Cout,Cout) matmul; variance from centered data (stable).
    colsum = jnp.sum(h, axis=0, keepdims=True)             # (1, Cout)
    mean = jnp.dot(colsum, A_ref[...],
                   preferred_element_type=jnp.float32)     # per-channel bcast of group mean
    hc = h - mean
    sqsum = jnp.sum(hc * hc, axis=0, keepdims=True)
    var = jnp.dot(sqsum, A_ref[...],
                  preferred_element_type=jnp.float32)      # biased, like torch
    scale = lax.rsqrt(var + eps) * g_ref[...]
    y = hc * scale + bt_ref[...]

    # TODO(synk): nn.GELU() default is exact erf; tanh approximation used here
    # (no guaranteed Mosaic erf lowering). Max deviation ~1e-3.
    y = 0.5 * y * (1.0 + jnp.tanh(0.7978845608028654 *
                                  (y + 0.044715 * y * y * y)))

    o_ref[0] = y.astype(o_ref.dtype)


def conv3x3_gn_gelu(x_nhwc, conv_p, gn_p, *, num_groups=8, eps=1e-5,
                    out_dtype=jnp.bfloat16):
    """Conv2d(3x3, pad=1) -> GroupNorm(num_groups) -> GELU, fused per image."""
    N, H, W, Cin = x_nhwc.shape
    Cout = conv_p["w"].shape[0]
    assert Cout % num_groups == 0
    cg = Cout // num_groups

    xb = x_nhwc.astype(jnp.bfloat16)
    # torch weight (Cout, Cin, 3, 3) -> (di, dj, ci, co) -> (9*Cin, Cout), bf16
    wflat = jnp.transpose(conv_p["w"], (2, 3, 1, 0)).reshape(
        9 * Cin, Cout).astype(jnp.bfloat16)
    gid = jnp.arange(Cout, dtype=jnp.int32) // cg
    A = (gid[:, None] == gid[None, :]).astype(jnp.float32) / float(H * W * cg)
    b2 = conv_p["b"].reshape(1, Cout).astype(jnp.float32)
    g2 = gn_p["gamma"].reshape(1, Cout).astype(jnp.float32)
    bt2 = gn_p["beta"].reshape(1, Cout).astype(jnp.float32)

    osz = jnp.dtype(out_dtype).itemsize
    vmem = _vmem_limit(
        2 * H * W * Cin * 2 +               # input blocks (double buffered)
        2 * H * W * Cout * osz +            # output blocks
        2 * 9 * Cin * Cout * 2 +            # weights
        (H + 2) * (W + 2) * Cin * 2 +       # pad scratch
        H * W * 9 * Cin * 2 +               # im2col scratch
        6 * H * W * Cout * 4 +              # f32 epilogue temporaries
        Cout * Cout * 4)

    y = pl.pallas_call(
        partial(_conv3x3_gn_gelu_kernel, H=H, W=W, Cin=Cin, Cout=Cout, eps=eps),
        out_shape=jax.ShapeDtypeStruct((N, H * W, Cout), out_dtype),
        grid_spec=pltpu.PrefetchScalarGridSpec(
            num_scalar_prefetch=0,
            grid=(N,),
            in_specs=[
                pl.BlockSpec((1, H, W, Cin), lambda n: (n, 0, 0, 0)),
                pl.BlockSpec((9 * Cin, Cout), lambda n: (0, 0)),
                pl.BlockSpec((1, Cout), lambda n: (0, 0)),
                pl.BlockSpec((1, Cout), lambda n: (0, 0)),
                pl.BlockSpec((1, Cout), lambda n: (0, 0)),
                pl.BlockSpec((Cout, Cout), lambda n: (0, 0)),
            ],
            out_specs=pl.BlockSpec((1, H * W, Cout), lambda n: (n, 0, 0)),
            scratch_shapes=[
                pltpu.VMEM((H + 2, W + 2, Cin), jnp.bfloat16),
                pltpu.VMEM((H, W, 9 * Cin), jnp.bfloat16),
            ],
        ),
        compiler_params=pltpu.CompilerParams(
            dimension_semantics=("parallel",),
            vmem_limit_bytes=vmem),
    )(xb, wflat, b2, g2, bt2, A)
    # Free, metadata-only reshape back to NHWC (flat output keeps the kernel
    # store reshape-free).
    return y.reshape(N, H, W, Cout)


# --------------------------------------------------------------------------
# Layer wrappers
# --------------------------------------------------------------------------
def conv_transpose_up(x_nhwc, w, b):
    """ConvTranspose2d(kernel=stride=k). w torch layout (Cin, Cout, k, k)."""
    N, H, W, Cin = x_nhwc.shape
    _, Cout, k, _ = w.shape
    wm = jnp.transpose(w, (0, 2, 3, 1)).reshape(Cin, k * k * Cout).astype(jnp.bfloat16)
    bm = jnp.tile(b, k * k).astype(jnp.float32)
    y = matmul_bias(x_nhwc.reshape(N * H * W, Cin).astype(jnp.bfloat16),
                    wm, bm, out_dtype=jnp.bfloat16)
    # TODO(synk): pixel-shuffle kept as a cheap bf16 XLA transpose; absorbing
    # it into out_specs needs k*Cout to be a multiple of 128 lanes.
    y = y.reshape(N, H, W, k, k, Cout).transpose(0, 1, 3, 2, 4, 5)
    return y.reshape(N, H * k, W * k, Cout)


def resblock_fwd(x, p, *, out_dtype):
    """ResBlock2d(c, c) with is_res=False: two fused conv+GN+GELU blocks."""
    h1 = conv3x3_gn_gelu(x, p["conv1"], p["gn1"], out_dtype=jnp.bfloat16)
    h2 = conv3x3_gn_gelu(h1, p["conv2"], p["gn2"], out_dtype=out_dtype)
    return h2


def up2d_forward(params, x_nchw, skip_nchw=None):
    if skip_nchw is not None:
        x_nchw = jnp.concatenate([x_nchw, skip_nchw], axis=1)
    x = jnp.transpose(x_nchw, (0, 2, 3, 1))            # NCHW -> NHWC
    h = conv_transpose_up(x, params["convt"]["w"], params["convt"]["b"])
    h = resblock_fwd(h, params["res1"], out_dtype=jnp.bfloat16)
    h = resblock_fwd(h, params["res2"], out_dtype=jnp.float32)
    return jnp.transpose(h, (0, 3, 1, 2))              # NHWC -> NCHW


# --------------------------------------------------------------------------
# Parameter init (deterministic, synthetic)
# --------------------------------------------------------------------------
def _init_conv3x3(key, cin, cout):
    kw, kb = jax.random.split(key)
    w = jax.random.normal(kw, (cout, cin, 3, 3), jnp.float32) / math.sqrt(cin * 9)
    b = 0.01 * jax.random.normal(kb, (cout,), jnp.float32)
    return {"w": w, "b": b}


def _init_convT(key, cin, cout, k):
    kw, kb = jax.random.split(key)
    w = jax.random.normal(kw, (cin, cout, k, k), jnp.float32) / math.sqrt(cin)
    b = 0.01 * jax.random.normal(kb, (cout,), jnp.float32)
    return {"w": w, "b": b}


def _init_gn(c):
    return {"gamma": jnp.ones((c,), jnp.float32),
            "beta": jnp.zeros((c,), jnp.float32)}


def _init_resblock(key, cin, cout):
    k1, k2 = jax.random.split(key)
    return {"conv1": _init_conv3x3(k1, cin, cout), "gn1": _init_gn(cout),
            "conv2": _init_conv3x3(k2, cout, cout), "gn2": _init_gn(cout)}


def init_up2d_params(key, in_channels, out_channels, up):
    k1, k2, k3 = jax.random.split(key, 3)
    return {"convt": _init_convT(k1, in_channels, out_channels, up),
            "res1": _init_resblock(k2, out_channels, out_channels),
            "res2": _init_resblock(k3, out_channels, out_channels)}


# --------------------------------------------------------------------------
if __name__ == "__main__":
    B, C_IN, C_OUT, UP, H, W = 2, 16, 32, 2, 8, 8   # C_OUT divisible by 8 groups

    root = jax.random.PRNGKey(0)
    k_param, k_x = jax.random.split(root)
    params = init_up2d_params(k_param, C_IN, C_OUT, UP)
    x = jax.random.normal(k_x, (B, C_IN, H, W), jnp.float32)

    fwd = jax.jit(up2d_forward)
    y = fwd(params, x)
    jax.block_until_ready(y)

    assert y.shape == (B, C_OUT, H * UP, W * UP), y.shape
    assert y.dtype == jnp.float32
    assert bool(jnp.all(jnp.isfinite(y)))
    print("KERNEL_OK")
</pallas_src>

<mosaic_0001>
module attributes {stable_mosaic.version = 11 : i64} {
  func.func @_matmul_bias_kernel(%arg0: i32, %arg1: i32, %arg2: i32, %arg3: memref<128x16xbf16, #tpu.memory_space<vmem>>, %arg4: memref<16x128xbf16, #tpu.memory_space<vmem>>, %arg5: memref<1x128xf32, #tpu.memory_space<vmem>>, %arg6: memref<128x128xbf16, #tpu.memory_space<vmem>>, %arg7: memref<128x128xf32, #tpu.memory_space<vmem>>) attributes {dimension_semantics = [#tpu.dimension_semantics<parallel>, #tpu.dimension_semantics<parallel>, #tpu.dimension_semantics<arbitrary>], iteration_bounds = array<i64: 1, 1, 1>, scalar_prefetch = 0 : i64, scratch_operands = 1 : i64, tpu.core_type = #tpu.core_type<tc>, window_params = [{transform_indices = @transform_0, window_bounds = array<i64: 128, 16>}, {transform_indices = @transform_1, window_bounds = array<i64: 16, 128>}, {transform_indices = @transform_2, window_bounds = array<i64: 1, 128>}, {transform_indices = @transform_3, window_bounds = array<i64: 128, 128>}]} {
    %c0_i32 = arith.constant 0 : i32
    %0 = arith.cmpi eq, %arg2, %c0_i32 : i32
    %1 = arith.extui %0 : i1 to i32
    %c0_i32_0 = arith.constant 0 : i32
    %2 = arith.cmpi ne, %1, %c0_i32_0 : i32
    scf.if %2 {
      %c0_10 = arith.constant 0 : index
      %c0_11 = arith.constant 0 : index
      %12 = vector.load %arg5[%c0_10, %c0_11] : memref<1x128xf32, #tpu.memory_space<vmem>>, vector<1x128xf32>
      %13 = vector.shape_cast %12 : vector<1x128xf32> to vector<1x128xf32>
      %14 = vector.broadcast %13 : vector<1x128xf32> to vector<128x128xf32>
      %c0_12 = arith.constant 0 : index
      %c0_13 = arith.constant 0 : index
      %15 = vector.load %arg7[%c0_12, %c0_13] : memref<128x128xf32, #tpu.memory_space<vmem>>, vector<128x128xf32>
      tpu.vector_store %arg7[%c0_12, %c0_13], %14 {strides = array<i32>} : memref<128x128xf32, #tpu.memory_space<vmem>>, vector<128x128xf32>,
    } else {
    }
    %c0 = arith.constant 0 : index
    %c0_1 = arith.constant 0 : index
    %3 = vector.load %arg7[%c0, %c0_1] : memref<128x128xf32, #tpu.memory_space<vmem>>, vector<128x128xf32>
    %c0_2 = arith.constant 0 : index
    %c0_3 = arith.constant 0 : index
    %4 = vector.load %arg3[%c0_2, %c0_3] : memref<128x16xbf16, #tpu.memory_space<vmem>>, vector<128x16xbf16>
    %c0_4 = arith.constant 0 : index
    %c0_5 = arith.constant 0 : index
    %5 = vector.load %arg4[%c0_4, %c0_5] : memref<16x128xbf16, #tpu.memory_space<vmem>>, vector<16x128xbf16>
    %cst = arith.constant dense<0.000000e+00> : vector<128x128xf32>
    %6 = tpu.matmul %4, %5, %cst {dimension_numbers = #tpu.dot_dimension_numbers<[1], [0], [0], [1], [0, 0, 1, 1], [], []>} : vector<128x16xbf16>, vector<16x128xbf16>, vector<128x128xf32> -> vector<128x128xf32>
    %7 = arith.addf %3, %6 : vector<128x128xf32>
    %c0_6 = arith.constant 0 : index
    %c0_7 = arith.constant 0 : index
    %8 = vector.load %arg7[%c0_6, %c0_7] : memref<128x128xf32, #tpu.memory_space<vmem>>, vector<128x128xf32>
    tpu.vector_store %arg7[%c0_6, %c0_7], %7 {strides = array<i32>} : memref<128x128xf32, #tpu.memory_space<vmem>>, vector<128x128xf32>,
    %c0_i32_8 = arith.constant 0 : i32
    %9 = arith.cmpi eq, %arg2, %c0_i32_8 : i32
    %10 = arith.extui %9 : i1 to i32
    %c0_i32_9 = arith.constant 0 : i32
    %11 = arith.cmpi ne, %10, %c0_i32_9 : i32
    scf.if %11 {
      %c0_10 = arith.constant 0 : index
      %c0_11 = arith.constant 0 : index
      %12 = vector.load %arg7[%c0_10, %c0_11] : memref<128x128xf32, #tpu.memory_space<vmem>>, vector<128x128xf32>
      %13 = arith.truncf %12 : vector<128x128xf32> to vector<128x128xbf16>
      %c0_12 = arith.constant 0 : index
      %c0_13 = arith.constant 0 : index
      %14 = vector.load %arg6[%c0_12, %c0_13] : memref<128x128xbf16, #tpu.memory_space<vmem>>, vector<128x128xbf16>
      tpu.vector_store %arg6[%c0_12, %c0_13], %13 {strides = array<i32>} : memref<128x128xbf16, #tpu.memory_space<vmem>>, vector<128x128xbf16>,
    } else {
    }
    return
  }
  func.func @transform_0(%arg0: i32, %arg1: i32, %arg2: i32) -> (i32, i32) {
    %c0_i32 = arith.constant 0 : i32
    return %arg0, %arg2 : i32, i32
  }
  func.func @transform_1(%arg0: i32, %arg1: i32, %arg2: i32) -> (i32, i32) {
    %c0_i32 = arith.constant 0 : i32
    return %arg2, %arg1 : i32, i32
  }
  func.func @transform_2(%arg0: i32, %arg1: i32, %arg2: i32) -> (i32, i32) {
    %c0_i32 = arith.constant 0 : i32
    %c0_i32_0 = arith.constant 0 : i32
    return %c0_i32, %arg1 : i32, i32
  }
  func.func @transform_3(%arg0: i32, %arg1: i32, %arg2: i32) -> (i32, i32) {
    %c0_i32 = arith.constant 0 : i32
    return %arg0, %arg1 : i32, i32
  }
}

module attributes {stable_mosaic.version = 11 : i64} {
  func.func @_conv3x3_gn_gelu_kernel(%arg0: i32, %arg1: memref<1x16x16x32xbf16, #tpu.memory_space<vmem>>, %arg2: memref<288x32xbf16, #tpu.memory_space<vmem>>, %arg3: memref<1x32xf32, #tpu.memory_space<vmem>>, %arg4: memref<1x32xf32, #tpu.memory_space<vmem>>, %arg5: memref<1x32xf32, #tpu.memory_space<vmem>>, %arg6: memref<32x32xf32, #tpu.memory_space<vmem>>, %arg7: memref<1x256x32xbf16, #tpu.memory_space<vmem>>, %arg8: memref<18x18x32xbf16, #tpu.memory_space<vmem>>, %arg9: memref<16x16x288xbf16, #tpu.memory_space<vmem>>) attributes {dimension_semantics = [#tpu.dimension_semantics<parallel>], iteration_bounds = array<i64: 2>, scalar_prefetch = 0 : i64, scratch_operands = 2 : i64, tpu.core_type = #tpu.core_type<tc>, window_params = [{transform_indices = @transform_0, window_bounds = array<i64: 1, 16, 16, 32>}, {pipeline_mode = #tpu.pipeline_mode<synchronous>, transform_indices = @transform_1, window_bounds = array<i64: 288, 32>}, {pipeline_mode = #tpu.pipeline_mode<synchronous>, transform_indices = @transform_2, window_bounds = array<i64: 1, 32>}, {pipeline_mode = #tpu.pipeline_mode<synchronous>, transform_indices = @transform_3, window_bounds = array<i64: 1, 32>}, {pipeline_mode = #tpu.pipeline_mode<synchronous>, transform_indices = @transform_4, window_bounds = array<i64: 1, 32>}, {pipeline_mode = #tpu.pipeline_mode<synchronous>, transform_indices = @transform_5, window_bounds = array<i64: 32, 32>}, {transform_indices = @transform_6, window_bounds = array<i64: 1, 256, 32>}]} {
    %cst = arith.constant 0.000000e+00 : bf16
    %0 = vector.broadcast %cst : bf16 to vector<18x18x32xbf16>
    %c0 = arith.constant 0 : index
    %c0_0 = arith.constant 0 : index
    %c0_1 = arith.constant 0 : index
    %1 = vector.load %arg8[%c0, %c0_0, %c0_1] : memref<18x18x32xbf16, #tpu.memory_space<vmem>>, vector<18x18x32xbf16>
    tpu.vector_store %arg8[%c0, %c0_0, %c0_1], %0 {strides = array<i32>} : memref<18x18x32xbf16, #tpu.memory_space<vmem>>, vector<18x18x32xbf16>,
    %c0_2 = arith.constant 0 : index
    %c0_3 = arith.constant 0 : index
    %c0_4 = arith.constant 0 : index
    %c0_5 = arith.constant 0 : index
    %2 = vector.load %arg1[%c0_2, %c0_3, %c0_4, %c0_5] : memref<1x16x16x32xbf16, #tpu.memory_space<vmem>>, vector<1x16x16x32xbf16>
    %3 = vector.shape_cast %2 : vector<1x16x16x32xbf16> to vector<16x16x32xbf16>
    %c1 = arith.constant 1 : index
    %c1_6 = arith.constant 1 : index
    %c0_7 = arith.constant 0 : index
    %4 = vector.load %arg8[%c1, %c1_6, %c0_7] : memref<18x18x32xbf16, #tpu.memory_space<vmem>>, vector<16x16x32xbf16>
    tpu.vector_store %arg8[%c1, %c1_6, %c0_7], %3 {strides = array<i32>} : memref<18x18x32xbf16, #tpu.memory_space<vmem>>, vector<16x16x32xbf16>,
    %c0_8 = arith.constant 0 : index
    %c0_9 = arith.constant 0 : index
    %c0_10 = arith.constant 0 : index
    %5 = vector.load %arg8[%c0_8, %c0_9, %c0_10] : memref<18x18x32xbf16, #tpu.memory_space<vmem>>, vector<16x16x32xbf16>
    %c0_11 = arith.constant 0 : index
    %c0_12 = arith.constant 0 : index
    %c0_13 = arith.constant 0 : index
    %6 = vector.load %arg9[%c0_11, %c0_12, %c0_13] : memref<16x16x288xbf16, #tpu.memory_space<vmem>>, vector<16x16x32xbf16>
    tpu.vector_store %arg9[%c0_11, %c0_12, %c0_13], %5 {strides = array<i32>} : memref<16x16x288xbf16, #tpu.memory_space<vmem>>, vector<16x16x32xbf16>,
    %c0_14 = arith.constant 0 : index
    %c1_15 = arith.constant 1 : index
    %c0_16 = arith.constant 0 : index
    %7 = vector.load %arg8[%c0_14, %c1_15, %c0_16] : memref<18x18x32xbf16, #tpu.memory_space<vmem>>, vector<16x16x32xbf16>
    %c0_17 = arith.constant 0 : index
    %c0_18 = arith.constant 0 : index
    %c32 = arith.constant 32 : index
    %8 = vector.load %arg9[%c0_17, %c0_18, %c32] : memref<16x16x288xbf16, #tpu.memory_space<vmem>>, vector<16x16x32xbf16>
    tpu.vector_store %arg9[%c0_17, %c0_18, %c32], %7 {strides = array<i32>} : memref<16x16x288xbf16, #tpu.memory_space<vmem>>, vector<16x16x32xbf16>,
    %c0_19 = arith.constant 0 : index
    %c2 = arith.constant 2 : index
    %c0_20 = arith.constant 0 : index
    %9 = vector.load %arg8[%c0_19, %c2, %c0_20] : memref<18x18x32xbf16, #tpu.memory_space<vmem>>, vector<16x16x32xbf16>
    %c0_21 = arith.constant 0 : index
    %c0_22 = arith.constant 0 : index
    %c64 = arith.constant 64 : index
    %10 = vector.load %arg9[%c0_21, %c0_22, %c64] : memref<16x16x288xbf16, #tpu.memory_space<vmem>>, vector<16x16x32xbf16>
    tpu.vector_store %arg9[%c0_21, %c0_22, %c64], %9 {strides = array<i32>} : memref<16x16x288xbf16, #tpu.memory_space<vmem>>, vector<16x16x32xbf16>,
    %c1_23 = arith.constant 1 : index
    %c0_24 = arith.constant 0 : index
    %c0_25 = arith.constant 0 : index
    %11 = vector.load %arg8[%c1_23, %c0_24, %c0_25] : memref<18x18x32xbf16, #tpu.memory_space<vmem>>, vector<16x16x32xbf16>
    %c0_26 = arith.constant 0 : index
    %c0_27 = arith.constant 0 : index
    %c96 = arith.constant 96 : index
    %12 = vector.load %arg9[%c0_26, %c0_27, %c96] : memref<16x16x288xbf16, #tpu.memory_space<vmem>>, vector<16x16x32xbf16>
    tpu.vector_store %arg9[%c0_26, %c0_27, %c96], %11 {strides = array<i32>} : memref<16x16x288xbf16, #tpu.memory_space<vmem>>, vector<16x16x32xbf16>,
    %c1_28 = arith.constant 1 : index
    %c1_29 = arith.constant 1 : index
    %c0_30 = arith.constant 0 : index
    %13 = vector.load %arg8[%c1_28, %c1_29, %c0_30] : memref<18x18x32xbf16, #tpu.memory_space<vmem>>, vector<16x16x32xbf16>
    %c0_31 = arith.constant 0 : index
    %c0_32 = arith.constant 0 : index
    %c128 = arith.constant 128 : index
    %14 = vector.load %arg9[%c0_31, %c0_32, %c128] : memref<16x16x288xbf16, #tpu.memory_space<vmem>>, vector<16x16x32xbf16>
    tpu.vector_store %arg9[%c0_31, %c0_32, %c128], %13 {strides = array<i32>} : memref<16x16x288xbf16, #tpu.memory_space<vmem>>, vector<16x16x32xbf16>,
    %c1_33 = arith.constant 1 : index
    %c2_34 = arith.constant 2 : index
    %c0_35 = arith.constant 0 : index
    %15 = vector.load %arg8[%c1_33, %c2_34, %c0_35] : memref<18x18x32xbf16, #tpu.memory_space<vmem>>, vector<16x16x32xbf16>
    %c0_36 = arith.constant 0 : index
    %c0_37 = arith.constant 0 : index
    %c160 = arith.constant 160 : index
    %16 = vector.load %arg9[%c0_36, %c0_37, %c160] : memref<16x16x288xbf16, #tpu.memory_space<vmem>>, vector<16x16x32xbf16>
    tpu.vector_store %arg9[%c0_36, %c0_37, %c160], %15 {strides = array<i32>} : memref<16x16x288xbf16, #tpu.memory_space<vmem>>, vector<16x16x32xbf16>,
    %c2_38 = arith.constant 2 : index
    %c0_39 = arith.constant 0 : index
    %c0_40 = arith.constant 0 : index
    %17 = vector.load %arg8[%c2_38, %c0_39, %c0_40] : memref<18x18x32xbf16, #tpu.memory_space<vmem>>, vector<16x16x32xbf16>
    %c0_41 = arith.constant 0 : index
    %c0_42 = arith.constant 0 : index
    %c192 = arith.constant 192 : index
    %18 = vector.load %arg9[%c0_41, %c0_42, %c192] : memref<16x16x288xbf16, #tpu.memory_space<vmem>>, vector<16x16x32xbf16>
    tpu.vector_store %arg9[%c0_41, %c0_42, %c192], %17 {strides = array<i32>} : memref<16x16x288xbf16, #tpu.memory_space<vmem>>, vector<16x16x32xbf16>,
    %c2_43 = arith.constant 2 : index
    %c1_44 = arith.constant 1 : index
    %c0_45 = arith.constant 0 : index
    %19 = vector.load %arg8[%c2_43, %c1_44, %c0_45] : memref<18x18x32xbf16, #tpu.memory_space<vmem>>, vector<16x16x32xbf16>
    %c0_46 = arith.constant 0 : index
    %c0_47 = arith.constant 0 : index
    %c224 = arith.constant 224 : index
    %20 = vector.load %arg9[%c0_46, %c0_47, %c224] : memref<16x16x288xbf16, #tpu.memory_space<vmem>>, vector<16x16x32xbf16>
    tpu.vector_store %arg9[%c0_46, %c0_47, %c224], %19 {strides = array<i32>} : memref<16x16x288xbf16, #tpu.memory_space<vmem>>, vector<16x16x32xbf16>,
    %c2_48 = arith.constant 2 : index
    %c2_49 = arith.constant 2 : index
    %c0_50 = arith.constant 0 : index
    %21 = vector.load %arg8[%c2_48, %c2_49, %c0_50] : memref<18x18x32xbf16, #tpu.memory_space<vmem>>, vector<16x16x32xbf16>
    %c0_51 = arith.constant 0 : index
    %c0_52 = arith.constant 0 : index
    %c256 = arith.constant 256 : index
    %22 = vector.load %arg9[%c0_51, %c0_52, %c256] : memref<16x16x288xbf16, #tpu.memory_space<vmem>>, vector<16x16x32xbf16>
    tpu.vector_store %arg9[%c0_51, %c0_52, %c256], %21 {strides = array<i32>} : memref<16x16x288xbf16, #tpu.memory_space<vmem>>, vector<16x16x32xbf16>,
    %c0_53 = arith.constant 0 : index
    %c0_54 = arith.constant 0 : index
    %c0_55 = arith.constant 0 : index
    %23 = vector.load %arg9[%c0_53, %c0_54, %c0_55] : memref<16x16x288xbf16, #tpu.memory_space<vmem>>, vector<16x16x288xbf16>
    %24 = vector.shape_cast %23 : vector<16x16x288xbf16> to vector<256x288xbf16>
    %c0_56 = arith.constant 0 : index
    %c0_57 = arith.constant 0 : index
    %25 = vector.load %arg2[%c0_56, %c0_57] : memref<288x32xbf16, #tpu.memory_space<vmem>>, vector<288x32xbf16>
    %cst_58 = arith.constant dense<0.000000e+00> : vector<256x32xf32>
    %26 = tpu.matmul %24, %25, %cst_58 {dimension_numbers = #tpu.dot_dimension_numbers<[1], [0], [0], [1], [0, 0, 1, 1], [], []>} : vector<256x288xbf16>, vector<288x32xbf16>, vector<256x32xf32> -> vector<256x32xf32>
    %c0_59 = arith.constant 0 : index
    %c0_60 = arith.constant 0 : index
    %27 = vector.load %arg3[%c0_59, %c0_60] : memref<1x32xf32, #tpu.memory_space<vmem>>, vector<1x32xf32>
    %28 = vector.broadcast %27 : vector<1x32xf32> to vector<256x32xf32>
    %29 = arith.addf %26, %28 : vector<256x32xf32>
    %cst_61 = arith.constant dense<0.000000e+00> : vector<32xf32>
    %30 = vector.multi_reduction <add>, %29, %cst_61 [0] : vector<256x32xf32> to vector<32xf32>
    %31 = vector.shape_cast %30 : vector<32xf32> to vector<1x32xf32>
    %c0_62 = arith.constant 0 : index
    %c0_63 = arith.constant 0 : index
    %32 = vector.load %arg6[%c0_62, %c0_63] : memref<32x32xf32, #tpu.memory_space<vmem>>, vector<32x32xf32>
    %cst_64 = arith.constant dense<0.000000e+00> : vector<1x32xf32>
    %33 = tpu.matmul %31, %32, %cst_64 {dimension_numbers = #tpu.dot_dimension_numbers<[1], [0], [0], [1], [0, 0, 1, 1], [], []>} : vector<1x32xf32>, vector<32x32xf32>, vector<1x32xf32> -> vector<1x32xf32>
    %34 = vector.broadcast %33 : vector<1x32xf32> to vector<256x32xf32>
    %35 = arith.subf %29, %34 : vector<256x32xf32>
    %36 = arith.mulf %35, %35 : vector<256x32xf32>
    %cst_65 = arith.constant dense<0.000000e+00> : vector<32xf32>
    %37 = vector.multi_reduction <add>, %36, %cst_65 [0] : vector<256x32xf32> to vector<32xf32>
    %38 = vector.shape_cast %37 : vector<32xf32> to vector<1x32xf32>
    %c0_66 = arith.constant 0 : index
    %c0_67 = arith.constant 0 : index
    %39 = vector.load %arg6[%c0_66, %c0_67] : memref<32x32xf32, #tpu.memory_space<vmem>>, vector<32x32xf32>
    %cst_68 = arith.constant dense<0.000000e+00> : vector<1x32xf32>
    %40 = tpu.matmul %38, %39, %cst_68 {dimension_numbers = #tpu.dot_dimension_numbers<[1], [0], [0], [1], [0, 0, 1, 1], [], []>} : vector<1x32xf32>, vector<32x32xf32>, vector<1x32xf32> -> vector<1x32xf32>
    %cst_69 = arith.constant 9.99999974E-6 : f32
    %41 = vector.broadcast %cst_69 : f32 to vector<1x32xf32>
    %42 = arith.addf %40, %41 : vector<1x32xf32>
    %43 = math.rsqrt %42 : vector<1x32xf32>
    %c0_70 = arith.constant 0 : index
    %c0_71 = arith.constant 0 : index
    %44 = vector.load %arg4[%c0_70, %c0_71] : memref<1x32xf32, #tpu.memory_space<vmem>>, vector<1x32xf32>
    %45 = arith.mulf %43, %44 : vector<1x32xf32>
    %46 = vector.broadcast %45 : vector<1x32xf32> to vector<256x32xf32>
    %47 = arith.mulf %35, %46 : vector<256x32xf32>
    %c0_72 = arith.constant 0 : index
    %c0_73 = arith.constant 0 : index
    %48 = vector.load %arg5[%c0_72, %c0_73] : memref<1x32xf32, #tpu.memory_space<vmem>>, vector<1x32xf32>
    %49 = vector.broadcast %48 : vector<1x32xf32> to vector<256x32xf32>
    %50 = arith.addf %47, %49 : vector<256x32xf32>
    %cst_74 = arith.constant 5.000000e-01 : f32
    %51 = vector.broadcast %cst_74 : f32 to vector<256x32xf32>
    %52 = arith.mulf %51, %50 : vector<256x32xf32>
    %cst_75 = arith.constant 4.471500e-02 : f32
    %53 = vector.broadcast %cst_75 : f32 to vector<256x32xf32>
    %54 = arith.mulf %53, %50 : vector<256x32xf32>
    %55 = arith.mulf %54, %50 : vector<256x32xf32>
    %56 = arith.mulf %55, %50 : vector<256x32xf32>
    %57 = arith.addf %50, %56 : vector<256x32xf32>
    %cst_76 = arith.constant 0.797884583 : f32
    %58 = vector.broadcast %cst_76 : f32 to vector<256x32xf32>
    %59 = arith.mulf %58, %57 : vector<256x32xf32>
    %60 = math.tanh %59 : vector<256x32xf32>
    %cst_77 = arith.constant 1.000000e+00 : f32
    %61 = vector.broadcast %cst_77 : f32 to vector<256x32xf32>
    %62 = arith.addf %61, %60 : vector<256x32xf32>
    %63 = arith.mulf %52, %62 : vector<256x32xf32>
    %64 = arith.truncf %63 : vector<256x32xf32> to vector<256x32xbf16>
    %c0_78 = arith.constant 0 : index
    %c0_79 = arith.constant 0 : index
    %c0_80 = arith.constant 0 : index
    %65 = vector.load %arg7[%c0_78, %c0_79, %c0_80] : memref<1x256x32xbf16, #tpu.memory_space<vmem>>, vector<1x256x32xbf16>
    %66 = vector.shape_cast %65 : vector<1x256x32xbf16> to vector<256x32xbf16>
    %67 = vector.shape_cast %64 : vector<256x32xbf16> to vector<1x256x32xbf16>
    tpu.vector_store %arg7[%c0_78, %c0_79, %c0_80], %67 {strides = array<i32>} : memref<1x256x32xbf16, #tpu.memory_space<vmem>>, vector<1x256x32xbf16>,
    return
  }
  func.func @transform_0(%arg0: i32) -> (i32, i32, i32, i32) {
    %c0_i32 = arith.constant 0 : i32
    %c0_i32_0 = arith.constant 0 : i32
    %c0_i32_1 = arith.constant 0 : i32
    %c0_i32_2 = arith.constant 0 : i32
    return %arg0, %c0_i32, %c0_i32_0, %c0_i32_1 : i32, i32, i32, i32
  }
  func.func @transform_1(%arg0: i32) -> (i32, i32) {
    %c0_i32 = arith.constant 0 : i32
    %c0_i32_0 = arith.constant 0 : i32
    %c0_i32_1 = arith.constant 0 : i32
    return %c0_i32, %c0_i32_0 : i32, i32
  }
  func.func @transform_2(%arg0: i32) -> (i32, i32) {
    %c0_i32 = arith.constant 0 : i32
    %c0_i32_0 = arith.constant 0 : i32
    %c0_i32_1 = arith.constant 0 : i32
    return %c0_i32, %c0_i32_0 : i32, i32
  }
  func.func @transform_3(%arg0: i32) -> (i32, i32) {
    %c0_i32 = arith.constant 0 : i32
    %c0_i32_0 = arith.constant 0 : i32
    %c0_i32_1 = arith.constant 0 : i32
    return %c0_i32, %c0_i32_0 : i32, i32
  }
  func.func @transform_4(%arg0: i32) -> (i32, i32) {
    %c0_i32 = arith.constant 0 : i32
    %c0_i32_0 = arith.constant 0 : i32
    %c0_i32_1 = arith.constant 0 : i32
    return %c0_i32, %c0_i32_0 : i32, i32
  }
  func.func @transform_5(%arg0: i32) -> (i32, i32) {
    %c0_i32 = arith.constant 0 : i32
    %c0_i32_0 = arith.constant 0 : i32
    %c0_i32_1 = arith.constant 0 : i32
    return %c0_i32, %c0_i32_0 : i32, i32
  }
  func.func @transform_6(%arg0: i32) -> (i32, i32, i32) {
    %c0_i32 = arith.constant 0 : i32
    %c0_i32_0 = arith.constant 0 : i32
    %c0_i32_1 = arith.constant 0 : i32
    return %arg0, %c0_i32, %c0_i32_0 : i32, i32, i32
  }
}

module attributes {stable_mosaic.version = 11 : i64} {
  func.func @_conv3x3_gn_gelu_kernel(%arg0: i32, %arg1: memref<1x16x16x32xbf16, #tpu.memory_space<vmem>>, %arg2: memref<288x32xbf16, #tpu.memory_space<vmem>>, %arg3: memref<1x32xf32, #tpu.memory_space<vmem>>, %arg4: memref<1x32xf32, #tpu.memory_space<vmem>>, %arg5: memref<1x32xf32, #tpu.memory_space<vmem>>, %arg6: memref<32x32xf32, #tpu.memory_space<vmem>>, %arg7: memref<1x256x32xf32, #tpu.memory_space<vmem>>, %arg8: memref<18x18x32xbf16, #tpu.memory_space<vmem>>, %arg9: memref<16x16x288xbf16, #tpu.memory_space<vmem>>) attributes {dimension_semantics = [#tpu.dimension_semantics<parallel>], iteration_bounds = array<i64: 2>, scalar_prefetch = 0 : i64, scratch_operands = 2 : i64, tpu.core_type = #tpu.core_type<tc>, window_params = [{transform_indices = @transform_0, window_bounds = array<i64: 1, 16, 16, 32>}, {pipeline_mode = #tpu.pipeline_mode<synchronous>, transform_indices = @transform_1, window_bounds = array<i64: 288, 32>}, {pipeline_mode = #tpu.pipeline_mode<synchronous>, transform_indices = @transform_2, window_bounds = array<i64: 1, 32>}, {pipeline_mode = #tpu.pipeline_mode<synchronous>, transform_indices = @transform_3, window_bounds = array<i64: 1, 32>}, {pipeline_mode = #tpu.pipeline_mode<synchronous>, transform_indices = @transform_4, window_bounds = array<i64: 1, 32>}, {pipeline_mode = #tpu.pipeline_mode<synchronous>, transform_indices = @transform_5, window_bounds = array<i64: 32, 32>}, {transform_indices = @transform_6, window_bounds = array<i64: 1, 256, 32>}]} {
    %cst = arith.constant 0.000000e+00 : bf16
    %0 = vector.broadcast %cst : bf16 to vector<18x18x32xbf16>
    %c0 = arith.constant 0 : index
    %c0_0 = arith.constant 0 : index
    %c0_1 = arith.constant 0 : index
    %1 = vector.load %arg8[%c0, %c0_0, %c0_1] : memref<18x18x32xbf16, #tpu.memory_space<vmem>>, vector<18x18x32xbf16>
    tpu.vector_store %arg8[%c0, %c0_0, %c0_1], %0 {strides = array<i32>} : memref<18x18x32xbf16, #tpu.memory_space<vmem>>, vector<18x18x32xbf16>,
    %c0_2 = arith.constant 0 : index
    %c0_3 = arith.constant 0 : index
    %c0_4 = arith.constant 0 : index
    %c0_5 = arith.constant 0 : index
    %2 = vector.load %arg1[%c0_2, %c0_3, %c0_4, %c0_5] : memref<1x16x16x32xbf16, #tpu.memory_space<vmem>>, vector<1x16x16x32xbf16>
    %3 = vector.shape_cast %2 : vector<1x16x16x32xbf16> to vector<16x16x32xbf16>
    %c1 = arith.constant 1 : index
    %c1_6 = arith.constant 1 : index
    %c0_7 = arith.constant 0 : index
    %4 = vector.load %arg8[%c1, %c1_6, %c0_7] : memref<18x18x32xbf16, #tpu.memory_space<vmem>>, vector<16x16x32xbf16>
    tpu.vector_store %arg8[%c1, %c1_6, %c0_7], %3 {strides = array<i32>} : memref<18x18x32xbf16, #tpu.memory_space<vmem>>, vector<16x16x32xbf16>,
    %c0_8 = arith.constant 0 : index
    %c0_9 = arith.constant 0 : index
    %c0_10 = arith.constant 0 : index
    %5 = vector.load %arg8[%c0_8, %c0_9, %c0_10] : memref<18x18x32xbf16, #tpu.memory_space<vmem>>, vector<16x16x32xbf16>
    %c0_11 = arith.constant 0 : index
    %c0_12 = arith.constant 0 : index
    %c0_13 = arith.constant 0 : index
    %6 = vector.load %arg9[%c0_11, %c0_12, %c0_13] : memref<16x16x288xbf16, #tpu.memory_space<vmem>>, vector<16x16x32xbf16>
    tpu.vector_store %arg9[%c0_11, %c0_12, %c0_13], %5 {strides = array<i32>} : memref<16x16x288xbf16, #tpu.memory_space<vmem>>, vector<16x16x32xbf16>,
    %c0_14 = arith.constant 0 : index
    %c1_15 = arith.constant 1 : index
    %c0_16 = arith.constant 0 : index
    %7 = vector.load %arg8[%c0_14, %c1_15, %c0_16] : memref<18x18x32xbf16, #tpu.memory_space<vmem>>, vector<16x16x32xbf16>
    %c0_17 = arith.constant 0 : index
    %c0_18 = arith.constant 0 : index
    %c32 = arith.constant 32 : index
    %8 = vector.load %arg9[%c0_17, %c0_18, %c32] : memref<16x16x288xbf16, #tpu.memory_space<vmem>>, vector<16x16x32xbf16>
    tpu.vector_store %arg9[%c0_17, %c0_18, %c32], %7 {strides = array<i32>} : memref<16x16x288xbf16, #tpu.memory_space<vmem>>, vector<16x16x32xbf16>,
    %c0_19 = arith.constant 0 : index
    %c2 = arith.constant 2 : index
    %c0_20 = arith.constant 0 : index
    %9 = vector.load %arg8[%c0_19, %c2, %c0_20] : memref<18x18x32xbf16, #tpu.memory_space<vmem>>, vector<16x16x32xbf16>
    %c0_21 = arith.constant 0 : index
    %c0_22 = arith.constant 0 : index
    %c64 = arith.constant 64 : index
    %10 = vector.load %arg9[%c0_21, %c0_22, %c64] : memref<16x16x288xbf16, #tpu.memory_space<vmem>>, vector<16x16x32xbf16>
    tpu.vector_store %arg9[%c0_21, %c0_22, %c64], %9 {strides = array<i32>} : memref<16x16x288xbf16, #tpu.memory_space<vmem>>, vector<16x16x32xbf16>,
    %c1_23 = arith.constant 1 : index
    %c0_24 = arith.constant 0 : index
    %c0_25 = arith.constant 0 : index
    %11 = vector.load %arg8[%c1_23, %c0_24, %c0_25] : memref<18x18x32xbf16, #tpu.memory_space<vmem>>, vector<16x16x32xbf16>
    %c0_26 = arith.constant 0 : index
    %c0_27 = arith.constant 0 : index
    %c96 = arith.constant 96 : index
    %12 = vector.load %arg9[%c0_26, %c0_27, %c96] : memref<16x16x288xbf16, #tpu.memory_space<vmem>>, vector<16x16x32xbf16>
    tpu.vector_store %arg9[%c0_26, %c0_27, %c96], %11 {strides = array<i32>} : memref<16x16x288xbf16, #tpu.memory_space<vmem>>, vector<16x16x32xbf16>,
    %c1_28 = arith.constant 1 : index
    %c1_29 = arith.constant 1 : index
    %c0_30 = arith.constant 0 : index
    %13 = vector.load %arg8[%c1_28, %c1_29, %c0_30] : memref<18x18x32xbf16, #tpu.memory_space<vmem>>, vector<16x16x32xbf16>
    %c0_31 = arith.constant 0 : index
    %c0_32 = arith.constant 0 : index
    %c128 = arith.constant 128 : index
    %14 = vector.load %arg9[%c0_31, %c0_32, %c128] : memref<16x16x288xbf16, #tpu.memory_space<vmem>>, vector<16x16x32xbf16>
    tpu.vector_store %arg9[%c0_31, %c0_32, %c128], %13 {strides = array<i32>} : memref<16x16x288xbf16, #tpu.memory_space<vmem>>, vector<16x16x32xbf16>,
    %c1_33 = arith.constant 1 : index
    %c2_34 = arith.constant 2 : index
    %c0_35 = arith.constant 0 : index
    %15 = vector.load %arg8[%c1_33, %c2_34, %c0_35] : memref<18x18x32xbf16, #tpu.memory_space<vmem>>, vector<16x16x32xbf16>
    %c0_36 = arith.constant 0 : index
    %c0_37 = arith.constant 0 : index
    %c160 = arith.constant 160 : index
    %16 = vector.load %arg9[%c0_36, %c0_37, %c160] : memref<16x16x288xbf16, #tpu.memory_space<vmem>>, vector<16x16x32xbf16>
    tpu.vector_store %arg9[%c0_36, %c0_37, %c160], %15 {strides = array<i32>} : memref<16x16x288xbf16, #tpu.memory_space<vmem>>, vector<16x16x32xbf16>,
    %c2_38 = arith.constant 2 : index
    %c0_39 = arith.constant 0 : index
    %c0_40 = arith.constant 0 : index
    %17 = vector.load %arg8[%c2_38, %c0_39, %c0_40] : memref<18x18x32xbf16, #tpu.memory_space<vmem>>, vector<16x16x32xbf16>
    %c0_41 = arith.constant 0 : index
    %c0_42 = arith.constant 0 : index
    %c192 = arith.constant 192 : index
    %18 = vector.load %arg9[%c0_41, %c0_42, %c192] : memref<16x16x288xbf16, #tpu.memory_space<vmem>>, vector<16x16x32xbf16>
    tpu.vector_store %arg9[%c0_41, %c0_42, %c192], %17 {strides = array<i32>} : memref<16x16x288xbf16, #tpu.memory_space<vmem>>, vector<16x16x32xbf16>,
    %c2_43 = arith.constant 2 : index
    %c1_44 = arith.constant 1 : index
    %c0_45 = arith.constant 0 : index
    %19 = vector.load %arg8[%c2_43, %c1_44, %c0_45] : memref<18x18x32xbf16, #tpu.memory_space<vmem>>, vector<16x16x32xbf16>
    %c0_46 = arith.constant 0 : index
    %c0_47 = arith.constant 0 : index
    %c224 = arith.constant 224 : index
    %20 = vector.load %arg9[%c0_46, %c0_47, %c224] : memref<16x16x288xbf16, #tpu.memory_space<vmem>>, vector<16x16x32xbf16>
    tpu.vector_store %arg9[%c0_46, %c0_47, %c224], %19 {strides = array<i32>} : memref<16x16x288xbf16, #tpu.memory_space<vmem>>, vector<16x16x32xbf16>,
    %c2_48 = arith.constant 2 : index
    %c2_49 = arith.constant 2 : index
    %c0_50 = arith.constant 0 : index
    %21 = vector.load %arg8[%c2_48, %c2_49, %c0_50] : memref<18x18x32xbf16, #tpu.memory_space<vmem>>, vector<16x16x32xbf16>
    %c0_51 = arith.constant 0 : index
    %c0_52 = arith.constant 0 : index
    %c256 = arith.constant 256 : index
    %22 = vector.load %arg9[%c0_51, %c0_52, %c256] : memref<16x16x288xbf16, #tpu.memory_space<vmem>>, vector<16x16x32xbf16>
    tpu.vector_store %arg9[%c0_51, %c0_52, %c256], %21 {strides = array<i32>} : memref<16x16x288xbf16, #tpu.memory_space<vmem>>, vector<16x16x32xbf16>,
    %c0_53 = arith.constant 0 : index
    %c0_54 = arith.constant 0 : index
    %c0_55 = arith.constant 0 : index
    %23 = vector.load %arg9[%c0_53, %c0_54, %c0_55] : memref<16x16x288xbf16, #tpu.memory_space<vmem>>, vector<16x16x288xbf16>
    %24 = vector.shape_cast %23 : vector<16x16x288xbf16> to vector<256x288xbf16>
    %c0_56 = arith.constant 0 : index
    %c0_57 = arith.constant 0 : index
    %25 = vector.load %arg2[%c0_56, %c0_57] : memref<288x32xbf16, #tpu.memory_space<vmem>>, vector<288x32xbf16>
    %cst_58 = arith.constant dense<0.000000e+00> : vector<256x32xf32>
    %26 = tpu.matmul %24, %25, %cst_58 {dimension_numbers = #tpu.dot_dimension_numbers<[1], [0], [0], [1], [0, 0, 1, 1], [], []>} : vector<256x288xbf16>, vector<288x32xbf16>, vector<256x32xf32> -> vector<256x32xf32>
    %c0_59 = arith.constant 0 : index
    %c0_60 = arith.constant 0 : index
    %27 = vector.load %arg3[%c0_59, %c0_60] : memref<1x32xf32, #tpu.memory_space<vmem>>, vector<1x32xf32>
    %28 = vector.broadcast %27 : vector<1x32xf32> to vector<256x32xf32>
    %29 = arith.addf %26, %28 : vector<256x32xf32>
    %cst_61 = arith.constant dense<0.000000e+00> : vector<32xf32>
    %30 = vector.multi_reduction <add>, %29, %cst_61 [0] : vector<256x32xf32> to vector<32xf32>
    %31 = vector.shape_cast %30 : vector<32xf32> to vector<1x32xf32>
    %c0_62 = arith.constant 0 : index
    %c0_63 = arith.constant 0 : index
    %32 = vector.load %arg6[%c0_62, %c0_63] : memref<32x32xf32, #tpu.memory_space<vmem>>, vector<32x32xf32>
    %cst_64 = arith.constant dense<0.000000e+00> : vector<1x32xf32>
    %33 = tpu.matmul %31, %32, %cst_64 {dimension_numbers = #tpu.dot_dimension_numbers<[1], [0], [0], [1], [0, 0, 1, 1], [], []>} : vector<1x32xf32>, vector<32x32xf32>, vector<1x32xf32> -> vector<1x32xf32>
    %34 = vector.broadcast %33 : vector<1x32xf32> to vector<256x32xf32>
    %35 = arith.subf %29, %34 : vector<256x32xf32>
    %36 = arith.mulf %35, %35 : vector<256x32xf32>
    %cst_65 = arith.constant dense<0.000000e+00> : vector<32xf32>
    %37 = vector.multi_reduction <add>, %36, %cst_65 [0] : vector<256x32xf32> to vector<32xf32>
    %38 = vector.shape_cast %37 : vector<32xf32> to vector<1x32xf32>
    %c0_66 = arith.constant 0 : index
    %c0_67 = arith.constant 0 : index
    %39 = vector.load %arg6[%c0_66, %c0_67] : memref<32x32xf32, #tpu.memory_space<vmem>>, vector<32x32xf32>
    %cst_68 = arith.constant dense<0.000000e+00> : vector<1x32xf32>
    %40 = tpu.matmul %38, %39, %cst_68 {dimension_numbers = #tpu.dot_dimension_numbers<[1], [0], [0], [1], [0, 0, 1, 1], [], []>} : vector<1x32xf32>, vector<32x32xf32>, vector<1x32xf32> -> vector<1x32xf32>
    %cst_69 = arith.constant 9.99999974E-6 : f32
    %41 = vector.broadcast %cst_69 : f32 to vector<1x32xf32>
    %42 = arith.addf %40, %41 : vector<1x32xf32>
    %43 = math.rsqrt %42 : vector<1x32xf32>
    %c0_70 = arith.constant 0 : index
    %c0_71 = arith.constant 0 : index
    %44 = vector.load %arg4[%c0_70, %c0_71] : memref<1x32xf32, #tpu.memory_space<vmem>>, vector<1x32xf32>
    %45 = arith.mulf %43, %44 : vector<1x32xf32>
    %46 = vector.broadcast %45 : vector<1x32xf32> to vector<256x32xf32>
    %47 = arith.mulf %35, %46 : vector<256x32xf32>
    %c0_72 = arith.constant 0 : index
    %c0_73 = arith.constant 0 : index
    %48 = vector.load %arg5[%c0_72, %c0_73] : memref<1x32xf32, #tpu.memory_space<vmem>>, vector<1x32xf32>
    %49 = vector.broadcast %48 : vector<1x32xf32> to vector<256x32xf32>
    %50 = arith.addf %47, %49 : vector<256x32xf32>
    %cst_74 = arith.constant 5.000000e-01 : f32
    %51 = vector.broadcast %cst_74 : f32 to vector<256x32xf32>
    %52 = arith.mulf %51, %50 : vector<256x32xf32>
    %cst_75 = arith.constant 4.471500e-02 : f32
    %53 = vector.broadcast %cst_75 : f32 to vector<256x32xf32>
    %54 = arith.mulf %53, %50 : vector<256x32xf32>
    %55 = arith.mulf %54, %50 : vector<256x32xf32>
    %56 = arith.mulf %55, %50 : vector<256x32xf32>
    %57 = arith.addf %50, %56 : vector<256x32xf32>
    %cst_76 = arith.constant 0.797884583 : f32
    %58 = vector.broadcast %cst_76 : f32 to vector<256x32xf32>
    %59 = arith.mulf %58, %57 : vector<256x32xf32>
    %60 = math.tanh %59 : vector<256x32xf32>
    %cst_77 = arith.constant 1.000000e+00 : f32
    %61 = vector.broadcast %cst_77 : f32 to vector<256x32xf32>
    %62 = arith.addf %61, %60 : vector<256x32xf32>
    %63 = arith.mulf %52, %62 : vector<256x32xf32>
    %c0_78 = arith.constant 0 : index
    %c0_79 = arith.constant 0 : index
    %c0_80 = arith.constant 0 : index
    %64 = vector.load %arg7[%c0_78, %c0_79, %c0_80] : memref<1x256x32xf32, #tpu.memory_space<vmem>>, vector<1x256x32xf32>
    %65 = vector.shape_cast %64 : vector<1x256x32xf32> to vector<256x32xf32>
    %66 = vector.shape_cast %63 : vector<256x32xf32> to vector<1x256x32xf32>
    tpu.vector_store %arg7[%c0_78, %c0_79, %c0_80], %66 {strides = array<i32>} : memref<1x256x32xf32, #tpu.memory_space<vmem>>, vector<1x256x32xf32>,
    return
  }
  func.func @transform_0(%arg0: i32) -> (i32, i32, i32, i32) {
    %c0_i32 = arith.constant 0 : i32
    %c0_i32_0 = arith.constant 0 : i32
    %c0_i32_1 = arith.constant 0 : i32
    %c0_i32_2 = arith.constant 0 : i32
    return %arg0, %c0_i32, %c0_i32_0, %c0_i32_1 : i32, i32, i32, i32
  }
  func.func @transform_1(%arg0: i32) -> (i32, i32) {
    %c0_i32 = arith.constant 0 : i32
    %c0_i32_0 = arith.constant 0 : i32
    %c0_i32_1 = arith.constant 0 : i32
    return %c0_i32, %c0_i32_0 : i32, i32
  }
  func.func @transform_2(%arg0: i32) -> (i32, i32) {
    %c0_i32 = arith.constant 0 : i32
    %c0_i32_0 = arith.constant 0 : i32
    %c0_i32_1 = arith.constant 0 : i32
    return %c0_i32, %c0_i32_0 : i32, i32
  }
  func.func @transform_3(%arg0: i32) -> (i32, i32) {
    %c0_i32 = arith.constant 0 : i32
    %c0_i32_0 = arith.constant 0 : i32
    %c0_i32_1 = arith.constant 0 : i32
    return %c0_i32, %c0_i32_0 : i32, i32
  }
  func.func @transform_4(%arg0: i32) -> (i32, i32) {
    %c0_i32 = arith.constant 0 : i32
    %c0_i32_0 = arith.constant 0 : i32
    %c0_i32_1 = arith.constant 0 : i32
    return %c0_i32, %c0_i32_0 : i32, i32
  }
  func.func @transform_5(%arg0: i32) -> (i32, i32) {
    %c0_i32 = arith.constant 0 : i32
    %c0_i32_0 = arith.constant 0 : i32
    %c0_i32_1 = arith.constant 0 : i32
    return %c0_i32, %c0_i32_0 : i32, i32
  }
  func.func @transform_6(%arg0: i32) -> (i32, i32, i32) {
    %c0_i32 = arith.constant 0 : i32
    %c0_i32_0 = arith.constant 0 : i32
    %c0_i32_1 = arith.constant 0 : i32
    return %arg0, %c0_i32, %c0_i32_0 : i32, i32, i32
  }
}

</mosaic_0001>

<bundles_post_ra>
// kernel: tile.8
= control target key start
LH: loop header
LB: loop body
LE: loop exit
PB: predicated region body
PF: predicated region fallthrough
CT: control target
= control target key end

     0   :  { %s22_s0 = inlined_call_operand.vmem [shape: f32[32], index: 0, kind: input, shape index: {}]   ;;  %s23_s1 = inlined_call_operand.vmem [shape: f32[4,32], index: 1, kind: output, shape index: {}]  }
   0x1   :  { %v4_v0 = vld [vmem:[%s22_s0] ss:$0 sm:$0xff] }
   0x2   :  { %5 = vst [vmem:[%s23_s1] sm:$0xf] %v4_v0 }

// kernel: up2d_forward.5
= control target key start
LH: loop header
LB: loop body
LE: loop exit
PB: predicated region body
PF: predicated region fallthrough
CT: control target
= control target key end

     0   :  { %vm122_vm0 = vcmask 130048   ;;  %s596_s1 = inlined_call_operand.vmem [shape: bf16[16,128], index: 1, kind: input, shape index: {}]   ;;  %s597_s0 = inlined_call_operand.vmem [shape: bf16[128,16], index: 0, kind: input, shape index: {}]   ;;  %s598_s2 = inlined_call_operand.vmem [shape: f32[1,128], index: 2, kind: input, shape index: {}]   ;;  %s599_s3 = inlined_call_operand.vmem [shape: bf16[128,128], index: 3, kind: output, shape index: {}]  }
   0x1   :  { %v505_v0 = vld [vmem:[%s596_s1] sm:$0xff]   ;;  %v508_v3 = vld [vmem:[%s597_s0 + $0x8] sm:$0xff]   ;;  %v510_v5 = vld [vmem:[%s597_s0 + $0x10] sm:$0xff]  }
   0x2   :  { %v506_v1 = vld [vmem:[%s597_s0] sm:$0xff]   ;;  %485 = vmatprep.subr.bf16.mxu0 %v505_v0  ;;  %503 = vmatprep.subr.bf16.mxu1 %v505_v0  ;;  %v509_v4 = vld [vmem:[%s597_s0 + $0x28] sm:$0xff]   ;;  %v511_v6 = vld [vmem:[%s597_s0 + $0x30] sm:$0xff]  }
   0x3   :  { %v507_v2 = vld [vmem:[%s597_s0 + $0x20] sm:$0xff]   ;;  %486 = vmatpush3.bf16.msra.mxu0 %v505_v0  ;;  %504 = vmatpush3.bf16.msra.mxu1 %v505_v0  ;;  %v512_v7 = vld [vmem:[%s597_s0 + $0x18] sm:$0xff]  }
   0x4   :  { %487 = vmatprep.mubr.msk.bf16.mxu0 %vm122_vm0, %v506_v1  ;;  %495 = vmatprep.mubr.msk.bf16.mxu1 %vm122_vm0, %v507_v2  ;;  %v513_v8 = vld [vmem:[%s597_s0 + $0x38] sm:$0xff]   ;;  %v379_v9 = vld [vmem:[%s598_s2] ss:$0 sm:$0xff] }
   0x6   :  { %488 = vmatmul.mubr.msk.bf16.vlgmr.msra.gmra.mrb[0].mxu0 %vm122_vm0, %v508_v3  ;;  %496 = vmatmul.mubr.msk.bf16.vlgmr.msra.gmra.mrb[0].mxu1 %vm122_vm0, %v509_v4 }
   0x7   :  { %491 = vmatprep.mubr.msk.bf16.mxu0 %vm122_vm0, %v510_v5  ;;  %499 = vmatprep.mubr.msk.bf16.mxu1 %vm122_vm0, %v511_v6 }
   0xe   :  { %492 = vmatmul.mubr.msk.bf16.gmra.mrb[4].mxu0 %vm122_vm0, %v512_v7  ;;  %500 = vmatmul.mubr.msk.bf16.gmra.mrb[4].mxu1 %vm122_vm0, %v513_v8 }
  0xd9   :  { %v489_v10 = vpop.f32.mrb[0].mxu0  ;;  %v497_v11 = vpop.f32.mrb[0].mxu1 }
  0xda   :  { %v181_v12 = vpop.f32.mrb[1].mxu0  ;;  %v213_v13 = vpop.f32.mrb[1].mxu1  ;;  %v246_v16 = vadd.f32 %v489_v10, %v379_v9  ;;  %v254_v17 = vadd.f32 %v497_v11, %v379_v9 }
  0xdb   :  { %v490_v14 = vpop.f32.mrb[2].mxu0  ;;  %v498_v15 = vpop.f32.mrb[2].mxu1  ;;  %v244_v22 = vadd.f32 %v379_v9, %v181_v12  ;;  %v252_v23 = vadd.f32 %v379_v9, %v213_v13 }
  0xdc   :  { %v247_v18 = vadd.f32 %v490_v14, %v379_v9  ;;  %v255_v19 = vadd.f32 %v498_v15, %v379_v9  ;;  %v184_v20 = vpop.f32.mrb[3].mxu0  ;;  %v216_v21 = vpop.f32.mrb[3].mxu1 }
  0xdd   :  { %v245_v24 = vadd.f32 %v379_v9, %v184_v20  ;;  %v253_v25 = vadd.f32 %v379_v9, %v216_v21 }
  0xde   :  { %v437_v26 = vpack.c.bf16 %v247_v18, %v246_v16  ;;  %v457_v27 = vpack.c.bf16 %v255_v19, %v254_v17 }
  0xdf   :  { %v432_v28 = vpack.c.bf16 %v245_v24, %v244_v22  ;;  %v452_v29 = vpack.c.bf16 %v253_v25, %v252_v23 }
  0xe0   :  { %469 = vst [vmem:[%s599_s3 + $0x8] sm:$0xff] %v437_v26   ;;  %473 = vst [vmem:[%s599_s3 + $0x28] sm:$0xff] %v457_v27  }
  0xe1   :  { %433 = vst [vmem:[%s599_s3] sm:$0xff] %v432_v28   ;;  %472 = vst [vmem:[%s599_s3 + $0x20] sm:$0xff] %v452_v29   ;;  %v493_v30 = vpop.f32.mrb[4].mxu0  ;;  %v501_v31 = vpop.f32.mrb[4].mxu1 }
  0xe2   :  { %v197_v32 = vpop.f32.mrb[5].mxu0  ;;  %v229_v33 = vpop.f32.mrb[5].mxu1  ;;  %v250_v36 = vadd.f32 %v493_v30, %v379_v9  ;;  %v258_v37 = vadd.f32 %v501_v31, %v379_v9 }
  0xe3   :  { %v494_v34 = vpop.f32.mrb[6].mxu0  ;;  %v502_v35 = vpop.f32.mrb[6].mxu1  ;;  %v248_v42 = vadd.f32 %v379_v9, %v197_v32  ;;  %v256_v43 = vadd.f32 %v379_v9, %v229_v33 }
  0xe4   :  { %v251_v38 = vadd.f32 %v494_v34, %v379_v9  ;;  %v259_v39 = vadd.f32 %v502_v35, %v379_v9  ;;  %v200_v40 = vpop.f32.mrb[7].mxu0  ;;  %v232_v41 = vpop.f32.mrb[7].mxu1 }
  0xe5   :  { %v249_v44 = vadd.f32 %v379_v9, %v200_v40  ;;  %v257_v45 = vadd.f32 %v379_v9, %v232_v41 }
  0xe6   :  { %v447_v46 = vpack.c.bf16 %v251_v38, %v250_v36  ;;  %v467_v47 = vpack.c.bf16 %v259_v39, %v258_v37 }
  0xe7   :  { %v442_v48 = vpack.c.bf16 %v249_v44, %v248_v42  ;;  %v462_v49 = vpack.c.bf16 %v257_v45, %v256_v43 }
  0xe8   :  { %471 = vst [vmem:[%s599_s3 + $0x18] sm:$0xff] %v447_v46   ;;  %475 = vst [vmem:[%s599_s3 + $0x38] sm:$0xff] %v467_v47  }
  0xe9   :  { %470 = vst [vmem:[%s599_s3 + $0x10] sm:$0xff] %v442_v48   ;;  %474 = vst [vmem:[%s599_s3 + $0x30] sm:$0xff] %v462_v49  }

// kernel: up2d_forward.6
= control target key start
LH: loop header
LB: loop body
LE: loop exit
PB: predicated region body
PF: predicated region fallthrough
CT: control target
= control target key end

     0   :  { %s5857_s21 = smov 0   ;;  %s7644_s0 = inlined_call_operand.vmem [shape: bf16[2,16,16,32], index: 0, kind: input, shape index: {}]   ;;  %s7645_s1 = inlined_call_operand.vmem [shape: bf16[288,32], index: 1, kind: input, shape index: {}]   ;;  %s7646_s2 = inlined_call_operand.vmem [shape: f32[1,32], index: 2, kind: input, shape index: {}]   ;;  %s7647_s3 = inlined_call_operand.vmem [shape: f32[1,32], index: 3, kind: input, shape index: {}]   ;;  %s7648_s4 = inlined_call_operand.vmem [shape: f32[1,32], index: 4, kind: input, shape index: {}]   ;;  %s7649_s5 = inlined_call_operand.vmem [shape: f32[32,32], index: 5, kind: input, shape index: {}]   ;;  %s7650_s6 = inlined_call_operand.vmem [shape: bf16[2,256,32], index: 6, kind: output, shape index: {}]  }
   0x1 LB: > { %s4887_s22 = sadd.s32 4294967295, %s5813_s21   ;;  %p4891_p0 = scmp.ge.s32.totalorder %s5813_s21, 1  ;;  %s5813_s21 = sphi %s5857_s21, %s16_s21  }
   0x2   : > { %p212_p1 = scmp.lt.s32.totalorder %s5813_s21, 3 }
   0x4   : > { %p213_p2 = pnand %p4891_p0, %p212_p1 }
   0x6   : > { %216 = sbr.rel (%p213_p2) target bundleno = 1262 (0x4ee), region = 44 }
   0xd   : > { %vm253_vm0 = vcmask 257024   ;;  %vm256_vm1 = vcmask 253952   ;;  %v5815_v0 = vmov 0   ;;  %p242_p3 = scmp.lt.s32.totalorder %s4887_s22, 1  ;;  %vm1537_vm2 = vcmask 1046528   ;;  %s5816_s27 = smov 64  }
   0xe   : > { %254 = vst.msk [vmem:[#allocation2] sm:$0xf] %vm253_vm0, %v5815_v0  ;;  %255 = vst.msk [vmem:[#allocation2 + $0x4] sm:$0xf] %vm253_vm0, %v5815_v0  ;;  %vm341_vm3 = vsmask.f32 256 }
   0xf   : > { %257 = vst.msk [vmem:[#allocation2 + $0x8] sm:$0x1] %vm256_vm1, %v5815_v0  ;;  %260 = vst.msk [vmem:[#allocation2 + $0x14] sm:$0x1] %vm256_vm1, %v5815_v0  ;;  %s7817_s22 = smov (!%p242_p3, %s4887_s22), 1  ;;  %s5817_s28 = smov 32  }
  0x10   : > { %258 = vst.msk [vmem:[#allocation2 + $0xc] sm:$0xf] %vm253_vm0, %v5815_v0  ;;  %259 = vst.msk [vmem:[#allocation2 + $0x10] sm:$0xf] %vm253_vm0, %v5815_v0  ;;  %vm342_vm4 = vsmask.f32 4368 }
  0x11   : > { %261 = vst.msk [vmem:[#allocation2 + $0x18] sm:$0xf] %vm253_vm0, %v5815_v0  ;;  %262 = vst.msk [vmem:[#allocation2 + $0x1c] sm:$0xf] %vm253_vm0, %v5815_v0  ;;  %s5208_s23 = sshll.u32 %s7817_s22, 7  ;;  %s5818_s29 = smov 96  }
  0x12   : > { %263 = vst.msk [vmem:[#allocation2 + $0x20] sm:$0x1] %vm256_vm1, %v5815_v0  ;;  %266 = vst.msk [vmem:[#allocation2 + $0x2c] sm:$0x1] %vm256_vm1, %v5815_v0  ;;  %s5931_s26 = scalar_lea.vmem %s7644_s0, %s5208_s23  ;;  %vm1103_vm5 = vsmask.f32 7424  ;;  %s7531_s20 = scalar_lea.vmem %s7650_s6, %s5208_s23 }
  0x13   : > { %264 = vst.msk [vmem:[#allocation2 + $0x24] sm:$0xf] %vm253_vm0, %v5815_v0  ;;  %265 = vst.msk [vmem:[#allocation2 + $0x28] sm:$0xf] %vm253_vm0, %v5815_v0  ;;  %v313_v1 = vld [vmem:[%s5931_s26 + $0x10] sm:$0xf] }
  0x14   : > { %267 = vst.msk [vmem:[#allocation2 + $0x30] sm:$0xf] %vm253_vm0, %v5815_v0  ;;  %268 = vst.msk [vmem:[#allocation2 + $0x34] sm:$0xf] %vm253_vm0, %v5815_v0  ;;  %v314_v2 = vld [vmem:[%s5931_s26 + $0x14] sm:$0xf] }
  0x15   : > { %269 = vst.msk [vmem:[#allocation2 + $0x38] sm:$0x1] %vm256_vm1, %v5815_v0  ;;  %272 = vst.msk [vmem:[#allocation2 + $0x44] sm:$0x1] %vm256_vm1, %v5815_v0  ;;  %vm666_vm6 = vsmask.f32 7938 }
  0x16   : > { %270 = vst.msk [vmem:[#allocation2 + $0x3c] sm:$0xf] %vm253_vm0, %v5815_v0  ;;  %271 = vst.msk [vmem:[#allocation2 + $0x40] sm:$0xf] %vm253_vm0, %v5815_v0  ;;  %v311_v3 = vld [vmem:[%s5931_s26 + $0x8] sm:$0xf] }
  0x17   : > { %273 = vst.msk [vmem:[#allocation2 + $0x48] sm:$0xf] %vm253_vm0, %v5815_v0  ;;  %274 = vst.msk [vmem:[#allocation2 + $0x4c] sm:$0xf] %vm253_vm0, %v5815_v0  ;;  %v5483_v4 = vld [vmem:[#allocation2] sm:$0xfe]  }
  0x18   : > { %275 = vst.msk [vmem:[#allocation2 + $0x50] sm:$0x1] %vm256_vm1, %v5815_v0  ;;  %278 = vst.msk [vmem:[#allocation2 + $0x5c] sm:$0x1] %vm256_vm1, %v5815_v0  ;;  %v5485_v6 = vld [vmem:[#allocation2] sm:$0xff]   ;;  %v1538_v7 = vrot.slane %v5483_v4, 1 }
  0x19   : > { %276 = vst.msk [vmem:[#allocation2 + $0x54] sm:$0xf] %vm253_vm0, %v5815_v0  ;;  %277 = vst.msk [vmem:[#allocation2 + $0x58] sm:$0xf] %vm253_vm0, %v5815_v0  ;;  %v1105_v10 = vshrl.u32 %v5485_v6, 16  ;;  %v1107_v11 = vshll.u32 %v5485_v6, 16 }
  0x1a   : > { %279 = vst.msk [vmem:[#allocation2 + $0x60] sm:$0xf] %vm253_vm0, %v5815_v0  ;;  %280 = vst.msk [vmem:[#allocation2 + $0x64] sm:$0xf] %vm253_vm0, %v5815_v0  ;;  %v379_v12 = vshrl.u32 %v313_v1, 16  ;;  %v382_v13 = vshll.u32 %v313_v1, 16 }
  0x1b   : > { %281 = vst.msk [vmem:[#allocation2 + $0x68] sm:$0x1] %vm256_vm1, %v5815_v0  ;;  %284 = vst.msk [vmem:[#allocation2 + $0x74] sm:$0x1] %vm256_vm1, %v5815_v0  ;;  %v387_v14 = vshrl.u32 %v314_v2, 16  ;;  %v390_v17 = vshll.u32 %v314_v2, 16 }
  0x1c   : > { %282 = vst.msk [vmem:[#allocation2 + $0x6c] sm:$0xf] %vm253_vm0, %v5815_v0  ;;  %283 = vst.msk [vmem:[#allocation2 + $0x70] sm:$0xf] %vm253_vm0, %v5815_v0  ;;  %v312_v18 = vld [vmem:[%s5931_s26 + $0xc] sm:$0xf] }
  0x1d   : > { %285 = vst.msk [vmem:[#allocation2 + $0x78] sm:$0xf] %vm253_vm0, %v5815_v0  ;;  %286 = vst.msk [vmem:[#allocation2 + $0x7c] sm:$0xf] %vm253_vm0, %v5815_v0  ;;  %v362_v19 = vshrl.u32 %v311_v3, 16  ;;  %v1109_v20 = vrot.slane %v1107_v11, 1 }
  0x1e   : > { %287 = vst.msk [vmem:[#allocation2 + $0x80] sm:$0x1] %vm256_vm1, %v5815_v0  ;;  %290 = vst.msk [vmem:[#allocation2 + $0x8c] sm:$0x1] %vm256_vm1, %v5815_v0  ;;  %v381_v22 = vrot.slane %v379_v12, 7  ;;  %v5945_v23 = vrot.slane %v387_v14, 7 }
  0x1f   : > { %288 = vst.msk [vmem:[#allocation2 + $0x84] sm:$0xf] %vm253_vm0, %v5815_v0  ;;  %289 = vst.msk [vmem:[#allocation2 + $0x88] sm:$0xf] %vm253_vm0, %v5815_v0  ;;  %v684_v24 = vld [vmem:[#allocation2 + $0x24] sm:$0xf]  ;;  %v1110_v32 = vor.u32 %v1109_v20, %v1105_v10 }
  0x20   : > { %291 = vst.msk [vmem:[#allocation2 + $0x90] sm:$0xf] %vm253_vm0, %v5815_v0  ;;  %292 = vst.msk [vmem:[#allocation2 + $0x94] sm:$0xf] %vm253_vm0, %v5815_v0  ;;  %v365_v25 = vshll.u32 %v311_v3, 16  ;;  %v364_v28 = vrot.slane %v362_v19, 7  ;;  %v384_v33 = vor.u32 %v382_v13, %v381_v22  ;;  %v392_v35 = vor.u32 %v390_v17, %v5945_v23 }
  0x21   : > { %293 = vst.msk [vmem:[#allocation2 + $0x98] sm:$0x1] %vm256_vm1, %v5815_v0  ;;  %296 = vst.msk [vmem:[#allocation2 + $0xa4] sm:$0x1] %vm256_vm1, %v5815_v0  ;;  %v370_v29 = vshrl.u32 %v312_v18, 16  ;;  %v373_v30 = vshll.u32 %v312_v18, 16 }
  0x22   : > { %294 = vst.msk [vmem:[#allocation2 + $0x9c] sm:$0xf] %vm253_vm0, %v5815_v0  ;;  %295 = vst.msk [vmem:[#allocation2 + $0xa0] sm:$0xf] %vm253_vm0, %v5815_v0  ;;  %v315_v31 = vld [vmem:[%s5931_s26 + $0x18] sm:$0xf]  ;;  %v367_v38 = vor.u32 %v365_v25, %v364_v28 }
  0x23   : > { %297 = vst.msk [vmem:[#allocation2 + $0xa8] sm:$0xf] %vm253_vm0, %v5815_v0  ;;  %298 = vst.msk [vmem:[#allocation2 + $0xac] sm:$0xf] %vm253_vm0, %v5815_v0  ;;  %v385_v34 = vrot.slane %v381_v22, 4  ;;  %v368_v39 = vrot.slane %v364_v28, 4 }
  0x24   : > { %299 = vst.msk [vmem:[#allocation2 + $0xb0] sm:$0x1] %vm256_vm1, %v5815_v0  ;;  %302 = vst.msk [vmem:[#allocation2 + $0xbc] sm:$0x1] %vm256_vm1, %v5815_v0  ;;  %v677_v36 = vld [vmem:[#allocation2 + $0x18] sm:$0xf] }
  0x25   : > { %300 = vst.msk [vmem:[#allocation2 + $0xb4] sm:$0xf] %vm253_vm0, %v5815_v0  ;;  %301 = vst.msk [vmem:[#allocation2 + $0xb8] sm:$0xf] %vm253_vm0, %v5815_v0  ;;  %v316_v37 = vld [vmem:[%s5931_s26 + $0x1c] sm:$0xf] }
  0x26   : > { %303 = vst.msk [vmem:[#allocation2 + $0xc0] sm:$0xf] %vm253_vm0, %v5815_v0  ;;  %304 = vst.msk [vmem:[#allocation2 + $0xc4] sm:$0xf] %vm253_vm0, %v5815_v0  ;;  %v372_v40 = vrot.slane %v370_v29, 7  ;;  %v396_v41 = vshrl.u32 %v315_v31, 16 }
  0x27   : > { %305 = vst.msk [vmem:[#allocation2 + $0xc8] sm:$0x1] %vm256_vm1, %v5815_v0  ;;  %308 = vst.msk [vmem:[#allocation2 + $0xd4] sm:$0x1] %vm256_vm1, %v5815_v0  ;;  %v309_v42 = vld [vmem:[%s5931_s26] sm:$0xf] }
  0x28   : > { %306 = vst.msk [vmem:[#allocation2 + $0xcc] sm:$0xf] %vm253_vm0, %v5815_v0  ;;  %307 = vst.msk [vmem:[#allocation2 + $0xd0] sm:$0xf] %vm253_vm0, %v5815_v0  ;;  %v399_v46 = vshll.u32 %v315_v31, 16  ;;  %v375_v48 = vor.u32 %v373_v30, %v372_v40  ;;  %v398_v50 = vrot.slane %v396_v41, 7 }
  0x29   : > { %v5484_v5 = vld [vmem:[#allocation2 + $0x8] ss:$0 sps:$4 sm:$0x11]   ;;  %vm5941_vm7 = vmor %vm341_vm3, %vm342_vm4  ;;  %v310_v47 = vld [vmem:[%s5931_s26 + $0x4] sm:$0xf]  ;;  %v404_v51 = vshrl.u32 %v316_v37, 16 }
  0x2a   : > { %v1539_v8 = vrot.slane %v5484_v5, 1  ;;  %v5486_v9 = vld [vmem:[#allocation2 + $0x8] ss:$0 sps:$4 sm:$0x11]   ;;  %vm5949_vm8 = vmand %vm253_vm0, %vm666_vm6  ;;  %v393_v44 = vsel %vm5941_vm7, %v385_v34, %v392_v35  ;;  %v407_v52 = vshll.u32 %v316_v37, 16  ;;  %v345_v54 = vshrl.u32 %v309_v42, 16 }
  0x2b   : > { %v1112_v16 = vshll.u32 %v5486_v9, 16  ;;  %v685_v45 = vsel %vm5949_vm8, %v384_v33, %v684_v24  ;;  %687 = vst.msk [vmem:[#allocation2 + $0x28] sm:$0xf] %vm253_vm0, %v393_v44  ;;  %v678_v49 = vsel %vm5949_vm8, %v367_v38, %v677_v36  ;;  %v691_v53 = vld [vmem:[#allocation2 + $0x30] sm:$0xf]  ;;  %v348_v55 = vshll.u32 %v309_v42, 16  ;;  %vm5974_vm9 = vmand %vm256_vm1, %vm341_vm3 }
  0x2c   : > { %v1540_v15 = vsel %vm1537_vm2, %v1538_v7, %v1539_v8  ;;  %686 = vst [vmem:[#allocation2 + $0x24] sm:$0xf] %v685_v45  ;;  %679 = vst [vmem:[#allocation2 + $0x18] sm:$0xf] %v678_v49  ;;  %v353_v56 = vshrl.u32 %v310_v47, 16  ;;  %v376_v57 = vsel %vm5941_vm7, %v368_v39, %v375_v48  ;;  %v401_v58 = vor.u32 %v399_v46, %v398_v50 }
  0x2d   : > { %1586 = vrot.lane.b32.xlu1 %v1540_v15, %s5816_s27  ;;  %v1114_v26 = vrot.slane %v1112_v16, 1  ;;  %v402_v59 = vrot.slane %v398_v50, 4  ;;  %v406_v60 = vrot.slane %v404_v51, 7  ;;  %v668_v61 = vld [vmem:[#allocation2 + $0xc] sm:$0xf]  ;;  %v347_v0 = vrot.slane %v345_v54, 7 }
  0x2e   : > { %v681_v62 = vld [vmem:[#allocation2 + $0x20] sm:$0x1]  ;;  %v688_v63 = vld [vmem:[#allocation2 + $0x2c] sm:$0x1]  ;;  %680 = vst.msk [vmem:[#allocation2 + $0x1c] sm:$0xf] %vm253_vm0, %v376_v57  ;;  %v692_v6 = vsel %vm5949_vm8, %v401_v58, %v691_v53 }
  0x2f   : > { %v1115_v43 = vsel %vm1103_vm5, %v1110_v32, %v1114_v26  ;;  %v355_v1 = vrot.slane %v353_v56, 7  ;;  %v356_v2 = vshll.u32 %v310_v47, 16  ;;  %v377_v3 = vrot.slane %v372_v40, 4  ;;  %v695_v4 = vld [vmem:[#allocation2 + $0x38] sm:$0x1] }
  0x30   : > { %1296 = vrot.lane.b32.xlu0 %v1115_v43, %s5817_s28  ;;  %v409_v5 = vor.u32 %v407_v52, %v406_v60  ;;  %v674_v8 = vld [vmem:[#allocation2 + $0x14] sm:$0x1]  ;;  %v394_v9 = vrot.slane %v5945_v23, 4  ;;  %v411_v10 = vrot.slane %v406_v60, 4  ;;  %v317_v11 = vld [vmem:[%s5931_s26 + $0x20] sm:$0xf]  ;;  %v350_v12 = vor.u32 %v348_v55, %v347_v0 }
  0x31   : > { %693 = vst [vmem:[#allocation2 + $0x30] sm:$0xf] %v692_v6  ;;  %v351_v13 = vrot.slane %v347_v0, 4  ;;  %v358_v14 = vor.u32 %v356_v2, %v355_v1  ;;  %v360_v15 = vrot.slane %v355_v1, 4  ;;  %v682_v17 = vsel %vm5974_vm9, %v377_v3, %v681_v62  ;;  %v698_v35 = vld [vmem:[#allocation2 + $0x3c] sm:$0xf] }
  0x32   : > { %v410_v16 = vsel %vm5941_vm7, %v402_v59, %v409_v5  ;;  %v689_v18 = vsel %vm5974_vm9, %v394_v9, %v688_v63  ;;  %v696_v19 = vsel %vm5974_vm9, %v411_v10, %v695_v4  ;;  %v669_v23 = vsel %vm5949_vm8, %v350_v12, %v668_v61  ;;  %683 = vst [vmem:[#allocation2 + $0x20] sm:$0x1] %v682_v17 }
  0x33   : > { %v5487_v20 = vld [vmem:[#allocation2 + $0x24] sm:$0xff]   ;;  %694 = vst.msk [vmem:[#allocation2 + $0x34] sm:$0xf] %vm253_vm0, %v410_v16  ;;  %v359_v22 = vsel %vm5941_vm7, %v351_v13, %v358_v14  ;;  %v675_v24 = vsel %vm5974_vm9, %v360_v15, %v674_v8  ;;  %690 = vst [vmem:[#allocation2 + $0x2c] sm:$0x1] %v689_v18  ;;  %v413_v25 = vshrl.u32 %v317_v11, 16 }
  0x34   : > { %697 = vst [vmem:[#allocation2 + $0x38] sm:$0x1] %v696_v19  ;;  %670 = vst [vmem:[#allocation2 + $0xc] sm:$0xf] %v669_v23  ;;  %2631 = vrot.lane.b32.xlu0 %v5487_v20, %s5816_s27  ;;  %v5498_v26 = vld [vmem:[#allocation2 + $0x24] sm:$0xfe]  }
  0x35   : > { %671 = vst.msk [vmem:[#allocation2 + $0x10] sm:$0xf] %vm253_vm0, %v359_v22  ;;  %676 = vst [vmem:[#allocation2 + $0x14] sm:$0x1] %v675_v24  ;;  %v5488_v28 = vld [vmem:[#allocation2 + $0x18] sm:$0xff]   ;;  %v2410_v30 = vrot.slane %v5498_v26, 1 }
  0x36   : > { %v5494_v29 = vld [vmem:[#allocation2 + $0x18] sm:$0xfe]   ;;  %v5997_v31 = vrot.slane %v413_v25, 7  ;;  %2629 = vrot.lane.b32.xlu1 %v5488_v28, %s5816_s27  ;;  %v416_v37 = vshll.u32 %v317_v11, 16  ;;  %v5506_v1 = vld [vmem:[#allocation2 + $0x24] sm:$0xff]   ;;  %vm910_vm10 = vcmask 261120  }
  0x37   : > { %v2407_v32 = vrot.slane %v5494_v29, 1  ;;  %v5500_v33 = vld [vmem:[#allocation2 + $0x18] sm:$0xfe]   ;;  %v2882_v14 = vshrl.u32 %v5506_v1, 16  ;;  %v2884_v15 = vshll.u32 %v5506_v1, 16  ;;  %vm1344_vm11 = vcmask 523520  }
  0x38   : > { %v5502_v34 = vld [vmem:[#allocation2 + $0x18] sm:$0xff]   ;;  %v1544_v40 = vrot.slane %v5500_v33, 1  ;;  %v418_v41 = vor.u32 %v416_v37, %v5997_v31  ;;  %v5515_v37 = vld [vmem:[#allocation2 + $0x24] sm:$0xff]   ;;  %vm1634_vm12 = vcmask 785920   ;;  %vm1811_vm13 = vcmask 1048320  }
  0x39   : > { %v5493_v39 = vld [vmem:[#allocation2 + $0x18] sm:$0xff]   ;;  %v2870_v44 = vshrl.u32 %v5502_v34, 16  ;;  %v5495_v45 = vld [vmem:[#allocation2 + $0x20] ss:$0 sps:$4 sm:$0x11]   ;;  %v2872_v46 = vshll.u32 %v5502_v34, 16 }
  0x3a   : > { %v5489_v36 = vld [vmem:[#allocation2 + $0x30] sm:$0xff]   ;;  %v699_v47 = vsel %vm5949_vm8, %v418_v41, %v698_v35  ;;  %v2408_v50 = vrot.slane %v5495_v45, 1  ;;  %v5499_v54 = vld [vmem:[#allocation2 + $0x2c] ss:$0 sps:$4 sm:$0x11]   ;;  %v5508_v19 = vld [vmem:[#allocation2 + $0x18] sm:$0xff]  }
  0x3b   : > { %2633 = vrot.lane.b32.xlu0 %v5489_v36, %s5816_s27  ;;  %700 = vst [vmem:[#allocation2 + $0x3c] sm:$0xf] %v699_v47  ;;  %v2874_v55 = vrot.slane %v2872_v46, 1  ;;  %v2411_v59 = vrot.slane %v5499_v54, 1  ;;  %v5510_v20 = vld [vmem:[#allocation2 + $0x30] sm:$0xff]   ;;  %v2886_v23 = vrot.slane %v2884_v15, 1 }
  0x3c   : > { %v5490_v38 = vld [vmem:[#allocation2 + $0xc] sm:$0xff]   ;;  %v5492_v43 = vld [vmem:[#allocation2 + $0x14] ss:$0 sps:$4 sm:$0x11]   ;;  %v2409_v58 = vsel %vm1537_vm2, %v2407_v32, %v2408_v50  ;;  %v1129_v28 = vshrl.u32 %v5508_v19, 16  ;;  %v1131_v29 = vshll.u32 %v5508_v19, 16 }
  0x3d   : > { %1763 = vrot.lane.b32.xlu1 %v5490_v38, %s5818_s29  ;;  %v5491_v42 = vld [vmem:[#allocation2 + $0xc] sm:$0xfe]   ;;  %v2405_v49 = vrot.slane %v5492_v43, 1  ;;  %v5497_v52 = vld [vmem:[#allocation2 + $0x14] ss:$0 sps:$4 sm:$0x11]   ;;  %v2412_v6 = vsel %vm1537_vm2, %v2410_v30, %v2411_v59  ;;  %v2875_v9 = vor.u32 %v2874_v55, %v2870_v44  ;;  %v2887_v30 = vor.u32 %v2886_v23, %v2882_v14 }
  0x3e   : > { %v2404_v48 = vrot.slane %v5491_v42, 1  ;;  %v5496_v51 = vld [vmem:[#allocation2 + $0xc] sm:$0xfe]   ;;  %v1542_v57 = vrot.slane %v5497_v52, 1  ;;  %v1133_v34 = vrot.slane %v1131_v29, 1  ;;  %v2894_v35 = vshrl.u32 %v5510_v20, 16 }
  0x3f   : > { %v1541_v56 = vrot.slane %v5496_v51, 1  ;;  %v5501_v60 = vld [vmem:[#allocation2 + $0x20] ss:$0 sps:$4 sm:$0x11]   ;;  %v5504_v63 = vld [vmem:[#allocation2 + $0xc] sm:$0xff]   ;;  %v2896_v36 = vshll.u32 %v5510_v20, 16 }
  0x40   : > { %v2406_v53 = vsel %vm1537_vm2, %v2404_v48, %v2405_v49  ;;  %v5503_v62 = vld [vmem:[#allocation2 + $0x20] ss:$0 sps:$4 sm:$0x11]   ;;  %v1545_v0 = vrot.slane %v5501_v60, 1  ;;  %v1117_v4 = vshrl.u32 %v5504_v63, 16  ;;  %v1119_v5 = vshll.u32 %v5504_v63, 16 }
  0x41   : > { %1765 = vrot.lane.b32.xlu1 %v5493_v39, %s5818_s29  ;;  %2452 = vrot.lane.b32.xlu0 %v2406_v53, %s5817_s28  ;;  %v1543_v61 = vsel %vm1537_vm2, %v1541_v56, %v1542_v57  ;;  %v2877_v2 = vshll.u32 %v5503_v62, 16  ;;  %v5505_v3 = vld [vmem:[#allocation2 + $0x14] ss:$0 sps:$4 sm:$0x11]   ;;  %v318_v41 = vld [vmem:[%s5931_s26 + $0x24] sm:$0xf]  ;;  %v1134_v42 = vor.u32 %v1133_v34, %v1129_v28 }
  0x42   : > { %v1546_v8 = vsel %vm1537_vm2, %v1544_v40, %v1545_v0  ;;  %v1121_v11 = vrot.slane %v1119_v5, 1  ;;  %v1124_v12 = vshll.u32 %v5505_v3, 16  ;;  %v5507_v13 = vld [vmem:[#allocation2 + $0x2c] ss:$0 sps:$4 sm:$0x11]   ;;  %v2898_v43 = vrot.slane %v2896_v36, 1 }
  0x43   : > { %v2879_v10 = vrot.slane %v2877_v2, 1  ;;  %v2889_v18 = vshll.u32 %v5507_v13, 16  ;;  %v5509_v24 = vld [vmem:[#allocation2 + $0x20] ss:$0 sps:$4 sm:$0x11]   ;;  %v1141_v44 = vshrl.u32 %v5515_v37, 16 }
  0x44   : > { %v1122_v16 = vor.u32 %v1121_v11, %v1117_v4  ;;  %v1126_v17 = vrot.slane %v1124_v12, 1  ;;  %v1136_v32 = vshll.u32 %v5509_v24, 16  ;;  %v5511_v33 = vld [vmem:[#allocation2 + $0x38] ss:$0 sps:$4 sm:$0x11]   ;;  %v5512_v46 = vld [vmem:[#allocation2 + $0x24] sm:$0xff]   ;;  %v2899_v51 = vor.u32 %v2898_v43, %v2894_v35 }
  0x45   : > { %1588 = vrot.lane.b32.xlu1 %v1543_v61, %s5816_s27  ;;  %2454 = vrot.lane.b32.xlu0 %v2409_v58, %s5817_s28  ;;  %v2880_v22 = vsel %vm1103_vm5, %v2875_v9, %v2879_v10  ;;  %v2891_v26 = vrot.slane %v2889_v18, 1  ;;  %v2901_v40 = vshll.u32 %v5511_v33, 16  ;;  %v5513_v47 = vld [vmem:[#allocation2 + $0x30] sm:$0xfe]   ;;  %v335_v49 = vld [vmem:[%s5931_s26 + $0x68] sm:$0xf] }
  0x46   : > { %v1127_v25 = vsel %vm1103_vm5, %v1122_v16, %v1126_v17  ;;  %v1138_v39 = vrot.slane %v1136_v32, 1  ;;  %v5514_v48 = vld [vmem:[#allocation2 + $0x38] ss:$0 sps:$4 sm:$0x11]   ;;  %v2413_v52 = vrot.slane %v5513_v47, 1  ;;  %v1143_v55 = vshll.u32 %v5515_v37, 16 }
  0x47   : > { %v2892_v38 = vsel %vm1103_vm5, %v2887_v30, %v2891_v26  ;;  %v2903_v45 = vrot.slane %v2901_v40, 1  ;;  %v2414_v53 = vrot.slane %v5514_v48, 1  ;;  %v5516_v54 = vld [vmem:[#allocation2 + $0x2c] ss:$0 sps:$4 sm:$0x11]   ;;  %v419_v57 = vrot.slane %v5997_v31, 4 }
  0x48   : > { %v1139_v50 = vsel %vm1103_vm5, %v1134_v42, %v1138_v39  ;;  %v421_v58 = vshrl.u32 %v318_v41, 16  ;;  %v424_v59 = vshll.u32 %v318_v41, 16  ;;  %v1145_v60 = vrot.slane %v1143_v55, 1  ;;  %v702_v62 = vld [vmem:[#allocation2 + $0x44] sm:$0x1]  ;;  %v5522_v36 = vld [vmem:[#allocation2 + $0x30] sm:$0xff]  }
  0x49   : > { %1590 = vrot.lane.b32.xlu1 %v1546_v8, %s5816_s27  ;;  %2456 = vrot.lane.b32.xlu0 %v2412_v6, %s5817_s28  ;;  %v2904_v56 = vsel %vm1103_vm5, %v2899_v51, %v2903_v45  ;;  %v1148_v61 = vshll.u32 %v5516_v54, 16  ;;  %v336_v63 = vld [vmem:[%s5931_s26 + $0x6c] sm:$0xf]  ;;  %v5518_v1 = vld [vmem:[#allocation2 + $0x24] sm:$0xfe]   ;;  %v566_v2 = vshrl.u32 %v335_v49, 16  ;;  %v2415_v4 = vsel %vm1537_vm2, %v2413_v52, %v2414_v53 }
  0x4a   : > { %v423_v0 = vrot.slane %v421_v58, 7  ;;  %v333_v3 = vld [vmem:[%s5931_s26 + $0x60] sm:$0xf]  ;;  %v1146_v5 = vor.u32 %v1145_v60, %v1141_v44  ;;  %v5519_v31 = vld [vmem:[#allocation2 + $0x2c] ss:$0 sps:$4 sm:$0x11]  }
  0x4b   : > { %v1150_v6 = vrot.slane %v1148_v61, 1  ;;  %v1547_v9 = vrot.slane %v5518_v1, 1  ;;  %v1548_v12 = vrot.slane %v5519_v31, 1  ;;  %v568_v13 = vrot.slane %v566_v2, 7  ;;  %v334_v15 = vld [vmem:[%s5931_s26 + $0x64] sm:$0xf] }
  0x4c   : > { %v426_v8 = vor.u32 %v424_v59, %v423_v0  ;;  %v428_v10 = vrot.slane %v423_v0, 4  ;;  %v569_v14 = vshll.u32 %v335_v49, 16  ;;  %v574_v18 = vshrl.u32 %v336_v63, 16  ;;  %v761_v20 = vld [vmem:[#allocation2 + $0xa8] sm:$0xf]  ;;  %v5581_v47 = vld [vmem:[%s7645_s1 + $0x40] sm:$0xff]  }
  0x4d   : > { %1298 = vrot.lane.b32.xlu1 %v1127_v25, %s5817_s28  ;;  %3061 = vrot.lane.b32.xlu0 %v2880_v22, %s5818_s29  ;;  %v1151_v11 = vsel %vm1103_vm5, %v1146_v5, %v1150_v6  ;;  %v577_v19 = vshll.u32 %v336_v63, 16  ;;  %v1549_v22 = vsel %vm1537_vm2, %v1547_v9, %v1548_v12  ;;  %v572_v24 = vrot.slane %v568_v13, 4  ;;  %v765_v25 = vld [vmem:[#allocation2 + $0xb0] sm:$0x1]  ;;  %v338_v29 = vld [vmem:[%s5931_s26 + $0x74] sm:$0xf] }
  0x4e   : > { %v427_v16 = vsel %vm5941_vm7, %v419_v57, %v426_v8  ;;  %v703_v17 = vsel %vm5974_vm9, %v428_v10, %v702_v62  ;;  %v571_v23 = vor.u32 %v569_v14, %v568_v13  ;;  %v549_v26 = vshrl.u32 %v333_v3, 16  ;;  %v337_v28 = vld [vmem:[%s5931_s26 + $0x70] sm:$0xf]  ;;  %v754_v35 = vld [vmem:[#allocation2 + $0x9c] sm:$0xf]  ;;  %v5584_v52 = vld [vmem:[%s7645_s1] sm:$0xff]   ;;  %5242 = vmatprep.subr.bf16.mxu0 %v5581_v47  ;;  %5452 = vmatprep.subr.bf16.mxu1 %v5581_v47 }
  0x4f   : > { %701 = vst.msk [vmem:[#allocation2 + $0x40] sm:$0xf] %vm253_vm0, %v427_v16  ;;  %704 = vst [vmem:[#allocation2 + $0x44] sm:$0x1] %v703_v17  ;;  %v576_v30 = vrot.slane %v574_v18, 7  ;;  %v552_v32 = vshll.u32 %v333_v3, 16  ;;  %5243 = vmatpush3.bf16.msra.mxu0 %v5584_v52  ;;  %5460 = vmatpush3.bf16.msra.mxu1 %v5584_v52 }
  0x50   : > { %v557_v33 = vshrl.u32 %v334_v15, 16  ;;  %v560_v34 = vshll.u32 %v334_v15, 16  ;;  %v762_v37 = vsel %vm5949_vm8, %v571_v23, %v761_v20  ;;  %v758_v39 = vld [vmem:[#allocation2 + $0xa4] sm:$0x1]  ;;  %v583_v40 = vshrl.u32 %v337_v28, 16  ;;  %v5586_v57 = vld [vmem:[%s7645_s1 + $0x48] sm:$0xff]  }
  0x51   : > { %3063 = vrot.lane.b32.xlu0 %v2892_v38, %s5818_s29  ;;  %1300 = vrot.lane.b32.xlu1 %v1139_v50, %s5817_s28  ;;  %v551_v38 = vrot.slane %v549_v26, 7  ;;  %v586_v41 = vshll.u32 %v337_v28, 16  ;;  %v579_v42 = vor.u32 %v577_v19, %v576_v30  ;;  %v581_v43 = vrot.slane %v576_v30, 4  ;;  %763 = vst [vmem:[#allocation2 + $0xa8] sm:$0xf] %v762_v37  ;;  %v5589_v63 = vld [vmem:[%s7645_s1 + $0x8] sm:$0xff]  }
  0x52   : > { %v559_v44 = vrot.slane %v557_v33, 7  ;;  %v591_v45 = vshrl.u32 %v338_v29, 16  ;;  %v585_v50 = vrot.slane %v583_v40, 7  ;;  %v594_v51 = vshll.u32 %v338_v29, 16  ;;  %v772_v62 = vld [vmem:[#allocation2 + $0xbc] sm:$0x1]  ;;  %5244 = vmatprep.subr.bf16.mxu0 %v5586_v57  ;;  %5453 = vmatprep.subr.bf16.mxu1 %v5586_v57 }
  0x53   : > { %v554_v48 = vor.u32 %v552_v32, %v551_v38  ;;  %v555_v49 = vrot.slane %v551_v38, 4  ;;  %v580_v53 = vsel %vm5941_vm7, %v572_v24, %v579_v42  ;;  %v766_v54 = vsel %vm5974_vm9, %v581_v43, %v765_v25  ;;  %v6078_v12 = vld [vmem:[#allocation2 + $0x30] sm:$0xff]   ;;  %5245 = vmatpush3.bf16.msra.mxu0 %v5589_v63  ;;  %5461 = vmatpush3.bf16.msra.mxu1 %v5589_v63  ;;  %v5536_v28 = vld [vmem:[#allocation2 + $0x38] ss:$0 sps:$4 sm:$0x11]  }
  0x54   : > { %v562_v55 = vor.u32 %v560_v34, %v559_v44  ;;  %764 = vst.msk [vmem:[#allocation2 + $0xac] sm:$0xf] %vm253_vm0, %v580_v53  ;;  %767 = vst [vmem:[#allocation2 + $0xb0] sm:$0x1] %v766_v54  ;;  %v588_v59 = vor.u32 %v586_v41, %v585_v50  ;;  %v589_v60 = vrot.slane %v585_v50, 4  ;;  %v593_v61 = vrot.slane %v591_v45, 7 }
  0x55   : > { %3065 = vrot.lane.b32.xlu0 %v2904_v56, %s5818_s29  ;;  %1767 = vrot.lane.b32.xlu1 %v5512_v46, %s5818_s29  ;;  %v768_v46 = vld [vmem:[#allocation2 + $0xb4] sm:$0xf]  ;;  %v564_v56 = vrot.slane %v559_v44, 4  ;;  %v755_v58 = vsel %vm5949_vm8, %v554_v48, %v754_v35  ;;  %v1153_v16 = vshrl.u32 %v6078_v12, 16  ;;  %v1155_v20 = vshll.u32 %v6078_v12, 16 }
  0x56   : > { %v5517_v0 = vld [vmem:[#allocation2 + $0x3c] sm:$0xff]   ;;  %v563_v1 = vsel %vm5941_vm7, %v555_v49, %v562_v55  ;;  %756 = vst [vmem:[#allocation2 + $0x9c] sm:$0xf] %v755_v58  ;;  %v596_v5 = vor.u32 %v594_v51, %v593_v61  ;;  %v769_v6 = vsel %vm5949_vm8, %v588_v59, %v768_v46  ;;  %v598_v31 = vrot.slane %v593_v61, 4  ;;  %v319_v53 = vld [vmem:[%s5931_s26 + $0x28] sm:$0xf] }
  0x57   : > { %v759_v2 = vsel %vm5974_vm9, %v564_v56, %v758_v39  ;;  %v5520_v3 = vld [vmem:[#allocation2 + $0x3c] sm:$0xff]   ;;  %757 = vst.msk [vmem:[#allocation2 + $0xa0] sm:$0xf] %vm253_vm0, %v563_v1  ;;  %770 = vst [vmem:[#allocation2 + $0xb4] sm:$0xf] %v769_v6  ;;  %v1160_v49 = vshll.u32 %v5536_v28, 16 }
  0x58   : > { %760 = vst [vmem:[#allocation2 + $0xa4] sm:$0x1] %v759_v2  ;;  %v2906_v8 = vshrl.u32 %v5520_v3, 16  ;;  %v2908_v9 = vshll.u32 %v5520_v3, 16  ;;  %v773_v13 = vsel %vm5974_vm9, %v598_v31, %v772_v62  ;;  %v5533_v32 = vld [vmem:[#allocation2 + $0x3c] sm:$0xfe]  }
  0x59   : > { %2458 = vrot.lane.b32.xlu0 %v2415_v4, %s5817_s28  ;;  %1302 = vrot.lane.b32.xlu1 %v1151_v11, %s5817_s28  ;;  %v5521_v4 = vld [vmem:[#allocation2 + $0x44] ss:$0 sps:$4 sm:$0x11]   ;;  %v597_v11 = vsel %vm5941_vm7, %v589_v60, %v596_v5  ;;  %774 = vst [vmem:[#allocation2 + $0xbc] sm:$0x1] %v773_v13  ;;  %v2416_v51 = vrot.slane %v5533_v32, 1 }
  0x5a   : > { %v2913_v10 = vshll.u32 %v5521_v4, 16  ;;  %771 = vst.msk [vmem:[#allocation2 + $0xb8] sm:$0xf] %vm253_vm0, %v597_v11  ;;  %v2910_v14 = vrot.slane %v2908_v9, 1  ;;  %v320_v54 = vld [vmem:[%s5931_s26 + $0x2c] sm:$0xf] }
  0x5b   : > { %v5523_v17 = vld [vmem:[#allocation2 + $0xa8] sm:$0xfe]   ;;  %v5524_v19 = vld [vmem:[#allocation2 + $0xb0] ss:$0 sps:$4 sm:$0x11]   ;;  %v430_v57 = vshrl.u32 %v319_v53, 16 }
  0x5c   : > { %v2915_v15 = vrot.slane %v2913_v10, 1  ;;  %v2911_v18 = vor.u32 %v2910_v14, %v2906_v8  ;;  %v2444_v25 = vrot.slane %v5524_v19, 1  ;;  %v5534_v33 = vld [vmem:[#allocation2 + $0x44] ss:$0 sps:$4 sm:$0x11]   ;;  %v433_v58 = vshll.u32 %v319_v53, 16 }
  0x5d   : > { %1592 = vrot.lane.b32.xlu1 %v1549_v22, %s5816_s27  ;;  %2635 = vrot.lane.b32.xlu0 %v5517_v0, %s5816_s27  ;;  %v2443_v22 = vrot.slane %v5523_v17, 1  ;;  %v2417_v52 = vrot.slane %v5534_v33, 1  ;;  %v438_v60 = vshrl.u32 %v320_v54, 16  ;;  %v441_v61 = vshll.u32 %v320_v54, 16  ;;  %v705_v62 = vld [vmem:[#allocation2 + $0x48] sm:$0xf] }
  0x5e   : > { %v5525_v23 = vld [vmem:[#allocation2 + $0x9c] sm:$0xff]   ;;  %v2916_v24 = vsel %vm1103_vm5, %v2911_v18, %v2915_v15  ;;  %v432_v1 = vrot.slane %v430_v57, 7  ;;  %v5538_v2 = vld [vmem:[#allocation2 + $0x30] sm:$0xfe]   ;;  %v709_v5 = vld [vmem:[#allocation2 + $0x50] sm:$0x1] }
  0x5f   : > { %v5526_v26 = vld [vmem:[#allocation2 + $0xa4] ss:$0 sps:$4 sm:$0x11]   ;;  %v1261_v29 = vshrl.u32 %v5525_v23, 16  ;;  %v1263_v30 = vshll.u32 %v5525_v23, 16  ;;  %v2445_v34 = vsel %vm1537_vm2, %v2443_v22, %v2444_v25  ;;  %v440_v3 = vrot.slane %v438_v60, 7 }
  0x60   : > { %v1268_v35 = vshll.u32 %v5526_v26, 16  ;;  %v5528_v39 = vld [vmem:[#allocation2 + $0x9c] sm:$0xfe]   ;;  %v5529_v40 = vld [vmem:[#allocation2 + $0xa4] ss:$0 sps:$4 sm:$0x11]   ;;  %v435_v8 = vor.u32 %v433_v58, %v432_v1  ;;  %v2418_v14 = vsel %vm1537_vm2, %v2416_v51, %v2417_v52 }
  0x61   : > { %1769 = vrot.lane.b32.xlu1 %v5522_v36, %s5818_s29  ;;  %3067 = vrot.lane.b32.xlu0 %v2916_v24, %s5818_s29  ;;  %v1157_v36 = vrot.slane %v1155_v20, 1  ;;  %v1265_v37 = vrot.slane %v1263_v30, 1  ;;  %v5527_v38 = vld [vmem:[#allocation2 + $0xb4] sm:$0xff]   ;;  %v1577_v44 = vrot.slane %v5528_v39, 1  ;;  %v1578_v45 = vrot.slane %v5529_v40, 1  ;;  %v5532_v31 = vld [vmem:[#allocation2 + $0xa8] sm:$0xff]  }
  0x62   : > { %v1270_v41 = vrot.slane %v1268_v35, 1  ;;  %v5530_v42 = vld [vmem:[#allocation2 + $0xb4] sm:$0xff]   ;;  %v5531_v46 = vld [vmem:[#allocation2 + $0xbc] ss:$0 sps:$4 sm:$0x11]   ;;  %v436_v9 = vrot.slane %v432_v1, 4  ;;  %v443_v12 = vor.u32 %v441_v61, %v440_v3  ;;  %v706_v15 = vsel %vm5949_vm8, %v435_v8, %v705_v62 }
  0x63   : > { %v1266_v43 = vor.u32 %v1265_v37, %v1261_v29  ;;  %v3026_v47 = vshrl.u32 %v5530_v42, 16  ;;  %v3028_v48 = vshll.u32 %v5530_v42, 16  ;;  %v3033_v56 = vshll.u32 %v5531_v46, 16  ;;  %v5539_v4 = vld [vmem:[#allocation2 + $0x38] ss:$0 sps:$4 sm:$0x11]  }
  0x64   : > { %v1579_v59 = vsel %vm1537_vm2, %v1577_v44, %v1578_v45  ;;  %v1158_v10 = vor.u32 %v1157_v36, %v1153_v16  ;;  %v1162_v11 = vrot.slane %v1160_v49, 1  ;;  %v445_v13 = vrot.slane %v440_v3, 4  ;;  %707 = vst [vmem:[#allocation2 + $0x48] sm:$0xf] %v706_v15  ;;  %v6105_v20 = vld [vmem:[#allocation2 + $0xb4] sm:$0xfe]  }
  0x65   : > { %2478 = vrot.lane.b32.xlu0 %v2445_v34, %s5817_s28  ;;  %v1271_v50 = vsel %vm1103_vm5, %v1266_v43, %v1270_v41  ;;  %v3030_v55 = vrot.slane %v3028_v48, 1  ;;  %v3035_v0 = vrot.slane %v3033_v56, 1  ;;  %v444_v17 = vsel %vm5941_vm7, %v436_v9, %v443_v12  ;;  %v5545_v16 = vld [vmem:[#allocation2 + $0xa8] sm:$0xff]   ;;  %v5546_v23 = vld [vmem:[#allocation2 + $0xb0] ss:$0 sps:$4 sm:$0x11]  }
  0x66   : > { %1322 = vrot.lane.b32.xlu1 %v1271_v50, %s5817_s28  ;;  %v1550_v18 = vrot.slane %v5538_v2, 1  ;;  %v710_v19 = vsel %vm5974_vm9, %v445_v13, %v709_v5  ;;  %708 = vst.msk [vmem:[#allocation2 + $0x4c] sm:$0xf] %vm253_vm0, %v444_v17  ;;  %v1551_v22 = vrot.slane %v5539_v4, 1  ;;  %v1163_v24 = vsel %vm1103_vm5, %v1158_v10, %v1162_v11  ;;  %v339_v28 = vld [vmem:[%s5931_s26 + $0x78] sm:$0xf] }
  0x67   : > { %v3031_v63 = vor.u32 %v3030_v55, %v3026_v47  ;;  %711 = vst [vmem:[#allocation2 + $0x50] sm:$0x1] %v710_v19  ;;  %v6111_v25 = vld [vmem:[#allocation2 + $0xbc] ss:$0 sps:$4 sm:$0x11]   ;;  %v1275_v26 = vshll.u32 %v5545_v16, 16 }
  0x68   : > { %v340_v29 = vld [vmem:[%s5931_s26 + $0x7c] sm:$0xf]  ;;  %v600_v30 = vshrl.u32 %v339_v28, 16  ;;  %v603_v32 = vshll.u32 %v339_v28, 16  ;;  %v2446_v33 = vrot.slane %v6105_v20, 1  ;;  %v1280_v34 = vshll.u32 %v5546_v23, 16 }
  0x69   : > { %2655 = vrot.lane.b32.xlu0 %v5527_v38, %s5816_s27  ;;  %v3036_v6 = vsel %vm1103_vm5, %v3031_v63, %v3035_v0  ;;  %v608_v35 = vshrl.u32 %v340_v29, 16  ;;  %v611_v36 = vshll.u32 %v340_v29, 16  ;;  %v775_v37 = vld [vmem:[#allocation2 + $0xc0] sm:$0xf]  ;;  %v1273_v38 = vshrl.u32 %v5545_v16, 16  ;;  %v6128_v63 = vld [vmem:[#allocation2 + $0xb4] sm:$0xff]  }
  0x6a   : > { %1612 = vrot.lane.b32.xlu1 %v1579_v59, %s5816_s27  ;;  %v602_v39 = vrot.slane %v600_v30, 7  ;;  %v1552_v40 = vsel %vm1537_vm2, %v1550_v18, %v1551_v22  ;;  %v1277_v41 = vrot.slane %v1275_v26, 1  ;;  %v5548_v43 = vld [vmem:[#allocation2 + $0xa8] sm:$0xfe]   ;;  %v6118_v44 = vld [vmem:[#allocation2 + $0x3c] sm:$0xff]   ;;  %v2447_v46 = vrot.slane %v6111_v25, 1 }
  0x6b   : > { %v610_v42 = vrot.slane %v608_v35, 7  ;;  %v5542_v45 = vld [vmem:[#allocation2 + $0x3c] sm:$0xff]   ;;  %v1282_v50 = vrot.slane %v1280_v34, 1  ;;  %v5549_v57 = vld [vmem:[#allocation2 + $0xb0] ss:$0 sps:$4 sm:$0x11]  }
  0x6c   : > { %v605_v47 = vor.u32 %v603_v32, %v602_v39  ;;  %v606_v48 = vrot.slane %v602_v39, 4  ;;  %v1278_v55 = vor.u32 %v1277_v41, %v1273_v38  ;;  %v779_v59 = vld [vmem:[#allocation2 + $0xc8] sm:$0x1]  ;;  %v1580_v0 = vrot.slane %v5548_v43, 1  ;;  %v321_v15 = vld [vmem:[%s5931_s26 + $0x30] sm:$0xf] }
  0x6d   : > { %3087 = vrot.lane.b32.xlu0 %v3036_v6, %s5818_s29  ;;  %v5537_v49 = vld [vmem:[#allocation2 + $0x48] sm:$0xff]   ;;  %v613_v51 = vor.u32 %v611_v36, %v610_v42  ;;  %v615_v58 = vrot.slane %v610_v42, 4  ;;  %v1167_v2 = vshll.u32 %v6118_v44, 16  ;;  %v1581_v6 = vrot.slane %v5549_v57, 1  ;;  %v5552_v22 = vld [vmem:[#allocation2 + $0xb4] sm:$0xff]  }
  0x6e   : > { %1789 = vrot.lane.b32.xlu1 %v5532_v31, %s5818_s29  ;;  %v5540_v52 = vld [vmem:[#allocation2 + $0x48] sm:$0xff]   ;;  %v5541_v53 = vld [vmem:[#allocation2 + $0x50] ss:$0 sps:$4 sm:$0x11]   ;;  %v776_v54 = vsel %vm5949_vm8, %v605_v47, %v775_v37  ;;  %v1283_v5 = vsel %vm1103_vm5, %v1278_v55, %v1282_v50  ;;  %v1165_v11 = vshrl.u32 %v6118_v44, 16  ;;  %v1287_v13 = vshll.u32 %v6128_v63, 16 }
  0x6f   : > { %v614_v56 = vsel %vm5941_vm7, %v606_v48, %v613_v51  ;;  %777 = vst [vmem:[#allocation2 + $0xc0] sm:$0xf] %v776_v54  ;;  %v2918_v60 = vshrl.u32 %v5540_v52, 16  ;;  %v2920_v61 = vshll.u32 %v5540_v52, 16  ;;  %v2925_v62 = vshll.u32 %v5541_v53, 16  ;;  %v6155_v52 = vld [vmem:[#allocation2 + $0xcc] sm:$0xff]  }
  0x70   : > { %778 = vst.msk [vmem:[#allocation2 + $0xc4] sm:$0xf] %vm253_vm0, %v614_v56  ;;  %v780_v1 = vsel %vm5974_vm9, %v615_v58, %v779_v59  ;;  %v6135_v31 = vld [vmem:[#allocation2 + $0x48] sm:$0xfe]   ;;  %v1169_v12 = vrot.slane %v1167_v2, 1  ;;  %v1582_v17 = vsel %vm1537_vm2, %v1580_v0, %v1581_v6  ;;  %v2448_v20 = vsel %vm1537_vm2, %v2446_v33, %v2447_v46 }
  0x71   : > { %2460 = vrot.lane.b32.xlu0 %v2418_v14, %s5817_s28  ;;  %v2922_v3 = vrot.slane %v2920_v61, 1  ;;  %v2927_v4 = vrot.slane %v2925_v62, 1  ;;  %781 = vst [vmem:[#allocation2 + $0xc8] sm:$0x1] %v780_v1  ;;  %v2419_v18 = vrot.slane %v6135_v31, 1  ;;  %v447_v25 = vshrl.u32 %v321_v15, 16 }
  0x72   : > { %1304 = vrot.lane.b32.xlu1 %v1163_v24, %s5817_s28  ;;  %v6137_v8 = vld [vmem:[#allocation2 + $0x50] ss:$0 sps:$4 sm:$0x11]   ;;  %v5556_v10 = vld [vmem:[#allocation2 + $0x44] ss:$0 sps:$4 sm:$0x11]   ;;  %v1170_v38 = vor.u32 %v1169_v12, %v1165_v11 }
  0x73   : > { %v2923_v9 = vor.u32 %v2922_v3, %v2918_v60  ;;  %v1172_v19 = vshll.u32 %v5556_v10, 16  ;;  %v2420_v23 = vrot.slane %v6137_v8, 1  ;;  %v322_v24 = vld [vmem:[%s5931_s26 + $0x34] sm:$0xf]  ;;  %v450_v26 = vshll.u32 %v321_v15, 16  ;;  %v5575_v1 = vld [vmem:[#allocation2 + $0x48] sm:$0xff]  }
  0x74   : > { %v449_v35 = vrot.slane %v447_v25, 7  ;;  %v455_v36 = vshrl.u32 %v322_v24, 16  ;;  %v712_v37 = vld [vmem:[#allocation2 + $0x54] sm:$0xf]  ;;  %v458_v39 = vshll.u32 %v322_v24, 16  ;;  %v1285_v60 = vshrl.u32 %v6128_v63, 16 }
  0x75   : > { %2637 = vrot.lane.b32.xlu0 %v5537_v49, %s5816_s27  ;;  %v2928_v14 = vsel %vm1103_vm5, %v2923_v9, %v2927_v4  ;;  %v1174_v30 = vrot.slane %v1172_v19, 1  ;;  %v5559_v46 = vld [vmem:[#allocation2 + $0x44] ss:$0 sps:$4 sm:$0x11]   ;;  %v716_v51 = vld [vmem:[#allocation2 + $0x5c] sm:$0x1]  ;;  %v2421_v6 = vsel %vm1537_vm2, %v2419_v18, %v2420_v23 }
  0x76   : > { %1594 = vrot.lane.b32.xlu1 %v1552_v40, %s5816_s27  ;;  %v452_v41 = vor.u32 %v450_v26, %v449_v35  ;;  %v453_v42 = vrot.slane %v449_v35, 4  ;;  %v457_v43 = vrot.slane %v455_v36, 7  ;;  %v1554_v55 = vrot.slane %v5559_v46, 1  ;;  %v5566_v4 = vld [vmem:[#allocation2 + $0xbc] ss:$0 sps:$4 sm:$0x11]  }
  0x77   : > { %v5550_v16 = vld [vmem:[#allocation2 + $0xc0] sm:$0xff]   ;;  %v1175_v53 = vsel %vm1103_vm5, %v1170_v38, %v1174_v30  ;;  %v1289_v61 = vrot.slane %v1287_v13, 1  ;;  %v3050_v62 = vshrl.u32 %v6155_v52, 16  ;;  %v3052_v0 = vshll.u32 %v6155_v52, 16  ;;  %v5562_v31 = vld [vmem:[#allocation2 + $0x48] sm:$0xff]   ;;  %v5592_v52 = vld [vmem:[%s7645_s1 + $0x50] sm:$0xff]  }
  0x78   : > { %v5547_v28 = vld [vmem:[#allocation2 + $0xc0] sm:$0xff]   ;;  %v5551_v29 = vld [vmem:[#allocation2 + $0xc8] ss:$0 sps:$4 sm:$0x11]   ;;  %v3038_v32 = vshrl.u32 %v5550_v16, 16  ;;  %v3040_v34 = vshll.u32 %v5550_v16, 16  ;;  %v460_v48 = vor.u32 %v458_v39, %v457_v43  ;;  %v713_v49 = vsel %vm5949_vm8, %v452_v41, %v712_v37  ;;  %5246 = vmatprep.subr.bf16.mxu0 %v5592_v52  ;;  %5454 = vmatprep.subr.bf16.mxu1 %v5592_v52 }
  0x79   : > { %3069 = vrot.lane.b32.xlu0 %v2928_v14, %s5818_s29  ;;  %v3045_v33 = vshll.u32 %v5551_v29, 16  ;;  %v462_v50 = vrot.slane %v457_v43, 4  ;;  %714 = vst [vmem:[#allocation2 + $0x54] sm:$0xf] %v713_v49  ;;  %v6164_v59 = vld [vmem:[#allocation2 + $0xc0] sm:$0xfe]   ;;  %v1290_v10 = vor.u32 %v1289_v61, %v1285_v60 }
  0x7a   : > { %1771 = vrot.lane.b32.xlu1 %v5542_v45, %s5818_s29  ;;  %v3042_v40 = vrot.slane %v3040_v34, 1  ;;  %v5558_v45 = vld [vmem:[#allocation2 + $0x3c] sm:$0xfe]   ;;  %v461_v57 = vsel %vm5941_vm7, %v453_v42, %v460_v48  ;;  %v2449_v3 = vrot.slane %v6164_v59, 1  ;;  %v1292_v63 = vshll.u32 %v5566_v4, 16 }
  0x7b   : > { %v3047_v44 = vrot.slane %v3045_v33, 1  ;;  %v1553_v54 = vrot.slane %v5558_v45, 1  ;;  %v717_v58 = vsel %vm5974_vm9, %v462_v50, %v716_v51  ;;  %715 = vst.msk [vmem:[#allocation2 + $0x58] sm:$0xf] %vm253_vm0, %v461_v57  ;;  %v5568_v8 = vld [vmem:[#allocation2 + $0xb4] sm:$0xfe]  }
  0x7c   : > { %v3043_v47 = vor.u32 %v3042_v40, %v3038_v32  ;;  %718 = vst [vmem:[#allocation2 + $0x5c] sm:$0x1] %v717_v58  ;;  %v1177_v9 = vshrl.u32 %v5575_v1, 16  ;;  %v1294_v11 = vrot.slane %v1292_v63, 1  ;;  %v1583_v13 = vrot.slane %v5568_v8, 1  ;;  %v5567_v58 = vld [vmem:[#allocation2 + $0xcc] sm:$0xff]  }
  0x7d   : > { %2480 = vrot.lane.b32.xlu0 %v2448_v20, %s5817_s28  ;;  %v1555_v2 = vsel %vm1537_vm2, %v1553_v54, %v1554_v55  ;;  %v5569_v12 = vld [vmem:[#allocation2 + $0xbc] ss:$0 sps:$4 sm:$0x11]   ;;  %v1179_v14 = vshll.u32 %v5575_v1, 16  ;;  %v3054_v39 = vrot.slane %v3052_v0, 1  ;;  %vm5820_vm14 = vmmov 0  }
  0x7e   : > { %1324 = vrot.lane.b32.xlu1 %v1283_v5, %s5817_s28  ;;  %v3048_v56 = vsel %vm1103_vm5, %v3043_v47, %v3047_v44  ;;  %v5580_v5 = vld [vmem:[#allocation2] sm:$0xff]   ;;  %v5564_v20 = vld [vmem:[#allocation2 + $0xc8] ss:$0 sps:$4 sm:$0x11]   ;;  %v1584_v18 = vrot.slane %v5569_v12, 1  ;;  %v1295_v25 = vsel %vm1103_vm5, %v1290_v10, %v1294_v11 }
  0x7f   : > { %911 = vst.msk [vmem:[#allocation3] sm:$0xff] %vm910_vm10, %v5580_v5  ;;  %v1181_v16 = vrot.slane %v1179_v14, 1  ;;  %v5571_v26 = vld [vmem:[#allocation2 + $0xd4] ss:$0 sps:$4 sm:$0x11]   ;;  %v2450_v36 = vrot.slane %v5564_v20, 1  ;;  %v3055_v0 = vor.u32 %v3054_v39, %v3050_v62 }
  0x80   : > { %v3057_v32 = vshll.u32 %v5571_v26, 16  ;;  %v1585_v37 = vsel %vm1537_vm2, %v1583_v13, %v1584_v18  ;;  %v5576_v40 = vld [vmem:[#allocation2 + $0x50] ss:$0 sps:$4 sm:$0x11]   ;;  %v323_v45 = vld [vmem:[%s5931_s26 + $0x38] sm:$0xf] }
  0x81   : > { %2657 = vrot.lane.b32.xlu0 %v5547_v28, %s5816_s27  ;;  %v1182_v44 = vor.u32 %v1181_v16, %v1177_v9  ;;  %v324_v46 = vld [vmem:[%s5931_s26 + $0x3c] sm:$0xf]  ;;  %v5572_v47 = vld [vmem:[#allocation2 + $0xc0] sm:$0xff]   ;;  %v1184_v48 = vshll.u32 %v5576_v40, 16  ;;  %v464_v49 = vshrl.u32 %v323_v45, 16  ;;  %v467_v50 = vshll.u32 %v323_v45, 16 }
  0x82   : > { %1614 = vrot.lane.b32.xlu1 %v1582_v17, %s5816_s27  ;;  %v5557_v15 = vld [vmem:[#allocation2 + $0x54] sm:$0xff]   ;;  %v3059_v42 = vrot.slane %v3057_v32, 1  ;;  %v472_v51 = vshrl.u32 %v324_v46, 16  ;;  %v475_v54 = vshll.u32 %v324_v46, 16  ;;  %v719_v55 = vld [vmem:[#allocation2 + $0x60] sm:$0xf] }
  0x83   : > { %v5560_v17 = vld [vmem:[#allocation2 + $0x54] sm:$0xff]   ;;  %v5561_v19 = vld [vmem:[#allocation2 + $0x5c] ss:$0 sps:$4 sm:$0x11]   ;;  %v1186_v59 = vrot.slane %v1184_v48, 1  ;;  %v466_v60 = vrot.slane %v464_v49, 7 }
  0x84   : > { %v2932_v23 = vshll.u32 %v5560_v17, 16  ;;  %v2937_v24 = vshll.u32 %v5561_v19, 16  ;;  %v6182_v34 = vld [vmem:[#allocation2 + $0x54] sm:$0xfe]   ;;  %v474_v61 = vrot.slane %v472_v51, 7  ;;  %v3060_v19 = vsel %vm1103_vm5, %v3055_v0, %v3059_v42 }
  0x85   : > { %3089 = vrot.lane.b32.xlu0 %v3048_v56, %s5818_s29  ;;  %v6186_v33 = vld [vmem:[#allocation2 + $0x5c] ss:$0 sps:$4 sm:$0x11]   ;;  %v2422_v43 = vrot.slane %v6182_v34, 1  ;;  %v6197_v57 = vld [vmem:[#allocation2 + $0x54] sm:$0xff]  }
  0x86   : > { %1791 = vrot.lane.b32.xlu1 %v5552_v22, %s5818_s29  ;;  %v2930_v22 = vshrl.u32 %v5560_v17, 16  ;;  %v2934_v29 = vrot.slane %v2932_v23, 1  ;;  %v2939_v30 = vrot.slane %v2937_v24, 1  ;;  %v2423_v1 = vrot.slane %v6186_v33, 1  ;;  %v723_v10 = vld [vmem:[#allocation2 + $0x68] sm:$0x1] }
  0x87   : > { %v5579_v4 = vld [vmem:[#allocation2 + $0x50] ss:$0 sps:$4 sm:$0x11]   ;;  %v477_v63 = vor.u32 %v475_v54, %v474_v61  ;;  %v479_v9 = vrot.slane %v474_v61, 4  ;;  %v1191_v11 = vshll.u32 %v6197_v57, 16 }
  0x88   : > { %v2935_v35 = vor.u32 %v2934_v29, %v2930_v22  ;;  %v1557_v8 = vrot.slane %v5579_v4, 1  ;;  %v5591_v20 = vld [vmem:[#allocation2 + $0x5c] ss:$0 sps:$4 sm:$0x11]   ;;  %v325_v16 = vld [vmem:[%s5931_s26 + $0x40] sm:$0xf]  ;;  %v2424_v42 = vsel %vm1537_vm2, %v2422_v43, %v2423_v1 }
  0x89   : > { %2462 = vrot.lane.b32.xlu0 %v2421_v6, %s5817_s28  ;;  %v469_v6 = vor.u32 %v467_v50, %v466_v60  ;;  %v724_v14 = vsel %vm5974_vm9, %v479_v9, %v723_v10  ;;  %v5594_v22 = vld [vmem:[%s7645_s1 + $0x10] sm:$0xff]   ;;  %v1193_v24 = vrot.slane %v1191_v11, 1  ;;  %v481_v26 = vshrl.u32 %v325_v16, 16  ;;  %v5596_v48 = vld [vmem:[#allocation2 + $0x5c] ss:$0 sps:$4 sm:$0x11]  }
  0x8a   : > { %1306 = vrot.lane.b32.xlu1 %v1175_v53, %s5817_s28  ;;  %v2940_v41 = vsel %vm1103_vm5, %v2935_v35, %v2939_v30  ;;  %v2451_v53 = vsel %vm1537_vm2, %v2449_v3, %v2450_v36  ;;  %v1187_v3 = vsel %vm1103_vm5, %v1182_v44, %v1186_v59  ;;  %725 = vst [vmem:[#allocation2 + $0x68] sm:$0x1] %v724_v14  ;;  %v5585_v29 = vld [vmem:[#allocation2 + $0x54] sm:$0xff]   ;;  %v1196_v30 = vshll.u32 %v5591_v20, 16  ;;  %v726_v36 = vld [vmem:[#allocation2 + $0x6c] sm:$0xf] }
  0x8b   : > { %v720_v13 = vsel %vm5949_vm8, %v469_v6, %v719_v55  ;;  %5247 = vmatpush3.bf16.msra.mxu0 %v5594_v22  ;;  %5462 = vmatpush3.bf16.msra.mxu1 %v5594_v22  ;;  %v483_v33 = vrot.slane %v481_v26, 7  ;;  %v1560_v6 = vrot.slane %v5596_v48, 1  ;;  %v5597_v11 = vld [vmem:[#allocation2 + $0x14] ss:$0 sps:$4 sm:$0x11]  }
  0x8c   : > { %721 = vst [vmem:[#allocation2 + $0x60] sm:$0xf] %v720_v13  ;;  %v1198_v39 = vrot.slane %v1196_v30, 1 }
  0x8d   : > { %2639 = vrot.lane.b32.xlu0 %v5557_v15, %s5816_s27  ;;  %v1189_v15 = vshrl.u32 %v6197_v57, 16  ;;  %v487_v46 = vrot.slane %v483_v33, 4 }
  0x8e   : > { %1596 = vrot.lane.b32.xlu1 %v1555_v2, %s5816_s27  ;;  %v5578_v2 = vld [vmem:[#allocation2 + $0x48] sm:$0xfe]  }
  0x8f   : > { %v1556_v62 = vrot.slane %v5578_v2, 1  ;;  %v1194_v44 = vor.u32 %v1193_v24, %v1189_v15  ;;  %v730_v15 = vld [vmem:[#allocation2 + $0x74] sm:$0x1] }
  0x91   : > { %3071 = vrot.lane.b32.xlu0 %v2940_v41, %s5818_s29  ;;  %v1558_v23 = vsel %vm1537_vm2, %v1556_v62, %v1557_v8  ;;  %v5583_v55 = vld [vmem:[#allocation2 + $0x68] ss:$0 sps:$4 sm:$0x11]   ;;  %v1199_v59 = vsel %vm1103_vm5, %v1194_v44, %v1198_v39  ;;  %v5606_v39 = vld [vmem:[%s7645_s1 + $0x60] sm:$0xff]  }
  0x92   : > { %1773 = vrot.lane.b32.xlu1 %v5562_v31, %s5818_s29  ;;  %v470_v31 = vrot.slane %v466_v60, 4  ;;  %v2949_v1 = vshll.u32 %v5583_v55, 16  ;;  %v5588_v2 = vld [vmem:[#allocation2 + $0x68] ss:$0 sps:$4 sm:$0x11]  }
  0x93   : > { %v2426_v62 = vrot.slane %v5588_v2, 1 }
  0x94   : > { %v478_v12 = vsel %vm5941_vm7, %v470_v31, %v477_v63  ;;  %v2951_v52 = vrot.slane %v2949_v1, 1  ;;  %v5611_v1 = vld [vmem:[#allocation2 + $0x68] ss:$0 sps:$4 sm:$0x11]  }
  0x95   : > { %2482 = vrot.lane.b32.xlu0 %v2451_v53, %s5817_s28  ;;  %722 = vst.msk [vmem:[#allocation2 + $0x64] sm:$0xf] %vm253_vm0, %v478_v12 }
  0x96   : > { %1326 = vrot.lane.b32.xlu1 %v1295_v25, %s5817_s28  ;;  %v326_v25 = vld [vmem:[%s5931_s26 + $0x44] sm:$0xf] }
  0x97   : > { %v489_v32 = vshrl.u32 %v326_v25, 16  ;;  %v492_v35 = vshll.u32 %v326_v25, 16 }
  0x99   : > { %2659 = vrot.lane.b32.xlu0 %v5567_v58, %s5816_s27  ;;  %v491_v40 = vrot.slane %v489_v32, 7 }
  0x9a   : > { %1616 = vrot.lane.b32.xlu1 %v1585_v37, %s5816_s27  ;;  %v5598_v37 = vld [vmem:[#allocation2 + $0xc] sm:$0xff]  }
  0x9b   : > { %v494_v51 = vor.u32 %v492_v35, %v491_v40  ;;  %v2005_v53 = vshrl.u32 %v5598_v37, 16  ;;  %v2007_v31 = vshll.u32 %v5598_v37, 16  ;;  %v496_v8 = vrot.slane %v491_v40, 4  ;;  %v5604_v37 = vld [vmem:[#allocation2 + $0x18] sm:$0xff]  }
  0x9c   : > { %v5577_v50 = vld [vmem:[#allocation2 + $0x60] sm:$0xff]   ;;  %v2017_v40 = vshrl.u32 %v5604_v37, 16 }
  0x9d   : > { %3091 = vrot.lane.b32.xlu0 %v3060_v19, %s5818_s29  ;;  %v5582_v34 = vld [vmem:[#allocation2 + $0x60] sm:$0xff]   ;;  %v495_v43 = vsel %vm5941_vm7, %v487_v46, %v494_v51  ;;  %v2009_v12 = vrot.slane %v2007_v31, 1  ;;  %v2012_v19 = vshll.u32 %v5597_v11, 16  ;;  %v1208_v31 = vshll.u32 %v5611_v1, 16 }
  0x9e   : > { %1793 = vrot.lane.b32.xlu1 %v5572_v47, %s5818_s29  ;;  %v5595_v47 = vld [vmem:[#allocation2 + $0x54] sm:$0xfe]   ;;  %v5587_v58 = vld [vmem:[#allocation2 + $0x60] sm:$0xfe]   ;;  %729 = vst.msk [vmem:[#allocation2 + $0x70] sm:$0xf] %vm253_vm0, %v495_v43 }
  0x9f   : > { %v1587_v38 = vpop.permute.xlu1 %1586  ;;  %v2942_v61 = vshrl.u32 %v5582_v34, 16  ;;  %v2944_v0 = vshll.u32 %v5582_v34, 16  ;;  %v2425_v4 = vrot.slane %v5587_v58, 1  ;;  %v2010_v20 = vor.u32 %v2009_v12, %v2005_v53 }
  0xa0   : > { %v1210_v12 = vrot.slane %v1208_v31, 1 }
  0xa1   : > { %2464 = vrot.lane.b32.xlu0 %v2424_v42, %s5817_s28  ;;  %v2946_v63 = vrot.slane %v2944_v0, 1  ;;  %v2427_v26 = vsel %vm1537_vm2, %v2425_v4, %v2426_v62  ;;  %v2019_v42 = vshll.u32 %v5604_v37, 16 }
  0xa2   : > { %v1297_v28 = vpop.permute.xlu0 %1296  ;;  %1308 = vrot.lane.b32.xlu1 %v1187_v3, %s5817_s28  ;;  %v1559_v3 = vrot.slane %v5595_v47, 1  ;;  %v5610_v47 = vld [vmem:[#allocation2 + $0x60] sm:$0xff]  }
  0xa3   : > { %1345 = vst.msk [vmem:[#allocation3] sm:$0xff] %vm1344_vm11, %v1297_v28  ;;  %v484_v28 = vshll.u32 %v325_v16, 16  ;;  %v2947_v14 = vor.u32 %v2946_v63, %v2942_v61  ;;  %v5602_v16 = vld [vmem:[%s7645_s1 + $0x18] sm:$0xff]   ;;  %v1201_v61 = vshrl.u32 %v5610_v47, 16  ;;  %v1203_v2 = vshll.u32 %v5610_v47, 16  ;;  %v5612_v63 = vld [vmem:[#allocation2 + $0x24] sm:$0xff]  }
  0xa4   : > { %1635 = vst.msk [vmem:[#allocation3] sm:$0xff] %vm1634_vm12, %v1587_v38  ;;  %v5599_v38 = vld [vmem:[%s7645_s1 + $0x58] sm:$0xff]   ;;  %v1561_v10 = vsel %vm1537_vm2, %v1559_v3, %v1560_v6  ;;  %v5618_v47 = vld [vmem:[#allocation2 + $0x68] ss:$0 sps:$4 sm:$0x11]  }
  0xa5   : > { %v486_v45 = vor.u32 %v484_v28, %v483_v33  ;;  %5248 = vmatprep.subr.bf16.mxu0 %v5599_v38  ;;  %5455 = vmatprep.subr.bf16.mxu1 %v5599_v38  ;;  %v2952_v22 = vsel %vm1103_vm5, %v2947_v14, %v2951_v52  ;;  %v5603_v28 = vld [vmem:[#allocation2 + $0x60] sm:$0xff]   ;;  %v1205_v6 = vrot.slane %v1203_v2, 1  ;;  %v5613_v52 = vld [vmem:[#allocation2 + $0x2c] ss:$0 sps:$4 sm:$0x11]   ;;  %v2029_v14 = vshrl.u32 %v5612_v63, 16 }
  0xa6   : > { %v6195_v56 = vpop.permute.xlu0 %2631  ;;  %1598 = vrot.lane.b32.xlu1 %v1558_v23, %s5816_s27  ;;  %2641 = vrot.lane.b32.xlu0 %v5577_v50, %s5816_s27  ;;  %v2014_v23 = vrot.slane %v2012_v19, 1  ;;  %v5605_v33 = vld [vmem:[#allocation2 + $0x20] ss:$0 sps:$4 sm:$0x11]   ;;  %v5616_v19 = vld [vmem:[%s7645_s1 + $0x28] sm:$0xff]  }
  0xa7   : > { %v727_v54 = vsel %vm5949_vm8, %v486_v45, %v726_v36  ;;  %5249 = vmatpush3.bf16.msra.mxu0 %v5602_v16  ;;  %5463 = vmatpush3.bf16.msra.mxu1 %v5602_v16  ;;  %v2024_v44 = vshll.u32 %v5605_v33, 16  ;;  %v5609_v45 = vld [vmem:[%s7645_s1 + $0x20] sm:$0xff]   ;;  %v1206_v11 = vor.u32 %v1205_v6, %v1201_v61  ;;  %v329_v61 = vld [vmem:[%s5931_s26 + $0x50] sm:$0xf] }
  0xa8   : > { %v6202_v5 = vpop.permute.xlu1 %2629  ;;  %728 = vst [vmem:[#allocation2 + $0x6c] sm:$0xf] %v727_v54  ;;  %v2015_v32 = vsel %vm1103_vm5, %v2010_v20, %v2014_v23  ;;  %5250 = vmatprep.subr.bf16.mxu0 %v5606_v39  ;;  %5456 = vmatprep.subr.bf16.mxu1 %v5606_v39  ;;  %v2036_v20 = vshll.u32 %v5613_v52, 16 }
  0xa9   : > { %2212 = vst.msk [vmem:[#allocation3 + $0x8] sm:$0xff] %vm910_vm10, %v2015_v32  ;;  %v2026_v50 = vrot.slane %v2024_v44, 1  ;;  %v1211_v23 = vsel %vm1103_vm5, %v1206_v11, %v1210_v12  ;;  %v5617_v44 = vld [vmem:[#allocation2 + $0x60] sm:$0xfe]  }
  0xaa   : > { %1775 = vrot.lane.b32.xlu1 %v5585_v29, %s5818_s29  ;;  %3073 = vrot.lane.b32.xlu0 %v2952_v22, %s5818_s29  ;;  %v5619_v22 = vld [vmem:[#allocation2 + $0xc] sm:$0xff]   ;;  %v2038_v32 = vrot.slane %v2036_v20, 1 }
  0xab   : > { %5251 = vmatpush3.bf16.msra.mxu0 %v5609_v45  ;;  %5464 = vmatpush3.bf16.msra.mxu1 %v5609_v45  ;;  %912 = vst.msk [vmem:[#allocation3 + $0x18] sm:$0xff] %vm910_vm10, %v5619_v22 }
  0xad   : > { %v6220_v17 = vpop.permute.xlu0 %2633 }
  0xae   : > { %1310 = vrot.lane.b32.xlu1 %v1199_v59, %s5817_s28  ;;  %2466 = vrot.lane.b32.xlu0 %v2427_v26, %s5817_s28 }
  0xaf   : > { %v1764_v18 = vpop.permute.xlu1 %1763  ;;  %v5600_v24 = vld [vmem:[#allocation2 + $0x6c] sm:$0xff]  }
  0xb0   : > { %1812 = vst.msk [vmem:[#allocation3] sm:$0xff] %vm1811_vm13, %v1764_v18  ;;  %v731_v18 = vsel %vm5974_vm9, %v496_v8, %v730_v15  ;;  %v5593_v30 = vld [vmem:[#allocation2 + $0x6c] sm:$0xff]   ;;  %v2954_v35 = vshrl.u32 %v5600_v24, 16  ;;  %v2956_v36 = vshll.u32 %v5600_v24, 16  ;;  %v327_v15 = vld [vmem:[%s5931_s26 + $0x48] sm:$0xf] }
  0xb1   : > { %732 = vst [vmem:[#allocation2 + $0x74] sm:$0x1] %v731_v18  ;;  %v5607_v54 = vld [vmem:[#allocation2 + $0x6c] sm:$0xfe]   ;;  %v498_v18 = vshrl.u32 %v327_v15, 16  ;;  %v501_v16 = vshll.u32 %v327_v15, 16 }
  0xb2   : > { %1600 = vrot.lane.b32.xlu1 %v1561_v10, %s5816_s27  ;;  %v2958_v38 = vrot.slane %v2956_v36, 1  ;;  %2643 = vrot.lane.b32.xlu0 %v5593_v30, %s5816_s27  ;;  %v2428_v58 = vrot.slane %v5607_v54, 1  ;;  %v5614_v10 = vld [vmem:[%s7645_s1 + $0x68] sm:$0xff]   ;;  %v5620_v30 = vld [vmem:[%s7645_s1 + $0x70] sm:$0xff]  }
  0xb3   : > { %v6237_v41 = vpop.permute.xlu1 %1765  ;;  %v6242_v49 = vpop.permute.xlu0 %2452  ;;  %5252 = vmatprep.subr.bf16.mxu0 %v5614_v10  ;;  %5457 = vmatprep.subr.bf16.mxu1 %v5614_v10 }
  0xb4   : > { %2500 = vst.msk [vmem:[#allocation3 + $0x8] sm:$0xff] %vm1344_vm11, %v6242_v49  ;;  %v2021_v49 = vrot.slane %v2019_v42, 1  ;;  %5253 = vmatpush3.bf16.msra.mxu0 %v5616_v19  ;;  %5465 = vmatpush3.bf16.msra.mxu1 %v5616_v19 }
  0xb5   : > { %2677 = vst.msk [vmem:[#allocation3 + $0x8] sm:$0xff] %vm1634_vm12, %v6202_v5  ;;  %v2959_v5 = vor.u32 %v2958_v38, %v2954_v35  ;;  %v500_v35 = vrot.slane %v498_v18, 7  ;;  %5254 = vmatprep.subr.bf16.mxu0 %v5620_v30  ;;  %v5623_v38 = vld [vmem:[%s7645_s1 + $0x30] sm:$0xff]   ;;  %5458 = vmatprep.subr.bf16.mxu1 %v5620_v30  ;;  %v740_v18 = vld [vmem:[#allocation2 + $0x84] sm:$0xf] }
  0xb6   : > { %1777 = vrot.lane.b32.xlu1 %v5603_v28, %s5818_s29  ;;  %v2022_v55 = vor.u32 %v2021_v49, %v2017_v40  ;;  %v733_v28 = vld [vmem:[#allocation2 + $0x78] sm:$0xf]  ;;  %v1562_v49 = vrot.slane %v5617_v44, 1  ;;  %v5633_v44 = vld [vmem:[#allocation2 + $0x6c] sm:$0xfe]  }
  0xb7   : > { %v6250_v57 = vpop.permute.xlu1 %1588  ;;  %v6254_v60 = vpop.permute.xlu0 %2454  ;;  %v503_v40 = vor.u32 %v501_v16, %v500_v35  ;;  %v504_v42 = vrot.slane %v500_v35, 4 }
  0xb8   : > { %v5601_v46 = vld [vmem:[#allocation2 + $0x74] ss:$0 sps:$4 sm:$0x11]   ;;  %v2027_v0 = vsel %vm1103_vm5, %v2022_v55, %v2026_v50  ;;  %5255 = vmatpush3.bf16.msra.mxu0 %v5623_v38  ;;  %v5625_v50 = vld [vmem:[#allocation2 + $0x18] sm:$0xff]   ;;  %5466 = vmatpush3.bf16.msra.mxu1 %v5623_v38 }
  0xb9   : > { %v2961_v53 = vshll.u32 %v5601_v46, 16  ;;  %v5608_v34 = vld [vmem:[#allocation2 + $0x74] ss:$0 sps:$4 sm:$0x11]   ;;  %2213 = vst.msk [vmem:[#allocation3 + $0x20] sm:$0xff] %vm910_vm10, %v2027_v0  ;;  %913 = vst.msk [vmem:[#allocation3 + $0x30] sm:$0xff] %vm910_vm10, %v5625_v50 }
  0xba   : > { %v2429_v59 = vrot.slane %v5608_v34, 1  ;;  %2501 = vst.msk [vmem:[#allocation3 + $0x20] sm:$0xff] %vm1344_vm11, %v6254_v60  ;;  %v2031_v60 = vshll.u32 %v5612_v63, 16  ;;  %1312 = vrot.lane.b32.xlu1 %v1211_v23, %s5817_s28  ;;  %v5624_v34 = vld [vmem:[#allocation2 + $0x6c] sm:$0xff]   ;;  %v1565_v50 = vrot.slane %v5633_v44, 1 }
  0xbb   : > { %v6258_v9 = vpop.permute.xlu1 %1590  ;;  %v6261_v13 = vpop.permute.xlu0 %2456  ;;  %v2963_v43 = vrot.slane %v2961_v53, 1  ;;  %2678 = vst.msk [vmem:[#allocation3 + $0x20] sm:$0xff] %vm1634_vm12, %v6195_v56  ;;  %v328_v56 = vld [vmem:[%s5931_s26 + $0x4c] sm:$0xf]  ;;  %v737_v53 = vld [vmem:[#allocation2 + $0x80] sm:$0x1] }
  0xbc   : > { %v2430_v8 = vsel %vm1537_vm2, %v2428_v58, %v2429_v59  ;;  %v2033_v24 = vrot.slane %v2031_v60, 1  ;;  %v509_v26 = vshll.u32 %v328_v56, 16  ;;  %v5631_v58 = vld [vmem:[#allocation2 + $0x74] ss:$0 sps:$4 sm:$0x11]   ;;  %v515_v60 = vshrl.u32 %v329_v61, 16 }
  0xbd   : > { %v2964_v4 = vsel %vm1103_vm5, %v2959_v5, %v2963_v43  ;;  %v1563_v5 = vrot.slane %v5618_v47, 1  ;;  %v5629_v43 = vld [vmem:[%s7645_s1 + $0x38] sm:$0xff]   ;;  %v1220_v12 = vshll.u32 %v5631_v58, 16 }
  0xbe   : > { %3075 = vrot.lane.b32.xlu0 %v2964_v4, %s5818_s29  ;;  %v2034_v37 = vor.u32 %v2033_v24, %v2029_v14  ;;  %v330_v14 = vld [vmem:[%s5931_s26 + $0x54] sm:$0xf]  ;;  %v517_v23 = vrot.slane %v515_v60, 7 }
  0xbf   : > { %v3062_v25 = vpop.permute.xlu0 %3061  ;;  %v6272_v29 = vpop.permute.xlu1 %1298  ;;  %v1564_v55 = vsel %vm1537_vm2, %v1562_v49, %v1563_v5  ;;  %v1222_v22 = vrot.slane %v1220_v12, 1  ;;  %v523_v24 = vshrl.u32 %v330_v14, 16 }
  0xc0   : > { %3109 = vst.msk [vmem:[#allocation3 + $0x8] sm:$0xff] %vm1811_vm13, %v3062_v25  ;;  %v506_v25 = vshrl.u32 %v328_v56, 16  ;;  %v2039_v45 = vsel %vm1103_vm5, %v2034_v37, %v2038_v32  ;;  %1602 = vrot.lane.b32.xlu1 %v1564_v55, %s5816_s27  ;;  %v518_v56 = vshll.u32 %v329_v61, 16  ;;  %v526_v32 = vshll.u32 %v330_v14, 16  ;;  %v332_v14 = vld [vmem:[%s5931_s26 + $0x5c] sm:$0xf] }
  0xc1   : > { %1346 = vst.msk [vmem:[#allocation3 + $0x18] sm:$0xff] %vm1344_vm11, %v6272_v29 }
  0xc2   : > { %2468 = vrot.lane.b32.xlu0 %v2430_v8, %s5817_s28  ;;  %v508_v33 = vrot.slane %v506_v25, 7  ;;  %1636 = vst.msk [vmem:[#allocation3 + $0x18] sm:$0xff] %vm1634_vm12, %v6250_v57  ;;  %v3381_v25 = vld [vmem:[#allocation3] sm:$0xff]  ;;  %v520_v38 = vor.u32 %v518_v56, %v517_v23 }
  0xc3   : > { %v3064_v48 = vpop.permute.xlu0 %3063  ;;  %v6289_v51 = vpop.permute.xlu1 %1300  ;;  %1813 = vst.msk [vmem:[#allocation3 + $0x18] sm:$0xff] %vm1811_vm13, %v6237_v41  ;;  %v5626_v41 = vld [vmem:[%s7645_s1 + $0x78] sm:$0xff]  }
  0xc4   : > { %3110 = vst.msk [vmem:[#allocation3 + $0x20] sm:$0xff] %vm1811_vm13, %v3064_v48  ;;  %v511_v46 = vor.u32 %v509_v26, %v508_v33  ;;  %v513_v29 = vrot.slane %v508_v33, 4  ;;  %v734_v48 = vsel %vm5949_vm8, %v503_v40, %v733_v28  ;;  %5256 = vmatprep.subr.bf16.mxu0 %v5626_v41  ;;  %5459 = vmatprep.subr.bf16.mxu1 %v5626_v41  ;;  %v5635_v26 = vld [vmem:[#allocation2 + $0x30] sm:$0xff]   ;;  %v521_v40 = vrot.slane %v517_v23, 4 }
  0xc5   : > { %2214 = vst.msk [vmem:[#allocation3 + $0x38] sm:$0xff] %vm910_vm10, %v2039_v45  ;;  %735 = vst [vmem:[#allocation2 + $0x78] sm:$0xf] %v734_v48  ;;  %5257 = vmatpush3.bf16.msra.mxu0 %v5629_v43  ;;  %5467 = vmatpush3.bf16.msra.mxu1 %v5629_v43  ;;  %v2041_v47 = vshrl.u32 %v5635_v26, 16  ;;  %v741_v49 = vsel %vm5949_vm8, %v520_v38, %v740_v18  ;;  %v747_v18 = vld [vmem:[#allocation2 + $0x90] sm:$0xf] }
  0xc6   : > { %2502 = vst.msk [vmem:[#allocation3 + $0x38] sm:$0xff] %vm1344_vm11, %v6261_v13  ;;  %v512_v57 = vsel %vm5941_vm7, %v504_v42, %v511_v46  ;;  %v738_v54 = vsel %vm5974_vm9, %v513_v29, %v737_v53  ;;  %1347 = vst.msk [vmem:[#allocation3 + $0x30] sm:$0xff] %vm1344_vm11, %v6289_v51  ;;  %v5630_v51 = vld [vmem:[#allocation2 + $0x6c] sm:$0xff]   ;;  %1779 = vrot.lane.b32.xlu1 %v5624_v34, %s5818_s29  ;;  %v525_v42 = vrot.slane %v523_v24, 7  ;;  %v2043_v34 = vshll.u32 %v5635_v26, 16 }
  0xc7   : > { %v6295_v3 = vpop.permute.xlu0 %3065  ;;  %v6300_v62 = vpop.permute.xlu1 %1767  ;;  %2679 = vst.msk [vmem:[#allocation3 + $0x38] sm:$0xff] %vm1634_vm12, %v6220_v17  ;;  %739 = vst [vmem:[#allocation2 + $0x80] sm:$0x1] %v738_v54  ;;  %v3382_v59 = vld [vmem:[#allocation3 + $0x8] sm:$0xff]  ;;  %v1213_v1 = vshrl.u32 %v5630_v51, 16  ;;  %v1215_v11 = vshll.u32 %v5630_v51, 16 }
  0xc8   : > { %736 = vst.msk [vmem:[#allocation2 + $0x7c] sm:$0xf] %vm253_vm0, %v512_v57  ;;  %3660 = vmatprep.mubr.bf16.mxu0 %v3382_v59  ;;  %v5634_v46 = vld [vmem:[#allocation2 + $0x74] ss:$0 sps:$4 sm:$0x11]   ;;  %v528_v48 = vor.u32 %v526_v32, %v525_v42  ;;  %v5637_v57 = vld [vmem:[#allocation2 + $0x24] sm:$0xff]  }
  0xc9   : > { %3111 = vst.msk [vmem:[#allocation3 + $0x38] sm:$0xff] %vm1811_vm13, %v6295_v3  ;;  %v1217_v16 = vrot.slane %v1215_v11, 1  ;;  %3661 = vmatmul.mubr.bf16.vlgmr.msra.gmra.mrb[0].mxu0 %v3381_v25  ;;  %742 = vst [vmem:[#allocation2 + $0x84] sm:$0xf] %v741_v49  ;;  %v1566_v41 = vrot.slane %v5634_v46, 1  ;;  %v530_v55 = vrot.slane %v525_v42, 4 }
  0xca   : > { %1637 = vst.msk [vmem:[#allocation3 + $0x30] sm:$0xff] %vm1634_vm12, %v6258_v9  ;;  %v5636_v54 = vld [vmem:[#allocation2 + $0x38] ss:$0 sps:$4 sm:$0x11]   ;;  %v529_v43 = vsel %vm5941_vm7, %v521_v40, %v528_v48  ;;  %v744_v51 = vld [vmem:[#allocation2 + $0x8c] sm:$0x1] }
  0xcb   : > { %v6321_v36 = vpop.permute.xlu0 %2458  ;;  %v6328_v39 = vpop.permute.xlu1 %1302  ;;  %1814 = vst.msk [vmem:[#allocation3 + $0x30] sm:$0xff] %vm1811_vm13, %v6300_v62  ;;  %v3385_v35 = vld [vmem:[#allocation3 + $0x20] sm:$0xff]  ;;  %v1218_v33 = vor.u32 %v1217_v16, %v1213_v1  ;;  %v1567_v58 = vsel %vm1537_vm2, %v1565_v50, %v1566_v41  ;;  %v2045_v59 = vrot.slane %v2043_v34, 1  ;;  %v2048_v61 = vshll.u32 %v5636_v54, 16  ;;  %v5648_v42 = vld [vmem:[#allocation2 + $0xa8] sm:$0xff]  }
  0xcc   : > { %3668 = vmatprep.mubr.bf16.mxu0 %v3385_v35  ;;  %914 = vst.msk [vmem:[#allocation3 + $0x48] sm:$0xff] %vm910_vm10, %v5637_v57  ;;  %v540_v23 = vshrl.u32 %v332_v14, 16  ;;  %v543_v49 = vshll.u32 %v332_v14, 16 }
  0xcd   : > { %v1223_v29 = vsel %vm1103_vm5, %v1218_v33, %v1222_v22  ;;  %743 = vst.msk [vmem:[#allocation2 + $0x88] sm:$0xf] %vm253_vm0, %v529_v43 }
  0xce   : > { %v5622_v3 = vld [vmem:[#allocation2 + $0x80] ss:$0 sps:$4 sm:$0x11]   ;;  %1314 = vrot.lane.b32.xlu1 %v1223_v29, %s5817_s28  ;;  %1348 = vst.msk [vmem:[#allocation3 + $0x48] sm:$0xff] %vm1344_vm11, %v6328_v39  ;;  %v2046_v39 = vor.u32 %v2045_v59, %v2041_v47  ;;  %v542_v47 = vrot.slane %v540_v23, 7 }
  0xcf   : > { %v6351_v13 = vpop.permute.xlu0 %2635  ;;  %v6358_v17 = vpop.permute.xlu1 %1592  ;;  %v5615_v9 = vld [vmem:[#allocation2 + $0x78] sm:$0xff]   ;;  %v2973_v52 = vshll.u32 %v5622_v3, 16  ;;  %v5628_v62 = vld [vmem:[#allocation2 + $0x80] ss:$0 sps:$4 sm:$0x11]   ;;  %v3384_v3 = vld [vmem:[#allocation3 + $0x18] sm:$0xff] }
  0xd0   : > { %v5621_v4 = vld [vmem:[#allocation2 + $0x78] sm:$0xff]   ;;  %2645 = vrot.lane.b32.xlu0 %v5615_v9, %s5816_s27  ;;  %v2432_v20 = vrot.slane %v5628_v62, 1  ;;  %v745_v9 = vsel %vm5974_vm9, %v530_v55, %v744_v51  ;;  %1638 = vst.msk [vmem:[#allocation3 + $0x48] sm:$0xff] %vm1634_vm12, %v6358_v17  ;;  %v3388_v62 = vld [vmem:[#allocation3 + $0x38] sm:$0xff]  ;;  %v545_v27 = vor.u32 %v543_v49, %v542_v47  ;;  %v2161_v55 = vshrl.u32 %v5648_v42, 16 }
  0xd1   : > { %v5627_v6 = vld [vmem:[#allocation2 + $0x78] sm:$0xfe]   ;;  %v2966_v31 = vshrl.u32 %v5621_v4, 16  ;;  %v2968_v63 = vshll.u32 %v5621_v4, 16  ;;  %v2975_v19 = vrot.slane %v2973_v52, 1  ;;  %3669 = vmatmul.mubr.bf16.gmra.mrb[4].mxu0 %v3384_v3 }
  0xd2   : > { %v2431_v10 = vrot.slane %v5627_v6, 1  ;;  %746 = vst [vmem:[#allocation2 + $0x8c] sm:$0x1] %v745_v9  ;;  %v5640_v4 = vld [vmem:[#allocation2 + $0x78] sm:$0xff]   ;;  %1604 = vrot.lane.b32.xlu1 %v1567_v58, %s5816_s27  ;;  %3676 = vmatprep.mubr.bf16.mxu0 %v3388_v62  ;;  %v2163_v9 = vshll.u32 %v5648_v42, 16 }
  0xd3   : > { %v6370_v0 = vpop.permute.xlu0 %3067  ;;  %v6372_v2 = vpop.permute.xlu1 %1769  ;;  %v2970_v15 = vrot.slane %v2968_v63, 1  ;;  %v5643_v63 = vld [vmem:[#allocation2 + $0x78] sm:$0xff]   ;;  %v5644_v52 = vld [vmem:[#allocation2 + $0x80] ss:$0 sps:$4 sm:$0x11]  }
  0xd4   : > { %v2433_v53 = vsel %vm1537_vm2, %v2431_v10, %v2432_v20  ;;  %1815 = vst.msk [vmem:[#allocation3 + $0x48] sm:$0xff] %vm1811_vm13, %v6372_v2  ;;  %v331_v10 = vld [vmem:[%s5931_s26 + $0x58] sm:$0xf]  ;;  %v1225_v12 = vshrl.u32 %v5643_v63, 16  ;;  %v1227_v17 = vshll.u32 %v5643_v63, 16  ;;  %v5632_v22 = vld [vmem:[#allocation2 + $0x84] sm:$0xff]  }
  0xd5   : > { %v2971_v30 = vor.u32 %v2970_v15, %v2966_v31  ;;  %v2050_v31 = vrot.slane %v2048_v61, 1  ;;  %v532_v60 = vshrl.u32 %v331_v10, 16  ;;  %v535_v56 = vshll.u32 %v331_v10, 16  ;;  %v5638_v24 = vld [vmem:[#allocation2 + $0x84] sm:$0xff]   ;;  %v5650_v3 = vld [vmem:[#allocation2 + $0x9c] sm:$0xff]  }
  0xd6   : > { %1781 = vrot.lane.b32.xlu1 %v5640_v4, %s5818_s29  ;;  %v1229_v2 = vrot.slane %v1227_v17, 1  ;;  %v5641_v26 = vld [vmem:[#allocation2 + $0x84] sm:$0xfe]   ;;  %v2978_v35 = vshrl.u32 %v5638_v24, 16  ;;  %v2980_v33 = vshll.u32 %v5638_v24, 16  ;;  %924 = vst.msk [vmem:[#allocation3 + $0x138] sm:$0xff] %vm910_vm10, %v5650_v3 }
  0xd7   : > { %v6375_v8 = vpop.permute.xlu0 %2478  ;;  %v2976_v45 = vsel %vm1103_vm5, %v2971_v30, %v2975_v19  ;;  %v2051_v11 = vsel %vm1103_vm5, %v2046_v39, %v2050_v31  ;;  %v1232_v19 = vshll.u32 %v5644_v52, 16  ;;  %v534_v20 = vrot.slane %v532_v60, 7  ;;  %v5647_v34 = vld [vmem:[#allocation2 + $0x80] ss:$0 sps:$4 sm:$0x11]   ;;  %v3387_v63 = vld [vmem:[#allocation3 + $0x30] sm:$0xff] }
  0xd8   : > { %v6378_v28 = vpop.permute.xlu1 %1322  ;;  %3077 = vrot.lane.b32.xlu0 %v2976_v45, %s5818_s29  ;;  %2215 = vst.msk [vmem:[#allocation3 + $0x50] sm:$0xff] %vm910_vm10, %v2051_v11  ;;  %v1230_v30 = vor.u32 %v1229_v2, %v1225_v12  ;;  %v2434_v44 = vrot.slane %v5641_v26, 1  ;;  %v5649_v51 = vld [vmem:[#allocation2 + $0xb0] ss:$0 sps:$4 sm:$0x11]   ;;  %v1569_v61 = vrot.slane %v5647_v34, 1 }
  0xd9   : > { %2503 = vst.msk [vmem:[#allocation3 + $0x50] sm:$0xff] %vm1344_vm11, %v6321_v36  ;;  %v5639_v25 = vld [vmem:[#allocation2 + $0x8c] ss:$0 sps:$4 sm:$0x11]   ;;  %v537_v36 = vor.u32 %v535_v56, %v534_v20  ;;  %v1234_v45 = vrot.slane %v1232_v19, 1  ;;  %v538_v46 = vrot.slane %v534_v20, 4  ;;  %3677 = vmatmul.mubr.bf16.gmra.mrb[8].mxu0 %v3387_v63 }
  0xda   : > { %2680 = vst.msk [vmem:[#allocation3 + $0x50] sm:$0xff] %vm1634_vm12, %v6351_v13  ;;  %v2985_v38 = vshll.u32 %v5639_v25, 16  ;;  %v5642_v40 = vld [vmem:[#allocation2 + $0x8c] ss:$0 sps:$4 sm:$0x11]   ;;  %v2168_v4 = vshll.u32 %v5649_v51, 16 }
  0xdb   : > { %v6380_v37 = vpop.permute.xlu0 %2655  ;;  %3112 = vst.msk [vmem:[#allocation3 + $0x50] sm:$0xff] %vm1811_vm13, %v6370_v0  ;;  %v748_v13 = vsel %vm5949_vm8, %v537_v36, %v747_v18  ;;  %v2982_v0 = vrot.slane %v2980_v33, 1  ;;  %v2435_v48 = vrot.slane %v5642_v40, 1  ;;  %v1235_v57 = vsel %vm1103_vm5, %v1230_v30, %v1234_v45  ;;  %v751_v31 = vld [vmem:[#allocation2 + $0x98] sm:$0x1]  ;;  %v5653_v21 = vld [vmem:[#allocation2 + $0x84] sm:$0xff]  }
  0xdc   : > { %v6387_v5 = vpop.permute.xlu1 %1612  ;;  %2470 = vrot.lane.b32.xlu0 %v2433_v53, %s5817_s28  ;;  %749 = vst [vmem:[#allocation2 + $0x90] sm:$0xf] %v748_v13  ;;  %v2987_v29 = vrot.slane %v2985_v38, 1  ;;  %v5646_v53 = vld [vmem:[#allocation2 + $0x78] sm:$0xfe]   ;;  %1316 = vrot.lane.b32.xlu1 %v1235_v57, %s5817_s28  ;;  %v546_v59 = vsel %vm5941_vm7, %v538_v46, %v545_v27  ;;  %v547_v39 = vrot.slane %v542_v47, 4 }
  0xdd   : > { %v2983_v54 = vor.u32 %v2982_v0, %v2978_v35  ;;  %v1568_v43 = vrot.slane %v5646_v53, 1  ;;  %750 = vst.msk [vmem:[#allocation2 + $0x94] sm:$0xf] %vm253_vm0, %v546_v59  ;;  %v2436_v62 = vsel %vm1537_vm2, %v2434_v44, %v2435_v48  ;;  %v2165_v11 = vrot.slane %v2163_v9, 1  ;;  %v5656_v19 = vld [vmem:[#allocation2 + $0x84] sm:$0xff]   ;;  %v5661_v35 = vld [vmem:[#allocation2 + $0x3c] sm:$0xff]  }
  0xde   : > { %v2170_v17 = vrot.slane %v2168_v4, 1  ;;  %v752_v14 = vsel %vm5974_vm9, %v547_v39, %v751_v31  ;;  %1358 = vst.msk [vmem:[#allocation3 + $0x138] sm:$0xff] %vm1344_vm11, %v6378_v28  ;;  %v5657_v20 = vld [vmem:[#allocation2 + $0x8c] ss:$0 sps:$4 sm:$0x11]   ;;  %v1237_v28 = vshrl.u32 %v5656_v19, 16 }
  0xdf   : > { %v6400_v1 = vpop.permute.xlu0 %3087  ;;  %v2988_v58 = vsel %vm1103_vm5, %v2983_v54, %v2987_v29  ;;  %v1570_v10 = vsel %vm1537_vm2, %v1568_v43, %v1569_v61  ;;  %v2166_v2 = vor.u32 %v2165_v11, %v2161_v55  ;;  %753 = vst [vmem:[#allocation2 + $0x98] sm:$0x1] %v752_v14  ;;  %1648 = vst.msk [vmem:[#allocation3 + $0x138] sm:$0xff] %vm1634_vm12, %v6387_v5  ;;  %v1244_v23 = vshll.u32 %v5657_v20, 16  ;;  %v3390_v24 = vld [vmem:[#allocation3 + $0x48] sm:$0xff]  ;;  %v5663_v43 = vld [vmem:[#allocation2 + $0x30] sm:$0xff]  }
  0xe0   : > { %v6405_v6 = vpop.permute.xlu1 %1789  ;;  %2647 = vrot.lane.b32.xlu0 %v5632_v22, %s5816_s27  ;;  %1606 = vrot.lane.b32.xlu1 %v1570_v10, %s5816_s27  ;;  %v1239_v22 = vshll.u32 %v5656_v19, 16  ;;  %v5659_v46 = vld [vmem:[#allocation2 + $0x84] sm:$0xfe]   ;;  %v2053_v48 = vshrl.u32 %v5661_v35, 16  ;;  %v2055_v55 = vshll.u32 %v5661_v35, 16  ;;  %915 = vst.msk [vmem:[#allocation3 + $0x60] sm:$0xff] %vm910_vm10, %v5663_v43 }
  0xe1   : > { %v2171_v18 = vsel %vm1103_vm5, %v2166_v2, %v2170_v17  ;;  %1825 = vst.msk [vmem:[#allocation3 + $0x138] sm:$0xff] %vm1811_vm13, %v6405_v6  ;;  %v1246_v30 = vrot.slane %v1244_v23, 1  ;;  %v1571_v53 = vrot.slane %v5659_v46, 1  ;;  %v5662_v34 = vld [vmem:[#allocation2 + $0x44] ss:$0 sps:$4 sm:$0x11]  }
  0xe2   : > { %v3391_v60 = vld [vmem:[#allocation3 + $0x50] sm:$0xff]  ;;  %2225 = vst.msk [vmem:[#allocation3 + $0x140] sm:$0xff] %vm910_vm10, %v2171_v18  ;;  %v1241_v6 = vrot.slane %v1239_v22, 1  ;;  %v2057_v61 = vrot.slane %v2055_v55, 1  ;;  %v2060_v9 = vshll.u32 %v5662_v34, 16  ;;  %v5664_v3 = vld [vmem:[#allocation2 + $0x9c] sm:$0xff]  }
  0xe3   : > { %v6419_v16 = vpop.permute.xlu0 %2460  ;;  %3684 = vmatprep.mubr.bf16.mxu0 %v3391_v60  ;;  %2513 = vst.msk [vmem:[#allocation3 + $0x140] sm:$0xff] %vm1344_vm11, %v6375_v8  ;;  %v5665_v39 = vld [vmem:[#allocation2 + $0xa4] ss:$0 sps:$4 sm:$0x11]   ;;  %v3004_v17 = vshll.u32 %v5664_v3, 16  ;;  %v5658_v20 = vld [vmem:[#allocation2 + $0x9c] sm:$0xff]  }
  0xe4   : > { %v6414_v15 = vpop.permute.xlu1 %1304  ;;  %3079 = vrot.lane.b32.xlu0 %v2988_v58, %s5818_s29  ;;  %1783 = vrot.lane.b32.xlu1 %v5653_v21, %s5818_s29  ;;  %v5645_v5 = vld [vmem:[#allocation2 + $0x90] sm:$0xff]   ;;  %2690 = vst.msk [vmem:[#allocation3 + $0x140] sm:$0xff] %vm1634_vm12, %v6380_v37  ;;  %v1242_v40 = vor.u32 %v1241_v6, %v1237_v28  ;;  %v2058_v63 = vor.u32 %v2057_v61, %v2053_v48  ;;  %v3002_v21 = vshrl.u32 %v5664_v3, 16  ;;  %v3009_v14 = vshll.u32 %v5665_v39, 16  ;;  %v5667_v19 = vld [vmem:[#allocation2 + $0x9c] sm:$0xfe]  }
  0xe5   : > { %v5651_v25 = vld [vmem:[#allocation2 + $0x90] sm:$0xff]   ;;  %3122 = vst.msk [vmem:[#allocation3 + $0x140] sm:$0xff] %vm1811_vm13, %v6400_v1  ;;  %3685 = vmatmul.mubr.bf16.gmra.mrb[12].mxu0 %v3390_v24  ;;  %v5660_v1 = vld [vmem:[#allocation2 + $0x8c] ss:$0 sps:$4 sm:$0x11]   ;;  %v2440_v23 = vrot.slane %v5667_v19, 1 }
  0xe6   : > { %v5654_v36 = vld [vmem:[#allocation2 + $0x90] sm:$0xfe]   ;;  %v5652_v38 = vld [vmem:[#allocation2 + $0x98] ss:$0 sps:$4 sm:$0x11]   ;;  %v2990_v8 = vshrl.u32 %v5651_v25, 16  ;;  %v1247_v45 = vsel %vm1103_vm5, %v1242_v40, %v1246_v30 }
  0xe7   : > { %v6430_v50 = vpop.permute.xlu0 %2637  ;;  %v2992_v13 = vshll.u32 %v5651_v25, 16  ;;  %v5655_v42 = vld [vmem:[#allocation2 + $0x98] ss:$0 sps:$4 sm:$0x11]   ;;  %v2997_v37 = vshll.u32 %v5652_v38, 16  ;;  %v2437_v44 = vrot.slane %v5654_v36, 1 }
  0xe8   : > { %v6426_v32 = vpop.permute.xlu1 %1594  ;;  %2472 = vrot.lane.b32.xlu0 %v2436_v62, %s5817_s28  ;;  %v2438_v29 = vrot.slane %v5655_v42, 1  ;;  %1318 = vrot.lane.b32.xlu1 %v1247_v45, %s5817_s28  ;;  %v1572_v27 = vrot.slane %v5660_v1, 1  ;;  %1349 = vst.msk [vmem:[#allocation3 + $0x60] sm:$0xff] %vm1344_vm11, %v6414_v15  ;;  %v2062_v62 = vrot.slane %v2060_v9, 1  ;;  %v5666_v10 = vld [vmem:[#allocation2 + $0x90] sm:$0xff]   ;;  %v5677_v48 = vld [vmem:[#allocation2 + $0xa8] sm:$0xff]  }
  0xe9   : > { %v2994_v0 = vrot.slane %v2992_v13, 1  ;;  %v2999_v57 = vrot.slane %v2997_v37, 1  ;;  %1639 = vst.msk [vmem:[#allocation3 + $0x60] sm:$0xff] %vm1634_vm12, %v6426_v32  ;;  %v3420_v60 = vld [vmem:[#allocation3 + $0x138] sm:$0xff]  ;;  %v3006_v32 = vrot.slane %v3004_v17, 1  ;;  %v5676_v13 = vld [vmem:[#allocation2 + $0xa8] sm:$0xff]  }
  0xea   : > { %v1573_v59 = vsel %vm1537_vm2, %v1571_v53, %v1572_v27  ;;  %v2439_v31 = vsel %vm1537_vm2, %v2437_v44, %v2438_v29  ;;  %v2063_v2 = vsel %vm1103_vm5, %v2058_v63, %v2062_v62  ;;  %v5668_v18 = vld [vmem:[#allocation2 + $0xa4] ss:$0 sps:$4 sm:$0x11]   ;;  %v5669_v28 = vld [vmem:[#allocation2 + $0x90] sm:$0xff]   ;;  %925 = vst.msk [vmem:[#allocation3 + $0x150] sm:$0xff] %vm910_vm10, %v5676_v13  ;;  %v3016_v61 = vshll.u32 %v5677_v48, 16 }
  0xeb   : > { %v6445_v12 = vpop.permute.xlu0 %3069  ;;  %v2995_v54 = vor.u32 %v2994_v0, %v2990_v8  ;;  %2216 = vst.msk [vmem:[#allocation3 + $0x68] sm:$0xff] %vm910_vm10, %v2063_v2  ;;  %v3007_v24 = vor.u32 %v3006_v32, %v3002_v21  ;;  %v5670_v25 = vld [vmem:[#allocation2 + $0x98] ss:$0 sps:$4 sm:$0x11]   ;;  %v1249_v6 = vshrl.u32 %v5669_v28, 16  ;;  %v1251_v30 = vshll.u32 %v5669_v28, 16 }
  0xec   : > { %v6433_v41 = vpop.permute.xlu1 %1771  ;;  %2649 = vrot.lane.b32.xlu0 %v5645_v5, %s5816_s27  ;;  %1608 = vrot.lane.b32.xlu1 %v1573_v59, %s5816_s27  ;;  %v3421_v11 = vld [vmem:[#allocation3 + $0x140] sm:$0xff]  ;;  %2504 = vst.msk [vmem:[#allocation3 + $0x68] sm:$0xff] %vm1344_vm11, %v6419_v16  ;;  %v2441_v5 = vrot.slane %v5668_v18, 1  ;;  %v1256_v35 = vshll.u32 %v5670_v25, 16  ;;  %v5672_v40 = vld [vmem:[#allocation2 + $0x90] sm:$0xfe]  }
  0xed   : > { %v3000_v58 = vsel %vm1103_vm5, %v2995_v54, %v2999_v57  ;;  %3764 = vmatprep.mubr.bf16.mxu1 %v3421_v11  ;;  %1816 = vst.msk [vmem:[#allocation3 + $0x60] sm:$0xff] %vm1811_vm13, %v6433_v41  ;;  %v3011_v41 = vrot.slane %v3009_v14, 1  ;;  %v5674_v38 = vld [vmem:[#allocation2 + $0xb4] sm:$0xff]   ;;  %v1253_v8 = vrot.slane %v1251_v30, 1  ;;  %v1574_v46 = vrot.slane %v5672_v40, 1  ;;  %v5679_v3 = vld [vmem:[#allocation2 + $0x9c] sm:$0xff]  }
  0xee   : > { %3765 = vmatmul.mubr.bf16.vlgmr.msra.gmra.mrb[0].mxu1 %v3420_v60  ;;  %2681 = vst.msk [vmem:[#allocation3 + $0x68] sm:$0xff] %vm1634_vm12, %v6430_v50  ;;  %v1258_v42 = vrot.slane %v1256_v35, 1  ;;  %v5673_v50 = vld [vmem:[#allocation2 + $0x98] ss:$0 sps:$4 sm:$0x11]   ;;  %v2173_v0 = vshrl.u32 %v5674_v38, 16  ;;  %v2442_v57 = vsel %vm1537_vm2, %v2440_v23, %v2441_v5 }
  0xef   : > { %v6461_v7 = vpop.permute.xlu0 %2480  ;;  %3113 = vst.msk [vmem:[#allocation3 + $0x68] sm:$0xff] %vm1811_vm13, %v6445_v12  ;;  %v3012_v16 = vsel %vm1103_vm5, %v3007_v24, %v3011_v41  ;;  %v1254_v45 = vor.u32 %v1253_v8, %v1249_v6  ;;  %v1575_v12 = vrot.slane %v5673_v50, 1  ;;  %v5675_v29 = vld [vmem:[#allocation2 + $0xbc] ss:$0 sps:$4 sm:$0x11]   ;;  %v2175_v1 = vshll.u32 %v5674_v38, 16 }
  0xf0   : > { %v6441_v52 = vpop.permute.xlu1 %1324  ;;  %3081 = vrot.lane.b32.xlu0 %v3000_v58, %s5818_s29  ;;  %1785 = vrot.lane.b32.xlu1 %v5666_v10, %s5818_s29  ;;  %v2180_v27 = vshll.u32 %v5675_v29, 16  ;;  %v5678_v58 = vld [vmem:[#allocation2 + $0xb0] ss:$0 sps:$4 sm:$0x11]   ;;  %v3014_v59 = vshrl.u32 %v5677_v48, 16  ;;  %v5680_v62 = vld [vmem:[#allocation2 + $0x48] sm:$0xff]  }
  0xf1   : > { %1359 = vst.msk [vmem:[#allocation3 + $0x150] sm:$0xff] %vm1344_vm11, %v6441_v52  ;;  %v1259_v53 = vsel %vm1103_vm5, %v1254_v45, %v1258_v42  ;;  %v2177_v54 = vrot.slane %v2175_v1, 1  ;;  %v5671_v52 = vld [vmem:[#allocation2 + $0xa8] sm:$0xff]   ;;  %v1576_v43 = vsel %vm1537_vm2, %v1574_v46, %v1575_v12  ;;  %v3021_v63 = vshll.u32 %v5678_v58, 16  ;;  %v5683_v41 = vld [vmem:[#allocation2 + $0xc0] sm:$0xff]   ;;  %v5685_v24 = vld [vmem:[#allocation2 + $0xb4] sm:$0xff]  }
  0xf2   : > { %v2182_v9 = vrot.slane %v2180_v27, 1  ;;  %v5681_v60 = vld [vmem:[#allocation2 + $0x50] ss:$0 sps:$4 sm:$0x11]   ;;  %v2065_v2 = vshrl.u32 %v5680_v62, 16  ;;  %v2067_v19 = vshll.u32 %v5680_v62, 16 }
  0xf3   : > { %v6474_v33 = vpop.permute.xlu0 %2657  ;;  %v3023_v14 = vrot.slane %v3021_v63, 1  ;;  %v2072_v28 = vshll.u32 %v5681_v60, 16  ;;  %v5684_v23 = vld [vmem:[#allocation2 + $0xc8] ss:$0 sps:$4 sm:$0x11]   ;;  %v2187_v30 = vshll.u32 %v5683_v41, 16 }
  0xf4   : > { %v6456_v56 = vpop.permute.xlu1 %1614  ;;  %2474 = vrot.lane.b32.xlu0 %v2439_v31, %s5817_s28  ;;  %1320 = vrot.lane.b32.xlu1 %v1259_v53, %s5817_s28  ;;  %v3018_v31 = vrot.slane %v3016_v61, 1  ;;  %v2069_v18 = vrot.slane %v2067_v19, 1  ;;  %v5686_v35 = vld [vmem:[#allocation2 + $0x54] sm:$0xff]   ;;  %926 = vst.msk [vmem:[#allocation3 + $0x168] sm:$0xff] %vm910_vm10, %v5685_v24  ;;  %v5688_v38 = vld [vmem:[#allocation2 + $0x48] sm:$0xff]   ;;  %v5691_v48 = vld [vmem:[#allocation2 + $0x60] sm:$0xff]  }
  0xf5   : > { %1649 = vst.msk [vmem:[#allocation3 + $0x150] sm:$0xff] %vm1634_vm12, %v6456_v56  ;;  %v2178_v56 = vor.u32 %v2177_v54, %v2173_v0  ;;  %v2074_v6 = vrot.slane %v2072_v28, 1  ;;  %v2189_v8 = vrot.slane %v2187_v30, 1  ;;  %v2079_v42 = vshll.u32 %v5686_v35, 16  ;;  %v5690_v12 = vld [vmem:[%s7645_s1 + $0x88] sm:$0xff]   ;;  %v5695_v53 = vld [vmem:[#allocation2 + $0x54] sm:$0xff]  }
  0xf6   : > { %v3394_v39 = vld [vmem:[#allocation3 + $0x68] sm:$0xff]  ;;  %v3019_v17 = vor.u32 %v3018_v31, %v3014_v59  ;;  %v2070_v25 = vor.u32 %v2069_v18, %v2065_v2  ;;  %917 = vst.msk [vmem:[#allocation3 + $0x90] sm:$0xff] %vm910_vm10, %v5688_v38  ;;  %v2089_v27 = vshrl.u32 %v5691_v48, 16  ;;  %918 = vst.msk [vmem:[#allocation3 + $0xa8] sm:$0xff] %vm910_vm10, %v5695_v53  ;;  %v5693_v59 = vld [vmem:[#allocation2 + $0x18] sm:$0xfe]  }
  0xf7   : > { %v6480_v49 = vpop.permute.xlu0 %3089  ;;  %3692 = vmatprep.mubr.bf16.mxu0 %v3394_v39  ;;  %v2183_v10 = vsel %vm1103_vm5, %v2178_v56, %v2182_v9  ;;  %v5702_v56 = vld [vmem:[#allocation2 + $0x6c] sm:$0xff]   ;;  %v5694_v39 = vld [vmem:[#allocation2 + $0x20] ss:$0 sps:$4 sm:$0x11]  }
  0xf8   : > { %v6469_v26 = vpop.permute.xlu1 %1791  ;;  %2651 = vrot.lane.b32.xlu0 %v5658_v20, %s5816_s27  ;;  %1610 = vrot.lane.b32.xlu1 %v1576_v43, %s5816_s27  ;;  %2226 = vst.msk [vmem:[#allocation3 + $0x158] sm:$0xff] %vm910_vm10, %v2183_v10  ;;  %v5682_v20 = vld [vmem:[#allocation2 + $0x3c] sm:$0xff]   ;;  %v3024_v32 = vsel %vm1103_vm5, %v3019_v17, %v3023_v14  ;;  %v3302_v62 = vrot.slane %v5694_v39, 1  ;;  %v5696_v10 = vld [vmem:[#allocation2 + $0x24] sm:$0xfe]   ;;  %v2101_v24 = vshrl.u32 %v5702_v56, 16 }
  0xf9   : > { %1826 = vst.msk [vmem:[#allocation3 + $0x150] sm:$0xff] %vm1811_vm13, %v6469_v26  ;;  %v3393_v26 = vld [vmem:[#allocation3 + $0x60] sm:$0xff]  ;;  %v5697_v17 = vld [vmem:[#allocation2 + $0x2c] ss:$0 sps:$4 sm:$0x11]   ;;  %v3304_v19 = vrot.slane %v5696_v10, 1 }
  0xfa   : > { %3693 = vmatmul.mubr.bf16.gmra.mrb[16].mxu0 %v3393_v26  ;;  %2514 = vst.msk [vmem:[#allocation3 + $0x158] sm:$0xff] %vm1344_vm11, %v6461_v7  ;;  %v3301_v26 = vrot.slane %v5693_v59, 1  ;;  %v3305_v18 = vrot.slane %v5697_v17, 1  ;;  %v5698_v28 = vld [vmem:[#allocation2 + $0x30] sm:$0xfe]   ;;  %v5720_v59 = vld [vmem:[#allocation2 + $0x84] sm:$0xff]  }
  0xfb   : > { %v6487_v4 = vpop.permute.xlu0 %2462  ;;  %2691 = vst.msk [vmem:[#allocation3 + $0x158] sm:$0xff] %vm1634_vm12, %v6474_v33  ;;  %v2185_v33 = vshrl.u32 %v5683_v41, 16  ;;  %v5713_v38 = vld [vmem:[#allocation2 + $0x6c] sm:$0xff]   ;;  %v5711_v39 = vld [vmem:[#allocation2 + $0x60] sm:$0xfe]  }
  0xfc   : > { %v6477_v47 = vpop.permute.xlu1 %1306  ;;  %3083 = vrot.lane.b32.xlu0 %v3012_v16, %s5818_s29  ;;  %1787 = vrot.lane.b32.xlu1 %v5679_v3, %s5818_s29  ;;  %3123 = vst.msk [vmem:[#allocation3 + $0x158] sm:$0xff] %vm1811_vm13, %v6480_v49  ;;  %v2192_v49 = vshll.u32 %v5684_v23, 16  ;;  %v2075_v16 = vsel %vm1103_vm5, %v2070_v25, %v2074_v6  ;;  %v3303_v2 = vsel %vm1537_vm2, %v3301_v26, %v3302_v62  ;;  %v5699_v23 = vld [vmem:[#allocation2 + $0x38] ss:$0 sps:$4 sm:$0x11]   ;;  %v3319_v62 = vrot.slane %v5711_v39, 1 }
  0xfd   : > { %916 = vst.msk [vmem:[#allocation3 + $0x78] sm:$0xff] %vm910_vm10, %v5682_v20  ;;  %2217 = vst.msk [vmem:[#allocation3 + $0x80] sm:$0xff] %vm910_vm10, %v2075_v16  ;;  %v2103_v20 = vshll.u32 %v5702_v56, 16  ;;  %v5700_v25 = vld [vmem:[#allocation2 + $0x3c] sm:$0xfe]  }
  0xfe   : > { %1350 = vst.msk [vmem:[#allocation3 + $0x78] sm:$0xff] %vm1344_vm11, %v6477_v47  ;;  %v2077_v47 = vshrl.u32 %v5686_v35, 16  ;;  %v2194_v13 = vrot.slane %v2192_v49, 1  ;;  %2505 = vst.msk [vmem:[#allocation3 + $0x80] sm:$0xff] %vm1344_vm11, %v6487_v4  ;;  %v3308_v35 = vrot.slane %v5699_v23, 1  ;;  %v3310_v16 = vrot.slane %v5700_v25, 1 }
  0xff   : > { %v6504_v22 = vpop.permute.xlu0 %2639  ;;  %3365 = vst.msk [vmem:[#allocation3 + $0x10] sm:$0xff] %vm910_vm10, %v3303_v2  ;;  %v2105_v6 = vrot.slane %v2103_v20, 1  ;;  %v5701_v49 = vld [vmem:[#allocation2 + $0x44] ss:$0 sps:$4 sm:$0x11]   ;;  %920 = vst.msk [vmem:[#allocation3 + $0xd8] sm:$0xff] %vm910_vm10, %v5713_v38 }
 0x100   : > { %v6482_v51 = vpop.permute.xlu1 %1596  ;;  %2476 = vrot.lane.b32.xlu0 %v2442_v57, %s5817_s28  ;;  %v3423_v40 = vld [vmem:[#allocation3 + $0x150] sm:$0xff]  ;;  %2682 = vst.msk [vmem:[#allocation3 + $0x80] sm:$0xff] %vm1634_vm12, %v6504_v22 }
 0x101   : > { %1640 = vst.msk [vmem:[#allocation3 + $0x78] sm:$0xff] %vm1634_vm12, %v6482_v51  ;;  %v5687_v51 = vld [vmem:[#allocation2 + $0x5c] ss:$0 sps:$4 sm:$0x11]   ;;  %v5718_v25 = vld [vmem:[#allocation2 + $0x84] sm:$0xfe]  }
 0x102   : > { %v2084_v46 = vshll.u32 %v5687_v51, 16  ;;  %v3328_v38 = vrot.slane %v5718_v25, 1 }
 0x103   : > { %v6516_v37 = vpop.permute.xlu0 %3071  ;;  %v3424_v0 = vld [vmem:[#allocation3 + $0x158] sm:$0xff] }
 0x104   : > { %v6498_v15 = vpop.permute.xlu1 %1773  ;;  %2653 = vrot.lane.b32.xlu0 %v5671_v52, %s5816_s27  ;;  %3114 = vst.msk [vmem:[#allocation3 + $0x80] sm:$0xff] %vm1811_vm13, %v6516_v37  ;;  %3772 = vmatprep.mubr.bf16.mxu1 %v3424_v0  ;;  %v2086_v29 = vrot.slane %v2084_v46, 1  ;;  %v5692_v37 = vld [vmem:[#allocation2 + $0x68] ss:$0 sps:$4 sm:$0x11]  }
 0x105   : > { %1817 = vst.msk [vmem:[#allocation3 + $0x78] sm:$0xff] %vm1811_vm13, %v6498_v15  ;;  %v5689_v15 = vld [vmem:[%s7645_s1 + $0x80] sm:$0xff]   ;;  %3773 = vmatmul.mubr.bf16.gmra.mrb[4].mxu1 %v3423_v40  ;;  %v2096_v43 = vshll.u32 %v5692_v37, 16  ;;  %v3311_v40 = vrot.slane %v5701_v49, 1 }
 0x106   : > { %5382 = vmatprep.subr.bf16.mxu1 %v5689_v15  ;;  %v3383_v51 = vld [vmem:[#allocation3 + $0x10] sm:$0xff] }
 0x107   : > { %v6531_v34 = vpop.permute.xlu0 %2482  ;;  %5383 = vmatpush3.bf16.msra.mxu1 %v5689_v15  ;;  %v2098_v3 = vrot.slane %v2096_v43, 1 }
 0x108   : > { %v6510_v36 = vpop.permute.xlu1 %1326  ;;  %3085 = vrot.lane.b32.xlu0 %v3024_v32, %s5818_s29  ;;  %5384 = vmatprep.subr.bf16.mxu1 %v5690_v12 }
 0x109   : > { %1360 = vst.msk [vmem:[#allocation3 + $0x168] sm:$0xff] %vm1344_vm11, %v6510_v36  ;;  %v2190_v36 = vor.u32 %v2189_v8, %v2185_v33  ;;  %v5709_v8 = vld [vmem:[#allocation2 + $0x78] sm:$0xff]  }
 0x10a   : > { %v2115_v0 = vshll.u32 %v5709_v8, 16 }
 0x10b   : > { %v6539_v11 = vpop.permute.xlu0 %2659  ;;  %v2195_v4 = vsel %vm1103_vm5, %v2190_v36, %v2194_v13  ;;  %5385 = vmatpush3.bf16.msra.mxu1 %v5690_v12  ;;  %v3397_v31 = vld [vmem:[#allocation3 + $0x80] sm:$0xff]  ;;  %v5703_v13 = vld [vmem:[#allocation2 + $0x74] ss:$0 sps:$4 sm:$0x11]   ;;  %v5705_v36 = vld [vmem:[#allocation2 + $0x48] sm:$0xfe]  }
 0x10c   : > { %v6518_v44 = vpop.permute.xlu1 %1616  ;;  %2227 = vst.msk [vmem:[#allocation3 + $0x170] sm:$0xff] %vm910_vm10, %v2195_v4  ;;  %v3396_v52 = vld [vmem:[#allocation3 + $0x78] sm:$0xff]  ;;  %3700 = vmatprep.mubr.bf16.mxu0 %v3397_v31  ;;  %v2108_v15 = vshll.u32 %v5703_v13, 16  ;;  %v3313_v12 = vrot.slane %v5705_v36, 1  ;;  %v2117_v37 = vrot.slane %v2115_v0, 1 }
 0x10d   : > { %1650 = vst.msk [vmem:[#allocation3 + $0x168] sm:$0xff] %vm1634_vm12, %v6518_v44  ;;  %v2081_v44 = vrot.slane %v2079_v42, 1  ;;  %3701 = vmatmul.mubr.bf16.gmra.mrb[20].mxu0 %v3396_v52  ;;  %v3312_v42 = vsel %vm1537_vm2, %v3310_v16, %v3311_v40  ;;  %v5727_v16 = vld [vmem:[#allocation2 + $0x90] sm:$0xff]  }
 0x10e   : > { %2515 = vst.msk [vmem:[#allocation3 + $0x170] sm:$0xff] %vm1344_vm11, %v6531_v34  ;;  %v5704_v34 = vld [vmem:[#allocation2 + $0x60] sm:$0xff]   ;;  %v2110_v46 = vrot.slane %v2108_v15, 1  ;;  %v5723_v15 = vld [vmem:[#allocation2 + $0x90] sm:$0xfe]   ;;  %v2137_v36 = vshrl.u32 %v5727_v16, 16 }
 0x10f   : > { %v3092_v5 = vpop.permute.xlu0 %3091  ;;  %v2082_v22 = vor.u32 %v2081_v44, %v2077_v47  ;;  %2692 = vst.msk [vmem:[#allocation3 + $0x170] sm:$0xff] %vm1634_vm12, %v6539_v11  ;;  %v5706_v44 = vld [vmem:[#allocation2 + $0x50] ss:$0 sps:$4 sm:$0x11]  }
 0x110   : > { %v6533_v55 = vpop.permute.xlu1 %1793  ;;  %3124 = vst.msk [vmem:[#allocation3 + $0x170] sm:$0xff] %vm1811_vm13, %v3092_v5  ;;  %v3306_v5 = vsel %vm1537_vm2, %v3304_v19, %v3305_v18 }
 0x111   : > { %1827 = vst.msk [vmem:[#allocation3 + $0x168] sm:$0xff] %vm1811_vm13, %v6533_v55  ;;  %v2087_v54 = vsel %vm1103_vm5, %v2082_v22, %v2086_v29  ;;  %v2091_v55 = vshll.u32 %v5691_v48, 16  ;;  %v3314_v22 = vrot.slane %v5706_v44, 1  ;;  %v2113_v29 = vshrl.u32 %v5709_v8, 16  ;;  %v5707_v48 = vld [vmem:[#allocation2 + $0x54] sm:$0xfe]  }
 0x112   : > { %2218 = vst.msk [vmem:[#allocation3 + $0x98] sm:$0xff] %vm910_vm10, %v2087_v54  ;;  %919 = vst.msk [vmem:[#allocation3 + $0xc0] sm:$0xff] %vm910_vm10, %v5704_v34  ;;  %v3316_v43 = vrot.slane %v5707_v48, 1 }
 0x113   : > { %v2465_v50 = vpop.permute.xlu0 %2464  ;;  %v2093_v58 = vrot.slane %v2091_v55, 1  ;;  %3366 = vst.msk [vmem:[#allocation3 + $0x28] sm:$0xff] %vm910_vm10, %v3306_v5  ;;  %3368 = vst.msk [vmem:[#allocation3 + $0x58] sm:$0xff] %vm910_vm10, %v3312_v42  ;;  %v3315_v54 = vsel %vm1537_vm2, %v3313_v12, %v3314_v22  ;;  %v5725_v12 = vld [vmem:[#allocation2 + $0x9c] sm:$0xfe]  }
 0x114   : > { %v1309_v21 = vpop.permute.xlu1 %1308  ;;  %2506 = vst.msk [vmem:[#allocation3 + $0x98] sm:$0xff] %vm1344_vm11, %v2465_v50  ;;  %v2106_v50 = vor.u32 %v2105_v6, %v2101_v24 }
 0x115   : > { %1351 = vst.msk [vmem:[#allocation3 + $0x90] sm:$0xff] %vm1344_vm11, %v1309_v21  ;;  %v2094_v63 = vor.u32 %v2093_v58, %v2089_v27  ;;  %v5710_v58 = vld [vmem:[#allocation2 + $0x80] ss:$0 sps:$4 sm:$0x11]  }
 0x116   : > { %3369 = vst.msk [vmem:[#allocation3 + $0x70] sm:$0xff] %vm910_vm10, %v3315_v54  ;;  %v5728_v54 = vld [vmem:[#allocation2 + $0x98] ss:$0 sps:$4 sm:$0x11]  }
 0x117   : > { %v2099_v21 = vsel %vm1103_vm5, %v2094_v63, %v2098_v3  ;;  %v3427_v32 = vld [vmem:[#allocation3 + $0x170] sm:$0xff]  ;;  %v2120_v3 = vshll.u32 %v5710_v58, 16  ;;  %v2144_v58 = vshll.u32 %v5728_v54, 16 }
 0x118   : > { %v1599_v7 = vpop.permute.xlu1 %1598  ;;  %v2642_v1 = vpop.permute.xlu0 %2641  ;;  %v3426_v11 = vld [vmem:[#allocation3 + $0x168] sm:$0xff]  ;;  %2219 = vst.msk [vmem:[#allocation3 + $0xb0] sm:$0xff] %vm910_vm10, %v2099_v21  ;;  %3780 = vmatprep.mubr.bf16.mxu1 %v3427_v32  ;;  %v5712_v63 = vld [vmem:[#allocation2 + $0x68] ss:$0 sps:$4 sm:$0x11]   ;;  %v2125_v21 = vshrl.u32 %v5720_v59, 16 }
 0x119   : > { %1641 = vst.msk [vmem:[#allocation3 + $0x90] sm:$0xff] %vm1634_vm12, %v1599_v7  ;;  %2683 = vst.msk [vmem:[#allocation3 + $0x98] sm:$0xff] %vm1634_vm12, %v2642_v1  ;;  %3781 = vmatmul.mubr.bf16.gmra.mrb[8].mxu1 %v3426_v11  ;;  %v3307_v7 = vrot.slane %v5698_v28, 1  ;;  %v2111_v1 = vsel %vm1103_vm5, %v2106_v50, %v2110_v46  ;;  %v2122_v26 = vrot.slane %v2120_v3, 1  ;;  %v3320_v10 = vrot.slane %v5712_v63, 1 }
 0x11a   : > { %5386 = vmatprep.mubr.msk.bf16.mxu1 %vm910_vm10, %v3383_v51  ;;  %v3386_v4 = vld [vmem:[#allocation3 + $0x28] sm:$0xff]  ;;  %2220 = vst.msk [vmem:[#allocation3 + $0xc8] sm:$0xff] %vm910_vm10, %v2111_v1  ;;  %v5714_v11 = vld [vmem:[#allocation2 + $0x6c] sm:$0xfe]   ;;  %v5716_v28 = vld [vmem:[#allocation2 + $0x78] sm:$0xfe]  }
 0x11b   : > { %v3309_v47 = vsel %vm1537_vm2, %v3307_v7, %v3308_v35  ;;  %v3321_v19 = vsel %vm1537_vm2, %v3319_v62, %v3320_v10  ;;  %v3322_v20 = vrot.slane %v5714_v11, 1  ;;  %v3325_v5 = vrot.slane %v5716_v28, 1  ;;  %v5733_v11 = vld [vmem:[#allocation2 + $0xbc] ss:$0 sps:$4 sm:$0x11]  }
 0x11c   : > { %v1776_v45 = vpop.permute.xlu1 %1775  ;;  %v3074_v9 = vpop.permute.xlu0 %3073  ;;  %3367 = vst.msk [vmem:[#allocation3 + $0x40] sm:$0xff] %vm910_vm10, %v3309_v47  ;;  %3371 = vst.msk [vmem:[#allocation3 + $0xa0] sm:$0xff] %vm910_vm10, %v3321_v19  ;;  %v5721_v47 = vld [vmem:[#allocation2 + $0x8c] ss:$0 sps:$4 sm:$0x11]   ;;  %v3331_v46 = vrot.slane %v5723_v15, 1 }
 0x11d   : > { %1818 = vst.msk [vmem:[#allocation3 + $0x90] sm:$0xff] %vm1811_vm13, %v1776_v45  ;;  %3115 = vst.msk [vmem:[#allocation3 + $0x98] sm:$0xff] %vm1811_vm13, %v3074_v9  ;;  %v2118_v9 = vor.u32 %v2117_v37, %v2113_v29  ;;  %v3395_v2 = vld [vmem:[#allocation3 + $0x70] sm:$0xff]  ;;  %v2132_v50 = vshll.u32 %v5721_v47, 16  ;;  %v2139_v1 = vshll.u32 %v5727_v16, 16  ;;  %v3334_v37 = vrot.slane %v5725_v12, 1 }
 0x11e   : > { %v5726_v29 = vld [vmem:[#allocation2 + $0xa4] ss:$0 sps:$4 sm:$0x11]   ;;  %v2146_v3 = vrot.slane %v2144_v58, 1 }
 0x11f   : > { %v2123_v17 = vsel %vm1103_vm5, %v2118_v9, %v2122_v26  ;;  %v2134_v44 = vrot.slane %v2132_v50, 1  ;;  %v5738_v9 = vld [vmem:[#allocation2 + $0x9c] sm:$0xff]   ;;  %v5732_v26 = vld [vmem:[#allocation2 + $0xb4] sm:$0xfe]  }
 0x120   : > { %v1311_v57 = vpop.permute.xlu1 %1310  ;;  %v2467_v60 = vpop.permute.xlu0 %2466  ;;  %2221 = vst.msk [vmem:[#allocation3 + $0xe0] sm:$0xff] %vm910_vm10, %v2123_v17  ;;  %v3340_v19 = vrot.slane %v5732_v26, 1  ;;  %v5739_v16 = vld [vmem:[#allocation2 + $0xa4] ss:$0 sps:$4 sm:$0x11]  }
 0x121   : > { %1352 = vst.msk [vmem:[#allocation3 + $0xa8] sm:$0xff] %vm1344_vm11, %v1311_v57  ;;  %2507 = vst.msk [vmem:[#allocation3 + $0xb0] sm:$0xff] %vm1344_vm11, %v2467_v60  ;;  %5387 = vmatmul.mubr.msk.bf16.vlgmr.msra.gmra.mrb[12].mxu1 %vm910_vm10, %v3386_v4  ;;  %v5708_v57 = vld [vmem:[#allocation2 + $0x5c] ss:$0 sps:$4 sm:$0x11]   ;;  %v2127_v60 = vshll.u32 %v5720_v59, 16 }
 0x122   : > { %v3317_v34 = vrot.slane %v5708_v57, 1  ;;  %v5729_v59 = vld [vmem:[#allocation2 + $0xa8] sm:$0xfe]  }
 0x123   : > { %v3389_v27 = vld [vmem:[#allocation3 + $0x40] sm:$0xff]  ;;  %v2129_v6 = vrot.slane %v2127_v60, 1  ;;  %v3337_v39 = vrot.slane %v5729_v59, 1 }
 0x124   : > { %v1601_v61 = vpop.permute.xlu1 %1600  ;;  %v3399_v41 = vld [vmem:[#allocation3 + $0x90] sm:$0xff]  ;;  %v2644_v33 = vpop.permute.xlu0 %2643  ;;  %v3400_v30 = vld [vmem:[#allocation3 + $0x98] sm:$0xff]  ;;  %5390 = vmatprep.mubr.msk.bf16.mxu1 %vm910_vm10, %v3389_v27  ;;  %v3318_v56 = vsel %vm1537_vm2, %v3316_v43, %v3317_v34  ;;  %v3401_v13 = vld [vmem:[#allocation3 + $0xa0] sm:$0xff]  ;;  %v2141_v27 = vrot.slane %v2139_v1, 1 }
 0x125   : > { %1642 = vst.msk [vmem:[#allocation3 + $0xa8] sm:$0xff] %vm1634_vm12, %v1601_v61  ;;  %2684 = vst.msk [vmem:[#allocation3 + $0xb0] sm:$0xff] %vm1634_vm12, %v2644_v33  ;;  %3708 = vmatprep.mubr.bf16.mxu0 %v3400_v30  ;;  %v3392_v61 = vld [vmem:[#allocation3 + $0x58] sm:$0xff]  ;;  %v5719_v33 = vld [vmem:[#allocation2 + $0x8c] ss:$0 sps:$4 sm:$0x11]   ;;  %v2130_v42 = vor.u32 %v2129_v6, %v2125_v21 }
 0x126   : > { %3709 = vmatmul.mubr.bf16.gmra.mrb[24].mxu0 %v3399_v41  ;;  %3370 = vst.msk [vmem:[#allocation3 + $0x88] sm:$0xff] %vm910_vm10, %v3318_v56  ;;  %v5717_v41 = vld [vmem:[#allocation2 + $0x80] ss:$0 sps:$4 sm:$0x11]   ;;  %v5722_v30 = vld [vmem:[#allocation2 + $0x78] sm:$0xff]   ;;  %v3329_v8 = vrot.slane %v5719_v33, 1  ;;  %v2142_v34 = vor.u32 %v2141_v27, %v2137_v36 }
 0x127   : > { %v3326_v7 = vrot.slane %v5717_v41, 1  ;;  %921 = vst.msk [vmem:[#allocation3 + $0xf0] sm:$0xff] %vm910_vm10, %v5722_v30  ;;  %v2135_v22 = vsel %vm1103_vm5, %v2130_v42, %v2134_v44  ;;  %v5730_v56 = vld [vmem:[#allocation2 + $0xb0] ss:$0 sps:$4 sm:$0x11]   ;;  %v2151_v21 = vshll.u32 %v5738_v9, 16 }
 0x128   : > { %v1778_v14 = vpop.permute.xlu1 %1777  ;;  %v3330_v51 = vsel %vm1537_vm2, %v3328_v38, %v3329_v8  ;;  %2222 = vst.msk [vmem:[#allocation3 + $0xf8] sm:$0xff] %vm910_vm10, %v2135_v22  ;;  %v3338_v63 = vrot.slane %v5730_v56, 1  ;;  %v2147_v10 = vsel %vm1103_vm5, %v2142_v34, %v2146_v3  ;;  %v5737_v6 = vld [vmem:[#allocation2 + $0xd4] ss:$0 sps:$4 sm:$0x11]   ;;  %v2156_v42 = vshll.u32 %v5739_v16, 16 }
 0x129   : > { %1819 = vst.msk [vmem:[#allocation3 + $0xa8] sm:$0xff] %vm1811_vm13, %v1778_v14  ;;  %5391 = vmatmul.mubr.msk.bf16.gmra.mrb[16].mxu1 %vm910_vm10, %v3392_v61  ;;  %v5715_v14 = vld [vmem:[#allocation2 + $0x74] ss:$0 sps:$4 sm:$0x11]   ;;  %v3327_v49 = vsel %vm1537_vm2, %v3325_v5, %v3326_v7  ;;  %v5736_v5 = vld [vmem:[#allocation2 + $0xcc] sm:$0xfe]  }
 0x12a   : > { %5394 = vmatprep.mubr.msk.bf16.mxu1 %vm910_vm10, %v3395_v2  ;;  %v3323_v18 = vrot.slane %v5715_v14, 1  ;;  %3373 = vst.msk [vmem:[#allocation3 + $0xd0] sm:$0xff] %vm910_vm10, %v3327_v49  ;;  %3374 = vst.msk [vmem:[#allocation3 + $0xe8] sm:$0xff] %vm910_vm10, %v3330_v51  ;;  %v3339_v2 = vsel %vm1537_vm2, %v3337_v39, %v3338_v63  ;;  %v2149_v7 = vshrl.u32 %v5738_v9, 16  ;;  %v2153_v33 = vrot.slane %v2151_v21, 1  ;;  %v5740_v49 = vld [vmem:[#allocation2 + $0x90] sm:$0xff]  }
 0x12b   : > { %2223 = vst.msk [vmem:[#allocation3 + $0x110] sm:$0xff] %vm910_vm10, %v2147_v10  ;;  %3377 = vst.msk [vmem:[#allocation3 + $0x130] sm:$0xff] %vm910_vm10, %v3339_v2  ;;  %v3347_v38 = vrot.slane %v5737_v6, 1  ;;  %v2158_v50 = vrot.slane %v2156_v42, 1  ;;  %v4020_v6 = vld [vmem:[%s7649_s5 + $0x8] sm:$0xff] }
 0x12c   : > { %v1313_v55 = vpop.permute.xlu1 %1312  ;;  %v3324_v24 = vsel %vm1537_vm2, %v3322_v20, %v3323_v18  ;;  %v3341_v20 = vrot.slane %v5733_v11, 1  ;;  %v5735_v18 = vld [vmem:[#allocation2 + $0xc8] ss:$0 sps:$4 sm:$0x11]   ;;  %923 = vst.msk [vmem:[#allocation3 + $0x120] sm:$0xff] %vm910_vm10, %v5740_v49  ;;  %v2154_v51 = vor.u32 %v2153_v33, %v2149_v7  ;;  %v5819_v33 = vmov 0.0|0.0  }
 0x12d   : > { %1353 = vst.msk [vmem:[#allocation3 + $0xc0] sm:$0xff] %vm1344_vm11, %v1313_v55  ;;  %v3398_v23 = vld [vmem:[#allocation3 + $0x88] sm:$0xff]  ;;  %5440 = vmatprep.subr.bf16.mxu1 %v5819_v33 }
 0x12e   : > { %3372 = vst.msk [vmem:[#allocation3 + $0xb8] sm:$0xff] %vm910_vm10, %v3324_v24  ;;  %v5731_v55 = vld [vmem:[#allocation2 + $0x84] sm:$0xff]   ;;  %v3342_v41 = vsel %vm1537_vm2, %v3340_v19, %v3341_v20  ;;  %v3344_v24 = vrot.slane %v5735_v18, 1 }
 0x12f   : > { %922 = vst.msk [vmem:[#allocation3 + $0x108] sm:$0xff] %vm910_vm10, %v5731_v55  ;;  %3378 = vst.msk [vmem:[#allocation3 + $0x148] sm:$0xff] %vm910_vm10, %v3342_v41 }
 0x130   : > { %v3076_v45 = vpop.permute.xlu0 %3075  ;;  %v3402_v52 = vld [vmem:[#allocation3 + $0xa8] sm:$0xff] }
 0x131   : > { %3116 = vst.msk [vmem:[#allocation3 + $0xb0] sm:$0xff] %vm1811_vm13, %v3076_v45  ;;  %5395 = vmatmul.mubr.msk.bf16.gmra.mrb[20].mxu1 %vm910_vm10, %v3398_v23  ;;  %v5724_v45 = vld [vmem:[#allocation2 + $0x98] ss:$0 sps:$4 sm:$0x11]   ;;  %v3407_v48 = vld [vmem:[#allocation3 + $0xd0] sm:$0xff] }
 0x132   : > { %v1603_v32 = vpop.permute.xlu1 %1602  ;;  %5398 = vmatprep.mubr.msk.bf16.mxu1 %vm910_vm10, %v3401_v13  ;;  %v3332_v4 = vrot.slane %v5724_v45, 1  ;;  %v2159_v45 = vsel %vm1103_vm5, %v2154_v51, %v2158_v50 }
 0x133   : > { %1643 = vst.msk [vmem:[#allocation3 + $0xc0] sm:$0xff] %vm1634_vm12, %v1603_v32  ;;  %v5734_v32 = vld [vmem:[#allocation2 + $0xc0] sm:$0xfe]  }
 0x134   : > { %v2469_v53 = vpop.permute.xlu0 %2468  ;;  %v3333_v57 = vsel %vm1537_vm2, %v3331_v46, %v3332_v4  ;;  %v3343_v23 = vrot.slane %v5734_v32, 1  ;;  %2224 = vst.msk [vmem:[#allocation3 + $0x128] sm:$0xff] %vm910_vm10, %v2159_v45 }
 0x135   : > { %2508 = vst.msk [vmem:[#allocation3 + $0xc8] sm:$0xff] %vm1344_vm11, %v2469_v53  ;;  %v3404_v0 = vld [vmem:[#allocation3 + $0xb8] sm:$0xff]  ;;  %v3335_v53 = vrot.slane %v5726_v29, 1 }
 0x136   : > { %3375 = vst.msk [vmem:[#allocation3 + $0x100] sm:$0xff] %vm910_vm10, %v3333_v57  ;;  %v3345_v30 = vsel %vm1537_vm2, %v3343_v23, %v3344_v24  ;;  %v3422_v44 = vld [vmem:[#allocation3 + $0x148] sm:$0xff] }
 0x137   : > { %v3336_v43 = vsel %vm1537_vm2, %v3334_v37, %v3335_v53  ;;  %3379 = vst.msk [vmem:[#allocation3 + $0x160] sm:$0xff] %vm910_vm10, %v3345_v30 }
 0x138   : > { %v3403_v31 = vld [vmem:[#allocation3 + $0xb0] sm:$0xff]  ;;  %v1780_v35 = vpop.permute.xlu1 %1779  ;;  %3376 = vst.msk [vmem:[#allocation3 + $0x118] sm:$0xff] %vm910_vm10, %v3336_v43 }
 0x139   : > { %3716 = vmatprep.mubr.bf16.mxu0 %v3403_v31  ;;  %1820 = vst.msk [vmem:[#allocation3 + $0xc0] sm:$0xff] %vm1811_vm13, %v1780_v35  ;;  %5399 = vmatmul.mubr.msk.bf16.gmra.mrb[24].mxu1 %vm910_vm10, %v3404_v0  ;;  %v3410_v31 = vld [vmem:[#allocation3 + $0xe8] sm:$0xff]  ;;  %v3346_v35 = vrot.slane %v5736_v5, 1 }
 0x13a   : > { %3717 = vmatmul.mubr.bf16.gmra.mrb[28].mxu0 %v3402_v52  ;;  %5402 = vmatprep.mubr.msk.bf16.mxu1 %vm910_vm10, %v3407_v48 }
 0x13b   : > { %v3348_v13 = vsel %vm1537_vm2, %v3346_v35, %v3347_v38 }
 0x13c   : > { %3380 = vst.msk [vmem:[#allocation3 + $0x178] sm:$0xff] %vm910_vm10, %v3348_v13 }
 0x13d   : > { %v3413_v60 = vld [vmem:[#allocation3 + $0x100] sm:$0xff] }
 0x13e   : > { %v3425_v46 = vld [vmem:[#allocation3 + $0x160] sm:$0xff] }
 0x13f   : > { %v3416_v47 = vld [vmem:[#allocation3 + $0x118] sm:$0xff] }
 0x140   : > { %v1315_v61 = vpop.permute.xlu1 %1314  ;;  %v3405_v14 = vld [vmem:[#allocation3 + $0xc0] sm:$0xff] }
 0x141   : > { %1354 = vst.msk [vmem:[#allocation3 + $0xd8] sm:$0xff] %vm1344_vm11, %v1315_v61  ;;  %5403 = vmatmul.mubr.msk.bf16.gmra.mrb[28].mxu1 %vm910_vm10, %v3410_v31 }
 0x142   : > { %v2646_v40 = vpop.permute.xlu0 %2645  ;;  %5406 = vmatprep.mubr.msk.bf16.mxu1 %vm910_vm10, %v3413_v60 }
 0x143   : > { %2685 = vst.msk [vmem:[#allocation3 + $0xc8] sm:$0xff] %vm1634_vm12, %v2646_v40  ;;  %v3419_v40 = vld [vmem:[#allocation3 + $0x130] sm:$0xff]  ;;  %v3428_v1 = vld [vmem:[#allocation3 + $0x178] sm:$0xff] }
 0x144   : > { %v1605_v17 = vpop.permute.xlu1 %1604 }
 0x145   : > { %1644 = vst.msk [vmem:[#allocation3 + $0xd8] sm:$0xff] %vm1634_vm12, %v1605_v17 }
 0x148   : > { %v1782_v25 = vpop.permute.xlu1 %1781 }
 0x149   : > { %1821 = vst.msk [vmem:[#allocation3 + $0xd8] sm:$0xff] %vm1811_vm13, %v1782_v25  ;;  %5407 = vmatmul.mubr.msk.bf16.gmra.mrb[32].mxu1 %vm910_vm10, %v3416_v47  ;;  %v4019_v25 = vld [vmem:[%s7649_s5] sm:$0xff] }
 0x14a   : > { %v3078_v52 = vpop.permute.xlu0 %3077  ;;  %5410 = vmatprep.mubr.msk.bf16.mxu1 %vm910_vm10, %v3419_v40  ;;  %v6717_v30 = vpack.c.bf16 %v4020_v6, %v4019_v25 }
 0x14b   : > { %3117 = vst.msk [vmem:[#allocation3 + $0xc8] sm:$0xff] %vm1811_vm13, %v3078_v52 }
 0x14c   : > { %5442 = vmatpush3.bf16.msra.mxu1 %v6717_v30 }
 0x14d   : > { %5443 = vmatprep.subr.bf16.mxu1 %v5819_v33 }
 0x14e   : > { %v2471_v62 = vpop.permute.xlu0 %2470  ;;  %v1317_v15 = vpop.permute.xlu1 %1316 }
 0x14f   : > { %2509 = vst.msk [vmem:[#allocation3 + $0xe0] sm:$0xff] %vm1344_vm11, %v2471_v62  ;;  %1355 = vst.msk [vmem:[#allocation3 + $0xf0] sm:$0xff] %vm1344_vm11, %v1317_v15 }
 0x150   : > { %v3408_v22 = vld [vmem:[#allocation3 + $0xd8] sm:$0xff] }
 0x151   : > { %5411 = vmatmul.mubr.msk.bf16.gmra.mrb[36].mxu1 %vm910_vm10, %v3422_v44 }
 0x152   : > { %v3406_v28 = vld [vmem:[#allocation3 + $0xc8] sm:$0xff]  ;;  %v2648_v8 = vpop.permute.xlu0 %2647  ;;  %v1607_v0 = vpop.permute.xlu1 %1606  ;;  %5414 = vmatprep.mubr.msk.bf16.mxu1 %vm910_vm10, %v3425_v46 }
 0x153   : > { %3724 = vmatprep.mubr.bf16.mxu0 %v3406_v28  ;;  %2686 = vst.msk [vmem:[#allocation3 + $0xe0] sm:$0xff] %vm1634_vm12, %v2648_v8  ;;  %1645 = vst.msk [vmem:[#allocation3 + $0xf0] sm:$0xff] %vm1634_vm12, %v1607_v0 }
 0x154   : > { %3725 = vmatmul.mubr.bf16.gmra.mrb[32].mxu0 %v3405_v14 }
 0x156   : > { %v3080_v36 = vpop.permute.xlu0 %3079  ;;  %v1784_v12 = vpop.permute.xlu1 %1783 }
 0x157   : > { %3118 = vst.msk [vmem:[#allocation3 + $0xe0] sm:$0xff] %vm1811_vm13, %v3080_v36  ;;  %1822 = vst.msk [vmem:[#allocation3 + $0xf0] sm:$0xff] %vm1811_vm13, %v1784_v12 }
 0x159   : > { %5415 = vmatmul.mubr.msk.bf16.gmra.mrb[40].mxu1 %vm910_vm10, %v3428_v1 }
 0x15a   : > { %v2473_v4 = vpop.permute.xlu0 %2472  ;;  %v1319_v57 = vpop.permute.xlu1 %1318 }
 0x15b   : > { %2510 = vst.msk [vmem:[#allocation3 + $0xf8] sm:$0xff] %vm1344_vm11, %v2473_v4  ;;  %1356 = vst.msk [vmem:[#allocation3 + $0x108] sm:$0xff] %vm1344_vm11, %v1319_v57 }
 0x15e   : > { %v3409_v29 = vld [vmem:[#allocation3 + $0xe0] sm:$0xff]  ;;  %v2650_v48 = vpop.permute.xlu0 %2649  ;;  %v1609_v53 = vpop.permute.xlu1 %1608  ;;  %v3411_v55 = vld [vmem:[#allocation3 + $0xf0] sm:$0xff] }
 0x15f   : > { %3732 = vmatprep.mubr.bf16.mxu0 %v3409_v29  ;;  %2687 = vst.msk [vmem:[#allocation3 + $0xf8] sm:$0xff] %vm1634_vm12, %v2650_v48  ;;  %1646 = vst.msk [vmem:[#allocation3 + $0x108] sm:$0xff] %vm1634_vm12, %v1609_v53 }
 0x160   : > { %3733 = vmatmul.mubr.bf16.gmra.mrb[36].mxu0 %v3408_v22 }
 0x162   : > { %v3082_v37 = vpop.permute.xlu0 %3081  ;;  %v1786_v27 = vpop.permute.xlu1 %1785 }
 0x163   : > { %3119 = vst.msk [vmem:[#allocation3 + $0xf8] sm:$0xff] %vm1811_vm13, %v3082_v37  ;;  %1823 = vst.msk [vmem:[#allocation3 + $0x108] sm:$0xff] %vm1811_vm13, %v1786_v27 }
 0x166   : > { %v2475_v54 = vpop.permute.xlu0 %2474  ;;  %v1321_v58 = vpop.permute.xlu1 %1320 }
 0x167   : > { %2511 = vst.msk [vmem:[#allocation3 + $0x110] sm:$0xff] %vm1344_vm11, %v2475_v54  ;;  %1357 = vst.msk [vmem:[#allocation3 + $0x120] sm:$0xff] %vm1344_vm11, %v1321_v58 }
 0x16a   : > { %v2652_v52 = vpop.permute.xlu0 %2651  ;;  %v3412_v43 = vld [vmem:[#allocation3 + $0xf8] sm:$0xff]  ;;  %v1611_v61 = vpop.permute.xlu1 %1610  ;;  %v3414_v56 = vld [vmem:[#allocation3 + $0x108] sm:$0xff] }
 0x16b   : > { %2688 = vst.msk [vmem:[#allocation3 + $0x110] sm:$0xff] %vm1634_vm12, %v2652_v52  ;;  %3740 = vmatprep.mubr.bf16.mxu0 %v3412_v43  ;;  %1647 = vst.msk [vmem:[#allocation3 + $0x120] sm:$0xff] %vm1634_vm12, %v1611_v61 }
 0x16c   : > { %3741 = vmatmul.mubr.bf16.gmra.mrb[40].mxu0 %v3411_v55 }
 0x16e   : > { %v3084_v34 = vpop.permute.xlu0 %3083  ;;  %v1788_v39 = vpop.permute.xlu1 %1787 }
 0x16f   : > { %3120 = vst.msk [vmem:[#allocation3 + $0x110] sm:$0xff] %vm1811_vm13, %v3084_v34  ;;  %1824 = vst.msk [vmem:[#allocation3 + $0x120] sm:$0xff] %vm1811_vm13, %v1788_v39 }
 0x172   : > { %v2477_v59 = vpop.permute.xlu0 %2476 }
 0x173   : > { %2512 = vst.msk [vmem:[#allocation3 + $0x128] sm:$0xff] %vm1344_vm11, %v2477_v59 }
 0x176   : > { %v2654_v9 = vpop.permute.xlu0 %2653  ;;  %v3415_v3 = vld [vmem:[#allocation3 + $0x110] sm:$0xff]  ;;  %v3417_v63 = vld [vmem:[#allocation3 + $0x120] sm:$0xff] }
 0x177   : > { %2689 = vst.msk [vmem:[#allocation3 + $0x128] sm:$0xff] %vm1634_vm12, %v2654_v9  ;;  %3748 = vmatprep.mubr.bf16.mxu0 %v3415_v3  ;;  %v4022_v9 = vld [vmem:[%s7649_s5 + $0x18] sm:$0xff] }
 0x178   : > { %3749 = vmatmul.mubr.bf16.gmra.mrb[44].mxu0 %v3414_v56  ;;  %v4021_v56 = vld [vmem:[%s7649_s5 + $0x10] sm:$0xff] }
 0x17a   : > { %v3086_v31 = vpop.permute.xlu0 %3085 }
 0x17b   : > { %3121 = vst.msk [vmem:[#allocation3 + $0x128] sm:$0xff] %vm1811_vm13, %v3086_v31  ;;  %v6745_v31 = vpack.c.bf16 %v4022_v9, %v4021_v56 }
 0x17d   : > { %5445 = vmatpush3.bf16.msra.mxu1 %v6745_v31 }
 0x17e   : > { %5446 = vmatprep.subr.bf16.mxu1 %v5819_v33 }
 0x182   : > { %v3418_v26 = vld [vmem:[#allocation3 + $0x128] sm:$0xff] }
 0x183   : > { %3756 = vmatprep.mubr.bf16.mxu0 %v3418_v26 }
 0x184   : > { %3757 = vmatmul.mubr.bf16.gmra.mrb[48].mxu0 %v3417_v63  ;;  %v5821_v63 = vmov 0.0  }
 0x185   : > { %5426 = vmatprep.mubr.msk.f32.mxu1 %vm5820_vm14, %v5821_v63 }
 0x19c   : > { %v5258_v62 = vpop.f32.mrb[0].mxu0 }
 0x19d   : > { %v5259_v10 = vpop.f32.mrb[1].mxu0 }
 0x19e   : > { %v6698_v11 = vadd.f32 %v5259_v10, %v5258_v62  ;;  %v5261_v21 = vpop.f32.mrb[2].mxu0  ;;  %v6752_v62 = vld [vmem:[%s7646_s2] ss:$0 sm:$0xff] }
 0x19f   : > { %v5262_v17 = vpop.f32.mrb[3].mxu0 }
 0x1a0   : > { %v6700_v14 = vadd.f32 %v5262_v17, %v5261_v21 }
 0x1a2   : > { %v3666_v6 = vadd.f32 %v6700_v14, %v6752_v62 }
 0x1a4   : > { %v5264_v60 = vpop.f32.mrb[4].mxu0 }
 0x1a5   : > { %v5265_v2 = vpop.f32.mrb[5].mxu0 }
 0x1a6   : > { %v6702_v19 = vadd.f32 %v5265_v2, %v5264_v60  ;;  %v5267_v20 = vpop.f32.mrb[6].mxu0 }
 0x1a7   : > { %v5268_v32 = vpop.f32.mrb[7].mxu0 }
 0x1a8   : > { %v6704_v18 = vadd.f32 %v5268_v32, %v5267_v20  ;;  %v3671_v60 = vadd.f32 %v6702_v19, %v6752_v62  ;;  %v3663_v32 = vadd.f32 %v6698_v11, %v6752_v62 }
 0x1ac   : > { %v5270_v28 = vpop.f32.mrb[8].mxu0 }
 0x1ad   : > { %v5271_v41 = vpop.f32.mrb[9].mxu0 }
 0x1ae   : > { %v6706_v23 = vadd.f32 %v5271_v41, %v5270_v28  ;;  %v5273_v24 = vpop.f32.mrb[10].mxu0 }
 0x1af   : > { %v5274_v5 = vpop.f32.mrb[11].mxu0 }
 0x1b0   : > { %v6708_v7 = vadd.f32 %v5274_v5, %v5273_v24  ;;  %v3674_v24 = vadd.f32 %v6704_v18, %v6752_v62 }
 0x1b8   : > { %v5276_v35 = vpop.f32.mrb[12].mxu0 }
 0x1b9   : > { %v5277_v49 = vpop.f32.mrb[13].mxu0 }
 0x1ba   : > { %v5278_v38 = vadd.f32 %v5277_v49, %v5276_v35  ;;  %v5279_v16 = vpop.f32.mrb[14].mxu0 }
 0x1bb   : > { %v5280_v8 = vpop.f32.mrb[15].mxu0 }
 0x1bc   : > { %v6721_v47 = vadd.f32 %v5280_v8, %v5279_v16  ;;  %v3687_v16 = vadd.f32 %v5278_v38, %v6752_v62  ;;  %v3682_v38 = vadd.f32 %v6708_v7, %v6752_v62 }
 0x1c1   : > { %v5336_v40 = vpop.f32.mrb[0].mxu1 }
 0x1c2   : > { %v5337_v13 = vpop.f32.mrb[1].mxu1 }
 0x1c3   : > { %v6723_v51 = vadd.f32 %v5337_v13, %v5336_v40  ;;  %v5339_v42 = vpop.f32.mrb[2].mxu1  ;;  %v3679_v40 = vadd.f32 %v6706_v23, %v6752_v62 }
 0x1c4   : > { %v5340_v50 = vpop.f32.mrb[3].mxu1 }
 0x1c5   : > { %v6725_v15 = vadd.f32 %v5340_v50, %v5339_v42  ;;  %v3690_v50 = vadd.f32 %v6721_v47, %v6752_v62 }
 0x1cd   : > { %v5282_v45 = vpop.f32.mrb[16].mxu0 }
 0x1ce   : > { %v5283_v36 = vpop.f32.mrb[17].mxu0 }
 0x1cf   : > { %v6727_v44 = vadd.f32 %v5283_v36, %v5282_v45  ;;  %v5285_v46 = vpop.f32.mrb[18].mxu0 }
 0x1d0   : > { %v5286_v0 = vpop.f32.mrb[19].mxu0 }
 0x1d1   : > { %v6729_v4 = vadd.f32 %v5286_v0, %v5285_v46  ;;  %v3695_v47 = vadd.f32 %v6727_v44, %v6752_v62 }
 0x1d8   : > { %v5342_v12 = vpop.f32.mrb[4].mxu1 }
 0x1d9   : > { %v5343_v22 = vpop.f32.mrb[5].mxu1 }
 0x1da   : > { %v6731_v29 = vadd.f32 %v5343_v22, %v5342_v12  ;;  %v5345_v1 = vpop.f32.mrb[6].mxu1 }
 0x1db   : > { %v5346_v48 = vpop.f32.mrb[7].mxu1 }
 0x1dc   : > { %v6733_v57 = vadd.f32 %v5346_v48, %v5345_v1 }
 0x1e0   : > { %v5288_v37 = vpop.f32.mrb[20].mxu0 }
 0x1e1   : > { %v5289_v53 = vpop.f32.mrb[21].mxu0 }
 0x1e2   : > { %v5290_v54 = vadd.f32 %v5289_v53, %v5288_v37  ;;  %v5291_v27 = vpop.f32.mrb[22].mxu0 }
 0x1e3   : > { %v5292_v55 = vpop.f32.mrb[23].mxu0 }
 0x1e4   : > { %v5293_v52 = vadd.f32 %v5292_v55, %v5291_v27  ;;  %v3703_v48 = vadd.f32 %v5290_v54, %v6752_v62 }
 0x1e6   : > { %v3706_v55 = vadd.f32 %v5293_v52, %v6752_v62 }
 0x1ec   : > { %v5348_v43 = vpop.f32.mrb[8].mxu1 }
 0x1ed   : > { %v5349_v34 = vpop.f32.mrb[9].mxu1 }
 0x1ee   : > { %v6735_v58 = vadd.f32 %v5349_v34, %v5348_v43  ;;  %v5351_v59 = vpop.f32.mrb[10].mxu1  ;;  %v3698_v34 = vadd.f32 %v6729_v4, %v6752_v62 }
 0x1ef   : > { %v5352_v61 = vpop.f32.mrb[11].mxu1 }
 0x1f0   : > { %v6743_v3 = vadd.f32 %v5352_v61, %v5351_v59 }
 0x1f4   : > { %v5388_v20 = vpop.f32.mrb[12].mxu1 }
 0x1f5   : > { %v6760_v28 = vadd.f32 %v5388_v20, %v3671_v60  ;;  %v3823_v41 = vpop.f32.mrb[13].mxu1 }
 0x1f6   : > { %v6764_v5 = vadd.f32 %v3823_v41, %v3663_v32  ;;  %v5389_v25 = vpop.f32.mrb[14].mxu1 }
 0x1f7   : > { %v6768_v35 = vadd.f32 %v5389_v25, %v3674_v24  ;;  %v3826_v19 = vpop.f32.mrb[15].mxu1  ;;  %v3953_v4 = vsel %vm910_vm10, %v6760_v28, 0.0 }
 0x1f8   : > { %v6770_v49 = vadd.f32 %v3826_v19, %v3666_v6  ;;  %v3950_v44 = vsel %vm910_vm10, %v6764_v5, 0.0 }
 0x1f9   : > { %v5294_v39 = vpop.f32.mrb[24].mxu0 }
 0x1fa   : > { %v5295_v26 = vpop.f32.mrb[25].mxu0  ;;  %v3951_v59 = vsel %vm910_vm10, %v6770_v49, 0.0 }
 0x1fb   : > { %v5296_v10 = vadd.f32 %v5295_v26, %v5294_v39  ;;  %v5297_v21 = vpop.f32.mrb[26].mxu0  ;;  %v3952_v9 = vadd.f32 %v3951_v59, %v3950_v44 }
 0x1fc   : > { %v5298_v17 = vpop.f32.mrb[27].mxu0  ;;  %v5392_v8 = vpop.f32.mrb[16].mxu1 }
 0x1fd   : > { %v5299_v2 = vadd.f32 %v5298_v17, %v5297_v21  ;;  %v6775_v18 = vadd.f32 %v5392_v8, %v3687_v16  ;;  %v3839_v42 = vpop.f32.mrb[17].mxu1  ;;  %v3711_v26 = vadd.f32 %v5296_v10, %v6752_v62  ;;  %v3954_v20 = vadd.f32 %v3953_v4, %v3952_v9 }
 0x1fe   : > { %v6779_v36 = vadd.f32 %v3839_v42, %v3679_v40  ;;  %v5393_v46 = vpop.f32.mrb[18].mxu1  ;;  %v3955_v10 = vsel %vm910_vm10, %v6768_v35, 0.0 }
 0x1ff   : > { %v6783_v12 = vadd.f32 %v5393_v46, %v3690_v50  ;;  %v3842_v22 = vpop.f32.mrb[19].mxu1  ;;  %v3714_v24 = vadd.f32 %v5299_v2, %v6752_v62  ;;  %v3956_v16 = vadd.f32 %v3955_v10, %v3954_v20  ;;  %v3770_v20 = vadd.f32 %v6725_v15, %v6752_v62 }
 0x200   : > { %v6785_v1 = vadd.f32 %v3842_v22, %v3682_v38 }
 0x201   : > { %v3963_v9 = vsel %vm910_vm10, %v6783_v12, 0.0 }
 0x202   : > { %v3959_v50 = vsel %vm910_vm10, %v6785_v1, 0.0 }
 0x204   : > { %v5396_v37 = vpop.f32.mrb[20].mxu1 }
 0x205   : > { %v6790_v53 = vadd.f32 %v5396_v37, %v3703_v48  ;;  %v3855_v27 = vpop.f32.mrb[21].mxu1 }
 0x206   : > { %v6793_v43 = vadd.f32 %v3855_v27, %v3695_v47  ;;  %v5397_v7 = vpop.f32.mrb[22].mxu1  ;;  %v3961_v47 = vsel %vm910_vm10, %v6775_v18, 0.0 }
 0x207   : > { %v6799_v61 = vadd.f32 %v5397_v7, %v3706_v55  ;;  %v3858_v54 = vpop.f32.mrb[23].mxu1  ;;  %v3969_v15 = vsel %vm910_vm10, %v6790_v53, 0.0 }
 0x208   : > { %v6801_v56 = vadd.f32 %v3858_v54, %v3698_v34 }
 0x20c   : > { %v5400_v39 = vpop.f32.mrb[24].mxu1 }
 0x20d   : > { %v5300_v11 = vpop.f32.mrb[28].mxu0  ;;  %v3871_v17 = vpop.f32.mrb[25].mxu1 }
 0x20e   : > { %v5301_v13 = vpop.f32.mrb[29].mxu0  ;;  %v6812_v32 = vadd.f32 %v3871_v17, %v3711_v26  ;;  %v5401_v41 = vpop.f32.mrb[26].mxu1  ;;  %v3767_v26 = vadd.f32 %v6723_v51, %v6752_v62  ;;  %v3783_v51 = vadd.f32 %v6735_v58, %v6752_v62 }
 0x20f   : > { %v5302_v14 = vadd.f32 %v5301_v13, %v5300_v11  ;;  %v5303_v45 = vpop.f32.mrb[30].mxu0  ;;  %v3874_v6 = vpop.f32.mrb[27].mxu1  ;;  %v3957_v11 = vsel %vm910_vm10, %v6779_v36, 0.0 }
 0x210   : > { %v5304_v0 = vpop.f32.mrb[31].mxu0  ;;  %v6817_v19 = vadd.f32 %v3874_v6, %v3714_v24  ;;  %v3958_v13 = vadd.f32 %v3957_v11, %v3956_v16  ;;  %v3967_v6 = vsel %vm910_vm10, %v6801_v56, 0.0 }
 0x211   : > { %v5305_v23 = vadd.f32 %v5304_v0, %v5303_v45  ;;  %v3719_v52 = vadd.f32 %v5302_v14, %v6752_v62 }
 0x212   : > { %v3960_v0 = vadd.f32 %v3959_v50, %v3958_v13 }
 0x213   : > { %v6809_v21 = vadd.f32 %v5400_v39, %v3719_v52  ;;  %v3722_v60 = vadd.f32 %v5305_v23, %v6752_v62  ;;  %v3965_v39 = vsel %vm910_vm10, %v6793_v43, 0.0 }
 0x214   : > { %v5404_v8 = vpop.f32.mrb[28].mxu1  ;;  %v3962_v34 = vadd.f32 %v3961_v47, %v3960_v0  ;;  %v3786_v0 = vadd.f32 %v6743_v3, %v6752_v62  ;;  %v3778_v47 = vadd.f32 %v6733_v57, %v6752_v62 }
 0x215   : > { %v6815_v25 = vadd.f32 %v5401_v41, %v3722_v60  ;;  %v3887_v40 = vpop.f32.mrb[29].mxu1 }
 0x216   : > { %v5405_v42 = vpop.f32.mrb[30].mxu1  ;;  %v3964_v52 = vadd.f32 %v3963_v9, %v3962_v34 }
 0x217   : > { %v3890_v14 = vpop.f32.mrb[31].mxu1 }
 0x218   : > { %v3966_v41 = vadd.f32 %v3965_v39, %v3964_v52  ;;  %v3971_v39 = vsel %vm910_vm10, %v6799_v61, 0.0 }
 0x21a   : > { %v3968_v11 = vadd.f32 %v3967_v6, %v3966_v41 }
 0x21c   : > { %v6826_v37 = vpop.f32.mrb[32].mxu1 }
 0x21d   : > { %v3903_v7 = vpop.f32.mrb[33].mxu1 }
 0x21e   : > { %v6833_v59 = vpop.f32.mrb[34].mxu1 }
 0x21f   : > { %v3906_v44 = vpop.f32.mrb[35].mxu1 }
 0x224   : > { %v5412_v4 = vpop.f32.mrb[36].mxu1 }
 0x225   : > { %v6843_v17 = vadd.f32 %v5412_v4, %v3767_v26  ;;  %v6845_v60 = vpop.f32.mrb[37].mxu1 }
 0x226   : > { %v5413_v24 = vpop.f32.mrb[38].mxu1 }
 0x227   : > { %v5306_v2 = vpop.f32.mrb[32].mxu0  ;;  %v6851_v10 = vadd.f32 %v5413_v24, %v3770_v20  ;;  %v6853_v16 = vpop.f32.mrb[39].mxu1  ;;  %v3973_v20 = vsel %vm910_vm10, %v6812_v32, 0.0  ;;  %v3975_v24 = vsel %vm910_vm10, %v6817_v19, 0.0 }
 0x228   : > { %v5307_v45 = vpop.f32.mrb[33].mxu0 }
 0x229   : > { %v5308_v46 = vadd.f32 %v5307_v45, %v5306_v2  ;;  %v5309_v38 = vpop.f32.mrb[34].mxu0  ;;  %v3775_v2 = vadd.f32 %v6731_v29, %v6752_v62 }
 0x22a   : > { %v5310_v22 = vpop.f32.mrb[35].mxu0 }
 0x22b   : > { %v5311_v23 = vadd.f32 %v5310_v22, %v5309_v38  ;;  %v3727_v48 = vadd.f32 %v5308_v46, %v6752_v62  ;;  %v3970_v22 = vadd.f32 %v3969_v15, %v3968_v11  ;;  %v3977_v11 = vsel %vm910_vm10, %v6809_v21, 0.0 }
 0x22c   : > { %v5416_v50 = vpop.f32.mrb[40].mxu1  ;;  %v3979_v15 = vsel %vm910_vm10, %v6815_v25, 0.0 }
 0x22d   : > { %v6830_v27 = vadd.f32 %v3887_v40, %v3727_v48  ;;  %v3730_v55 = vadd.f32 %v5311_v23, %v6752_v62  ;;  %v6861_v46 = vadd.f32 %v5416_v50, %v3783_v51  ;;  %v3935_v38 = vpop.f32.mrb[41].mxu1  ;;  %v3972_v4 = vadd.f32 %v3971_v39, %v3970_v22 }
 0x22e   : > { %v6865_v48 = vadd.f32 %v3935_v38, %v3775_v2  ;;  %v5417_v58 = vpop.f32.mrb[42].mxu1 }
 0x22f   : > { %v6835_v54 = vadd.f32 %v3890_v14, %v3730_v55  ;;  %v6870_v34 = vadd.f32 %v5417_v58, %v3786_v0  ;;  %v3938_v9 = vpop.f32.mrb[43].mxu1  ;;  %v3974_v41 = vadd.f32 %v3973_v20, %v3972_v4  ;;  %v3981_v38 = vsel %vm910_vm10, %v6830_v27, 0.0 }
 0x230   : > { %v6872_v52 = vadd.f32 %v3938_v9, %v3778_v47 }
 0x231   : > { %v3976_v6 = vadd.f32 %v3975_v24, %v3974_v41  ;;  %v3983_v47 = vsel %vm910_vm10, %v6835_v54, 0.0 }
 0x233   : > { %v5312_v40 = vpop.f32.mrb[36].mxu0  ;;  %v3978_v51 = vadd.f32 %v3977_v11, %v3976_v6 }
 0x234   : > { %v5313_v13 = vpop.f32.mrb[37].mxu0 }
 0x235   : > { %v5314_v14 = vadd.f32 %v5313_v13, %v5312_v40  ;;  %v5315_v45 = vpop.f32.mrb[38].mxu0 }
 0x236   : > { %v5316_v23 = vpop.f32.mrb[39].mxu0 }
 0x237   : > { %v3735_v29 = vadd.f32 %v5314_v14, %v6752_v62  ;;  %v5317_v55 = vadd.f32 %v5316_v23, %v5315_v45  ;;  %v3980_v45 = vadd.f32 %v3979_v15, %v3978_v51 }
 0x239   : > { %v6876_v3 = vadd.f32 %v5404_v8, %v3735_v29  ;;  %v3738_v26 = vadd.f32 %v5317_v55, %v6752_v62  ;;  %v3982_v58 = vadd.f32 %v3981_v38, %v3980_v45 }
 0x23b   : > { %v6881_v57 = vadd.f32 %v5405_v42, %v3738_v26  ;;  %v3985_v29 = vsel %vm910_vm10, %v6876_v3, 0.0  ;;  %v3984_v9 = vadd.f32 %v3983_v47, %v3982_v58 }
 0x23d   : > { %v3986_v20 = vadd.f32 %v3985_v29, %v3984_v9 }
 0x23f   : > { %v5318_v40 = vpop.f32.mrb[40].mxu0 }
 0x240   : > { %v5319_v8 = vpop.f32.mrb[41].mxu0 }
 0x241   : > { %v5320_v13 = vadd.f32 %v5319_v8, %v5318_v40  ;;  %v5321_v50 = vpop.f32.mrb[42].mxu0 }
 0x242   : > { %v5322_v2 = vpop.f32.mrb[43].mxu0 }
 0x243   : > { %v3743_v42 = vadd.f32 %v5320_v13, %v6752_v62  ;;  %v5323_v14 = vadd.f32 %v5322_v2, %v5321_v50 }
 0x245   : > { %v6892_v0 = vadd.f32 %v3903_v7, %v3743_v42  ;;  %v3746_v22 = vadd.f32 %v5323_v14, %v6752_v62  ;;  %v3987_v7 = vsel %vm910_vm10, %v6881_v57, 0.0 }
 0x246   : > { %v3988_v51 = vadd.f32 %v3987_v7, %v3986_v20  ;;  %v4001_v7 = vsel %vm910_vm10, %v6843_v17, 0.0 }
 0x247   : > { %v6895_v23 = vadd.f32 %v3906_v44, %v3746_v22  ;;  %v3989_v6 = vsel %vm910_vm10, %v6892_v0, 0.0 }
 0x248   : > { %v3990_v13 = vadd.f32 %v3989_v6, %v3988_v51  ;;  %v4009_v51 = vsel %vm910_vm10, %v6861_v46, 0.0 }
 0x249   : > { %v3991_v50 = vsel %vm910_vm10, %v6895_v23, 0.0 }
 0x24a   : > { %v3992_v42 = vadd.f32 %v3991_v50, %v3990_v13  ;;  %v4011_v50 = vsel %vm910_vm10, %v6870_v34, 0.0 }
 0x24b   : > { %v5324_v55 = vpop.f32.mrb[44].mxu0 }
 0x24c   : > { %v5325_v39 = vpop.f32.mrb[45].mxu0 }
 0x24d   : > { %v5326_v26 = vadd.f32 %v5325_v39, %v5324_v55  ;;  %v5327_v4 = vpop.f32.mrb[46].mxu0 }
 0x24e   : > { %v5328_v41 = vpop.f32.mrb[47].mxu0 }
 0x24f   : > { %v3751_v44 = vadd.f32 %v5326_v26, %v6752_v62  ;;  %v5329_v24 = vadd.f32 %v5328_v41, %v5327_v4 }
 0x251   : > { %v6907_v11 = vadd.f32 %v6826_v37, %v3751_v44  ;;  %v3754_v40 = vadd.f32 %v5329_v24, %v6752_v62  ;;  %v4005_v24 = vsel %vm910_vm10, %v6865_v48, 0.0 }
 0x253   : > { %v6911_v8 = vadd.f32 %v6833_v59, %v3754_v40  ;;  %v3993_v2 = vsel %vm910_vm10, %v6907_v11, 0.0 }
 0x254   : > { %v3994_v37 = vadd.f32 %v3993_v2, %v3992_v42 }
 0x255   : > { %v3995_v58 = vsel %vm910_vm10, %v6911_v8, 0.0 }
 0x256   : > { %v3996_v9 = vadd.f32 %v3995_v58, %v3994_v37 }
 0x257   : > { %v5330_v15 = vpop.f32.mrb[48].mxu0 }
 0x258   : > { %v5331_v14 = vpop.f32.mrb[49].mxu0 }
 0x259   : > { %v5332_v45 = vadd.f32 %v5331_v14, %v5330_v15  ;;  %v5333_v38 = vpop.f32.mrb[50].mxu0 }
 0x25a   : > { %v5334_v22 = vpop.f32.mrb[51].mxu0 }
 0x25b   : > { %v3759_v59 = vadd.f32 %v5332_v45, %v6752_v62  ;;  %v5335_v47 = vadd.f32 %v5334_v22, %v5333_v38  ;;  %v4096_v22 = vlaneseq }
 0x25d   : > { %v6921_v29 = vadd.f32 %v6845_v60, %v3759_v59  ;;  %v3762_v55 = vadd.f32 %v5335_v47, %v6752_v62  ;;  %v4003_v60 = vsel %vm910_vm10, %v6851_v10, 0.0  ;;  %v6949_v58 = vshrl.u32 %v4096_v22, 7 }
 0x25f   : > { %v3997_v39 = vsel %vm910_vm10, %v6921_v29, 0.0  ;;  %v6927_v26 = vadd.f32 %v6853_v16, %v3762_v55  ;;  %v4007_v16 = vsel %vm910_vm10, %v6872_v52, 0.0  ;;  %v4098_v55 = vsub.s32 0, %v6949_v58 }
 0x260   : > { %v3998_v4 = vadd.f32 %v3997_v39, %v3996_v9 }
 0x261   : > { %v3999_v20 = vsel %vm910_vm10, %v6927_v26, 0.0 }
 0x262   : > { %v4000_v41 = vadd.f32 %v3999_v20, %v3998_v4 }
 0x264   : > { %v4002_v44 = vadd.f32 %v4001_v7, %v4000_v41 }
 0x266   : > { %v4004_v62 = vadd.f32 %v4003_v60, %v4002_v44 }
 0x268   : > { %v4006_v6 = vadd.f32 %v4005_v24, %v4004_v62 }
 0x26a   : > { %v4008_v40 = vadd.f32 %v4007_v16, %v4006_v6 }
 0x26c   : > { %v4010_v13 = vadd.f32 %v4009_v51, %v4008_v40 }
 0x26e   : > { %v4012_v2 = vadd.f32 %v4011_v50, %v4010_v13 }
 0x270   : > { %v4013_v15 = vrot.slane %v4012_v2, 4 }
 0x272   : > { %v4014_v42 = vadd.f32 %v4013_v15, %v4012_v2 }
 0x274   : > { %v4015_v14 = vrot.slane %v4014_v42, 2 }
 0x276   : > { %v4016_v45 = vadd.f32 %v4015_v14, %v4014_v42 }
 0x278   : > { %v4017_v38 = vrot.slane %v4016_v45, 1 }
 0x27a   : > { %v4018_v37 = vadd.f32 %v4017_v38, %v4016_v45 }
 0x27c   : > { %5427 = vmatmul.mubr.msk.f32.vlgmr.msra.gmra.mrb[44].mxu1 %vm910_vm10, %v4018_v37 }
 0x27d   : > { %5448 = vmatpush3.bf16.msra.mxu1 %v6717_v30  ;;  %5437 = vmatprep.mubr.msk.f32.mxu1 %vm5820_vm14, %v5821_v63 }
 0x27e   : > { %5449 = vmatprep.subr.bf16.mxu1 %v5819_v33 }
 0x281   : > { %5451 = vmatpush3.bf16.msra.mxu1 %v6745_v31 }
 0x34f   : > { %v4092_v59 = vpop.f32.mrb[44].mxu1 }
 0x350   : > { %v5428_v47 = vpop.f32.mrb[45].mxu1  ;;  %v6954_v9 = vrot.slane %v4092_v59, %v4098_v55 }
 0x352   : > { %v6958_v30 = vsub.f32 %v6764_v5, %v6954_v9  ;;  %v6962_v33 = vsub.f32 %v6770_v49, %v6954_v9  ;;  %v6966_v31 = vsub.f32 %v6760_v28, %v6954_v9  ;;  %v6970_v63 = vsub.f32 %v6768_v35, %v6954_v9 }
 0x353   : > { %v6978_v5 = vsub.f32 %v6779_v36, %v6954_v9  ;;  %v6984_v28 = vsub.f32 %v6785_v1, %v6954_v9  ;;  %v6992_v44 = vsub.f32 %v6775_v18, %v6954_v9  ;;  %v6999_v1 = vsub.f32 %v6783_v12, %v6954_v9 }
 0x354   : > { %v4132_v39 = vmul.f32 %v6958_v30, %v6958_v30  ;;  %v4133_v4 = vmul.f32 %v6962_v33, %v6962_v33  ;;  %v4134_v49 = vmul.f32 %v6966_v31, %v6966_v31  ;;  %v4135_v35 = vmul.f32 %v6970_v63, %v6970_v63 }
 0x355   : > { %v4136_v36 = vmul.f32 %v6978_v5, %v6978_v5  ;;  %v4137_v24 = vmul.f32 %v6984_v28, %v6984_v28  ;;  %v7006_v18 = vsub.f32 %v6793_v43, %v6954_v9  ;;  %v4138_v40 = vmul.f32 %v6992_v44, %v6992_v44 }
 0x356   : > { %v4164_v20 = vsel %vm910_vm10, %v4132_v39, 0.0  ;;  %v4165_v41 = vsel %vm910_vm10, %v4133_v4, 0.0  ;;  %v4167_v60 = vsel %vm910_vm10, %v4134_v49, 0.0  ;;  %v4169_v6 = vsel %vm910_vm10, %v4135_v35, 0.0 }
 0x357   : > { %v4166_v7 = vadd.f32 %v4165_v41, %v4164_v20  ;;  %v4171_v51 = vsel %vm910_vm10, %v4136_v36, 0.0  ;;  %v7013_v12 = vsub.f32 %v6801_v56, %v6954_v9  ;;  %v4139_v50 = vmul.f32 %v6999_v1, %v6999_v1 }
 0x358   : > { %v4173_v2 = vsel %vm910_vm10, %v4137_v24, 0.0  ;;  %v7020_v43 = vsub.f32 %v6790_v53, %v6954_v9  ;;  %v4140_v42 = vmul.f32 %v7006_v18, %v7006_v18  ;;  %v4175_v14 = vsel %vm910_vm10, %v4138_v40, 0.0 }
 0x359   : > { %v4168_v62 = vadd.f32 %v4167_v60, %v4166_v7  ;;  %v7027_v56 = vsub.f32 %v6799_v61, %v6954_v9  ;;  %v4141_v38 = vmul.f32 %v7013_v12, %v7013_v12  ;;  %v4177_v37 = vsel %vm910_vm10, %v4139_v50, 0.0 }
 0x35a   : > { %v7034_v53 = vsub.f32 %v6812_v32, %v6954_v9  ;;  %v4142_v59 = vmul.f32 %v7020_v43, %v7020_v43  ;;  %v4179_v47 = vsel %vm910_vm10, %v4140_v42, 0.0  ;;  %v7041_v61 = vsub.f32 %v6817_v19, %v6954_v9 }
 0x35b   : > { %v4170_v16 = vadd.f32 %v4169_v6, %v4168_v62  ;;  %v4143_v4 = vmul.f32 %v7027_v56, %v7027_v56  ;;  %v4181_v49 = vsel %vm910_vm10, %v4141_v38, 0.0  ;;  %v7048_v32 = vsub.f32 %v6809_v21, %v6954_v9 }
 0x35c   : > { %v4144_v20 = vmul.f32 %v7034_v53, %v7034_v53  ;;  %v4183_v41 = vsel %vm910_vm10, %v4142_v59, 0.0  ;;  %v7055_v19 = vsub.f32 %v6815_v25, %v6954_v9  ;;  %v4145_v36 = vmul.f32 %v7041_v61, %v7041_v61 }
 0x35d   : > { %v4172_v13 = vadd.f32 %v4171_v51, %v4170_v16  ;;  %v4185_v60 = vsel %vm910_vm10, %v4143_v4, 0.0  ;;  %v7062_v21 = vsub.f32 %v6830_v27, %v6954_v9  ;;  %v4146_v24 = vmul.f32 %v7048_v32, %v7048_v32 }
 0x35e   : > { %v4187_v6 = vsel %vm910_vm10, %v4144_v20, 0.0  ;;  %v7069_v25 = vsub.f32 %v6835_v54, %v6954_v9  ;;  %v4147_v40 = vmul.f32 %v7055_v19, %v7055_v19  ;;  %v4189_v51 = vsel %vm910_vm10, %v4145_v36, 0.0 }
 0x35f   : > { %v4174_v15 = vadd.f32 %v4173_v2, %v4172_v13  ;;  %v7076_v27 = vsub.f32 %v6876_v3, %v6954_v9  ;;  %v4148_v50 = vmul.f32 %v7062_v21, %v7062_v21  ;;  %v4191_v2 = vsel %vm910_vm10, %v4146_v24, 0.0 }
 0x360   : > { %v7083_v54 = vsub.f32 %v6881_v57, %v6954_v9  ;;  %v4149_v42 = vmul.f32 %v7069_v25, %v7069_v25  ;;  %v7090_v3 = vsub.f32 %v6892_v0, %v6954_v9  ;;  %v7097_v57 = vsub.f32 %v6895_v23, %v6954_v9 }
 0x361   : > { %v4176_v45 = vadd.f32 %v4175_v14, %v4174_v15  ;;  %v4193_v14 = vsel %vm910_vm10, %v4147_v40, 0.0  ;;  %v4150_v38 = vmul.f32 %v7076_v27, %v7076_v27  ;;  %v7104_v0 = vsub.f32 %v6907_v11, %v6954_v9 }
 0x362   : > { %v4151_v59 = vmul.f32 %v7083_v54, %v7083_v54  ;;  %v4152_v4 = vmul.f32 %v7090_v3, %v7090_v3  ;;  %v7111_v23 = vsub.f32 %v6911_v8, %v6954_v9  ;;  %v4153_v20 = vmul.f32 %v7097_v57, %v7097_v57 }
 0x363   : > { %v4178_v22 = vadd.f32 %v4177_v37, %v4176_v45  ;;  %v4195_v37 = vsel %vm910_vm10, %v4148_v50, 0.0  ;;  %v7118_v11 = vsub.f32 %v6921_v29, %v6954_v9  ;;  %v4154_v36 = vmul.f32 %v7104_v0, %v7104_v0 }
 0x364   : > { %v7125_v8 = vsub.f32 %v6927_v26, %v6954_v9  ;;  %v4155_v24 = vmul.f32 %v7111_v23, %v7111_v23  ;;  %v7132_v29 = vsub.f32 %v6843_v17, %v6954_v9  ;;  %v7139_v26 = vsub.f32 %v6851_v10, %v6954_v9 }
 0x365   : > { %v4180_v39 = vadd.f32 %v4179_v47, %v4178_v22  ;;  %v4197_v47 = vsel %vm910_vm10, %v4149_v42, 0.0  ;;  %v4156_v40 = vmul.f32 %v7118_v11, %v7118_v11  ;;  %v7146_v17 = vsub.f32 %v6865_v48, %v6954_v9 }
 0x366   : > { %v4157_v50 = vmul.f32 %v7125_v8, %v7125_v8  ;;  %v4158_v42 = vmul.f32 %v7132_v29, %v7132_v29  ;;  %v7153_v10 = vsub.f32 %v6872_v52, %v6954_v9  ;;  %v7160_v48 = vsub.f32 %v6861_v46, %v6954_v9 }
 0x367   : > { %v4182_v35 = vadd.f32 %v4181_v49, %v4180_v39  ;;  %v4199_v49 = vsel %vm910_vm10, %v4150_v38, 0.0  ;;  %v4159_v38 = vmul.f32 %v7139_v26, %v7139_v26  ;;  %v4131_v52 = vsub.f32 %v6870_v34, %v6954_v9 }
 0x369   : > { %v4184_v7 = vadd.f32 %v4183_v41, %v4182_v35  ;;  %v4201_v41 = vsel %vm910_vm10, %v4151_v59, 0.0  ;;  %v4160_v59 = vmul.f32 %v7146_v17, %v7146_v17 }
 0x36b   : > { %v4186_v62 = vadd.f32 %v4185_v60, %v4184_v7  ;;  %v4203_v60 = vsel %vm910_vm10, %v4152_v4, 0.0  ;;  %v4161_v4 = vmul.f32 %v7153_v10, %v7153_v10  ;;  %v4219_v46 = vsel %vm910_vm10, %v4160_v59, 0.0 }
 0x36d   : > { %v4188_v16 = vadd.f32 %v4187_v6, %v4186_v62  ;;  %v4205_v6 = vsel %vm910_vm10, %v4153_v20, 0.0  ;;  %v4162_v20 = vmul.f32 %v7160_v48, %v7160_v48 }
 0x36f   : > { %v4190_v13 = vadd.f32 %v4189_v51, %v4188_v16  ;;  %v4207_v51 = vsel %vm910_vm10, %v4154_v36, 0.0  ;;  %v4221_v36 = vsel %vm910_vm10, %v4161_v4, 0.0 }
 0x371   : > { %v4192_v15 = vadd.f32 %v4191_v2, %v4190_v13  ;;  %v4209_v2 = vsel %vm910_vm10, %v4155_v24, 0.0 }
 0x373   : > { %v4194_v45 = vadd.f32 %v4193_v14, %v4192_v15  ;;  %v4211_v14 = vsel %vm910_vm10, %v4156_v40, 0.0 }
 0x375   : > { %v4196_v22 = vadd.f32 %v4195_v37, %v4194_v45  ;;  %v4213_v37 = vsel %vm910_vm10, %v4157_v50, 0.0 }
 0x377   : > { %v4198_v39 = vadd.f32 %v4197_v47, %v4196_v22  ;;  %v4215_v47 = vsel %vm910_vm10, %v4158_v42, 0.0 }
 0x379   : > { %v4200_v35 = vadd.f32 %v4199_v49, %v4198_v39  ;;  %v4217_v49 = vsel %vm910_vm10, %v4159_v38, 0.0 }
 0x37b   : > { %v4202_v7 = vadd.f32 %v4201_v41, %v4200_v35 }
 0x37d   : > { %v4204_v62 = vadd.f32 %v4203_v60, %v4202_v7  ;;  %v4163_v7 = vmul.f32 %v4131_v52, %v4131_v52 }
 0x37f   : > { %v4206_v16 = vadd.f32 %v4205_v6, %v4204_v62  ;;  %v4223_v62 = vsel %vm910_vm10, %v4162_v20, 0.0  ;;  %v4225_v34 = vsel %vm910_vm10, %v4163_v7, 0.0 }
 0x381   : > { %v4208_v13 = vadd.f32 %v4207_v51, %v4206_v16 }
 0x383   : > { %v4210_v15 = vadd.f32 %v4209_v2, %v4208_v13 }
 0x385   : > { %v4212_v45 = vadd.f32 %v4211_v14, %v4210_v15 }
 0x387   : > { %v4214_v22 = vadd.f32 %v4213_v37, %v4212_v45  ;;  %v4307_v45 = vld [vmem:[%s7647_s3] sm:$0x1] }
 0x389   : > { %v4216_v39 = vadd.f32 %v4215_v47, %v4214_v22 }
 0x38b   : > { %v4218_v35 = vadd.f32 %v4217_v49, %v4216_v39 }
 0x38d   : > { %v4220_v41 = vadd.f32 %v4219_v46, %v4218_v35 }
 0x38f   : > { %v4222_v60 = vadd.f32 %v4221_v36, %v4220_v41 }
 0x391   : > { %v4224_v24 = vadd.f32 %v4223_v62, %v4222_v60 }
 0x393   : > { %v4226_v9 = vadd.f32 %v4225_v34, %v4224_v24 }
 0x395   : > { %v4227_v6 = vrot.slane %v4226_v9, 4 }
 0x397   : > { %v4228_v16 = vadd.f32 %v4227_v6, %v4226_v9 }
 0x399   : > { %v4229_v40 = vrot.slane %v4228_v16, 2 }
 0x39b   : > { %v4230_v51 = vadd.f32 %v4229_v40, %v4228_v16 }
 0x39d   : > { %v4231_v13 = vrot.slane %v4230_v51, 1 }
 0x39f   : > { %v4232_v50 = vadd.f32 %v4231_v13, %v4230_v51 }
 0x3a1   : > { %5438 = vmatmul.mubr.msk.f32.vlgmr.msra.gmra.mrb[46].mxu1 %vm910_vm10, %v4232_v50 }
 0x474   : > { %v4302_v2 = vpop.f32.mrb[46].mxu1 }
 0x475   : > { %v4303_v15 = vadd.f32 1e-05, %v4302_v2  ;;  %v5439_v42 = vpop.f32.mrb[47].mxu1 }
 0x477   : > { %5741 = vrsqrt.f32 %v4303_v15 }
 0x481   : > { %v5742_v14 = vpop.eup %5741 }
 0x482   : > { %v4308_v38 = vmul.f32 %v5742_v14, %v4307_v45 }
 0x484   : > { %v4312_v37 = vrot.slane %v4308_v38, %v4098_v55 }
 0x486   : > { %v4313_v22 = vmul.f32 %v4312_v37, %v6958_v30  ;;  %v4314_v59 = vmul.f32 %v4312_v37, %v6962_v33  ;;  %v4315_v47 = vmul.f32 %v4312_v37, %v6966_v31  ;;  %v4316_v39 = vmul.f32 %v4312_v37, %v6970_v63 }
 0x487   : > { %v4317_v4 = vmul.f32 %v4312_v37, %v6978_v5  ;;  %v4318_v49 = vmul.f32 %v4312_v37, %v6984_v28  ;;  %v4319_v35 = vmul.f32 %v4312_v37, %v6992_v44  ;;  %v4320_v20 = vmul.f32 %v4312_v37, %v6999_v1 }
 0x488   : > { %v4321_v46 = vmul.f32 %v4312_v37, %v7006_v18  ;;  %v4322_v58 = vmul.f32 %v4312_v37, %v7013_v12  ;;  %v4323_v55 = vmul.f32 %v4312_v37, %v7020_v43  ;;  %v4324_v30 = vmul.f32 %v4312_v37, %v7027_v56  ;;  %v7207_v56 = vld [vmem:[%s7648_s4] ss:$0 sm:$0xff] }
 0x489   : > { %v4325_v33 = vmul.f32 %v4312_v37, %v7034_v53  ;;  %v4326_v31 = vmul.f32 %v4312_v37, %v7041_v61  ;;  %v4327_v63 = vmul.f32 %v4312_v37, %v7048_v32  ;;  %v4328_v5 = vmul.f32 %v4312_v37, %v7055_v19 }
 0x48a   : > { %v4329_v28 = vmul.f32 %v4312_v37, %v7062_v21  ;;  %v4330_v44 = vmul.f32 %v4312_v37, %v7069_v25  ;;  %v4331_v1 = vmul.f32 %v4312_v37, %v7076_v27  ;;  %v4332_v18 = vmul.f32 %v4312_v37, %v7083_v54 }
 0x48b   : > { %v4333_v12 = vmul.f32 %v4312_v37, %v7090_v3  ;;  %v4334_v43 = vmul.f32 %v4312_v37, %v7097_v57  ;;  %v4335_v53 = vmul.f32 %v4312_v37, %v7104_v0  ;;  %v4336_v61 = vmul.f32 %v4312_v37, %v7111_v23 }
 0x48c   : > { %v4337_v32 = vmul.f32 %v4312_v37, %v7118_v11  ;;  %v4338_v19 = vmul.f32 %v4312_v37, %v7125_v8  ;;  %v4339_v21 = vmul.f32 %v4312_v37, %v7132_v29  ;;  %v4340_v25 = vmul.f32 %v4312_v37, %v7139_v26 }
 0x48d   : > { %v4341_v27 = vmul.f32 %v4312_v37, %v7146_v17  ;;  %v4342_v54 = vmul.f32 %v4312_v37, %v7153_v10  ;;  %v4343_v3 = vmul.f32 %v4312_v37, %v7160_v48  ;;  %v4344_v57 = vmul.f32 %v4312_v37, %v4131_v52 }
 0x48e   : > { %v7219_v41 = vadd.f32 %v7207_v56, %v4313_v22  ;;  %v7222_v0 = vadd.f32 %v7207_v56, %v4314_v59  ;;  %v7225_v23 = vadd.f32 %v7207_v56, %v4315_v47  ;;  %v7228_v11 = vadd.f32 %v7207_v56, %v4316_v39 }
 0x48f   : > { %v7231_v8 = vadd.f32 %v7207_v56, %v4317_v4  ;;  %v7234_v29 = vadd.f32 %v7207_v56, %v4318_v49  ;;  %v7237_v26 = vadd.f32 %v7207_v56, %v4319_v35  ;;  %v7240_v17 = vadd.f32 %v7207_v56, %v4320_v20 }
 0x490   : > { %7710 = vst [vmem:[#allocation4_spill] sm:$0xff] %v7219_v41  ;;  %7711 = vst [vmem:[#allocation5_spill] sm:$0xff] %v7222_v0  ;;  %v7243_v10 = vadd.f32 %v7207_v56, %v4321_v46  ;;  %v7246_v48 = vadd.f32 %v7207_v56, %v4322_v58  ;;  %v7249_v52 = vadd.f32 %v7207_v56, %v4323_v55  ;;  %v7309_v37 = vmul.f32 0.5, %v7219_v41 }
 0x491   : > { %7712 = vst [vmem:[#allocation6_spill] sm:$0xff] %v7225_v23  ;;  %7713 = vst [vmem:[#allocation7_spill] sm:$0xff] %v7228_v11  ;;  %v7252_v7 = vadd.f32 %v7207_v56, %v4324_v30  ;;  %v7255_v36 = vadd.f32 %v7207_v56, %v4325_v33  ;;  %v7258_v60 = vadd.f32 %v7207_v56, %v4326_v31  ;;  %v7312_v22 = vmul.f32 0.5, %v7222_v0 }
 0x492   : > { %7714 = vst [vmem:[#allocation8_spill] sm:$0xff] %v7231_v8  ;;  %7715 = vst [vmem:[#allocation9_spill] sm:$0xff] %v7234_v29  ;;  %v7261_v62 = vadd.f32 %v7207_v56, %v4327_v63  ;;  %v7264_v24 = vadd.f32 %v7207_v56, %v4328_v5  ;;  %v7267_v34 = vadd.f32 %v7207_v56, %v4329_v28  ;;  %v7315_v59 = vmul.f32 0.5, %v7225_v23 }
 0x493   : > { %7716 = vst [vmem:[#allocation10_spill] sm:$0xff] %v7237_v26  ;;  %7717 = vst [vmem:[#allocation11_spill] sm:$0xff] %v7240_v17  ;;  %v7270_v9 = vadd.f32 %v7207_v56, %v4330_v44  ;;  %v7273_v6 = vadd.f32 %v7207_v56, %v4331_v1  ;;  %v7276_v16 = vadd.f32 %v7207_v56, %v4332_v18  ;;  %v7318_v47 = vmul.f32 0.5, %v7228_v11 }
 0x494   : > { %7718 = vst [vmem:[#allocation12_spill] sm:$0xff] %v7246_v48  ;;  %7719 = vst [vmem:[#allocation13_spill] sm:$0xff] %v7249_v52  ;;  %v7279_v40 = vadd.f32 %v7207_v56, %v4333_v12  ;;  %v7282_v51 = vadd.f32 %v7207_v56, %v4334_v43  ;;  %v7285_v13 = vadd.f32 %v7207_v56, %v4335_v53  ;;  %v7321_v39 = vmul.f32 0.5, %v7231_v8 }
 0x495   : > { %7720 = vst [vmem:[#allocation14_spill] sm:$0xff] %v7252_v7  ;;  %7721 = vst [vmem:[#allocation15_spill] sm:$0xff] %v7255_v36  ;;  %v7288_v50 = vadd.f32 %v7207_v56, %v4336_v61  ;;  %v7291_v2 = vadd.f32 %v7207_v56, %v4337_v32  ;;  %v7294_v15 = vadd.f32 %v7207_v56, %v4338_v19  ;;  %v7324_v4 = vmul.f32 0.5, %v7234_v29 }
 0x496   : > { %7722 = vst [vmem:[#allocation16_spill] sm:$0xff] %v7258_v60  ;;  %7723 = vst [vmem:[#allocation17_spill] sm:$0xff] %v7261_v62  ;;  %v7297_v42 = vadd.f32 %v7207_v56, %v4339_v21  ;;  %v7300_v14 = vadd.f32 %v7207_v56, %v4340_v25  ;;  %v7303_v45 = vadd.f32 %v7207_v56, %v4341_v27  ;;  %v7327_v49 = vmul.f32 0.5, %v7237_v26 }
 0x497   : > { %7724 = vst [vmem:[#allocation18_spill] sm:$0xff] %v7264_v24  ;;  %7725 = vst [vmem:[#allocation19_spill] sm:$0xff] %v7267_v34  ;;  %v7306_v38 = vadd.f32 %v7207_v56, %v4342_v54  ;;  %v7330_v35 = vmul.f32 0.5, %v7240_v17  ;;  %v7333_v20 = vmul.f32 0.5, %v7243_v10  ;;  %v7336_v46 = vmul.f32 0.5, %v7246_v48 }
 0x498   : > { %7726 = vst [vmem:[#allocation20_spill] sm:$0xff] %v7270_v9  ;;  %7727 = vst [vmem:[#allocation21_spill] sm:$0xff] %v7273_v6  ;;  %v7339_v58 = vmul.f32 0.5, %v7249_v52  ;;  %v7342_v55 = vmul.f32 0.5, %v7252_v7  ;;  %v7345_v30 = vmul.f32 0.5, %v7255_v36  ;;  %v7348_v33 = vmul.f32 0.5, %v7258_v60 }
 0x499   : > { %7728 = vst [vmem:[#allocation22_spill] sm:$0xff] %v7279_v40  ;;  %7729 = vst [vmem:[#allocation23_spill] sm:$0xff] %v7282_v51  ;;  %v7351_v31 = vmul.f32 0.5, %v7261_v62  ;;  %v7354_v63 = vmul.f32 0.5, %v7264_v24  ;;  %v7357_v5 = vmul.f32 0.5, %v7267_v34  ;;  %v7360_v28 = vmul.f32 0.5, %v7270_v9 }
 0x49a   : > { %7730 = vst [vmem:[#allocation24_spill] sm:$0xff] %v7285_v13  ;;  %7731 = vst [vmem:[#allocation25_spill] sm:$0xff] %v7288_v50  ;;  %v7363_v44 = vmul.f32 0.5, %v7273_v6  ;;  %v4416_v1 = vmul.f32 0.044715, %v7219_v41  ;;  %v7367_v18 = vmul.f32 0.5, %v7276_v16  ;;  %v7375_v61 = vadd.f32 %v7207_v56, %v4343_v3 }
 0x49b   : > { %7732 = vst [vmem:[#allocation26_spill] sm:$0xff] %v7291_v2  ;;  %7733 = vst [vmem:[#allocation27_spill] sm:$0xff] %v7294_v15  ;;  %v7370_v12 = vmul.f32 0.5, %v7279_v40  ;;  %v4417_v43 = vmul.f32 0.044715, %v7222_v0  ;;  %v7381_v25 = vadd.f32 %v7207_v56, %v4344_v57 }
 0x49c   : > { %7734 = vst [vmem:[#allocation28_spill] sm:$0xff] %v7297_v42  ;;  %7735 = vst [vmem:[#allocation29_spill] sm:$0xff] %v7300_v14  ;;  %v4418_v53 = vmul.f32 0.044715, %v7225_v23  ;;  %v4419_v32 = vmul.f32 0.044715, %v7228_v11 }
 0x49d   : > { %7736 = vst [vmem:[#allocation30_spill] sm:$0xff] %v7303_v45  ;;  %7737 = vst [vmem:[#allocation31_spill] sm:$0xff] %v7306_v38  ;;  %v4420_v19 = vmul.f32 0.044715, %v7231_v8  ;;  %v4421_v21 = vmul.f32 0.044715, %v7234_v29  ;;  %v4449_v57 = vmul.f32 %v4417_v43, %v7222_v0 }
 0x49e   : > { %7738 = vst [vmem:[#allocation32_spill] sm:$0xff] %v7309_v37  ;;  %7739 = vst [vmem:[#allocation33_spill] sm:$0xff] %v7312_v22  ;;  %v4422_v27 = vmul.f32 0.044715, %v7237_v26  ;;  %v4423_v54 = vmul.f32 0.044715, %v7240_v17 }
 0x49f   : > { %7740 = vst [vmem:[#allocation34_spill] sm:$0xff] %v7315_v59  ;;  %7741 = vst [vmem:[#allocation35_spill] sm:$0xff] %v7318_v47  ;;  %v4426_v3 = vmul.f32 0.044715, %v7249_v52  ;;  %v4430_v56 = vmul.f32 0.044715, %v7261_v62  ;;  %v4453_v59 = vmul.f32 %v4421_v21, %v7234_v29 }
 0x4a0   : > { %7742 = vst [vmem:[#allocation36_spill] sm:$0xff] %v7321_v39  ;;  %7743 = vst [vmem:[#allocation37_spill] sm:$0xff] %v7324_v4  ;;  %v4438_v43 = vmul.f32 0.044715, %v7285_v13  ;;  %v4452_v4 = vmul.f32 %v4420_v19, %v7231_v8  ;;  %v4440_v39 = vmul.f32 0.044715, %v7291_v2  ;;  %v4455_v8 = vmul.f32 %v4423_v54, %v7240_v17 }
 0x4a1   : > { %7744 = vst [vmem:[#allocation38_spill] sm:$0xff] %v7327_v49  ;;  %7745 = vst [vmem:[#allocation39_spill] sm:$0xff] %v7330_v35  ;;  %v4437_v35 = vmul.f32 0.044715, %v7282_v51  ;;  %v4439_v49 = vmul.f32 0.044715, %v7288_v50  ;;  %v4458_v21 = vmul.f32 %v4426_v3, %v7249_v52 }
 0x4a2   : > { %7746 = vst [vmem:[#allocation40_spill] sm:$0xff] %v7333_v20  ;;  %7747 = vst [vmem:[#allocation41_spill] sm:$0xff] %v7336_v46  ;;  %v4436_v46 = vmul.f32 0.044715, %v7279_v40  ;;  %v4451_v20 = vmul.f32 %v4419_v32, %v7228_v11  ;;  %v4442_v47 = vmul.f32 0.044715, %v7297_v42  ;;  %v4454_v11 = vmul.f32 %v4422_v27, %v7237_v26 }
 0x4a3   : > { %7748 = vst [vmem:[#allocation42_spill] sm:$0xff] %v7339_v58  ;;  %7749 = vst [vmem:[#allocation43_spill] sm:$0xff] %v7342_v55  ;;  %v4450_v55 = vmul.f32 %v4418_v53, %v7225_v23  ;;  %v4434_v58 = vmul.f32 0.044715, %v7273_v6  ;;  %v4441_v53 = vmul.f32 0.044715, %v7294_v15  ;;  %v4462_v27 = vmul.f32 %v4430_v56, %v7261_v62 }
 0x4a4   : > { %7750 = vst [vmem:[#allocation44_spill] sm:$0xff] %v7345_v30  ;;  %7751 = vst [vmem:[#allocation45_spill] sm:$0xff] %v7348_v33  ;;  %v4432_v33 = vmul.f32 0.044715, %v7267_v34  ;;  %v4433_v30 = vmul.f32 0.044715, %v7270_v9  ;;  %v4468_v3 = vmul.f32 %v4436_v46, %v7279_v40  ;;  %v4472_v56 = vmul.f32 %v4440_v39, %v7291_v2 }
 0x4a5   : > { %7752 = vst [vmem:[#allocation46_spill] sm:$0xff] %v7351_v31  ;;  %7753 = vst [vmem:[#allocation47_spill] sm:$0xff] %v7354_v63  ;;  %v4429_v63 = vmul.f32 0.044715, %v7258_v60  ;;  %v4431_v31 = vmul.f32 0.044715, %v7264_v24 }
 0x4a6   : > { %7754 = vst [vmem:[#allocation48_spill] sm:$0xff] %v7357_v5  ;;  %7755 = vst [vmem:[#allocation49_spill] sm:$0xff] %v7360_v28  ;;  %v4448_v28 = vmul.f32 %v4416_v1, %v7219_v41  ;;  %v4428_v5 = vmul.f32 0.044715, %v7255_v36  ;;  %v4435_v1 = vmul.f32 0.044715, %v7276_v16  ;;  %v4465_v54 = vmul.f32 %v4433_v30, %v7270_v9 }
 0x4a7   : > { %7756 = vst [vmem:[#allocation50_spill] sm:$0xff] %v7363_v44  ;;  %7757 = vst [vmem:[#allocation51_spill] sm:$0xff] %v7367_v18  ;;  %v4425_v18 = vmul.f32 0.044715, %v7246_v48  ;;  %v4427_v44 = vmul.f32 0.044715, %v7252_v7  ;;  %v4463_v26 = vmul.f32 %v4431_v31, %v7264_v24  ;;  %v4473_v31 = vmul.f32 %v4441_v53, %v7294_v15 }
 0x4a8   : > { %7758 = vst [vmem:[#allocation52_spill] sm:$0xff] %v7370_v12  ;;  %7759 = vst [vmem:[#allocation53_spill] sm:$0xff] %v7375_v61  ;;  %v4424_v12 = vmul.f32 0.044715, %v7243_v10  ;;  %v4443_v22 = vmul.f32 0.044715, %v7300_v14 }
 0x4a9   : > { %7760 = vst [vmem:[#allocation54_spill] sm:$0xff] %v7381_v25  ;;  %v4444_v32 = vmul.f32 0.044715, %v7303_v45  ;;  %v4445_v37 = vmul.f32 0.044715, %v7306_v38  ;;  %v4457_v41 = vmul.f32 %v4425_v18, %v7246_v48  ;;  %v4459_v29 = vmul.f32 %v4427_v44, %v7252_v7  ;;  %v7761_v9 = vld [vmem:[#allocation30_spill] sm:$0xff] }
 0x4aa   : > { %v4446_v23 = vmul.f32 0.044715, %v7375_v61  ;;  %v4447_v19 = vmul.f32 0.044715, %v7381_v25  ;;  %v4456_v0 = vmul.f32 %v4424_v12, %v7243_v10  ;;  %v4460_v45 = vmul.f32 %v4428_v5, %v7255_v36  ;;  %v7767_v2 = vld [vmem:[#allocation7_spill] sm:$0xff]  ;;  %v7768_v15 = vld [vmem:[#allocation8_spill] sm:$0xff] }
 0x4ab   : > { %v4461_v38 = vmul.f32 %v4429_v63, %v7258_v60  ;;  %v4464_v25 = vmul.f32 %v4432_v33, %v7267_v34  ;;  %v4466_v12 = vmul.f32 %v4434_v58, %v7273_v6  ;;  %v4467_v18 = vmul.f32 %v4435_v1, %v7276_v16  ;;  %v7762_v6 = vld [vmem:[#allocation31_spill] sm:$0xff] }
 0x4ac   : > { %v4469_v44 = vmul.f32 %v4437_v35, %v7282_v51  ;;  %v4470_v5 = vmul.f32 %v4438_v43, %v7285_v13  ;;  %v4471_v63 = vmul.f32 %v4439_v49, %v7288_v50  ;;  %v4474_v33 = vmul.f32 %v4442_v47, %v7297_v42  ;;  %v7764_v51 = vld [vmem:[#allocation4_spill] sm:$0xff]  ;;  %v7765_v13 = vld [vmem:[#allocation5_spill] sm:$0xff]  ;;  %v7766_v50 = vld [vmem:[#allocation6_spill] sm:$0xff] }
 0x4ad   : > { %v4475_v30 = vmul.f32 %v4443_v22, %v7300_v14  ;;  %v4476_v58 = vmul.f32 %v4444_v32, %v7761_v9  ;;  %v4477_v1 = vmul.f32 %v4445_v37, %v7762_v6  ;;  %v4478_v46 = vmul.f32 %v4446_v23, %v7375_v61  ;;  %v7769_v42 = vld [vmem:[#allocation9_spill] sm:$0xff]  ;;  %v7770_v14 = vld [vmem:[#allocation10_spill] sm:$0xff] }
 0x4ae   : > { %v4480_v43 = vmul.f32 %v4448_v28, %v7764_v51  ;;  %v4481_v49 = vmul.f32 %v4449_v57, %v7765_v13  ;;  %v4482_v39 = vmul.f32 %v4450_v55, %v7766_v50  ;;  %v4483_v53 = vmul.f32 %v4451_v20, %v7767_v2 }
 0x4af   : > { %v4484_v47 = vmul.f32 %v4452_v4, %v7768_v15  ;;  %v4485_v22 = vmul.f32 %v4453_v59, %v7769_v42  ;;  %v4486_v32 = vmul.f32 %v4454_v11, %v7770_v14  ;;  %v4487_v37 = vmul.f32 %v4455_v8, %v7240_v17  ;;  %v7771_v14 = vld [vmem:[#allocation20_spill] sm:$0xff]  ;;  %v7772_v17 = vld [vmem:[#allocation21_spill] sm:$0xff] }
 0x4b0   : > { %v7763_v40 = vld [vmem:[#allocation54_spill] sm:$0xff]  ;;  %v4488_v23 = vmul.f32 %v4456_v0, %v7243_v10  ;;  %v4490_v28 = vmul.f32 %v4458_v21, %v7249_v52  ;;  %v4491_v57 = vmul.f32 %v4459_v29, %v7252_v7  ;;  %v4492_v55 = vmul.f32 %v4460_v45, %v7255_v36  ;;  %v7774_v52 = vld [vmem:[#allocation23_spill] sm:$0xff]  ;;  %v7775_v7 = vld [vmem:[#allocation24_spill] sm:$0xff] }
 0x4b1   : > { %v4479_v35 = vmul.f32 %v4447_v19, %v7763_v40  ;;  %v4489_v19 = vmul.f32 %v4457_v41, %v7246_v48  ;;  %v4493_v20 = vmul.f32 %v4461_v38, %v7258_v60  ;;  %v4494_v4 = vmul.f32 %v4462_v27, %v7261_v62  ;;  %v7773_v48 = vld [vmem:[#allocation22_spill] sm:$0xff]  ;;  %v7776_v36 = vld [vmem:[#allocation25_spill] sm:$0xff]  ;;  %v7778_v62 = vld [vmem:[#allocation27_spill] sm:$0xff] }
 0x4b2   : > { %v4495_v59 = vmul.f32 %v4463_v26, %v7264_v24  ;;  %v4496_v11 = vmul.f32 %v4464_v25, %v7267_v34  ;;  %v4497_v8 = vmul.f32 %v4465_v54, %v7771_v14  ;;  %v4498_v0 = vmul.f32 %v4466_v12, %v7772_v17  ;;  %v7777_v60 = vld [vmem:[#allocation26_spill] sm:$0xff]  ;;  %v7779_v24 = vld [vmem:[#allocation28_spill] sm:$0xff]  ;;  %v7780_v34 = vld [vmem:[#allocation29_spill] sm:$0xff] }
 0x4b3   : > { %v4499_v41 = vmul.f32 %v4467_v18, %v7276_v16  ;;  %v4500_v21 = vmul.f32 %v4468_v3, %v7773_v48  ;;  %v4501_v29 = vmul.f32 %v4469_v44, %v7774_v52  ;;  %v4502_v45 = vmul.f32 %v4470_v5, %v7775_v7 }
 0x4b4   : > { %v4503_v38 = vmul.f32 %v4471_v63, %v7776_v36  ;;  %v4504_v27 = vmul.f32 %v4472_v56, %v7777_v60  ;;  %v4505_v26 = vmul.f32 %v4473_v31, %v7778_v62  ;;  %v4506_v25 = vmul.f32 %v4474_v33, %v7779_v24 }
 0x4b5   : > { %v4507_v54 = vmul.f32 %v4475_v30, %v7780_v34  ;;  %v4508_v12 = vmul.f32 %v4476_v58, %v7761_v9  ;;  %v4509_v18 = vmul.f32 %v4477_v1, %v7762_v6  ;;  %v4510_v3 = vmul.f32 %v4478_v46, %v7375_v61  ;;  %v7781_v34 = vld [vmem:[#allocation10_spill] sm:$0xff]  ;;  %v7782_v9 = vld [vmem:[#allocation11_spill] sm:$0xff]  ;;  %v7783_v61 = vld [vmem:[#allocation12_spill] sm:$0xff] }
 0x4b6   : > { %v4511_v44 = vmul.f32 %v4479_v35, %v7763_v40  ;;  %v4512_v5 = vadd.f32 %v4480_v43, %v7764_v51  ;;  %v4513_v63 = vadd.f32 %v4481_v49, %v7765_v13  ;;  %v4514_v56 = vadd.f32 %v4482_v39, %v7766_v50  ;;  %v7784_v40 = vld [vmem:[#allocation13_spill] sm:$0xff]  ;;  %v7785_v43 = vld [vmem:[#allocation14_spill] sm:$0xff]  ;;  %v7786_v49 = vld [vmem:[#allocation15_spill] sm:$0xff] }
 0x4b7   : > { %v4515_v31 = vadd.f32 %v4483_v53, %v7767_v2  ;;  %v4516_v33 = vadd.f32 %v4484_v47, %v7768_v15  ;;  %v4517_v30 = vadd.f32 %v4485_v22, %v7769_v42  ;;  %v4518_v58 = vadd.f32 %v4486_v32, %v7781_v34  ;;  %v7787_v39 = vld [vmem:[#allocation16_spill] sm:$0xff]  ;;  %v7788_v53 = vld [vmem:[#allocation17_spill] sm:$0xff]  ;;  %v7789_v47 = vld [vmem:[#allocation18_spill] sm:$0xff] }
 0x4b8   : > { %v4519_v1 = vadd.f32 %v4487_v37, %v7782_v9  ;;  %v4520_v46 = vadd.f32 %v4488_v23, %v7243_v10  ;;  %v4521_v35 = vadd.f32 %v4489_v19, %v7783_v61  ;;  %v4522_v51 = vadd.f32 %v4490_v28, %v7784_v40  ;;  %v7790_v22 = vld [vmem:[#allocation19_spill] sm:$0xff] }
 0x4b9   : > { %v4523_v13 = vadd.f32 %v4491_v57, %v7785_v43  ;;  %v4524_v50 = vadd.f32 %v4492_v55, %v7786_v49  ;;  %v4525_v2 = vadd.f32 %v4493_v20, %v7787_v39  ;;  %v4526_v15 = vadd.f32 %v4494_v4, %v7788_v53 }
 0x4ba   : > { %v4527_v42 = vadd.f32 %v4495_v59, %v7789_v47  ;;  %v4528_v34 = vadd.f32 %v4496_v11, %v7790_v22  ;;  %v4529_v9 = vadd.f32 %v4497_v8, %v7771_v14  ;;  %v4530_v10 = vadd.f32 %v4498_v0, %v7772_v17  ;;  %v7792_v8 = vld [vmem:[#allocation30_spill] sm:$0xff] }
 0x4bb   : > { %v4544_v32 = vmul.f32 0.7978846, %v4512_v5  ;;  %v4545_v61 = vmul.f32 0.7978846, %v4513_v63  ;;  %v4531_v40 = vadd.f32 %v4499_v41, %v7276_v16  ;;  %v4532_v37 = vadd.f32 %v4500_v21, %v7773_v48  ;;  %v7791_v48 = vld [vmem:[#allocation29_spill] sm:$0xff] }
 0x4bc   : > { %v4546_v23 = vmul.f32 0.7978846, %v4514_v56  ;;  %v4547_v19 = vmul.f32 0.7978846, %v4515_v31  ;;  %v4533_v28 = vadd.f32 %v4501_v29, %v7774_v52  ;;  %v4534_v57 = vadd.f32 %v4502_v45, %v7775_v7  ;;  %v7793_v29 = vld [vmem:[#allocation53_spill] sm:$0xff] }
 0x4bd   : > { %v4548_v55 = vmul.f32 0.7978846, %v4516_v33  ;;  %5743 = vtanh.f32 %v4544_v32  ;;  %v4535_v20 = vadd.f32 %v4503_v38, %v7776_v36  ;;  %v4536_v14 = vadd.f32 %v4504_v27, %v7777_v60  ;;  %v7794_v27 = vld [vmem:[#allocation54_spill] sm:$0xff] }
 0x4be   : > { %v4549_v4 = vmul.f32 0.7978846, %v4517_v30  ;;  %5745 = vtanh.f32 %v4545_v61  ;;  %v4537_v17 = vadd.f32 %v4505_v26, %v7778_v62  ;;  %v4538_v16 = vadd.f32 %v4506_v25, %v7779_v24 }
 0x4bf   : > { %v4550_v59 = vmul.f32 0.7978846, %v4518_v58  ;;  %5747 = vtanh.f32 %v4546_v23  ;;  %v4539_v11 = vadd.f32 %v4507_v54, %v7791_v48  ;;  %v4540_v0 = vadd.f32 %v4508_v12, %v7792_v8 }
 0x4c0   : > { %v4551_v41 = vmul.f32 0.7978846, %v4519_v1  ;;  %5749 = vtanh.f32 %v4547_v19  ;;  %v4541_v21 = vadd.f32 %v4509_v18, %v7762_v6  ;;  %v4542_v45 = vadd.f32 %v4510_v3, %v7793_v29 }
 0x4c1   : > { %v4552_v38 = vmul.f32 0.7978846, %v4520_v46  ;;  %5751 = vtanh.f32 %v4548_v55  ;;  %v4543_v5 = vadd.f32 %v4511_v44, %v7794_v27  ;;  %v4553_v63 = vmul.f32 0.7978846, %v4521_v35 }
 0x4c2   : > { %v4554_v26 = vmul.f32 0.7978846, %v4522_v51  ;;  %5753 = vtanh.f32 %v4549_v4  ;;  %v4555_v25 = vmul.f32 0.7978846, %v4523_v13  ;;  %v4556_v56 = vmul.f32 0.7978846, %v4524_v50 }
 0x4c3   : > { %v4557_v31 = vmul.f32 0.7978846, %v4525_v2  ;;  %5755 = vtanh.f32 %v4550_v59  ;;  %v4558_v54 = vmul.f32 0.7978846, %v4526_v15  ;;  %v4559_v33 = vmul.f32 0.7978846, %v4527_v42 }
 0x4c4   : > { %v4560_v12 = vmul.f32 0.7978846, %v4528_v34  ;;  %5757 = vtanh.f32 %v4551_v41  ;;  %v4561_v30 = vmul.f32 0.7978846, %v4529_v9  ;;  %v4562_v58 = vmul.f32 0.7978846, %v4530_v10 }
 0x4c5   : > { %v4563_v18 = vmul.f32 0.7978846, %v4531_v40  ;;  %5759 = vtanh.f32 %v4552_v38  ;;  %v4564_v3 = vmul.f32 0.7978846, %v4532_v37  ;;  %v7505_v1 = vmul.f32 0.7978846, %v4533_v28 }
 0x4c6   : > { %v7507_v46 = vmul.f32 0.7978846, %v4534_v57  ;;  %5761 = vtanh.f32 %v4553_v63  ;;  %v7509_v35 = vmul.f32 0.7978846, %v4535_v20  ;;  %v7511_v51 = vmul.f32 0.7978846, %v4536_v14 }
 0x4c7   : > { %v5744_v44 = vpop.eup %5743  ;;  %v7513_v43 = vmul.f32 0.7978846, %v4537_v17  ;;  %5763 = vtanh.f32 %v4554_v26  ;;  %v7515_v49 = vmul.f32 0.7978846, %v4538_v16  ;;  %v7517_v50 = vmul.f32 0.7978846, %v4539_v11 }
 0x4c8   : > { %v5746_v13 = vpop.eup %5745  ;;  %5765 = vtanh.f32 %v4555_v25  ;;  %v4608_v39 = vadd.f32 1.0, %v5744_v44  ;;  %v7519_v53 = vmul.f32 0.7978846, %v4540_v0  ;;  %v7521_v15 = vmul.f32 0.7978846, %v4541_v21  ;;  %v7795_v9 = vld [vmem:[#allocation32_spill] sm:$0xff] }
 0x4c9   : > { %v5748_v2 = vpop.eup %5747  ;;  %5767 = vtanh.f32 %v4556_v56  ;;  %v4609_v47 = vadd.f32 1.0, %v5746_v13  ;;  %v7523_v22 = vmul.f32 0.7978846, %v4542_v45  ;;  %v7533_v61 = vmul.f32 0.7978846, %v4543_v5  ;;  %v7796_v37 = vld [vmem:[#allocation33_spill] sm:$0xff] }
 0x4ca   : > { %v5750_v42 = vpop.eup %5749  ;;  %5769 = vtanh.f32 %v4557_v31  ;;  %v4610_v34 = vadd.f32 1.0, %v5748_v2  ;;  %v4640_v10 = vmul.f32 %v4608_v39, %v7795_v9  ;;  %v7797_v57 = vld [vmem:[#allocation34_spill] sm:$0xff]  ;;  %v7798_v17 = vld [vmem:[#allocation35_spill] sm:$0xff]  ;;  %v7799_v41 = vld [vmem:[#allocation36_spill] sm:$0xff] }
 0x4cb   : > { %v5752_v32 = vpop.eup %5751  ;;  %5771 = vtanh.f32 %v4558_v54  ;;  %v4611_v40 = vadd.f32 1.0, %v5750_v42  ;;  %v4641_v23 = vmul.f32 %v4609_v47, %v7796_v37  ;;  %v7800_v63 = vld [vmem:[#allocation37_spill] sm:$0xff]  ;;  %v7801_v54 = vld [vmem:[#allocation38_spill] sm:$0xff]  ;;  %v7802_v44 = vld [vmem:[#allocation39_spill] sm:$0xff] }
 0x4cc   : > { %v5754_v19 = vpop.eup %5753  ;;  %5773 = vtanh.f32 %v4559_v33  ;;  %v4612_v28 = vadd.f32 1.0, %v5752_v32  ;;  %v4642_v55 = vmul.f32 %v4610_v34, %v7797_v57  ;;  %v5210_v20 = vpack.c.bf16 %v4640_v10, %v4640_v10  ;;  %v7803_v47 = vld [vmem:[#allocation40_spill] sm:$0xff]  ;;  %v7804_v10 = vld [vmem:[#allocation41_spill] sm:$0xff] }
 0x4cd   : > { %v5756_v14 = vpop.eup %5755  ;;  %5775 = vtanh.f32 %v4560_v12  ;;  %v4613_v4 = vadd.f32 1.0, %v5754_v19  ;;  %v4643_v16 = vmul.f32 %v4611_v40, %v7798_v17  ;;  %v5211_v59 = vpack.c.bf16 %v4641_v23, %v4641_v23  ;;  %v7805_v23 = vld [vmem:[#allocation42_spill] sm:$0xff]  ;;  %v7807_v17 = vld [vmem:[#allocation44_spill] sm:$0xff] }
 0x4ce   : > { %v5758_v11 = vpop.eup %5757  ;;  %5777 = vtanh.f32 %v4561_v30  ;;  %v4614_v0 = vadd.f32 1.0, %v5756_v14  ;;  %v4644_v21 = vmul.f32 %v4612_v28, %v7799_v41  ;;  %v5212_v45 = vpack.c.bf16 %v4642_v55, %v4642_v55  ;;  %4800 = vst.msk [vmem:[%s7531_s20] sm:$0xf] %vm253_vm0, %v5210_v20  ;;  %v7806_v55 = vld [vmem:[#allocation43_spill] sm:$0xff] }
 0x4cf   : > { %v5760_v38 = vpop.eup %5759  ;;  %5779 = vtanh.f32 %v4562_v58  ;;  %v4615_v5 = vadd.f32 1.0, %v5758_v11  ;;  %v4645_v26 = vmul.f32 %v4613_v4, %v7800_v63  ;;  %v5213_v25 = vpack.c.bf16 %v4643_v16, %v4643_v16  ;;  %4801 = vst.msk [vmem:[%s7531_s20 + $0x4] sm:$0xf] %vm253_vm0, %v5211_v59 }
 0x4d0   : > { %v5762_v56 = vpop.eup %5761  ;;  %5781 = vtanh.f32 %v4563_v18  ;;  %v4616_v31 = vadd.f32 1.0, %v5760_v38  ;;  %v4646_v33 = vmul.f32 %v4614_v0, %v7801_v54  ;;  %v5214_v12 = vpack.c.bf16 %v4644_v21, %v4644_v21  ;;  %4802 = vst.msk [vmem:[%s7531_s20 + $0x8] sm:$0xf] %vm253_vm0, %v5212_v45  ;;  %v7808_v0 = vld [vmem:[#allocation45_spill] sm:$0xff]  ;;  %v7809_v38 = vld [vmem:[#allocation46_spill] sm:$0xff] }
 0x4d1   : > { %v5764_v30 = vpop.eup %5763  ;;  %5783 = vtanh.f32 %v4564_v3  ;;  %v4617_v58 = vadd.f32 1.0, %v5762_v56  ;;  %v4647_v13 = vmul.f32 %v4615_v5, %v7802_v44  ;;  %v5215_v39 = vpack.c.bf16 %v4645_v26, %v4645_v26  ;;  %4803 = vst.msk [vmem:[%s7531_s20 + $0xc] sm:$0xf] %vm253_vm0, %v5213_v25  ;;  %v7810_v25 = vld [vmem:[#allocation47_spill] sm:$0xff]  ;;  %v7812_v44 = vld [vmem:[#allocation49_spill] sm:$0xff] }
 0x4d2   : > { %v5766_v2 = vpop.eup %5765  ;;  %5785 = vtanh.f32 %v7505_v1  ;;  %v4618_v18 = vadd.f32 1.0, %v5764_v30  ;;  %v4648_v42 = vmul.f32 %v4616_v31, %v7803_v47  ;;  %v5216_v34 = vpack.c.bf16 %v4646_v33, %v4646_v33  ;;  %4804 = vst.msk [vmem:[%s7531_s20 + $0x10] sm:$0xf] %vm253_vm0, %v5214_v12  ;;  %v7811_v33 = vld [vmem:[#allocation48_spill] sm:$0xff] }
 0x4d3   : > { %v5768_v9 = vpop.eup %5767  ;;  %5787 = vtanh.f32 %v7507_v46  ;;  %v4619_v3 = vadd.f32 1.0, %v5766_v2  ;;  %v4649_v32 = vmul.f32 %v4617_v58, %v7804_v10  ;;  %v5217_v40 = vpack.c.bf16 %v4647_v13, %v4647_v13  ;;  %4805 = vst.msk [vmem:[%s7531_s20 + $0x14] sm:$0xf] %vm253_vm0, %v5215_v39 }
 0x4d4   : > { %v5770_v37 = vpop.eup %5769  ;;  %5789 = vtanh.f32 %v7509_v35  ;;  %v4620_v1 = vadd.f32 1.0, %v5768_v9  ;;  %v4650_v19 = vmul.f32 %v4618_v18, %v7805_v23  ;;  %v5218_v28 = vpack.c.bf16 %v4648_v42, %v4648_v42  ;;  %4806 = vst.msk [vmem:[%s7531_s20 + $0x18] sm:$0xf] %vm253_vm0, %v5216_v34  ;;  %v7813_v18 = vld [vmem:[#allocation50_spill] sm:$0xff] }
 0x4d5   : > { %v5772_v57 = vpop.eup %5771  ;;  %5791 = vtanh.f32 %v7511_v51  ;;  %v4621_v46 = vadd.f32 1.0, %v5770_v37  ;;  %v4651_v20 = vmul.f32 %v4619_v3, %v7806_v55  ;;  %v5219_v14 = vpack.c.bf16 %v4649_v32, %v4649_v32  ;;  %4807 = vst.msk [vmem:[%s7531_s20 + $0x1c] sm:$0xf] %vm253_vm0, %v5217_v40  ;;  %v7814_v3 = vld [vmem:[#allocation51_spill] sm:$0xff] }
 0x4d6   : > { %v5774_v4 = vpop.eup %5773  ;;  %5793 = vtanh.f32 %v7513_v43  ;;  %v4622_v35 = vadd.f32 1.0, %v5772_v57  ;;  %v4652_v16 = vmul.f32 %v4620_v1, %v7807_v17  ;;  %v5220_v59 = vpack.c.bf16 %v4650_v19, %v4650_v19  ;;  %4808 = vst.msk [vmem:[%s7531_s20 + $0x20] sm:$0xf] %vm253_vm0, %v5218_v28  ;;  %v7815_v1 = vld [vmem:[#allocation52_spill] sm:$0xff] }
 0x4d7   : > { %v5776_v11 = vpop.eup %5775  ;;  %5795 = vtanh.f32 %v7515_v49  ;;  %v4623_v51 = vadd.f32 1.0, %v5774_v4  ;;  %v4653_v41 = vmul.f32 %v4621_v46, %v7808_v0  ;;  %v5221_v21 = vpack.c.bf16 %v4651_v20, %v4651_v20  ;;  %4809 = vst.msk [vmem:[%s7531_s20 + $0x24] sm:$0xf] %vm253_vm0, %v5219_v14 }
 0x4d8   : > { %v5778_v45 = vpop.eup %5777  ;;  %5797 = vtanh.f32 %v7517_v50  ;;  %v4624_v43 = vadd.f32 1.0, %v5776_v11  ;;  %v4654_v5 = vmul.f32 %v4622_v35, %v7809_v38  ;;  %v5222_v63 = vpack.c.bf16 %v4652_v16, %v4652_v16  ;;  %4810 = vst.msk [vmem:[%s7531_s20 + $0x28] sm:$0xf] %vm253_vm0, %v5220_v59 }
 0x4d9   : > { %v5780_v26 = vpop.eup %5779  ;;  %5799 = vtanh.f32 %v7519_v53  ;;  %v4625_v49 = vadd.f32 1.0, %v5778_v45  ;;  %v4655_v56 = vmul.f32 %v4623_v51, %v7810_v25  ;;  %v5223_v31 = vpack.c.bf16 %v4653_v41, %v4653_v41  ;;  %4811 = vst.msk [vmem:[%s7531_s20 + $0x2c] sm:$0xf] %vm253_vm0, %v5221_v21 }
 0x4da   : > { %v5782_v54 = vpop.eup %5781  ;;  %5801 = vtanh.f32 %v7521_v15  ;;  %v4626_v50 = vadd.f32 1.0, %v5780_v26  ;;  %v4656_v12 = vmul.f32 %v4624_v43, %v7811_v33  ;;  %v5224_v30 = vpack.c.bf16 %v4654_v5, %v4654_v5  ;;  %4812 = vst.msk [vmem:[%s7531_s20 + $0x30] sm:$0xf] %vm253_vm0, %v5222_v63 }
 0x4db   : > { %v5784_v58 = vpop.eup %5783  ;;  %5803 = vtanh.f32 %v7523_v22  ;;  %v4627_v53 = vadd.f32 1.0, %v5782_v54  ;;  %v4657_v13 = vmul.f32 %v4625_v49, %v7812_v44  ;;  %v5225_v39 = vpack.c.bf16 %v4655_v56, %v4655_v56  ;;  %4813 = vst.msk [vmem:[%s7531_s20 + $0x34] sm:$0xf] %vm253_vm0, %v5223_v31 }
 0x4dc   : > { %v5786_v2 = vpop.eup %5785  ;;  %5805 = vtanh.f32 %v7533_v61  ;;  %v4628_v15 = vadd.f32 1.0, %v5784_v58  ;;  %v4658_v47 = vmul.f32 %v4626_v50, %v7813_v18  ;;  %v5226_v42 = vpack.c.bf16 %v4656_v12, %v4656_v12  ;;  %4814 = vst.msk [vmem:[%s7531_s20 + $0x38] sm:$0xf] %vm253_vm0, %v5224_v30 }
 0x4dd   : > { %v5788_v34 = vpop.eup %5787  ;;  %v4405_v22 = vmul.f32 0.5, %v7774_v52  ;;  %v4629_v9 = vadd.f32 1.0, %v5786_v2  ;;  %v4659_v10 = vmul.f32 %v4627_v53, %v7814_v3  ;;  %v5227_v32 = vpack.c.bf16 %v4657_v13, %v4657_v13  ;;  %4815 = vst.msk [vmem:[%s7531_s20 + $0x3c] sm:$0xf] %vm253_vm0, %v5225_v39 }
 0x4de   : > { %v5790_v40 = vpop.eup %5789  ;;  %v4406_v61 = vmul.f32 0.5, %v7775_v7  ;;  %v4630_v37 = vadd.f32 1.0, %v5788_v34  ;;  %v4660_v23 = vmul.f32 %v4628_v15, %v7815_v1  ;;  %v5228_v19 = vpack.c.bf16 %v4658_v47, %v4658_v47  ;;  %4816 = vst.msk [vmem:[%s7531_s20 + $0x40] sm:$0xf] %vm253_vm0, %v5226_v42 }
 0x4df   : > { %v5792_v28 = vpop.eup %5791  ;;  %v4407_v52 = vmul.f32 0.5, %v7776_v36  ;;  %v4631_v57 = vadd.f32 1.0, %v5790_v40  ;;  %v4661_v46 = vmul.f32 %v4629_v9, %v4405_v22  ;;  %v5229_v55 = vpack.c.bf16 %v4659_v10, %v4659_v10  ;;  %4817 = vst.msk [vmem:[%s7531_s20 + $0x44] sm:$0xf] %vm253_vm0, %v5227_v32 }
 0x4e0   : > { %v5794_v20 = vpop.eup %5793  ;;  %v4408_v14 = vmul.f32 0.5, %v7777_v60  ;;  %v4632_v7 = vadd.f32 1.0, %v5792_v28  ;;  %v4662_v4 = vmul.f32 %v4630_v37, %v4406_v61  ;;  %v5230_v35 = vpack.c.bf16 %v4660_v23, %v4660_v23  ;;  %4818 = vst.msk [vmem:[%s7531_s20 + $0x48] sm:$0xf] %vm253_vm0, %v5228_v19 }
 0x4e1   : > { %v5796_v17 = vpop.eup %5795  ;;  %v4409_v16 = vmul.f32 0.5, %v7778_v62  ;;  %v4633_v36 = vadd.f32 1.0, %v5794_v20  ;;  %v4663_v59 = vmul.f32 %v4631_v57, %v4407_v52  ;;  %v5231_v11 = vpack.c.bf16 %v4661_v46, %v4661_v46  ;;  %4819 = vst.msk [vmem:[%s7531_s20 + $0x4c] sm:$0xf] %vm253_vm0, %v5229_v55 }
 0x4e2   : > { %v5798_v51 = vpop.eup %5797  ;;  %v4410_v0 = vmul.f32 0.5, %v7779_v24  ;;  %v4634_v60 = vadd.f32 1.0, %v5796_v17  ;;  %v4664_v41 = vmul.f32 %v4632_v7, %v4408_v14  ;;  %v5232_v21 = vpack.c.bf16 %v4662_v4, %v4662_v4  ;;  %4820 = vst.msk [vmem:[%s7531_s20 + $0x50] sm:$0xf] %vm253_vm0, %v5230_v35 }
 0x4e3   : > { %v5800_v45 = vpop.eup %5799  ;;  %v4411_v43 = vmul.f32 0.5, %v7791_v48  ;;  %v4635_v62 = vadd.f32 1.0, %v5798_v51  ;;  %v4665_v38 = vmul.f32 %v4633_v36, %v4409_v16  ;;  %v5233_v5 = vpack.c.bf16 %v4663_v59, %v4663_v59  ;;  %4821 = vst.msk [vmem:[%s7531_s20 + $0x54] sm:$0xf] %vm253_vm0, %v5231_v11 }
 0x4e4   : > { %v5802_v63 = vpop.eup %5801  ;;  %v4412_v26 = vmul.f32 0.5, %v7792_v8  ;;  %v4636_v24 = vadd.f32 1.0, %v5800_v45  ;;  %v4666_v49 = vmul.f32 %v4634_v60, %v4410_v0  ;;  %v5234_v25 = vpack.c.bf16 %v4664_v41, %v4664_v41  ;;  %4822 = vst.msk [vmem:[%s7531_s20 + $0x58] sm:$0xf] %vm253_vm0, %v5232_v21 }
 0x4e5   : > { %v5804_v56 = vpop.eup %5803  ;;  %v4413_v31 = vmul.f32 0.5, %v7762_v6  ;;  %v4637_v48 = vadd.f32 1.0, %v5802_v63  ;;  %v4667_v54 = vmul.f32 %v4635_v62, %v4411_v43  ;;  %v5235_v50 = vpack.c.bf16 %v4665_v38, %v4665_v38  ;;  %4823 = vst.msk [vmem:[%s7531_s20 + $0x5c] sm:$0xf] %vm253_vm0, %v5233_v5 }
 0x4e6   : > { %v5806_v33 = vpop.eup %5805  ;;  %v4414_v8 = vmul.f32 0.5, %v7793_v29  ;;  %v4638_v12 = vadd.f32 1.0, %v5804_v56  ;;  %v4668_v30 = vmul.f32 %v4636_v24, %v4412_v26  ;;  %v5236_v58 = vpack.c.bf16 %v4666_v49, %v4666_v49  ;;  %4824 = vst.msk [vmem:[%s7531_s20 + $0x60] sm:$0xf] %vm253_vm0, %v5234_v25 }
 0x4e7   : > { %v4415_v6 = vmul.f32 0.5, %v7794_v27  ;;  %v4639_v53 = vadd.f32 1.0, %v5806_v33  ;;  %v4669_v44 = vmul.f32 %v4637_v48, %v4413_v31  ;;  %v5237_v13 = vpack.c.bf16 %v4667_v54, %v4667_v54  ;;  %4825 = vst.msk [vmem:[%s7531_s20 + $0x64] sm:$0xf] %vm253_vm0, %v5235_v50 }
 0x4e8   : > { %v4670_v39 = vmul.f32 %v4638_v12, %v4414_v8  ;;  %v5238_v2 = vpack.c.bf16 %v4668_v30, %v4668_v30  ;;  %4826 = vst.msk [vmem:[%s7531_s20 + $0x68] sm:$0xf] %vm253_vm0, %v5236_v58 }
 0x4e9   : > { %v4671_v29 = vmul.f32 %v4639_v53, %v4415_v6  ;;  %v5239_v15 = vpack.c.bf16 %v4669_v44, %v4669_v44  ;;  %4827 = vst.msk [vmem:[%s7531_s20 + $0x6c] sm:$0xf] %vm253_vm0, %v5237_v13 }
 0x4ea   : > { %v5240_v18 = vpack.c.bf16 %v4670_v39, %v4670_v39  ;;  %4828 = vst.msk [vmem:[%s7531_s20 + $0x70] sm:$0xf] %vm253_vm0, %v5238_v2 }
 0x4eb   : > { %v5241_v47 = vpack.c.bf16 %v4671_v29, %v4671_v29  ;;  %4829 = vst.msk [vmem:[%s7531_s20 + $0x74] sm:$0xf] %vm253_vm0, %v5239_v15 }
 0x4ec   : > { %4830 = vst.msk [vmem:[%s7531_s20 + $0x78] sm:$0xf] %vm253_vm0, %v5240_v18 }
 0x4ed   : > { %4831 = vst.msk [vmem:[%s7531_s20 + $0x7c] sm:$0xf] %vm253_vm0, %v5241_v47 }
 0x4ee PF: > { %s16_s21 = sadd.s32 1, %s5813_s21  }
 0x4ef   : > { %p13_p4 = scmp.ge.s32.totalorder %s16_s21, 4  }
 0x4f1   :  { %15 = sbr.rel (!%p13_p4) target bundleno = 1 (0x1), region = 76 }

// kernel: up2d_forward.9
= control target key start
LH: loop header
LB: loop body
LE: loop exit
PB: predicated region body
PF: predicated region fallthrough
CT: control target
= control target key end

     0   :  { %11 = vsyncpa [#allocation5], 0  ;;  %s7626_s0 = inlined_call_operand.vmem [shape: bf16[2,16,16,32], index: 0, kind: input, shape index: {}]   ;;  %s7627_s1 = inlined_call_operand.vmem [shape: bf16[288,32], index: 1, kind: input, shape index: {}]   ;;  %s7628_s2 = inlined_call_operand.vmem [shape: f32[1,32], index: 2, kind: input, shape index: {}]   ;;  %s7629_s3 = inlined_call_operand.vmem [shape: f32[1,32], index: 3, kind: input, shape index: {}]   ;;  %s7630_s4 = inlined_call_operand.vmem [shape: f32[1,32], index: 4, kind: input, shape index: {}]   ;;  %s7631_s5 = inlined_call_operand.vmem [shape: f32[32,32], index: 5, kind: input, shape index: {}]   ;;  %s7632_s6 = inlined_call_operand.hbm [shape: f32[2,256,32], index: 6, kind: output, shape index: {}]  }
   0x1   :  { %13 = vsyncpa [#allocation5 + $0x1], 0  ;;  %s5777_s21 = smov 0   ;;  %s5779_s22 = smov 0  }
   0x2   :  { %s5781_s23 = smov 0   ;;  %s5783_s24 = smov 0  }
   0x3 LB: > { %s5798_s25 = sadd.s32 4294967295, %s5730_s24   ;;  %s4778_s26 = sadd.s32 4294967294, %s5730_s24   ;;  %s5730_s24 = sphi %s5783_s24, %s7783_s24   ;;  %s5726_s23 = sphi %s5781_s23, %s7782_s23   ;;  %s5722_s22 = sphi %s5779_s22, %s7781_s22   ;;  %s5718_s21 = sphi %s5777_s21, %s7780_s21  }
   0x4   : > { %s5802_s27 = sadd.s32 1, %s5730_s24   ;;  %s157_s28 = sadd.s32 1, %s5726_s23 }
   0x5   : > { %s154_s29 = ssub.s32 %s5730_s24, %s5802_s27  ;;  %p167_p0 = scmp.ne.s32.totalorder %s5726_s23, %s5722_s22 }
   0x6   : > { %p155_p1 = scmp.eq.s32.totalorder %s154_s29, 0  ;;  %p168_p2 = scmp.eq.s32.totalorder %s5798_s25, 1 }
   0x7   : > { %p173_p3 = scmp.ne.s32.totalorder %s5722_s22, %s5718_s21  ;;  %p174_p4 = scmp.eq.s32.totalorder %s4778_s26, 1 }
   0x8   : > { %s5813_s30 = scalar_select %p155_p1, %s5726_s23, %s157_s28  }
   0x9   : > { %p5815_p5 = por %p168_p2, %p167_p0  ;;  %p5819_p6 = por %p174_p4, %p173_p3 }
   0xa   : > { %p4781_p7 = scmp.ge.s32.totalorder %s5730_s24, 1  ;;  %p215_p8 = scmp.lt.s32.totalorder %s5730_s24, 3 }
   0xc   : > { %p216_p9 = pnand %p4781_p7, %p215_p8 }
   0xe   : > { %219 = sbr.rel (%p216_p9) target bundleno = 1276 (0x4fc), region = 44 }
  0x15   : > { %vm251_vm0 = vcmask 257024   ;;  %vm254_vm1 = vcmask 253952   ;;  %v5732_v0 = vmov 0   ;;  %p245_p10 = scmp.lt.s32.totalorder %s5798_s25, 1  ;;  %vm1535_vm2 = vcmask 1046528   ;;  %s5733_s14 = smov 64  }
  0x16   : > { %252 = vst.msk [vmem:[#allocation2] sm:$0xf] %vm251_vm0, %v5732_v0  ;;  %253 = vst.msk [vmem:[#allocation2 + $0x4] sm:$0xf] %vm251_vm0, %v5732_v0  ;;  %vm339_vm3 = vsmask.f32 256 }
  0x17   : > { %255 = vst.msk [vmem:[#allocation2 + $0x8] sm:$0x1] %vm254_vm1, %v5732_v0  ;;  %258 = vst.msk [vmem:[#allocation2 + $0x14] sm:$0x1] %vm254_vm1, %v5732_v0  ;;  %s246_s9 = scalar_select %p245_p10, %s5798_s25, 1  ;;  %vm908_vm10 = vcmask 261120  }
  0x18   : > { %256 = vst.msk [vmem:[#allocation2 + $0xc] sm:$0xf] %vm251_vm0, %v5732_v0  ;;  %257 = vst.msk [vmem:[#allocation2 + $0x10] sm:$0xf] %vm251_vm0, %v5732_v0  ;;  %vm340_vm4 = vsmask.f32 4368 }
  0x19   : > { %259 = vst.msk [vmem:[#allocation2 + $0x18] sm:$0xf] %vm251_vm0, %v5732_v0  ;;  %260 = vst.msk [vmem:[#allocation2 + $0x1c] sm:$0xf] %vm251_vm0, %v5732_v0  ;;  %s5068_s10 = sshll.u32 %s246_s9, 7  ;;  %s5734_s15 = smov 32  }
  0x1a   : > { %261 = vst.msk [vmem:[#allocation2 + $0x20] sm:$0x1] %vm254_vm1, %v5732_v0  ;;  %264 = vst.msk [vmem:[#allocation2 + $0x2c] sm:$0x1] %vm254_vm1, %v5732_v0  ;;  %s5884_s13 = scalar_lea.vmem %s7626_s0, %s5068_s10  ;;  %vm1101_vm5 = vsmask.f32 7424 }
  0x1b   : > { %262 = vst.msk [vmem:[#allocation2 + $0x24] sm:$0xf] %vm251_vm0, %v5732_v0  ;;  %263 = vst.msk [vmem:[#allocation2 + $0x28] sm:$0xf] %vm251_vm0, %v5732_v0  ;;  %v311_v1 = vld [vmem:[%s5884_s13 + $0x10] sm:$0xf] }
  0x1c   : > { %265 = vst.msk [vmem:[#allocation2 + $0x30] sm:$0xf] %vm251_vm0, %v5732_v0  ;;  %266 = vst.msk [vmem:[#allocation2 + $0x34] sm:$0xf] %vm251_vm0, %v5732_v0  ;;  %v312_v2 = vld [vmem:[%s5884_s13 + $0x14] sm:$0xf] }
  0x1d   : > { %267 = vst.msk [vmem:[#allocation2 + $0x38] sm:$0x1] %vm254_vm1, %v5732_v0  ;;  %270 = vst.msk [vmem:[#allocation2 + $0x44] sm:$0x1] %vm254_vm1, %v5732_v0  ;;  %vm664_vm6 = vsmask.f32 7938 }
  0x1e   : > { %268 = vst.msk [vmem:[#allocation2 + $0x3c] sm:$0xf] %vm251_vm0, %v5732_v0  ;;  %269 = vst.msk [vmem:[#allocation2 + $0x40] sm:$0xf] %vm251_vm0, %v5732_v0  ;;  %v309_v3 = vld [vmem:[%s5884_s13 + $0x8] sm:$0xf] }
  0x1f   : > { %271 = vst.msk [vmem:[#allocation2 + $0x48] sm:$0xf] %vm251_vm0, %v5732_v0  ;;  %272 = vst.msk [vmem:[#allocation2 + $0x4c] sm:$0xf] %vm251_vm0, %v5732_v0  ;;  %v5344_v4 = vld [vmem:[#allocation2] sm:$0xfe]  }
  0x20   : > { %273 = vst.msk [vmem:[#allocation2 + $0x50] sm:$0x1] %vm254_vm1, %v5732_v0  ;;  %276 = vst.msk [vmem:[#allocation2 + $0x5c] sm:$0x1] %vm254_vm1, %v5732_v0  ;;  %v5346_v6 = vld [vmem:[#allocation2] sm:$0xff]   ;;  %v1536_v7 = vrot.slane %v5344_v4, 1 }
  0x21   : > { %274 = vst.msk [vmem:[#allocation2 + $0x54] sm:$0xf] %vm251_vm0, %v5732_v0  ;;  %275 = vst.msk [vmem:[#allocation2 + $0x58] sm:$0xf] %vm251_vm0, %v5732_v0  ;;  %v1103_v10 = vshrl.u32 %v5346_v6, 16  ;;  %v1105_v11 = vshll.u32 %v5346_v6, 16 }
  0x22   : > { %277 = vst.msk [vmem:[#allocation2 + $0x60] sm:$0xf] %vm251_vm0, %v5732_v0  ;;  %278 = vst.msk [vmem:[#allocation2 + $0x64] sm:$0xf] %vm251_vm0, %v5732_v0  ;;  %v377_v12 = vshrl.u32 %v311_v1, 16  ;;  %v380_v13 = vshll.u32 %v311_v1, 16 }
  0x23   : > { %279 = vst.msk [vmem:[#allocation2 + $0x68] sm:$0x1] %vm254_vm1, %v5732_v0  ;;  %282 = vst.msk [vmem:[#allocation2 + $0x74] sm:$0x1] %vm254_vm1, %v5732_v0  ;;  %v385_v14 = vshrl.u32 %v312_v2, 16  ;;  %v388_v17 = vshll.u32 %v312_v2, 16 }
  0x24   : > { %280 = vst.msk [vmem:[#allocation2 + $0x6c] sm:$0xf] %vm251_vm0, %v5732_v0  ;;  %281 = vst.msk [vmem:[#allocation2 + $0x70] sm:$0xf] %vm251_vm0, %v5732_v0  ;;  %v310_v18 = vld [vmem:[%s5884_s13 + $0xc] sm:$0xf] }
  0x25   : > { %283 = vst.msk [vmem:[#allocation2 + $0x78] sm:$0xf] %vm251_vm0, %v5732_v0  ;;  %284 = vst.msk [vmem:[#allocation2 + $0x7c] sm:$0xf] %vm251_vm0, %v5732_v0  ;;  %v360_v19 = vshrl.u32 %v309_v3, 16  ;;  %v1107_v20 = vrot.slane %v1105_v11, 1 }
  0x26   : > { %285 = vst.msk [vmem:[#allocation2 + $0x80] sm:$0x1] %vm254_vm1, %v5732_v0  ;;  %288 = vst.msk [vmem:[#allocation2 + $0x8c] sm:$0x1] %vm254_vm1, %v5732_v0  ;;  %v379_v22 = vrot.slane %v377_v12, 7  ;;  %v5898_v23 = vrot.slane %v385_v14, 7 }
  0x27   : > { %286 = vst.msk [vmem:[#allocation2 + $0x84] sm:$0xf] %vm251_vm0, %v5732_v0  ;;  %287 = vst.msk [vmem:[#allocation2 + $0x88] sm:$0xf] %vm251_vm0, %v5732_v0  ;;  %v682_v24 = vld [vmem:[#allocation2 + $0x24] sm:$0xf]  ;;  %v1108_v32 = vor.u32 %v1107_v20, %v1103_v10 }
  0x28   : > { %289 = vst.msk [vmem:[#allocation2 + $0x90] sm:$0xf] %vm251_vm0, %v5732_v0  ;;  %290 = vst.msk [vmem:[#allocation2 + $0x94] sm:$0xf] %vm251_vm0, %v5732_v0  ;;  %v363_v25 = vshll.u32 %v309_v3, 16  ;;  %v362_v28 = vrot.slane %v360_v19, 7  ;;  %v382_v33 = vor.u32 %v380_v13, %v379_v22  ;;  %v390_v35 = vor.u32 %v388_v17, %v5898_v23 }
  0x29   : > { %291 = vst.msk [vmem:[#allocation2 + $0x98] sm:$0x1] %vm254_vm1, %v5732_v0  ;;  %294 = vst.msk [vmem:[#allocation2 + $0xa4] sm:$0x1] %vm254_vm1, %v5732_v0  ;;  %v368_v29 = vshrl.u32 %v310_v18, 16  ;;  %v371_v30 = vshll.u32 %v310_v18, 16 }
  0x2a   : > { %292 = vst.msk [vmem:[#allocation2 + $0x9c] sm:$0xf] %vm251_vm0, %v5732_v0  ;;  %293 = vst.msk [vmem:[#allocation2 + $0xa0] sm:$0xf] %vm251_vm0, %v5732_v0  ;;  %v313_v31 = vld [vmem:[%s5884_s13 + $0x18] sm:$0xf]  ;;  %v365_v38 = vor.u32 %v363_v25, %v362_v28 }
  0x2b   : > { %295 = vst.msk [vmem:[#allocation2 + $0xa8] sm:$0xf] %vm251_vm0, %v5732_v0  ;;  %296 = vst.msk [vmem:[#allocation2 + $0xac] sm:$0xf] %vm251_vm0, %v5732_v0  ;;  %v383_v34 = vrot.slane %v379_v22, 4  ;;  %v366_v39 = vrot.slane %v362_v28, 4 }
  0x2c   : > { %297 = vst.msk [vmem:[#allocation2 + $0xb0] sm:$0x1] %vm254_vm1, %v5732_v0  ;;  %300 = vst.msk [vmem:[#allocation2 + $0xbc] sm:$0x1] %vm254_vm1, %v5732_v0  ;;  %v675_v36 = vld [vmem:[#allocation2 + $0x18] sm:$0xf] }
  0x2d   : > { %298 = vst.msk [vmem:[#allocation2 + $0xb4] sm:$0xf] %vm251_vm0, %v5732_v0  ;;  %299 = vst.msk [vmem:[#allocation2 + $0xb8] sm:$0xf] %vm251_vm0, %v5732_v0  ;;  %v314_v37 = vld [vmem:[%s5884_s13 + $0x1c] sm:$0xf] }
  0x2e   : > { %301 = vst.msk [vmem:[#allocation2 + $0xc0] sm:$0xf] %vm251_vm0, %v5732_v0  ;;  %302 = vst.msk [vmem:[#allocation2 + $0xc4] sm:$0xf] %vm251_vm0, %v5732_v0  ;;  %v370_v40 = vrot.slane %v368_v29, 7  ;;  %v394_v41 = vshrl.u32 %v313_v31, 16 }
  0x2f   : > { %303 = vst.msk [vmem:[#allocation2 + $0xc8] sm:$0x1] %vm254_vm1, %v5732_v0  ;;  %306 = vst.msk [vmem:[#allocation2 + $0xd4] sm:$0x1] %vm254_vm1, %v5732_v0  ;;  %v307_v42 = vld [vmem:[%s5884_s13] sm:$0xf] }
  0x30   : > { %304 = vst.msk [vmem:[#allocation2 + $0xcc] sm:$0xf] %vm251_vm0, %v5732_v0  ;;  %305 = vst.msk [vmem:[#allocation2 + $0xd0] sm:$0xf] %vm251_vm0, %v5732_v0  ;;  %v397_v46 = vshll.u32 %v313_v31, 16  ;;  %v373_v48 = vor.u32 %v371_v30, %v370_v40  ;;  %v396_v50 = vrot.slane %v394_v41, 7 }
  0x31   : > { %v5345_v5 = vld [vmem:[#allocation2 + $0x8] ss:$0 sps:$4 sm:$0x11]   ;;  %vm5894_vm7 = vmor %vm339_vm3, %vm340_vm4  ;;  %v308_v47 = vld [vmem:[%s5884_s13 + $0x4] sm:$0xf]  ;;  %v402_v51 = vshrl.u32 %v314_v37, 16 }
  0x32   : > { %v1537_v8 = vrot.slane %v5345_v5, 1  ;;  %v5347_v9 = vld [vmem:[#allocation2 + $0x8] ss:$0 sps:$4 sm:$0x11]   ;;  %vm5902_vm8 = vmand %vm251_vm0, %vm664_vm6  ;;  %v391_v44 = vsel %vm5894_vm7, %v383_v34, %v390_v35  ;;  %v405_v52 = vshll.u32 %v314_v37, 16  ;;  %v343_v54 = vshrl.u32 %v307_v42, 16 }
  0x33   : > { %v1110_v16 = vshll.u32 %v5347_v9, 16  ;;  %v683_v45 = vsel %vm5902_vm8, %v382_v33, %v682_v24  ;;  %685 = vst.msk [vmem:[#allocation2 + $0x28] sm:$0xf] %vm251_vm0, %v391_v44  ;;  %v676_v49 = vsel %vm5902_vm8, %v365_v38, %v675_v36  ;;  %v689_v53 = vld [vmem:[#allocation2 + $0x30] sm:$0xf]  ;;  %v346_v55 = vshll.u32 %v307_v42, 16  ;;  %vm5927_vm9 = vmand %vm254_vm1, %vm339_vm3 }
  0x34   : > { %v1538_v15 = vsel %vm1535_vm2, %v1536_v7, %v1537_v8  ;;  %684 = vst [vmem:[#allocation2 + $0x24] sm:$0xf] %v683_v45  ;;  %677 = vst [vmem:[#allocation2 + $0x18] sm:$0xf] %v676_v49  ;;  %v351_v56 = vshrl.u32 %v308_v47, 16  ;;  %v374_v57 = vsel %vm5894_vm7, %v366_v39, %v373_v48  ;;  %v399_v58 = vor.u32 %v397_v46, %v396_v50  ;;  %s5735_s16 = smov 96  }
  0x35   : > { %1584 = vrot.lane.b32.xlu1 %v1538_v15, %s5733_s14  ;;  %v1112_v26 = vrot.slane %v1110_v16, 1  ;;  %v400_v59 = vrot.slane %v396_v50, 4  ;;  %v404_v60 = vrot.slane %v402_v51, 7  ;;  %v666_v61 = vld [vmem:[#allocation2 + $0xc] sm:$0xf]  ;;  %v345_v0 = vrot.slane %v343_v54, 7 }
  0x36   : > { %v679_v62 = vld [vmem:[#allocation2 + $0x20] sm:$0x1]  ;;  %v686_v63 = vld [vmem:[#allocation2 + $0x2c] sm:$0x1]  ;;  %678 = vst.msk [vmem:[#allocation2 + $0x1c] sm:$0xf] %vm251_vm0, %v374_v57  ;;  %v690_v6 = vsel %vm5902_vm8, %v399_v58, %v689_v53 }
  0x37   : > { %v1113_v43 = vsel %vm1101_vm5, %v1108_v32, %v1112_v26  ;;  %v353_v1 = vrot.slane %v351_v56, 7  ;;  %v354_v2 = vshll.u32 %v308_v47, 16  ;;  %v375_v3 = vrot.slane %v370_v40, 4  ;;  %v693_v4 = vld [vmem:[#allocation2 + $0x38] sm:$0x1]  ;;  %s5069_s18 = sshll.u32 %s5798_s25, 12 }
  0x38   : > { %1294 = vrot.lane.b32.xlu0 %v1113_v43, %s5734_s15  ;;  %v407_v5 = vor.u32 %v405_v52, %v404_v60  ;;  %v672_v8 = vld [vmem:[#allocation2 + $0x14] sm:$0x1]  ;;  %v392_v9 = vrot.slane %v5898_v23, 4  ;;  %v409_v10 = vrot.slane %v404_v60, 4  ;;  %v315_v11 = vld [vmem:[%s5884_s13 + $0x20] sm:$0xf]  ;;  %v348_v12 = vor.u32 %v346_v55, %v345_v0  ;;  %s7573_s26 = scalar_lea.hbm %s7632_s6, %s5069_s18 }
  0x39   : > { %691 = vst [vmem:[#allocation2 + $0x30] sm:$0xf] %v690_v6  ;;  %v349_v13 = vrot.slane %v345_v0, 4  ;;  %v356_v14 = vor.u32 %v354_v2, %v353_v1  ;;  %v358_v15 = vrot.slane %v353_v1, 4  ;;  %v680_v17 = vsel %vm5927_vm9, %v375_v3, %v679_v62  ;;  %v696_v35 = vld [vmem:[#allocation2 + $0x3c] sm:$0xf] }
  0x3a   : > { %v408_v16 = vsel %vm5894_vm7, %v400_v59, %v407_v5  ;;  %v687_v18 = vsel %vm5927_vm9, %v392_v9, %v686_v63  ;;  %v694_v19 = vsel %vm5927_vm9, %v409_v10, %v693_v4  ;;  %v667_v23 = vsel %vm5902_vm8, %v348_v12, %v666_v61  ;;  %681 = vst [vmem:[#allocation2 + $0x20] sm:$0x1] %v680_v17  ;;  %s5739_s9 = smov [#allocation4]  }
  0x3b   : > { %v5348_v20 = vld [vmem:[#allocation2 + $0x24] sm:$0xff]   ;;  %692 = vst.msk [vmem:[#allocation2 + $0x34] sm:$0xf] %vm251_vm0, %v408_v16  ;;  %v357_v22 = vsel %vm5894_vm7, %v349_v13, %v356_v14  ;;  %v673_v24 = vsel %vm5927_vm9, %v358_v15, %v672_v8  ;;  %688 = vst [vmem:[#allocation2 + $0x2c] sm:$0x1] %v687_v18  ;;  %v411_v25 = vshrl.u32 %v315_v11, 16 }
  0x3c   : > { %695 = vst [vmem:[#allocation2 + $0x38] sm:$0x1] %v694_v19  ;;  %668 = vst [vmem:[#allocation2 + $0xc] sm:$0xf] %v667_v23  ;;  %2629 = vrot.lane.b32.xlu0 %v5348_v20, %s5733_s14  ;;  %v5359_v26 = vld [vmem:[#allocation2 + $0x24] sm:$0xfe]  }
  0x3d   : > { %669 = vst.msk [vmem:[#allocation2 + $0x10] sm:$0xf] %vm251_vm0, %v357_v22  ;;  %674 = vst [vmem:[#allocation2 + $0x14] sm:$0x1] %v673_v24  ;;  %v5349_v28 = vld [vmem:[#allocation2 + $0x18] sm:$0xff]   ;;  %v2408_v30 = vrot.slane %v5359_v26, 1 }
  0x3e   : > { %v5355_v29 = vld [vmem:[#allocation2 + $0x18] sm:$0xfe]   ;;  %v5950_v31 = vrot.slane %v411_v25, 7  ;;  %2627 = vrot.lane.b32.xlu1 %v5349_v28, %s5733_s14  ;;  %v414_v37 = vshll.u32 %v315_v11, 16  ;;  %v5367_v1 = vld [vmem:[#allocation2 + $0x24] sm:$0xff]   ;;  %vm1342_vm11 = vcmask 523520  }
  0x3f   : > { %v2405_v32 = vrot.slane %v5355_v29, 1  ;;  %v5361_v33 = vld [vmem:[#allocation2 + $0x18] sm:$0xfe]   ;;  %v2880_v14 = vshrl.u32 %v5367_v1, 16  ;;  %v2882_v15 = vshll.u32 %v5367_v1, 16  ;;  %vm1632_vm12 = vcmask 785920  }
  0x40   : > { %v5363_v34 = vld [vmem:[#allocation2 + $0x18] sm:$0xff]   ;;  %v1542_v40 = vrot.slane %v5361_v33, 1  ;;  %v416_v41 = vor.u32 %v414_v37, %v5950_v31  ;;  %v5376_v37 = vld [vmem:[#allocation2 + $0x24] sm:$0xff]   ;;  %vm1809_vm13 = vcmask 1048320   ;;  %vm5737_vm14 = vmmov 0   ;;  %s5672_s10 = sshll.u32 %s5739_s9, 4  ;;  %s5673_s10 = int_to_ptr.vmem [resolvable:$false] %s5672_s10 }
  0x41   : > { %v5354_v39 = vld [vmem:[#allocation2 + $0x18] sm:$0xff]   ;;  %v2868_v44 = vshrl.u32 %v5363_v34, 16  ;;  %v5356_v45 = vld [vmem:[#allocation2 + $0x20] ss:$0 sps:$4 sm:$0x11]   ;;  %v2870_v46 = vshll.u32 %v5363_v34, 16 }
  0x42   : > { %v5350_v36 = vld [vmem:[#allocation2 + $0x30] sm:$0xff]   ;;  %v697_v47 = vsel %vm5902_vm8, %v416_v41, %v696_v35  ;;  %v2406_v50 = vrot.slane %v5356_v45, 1  ;;  %v5360_v54 = vld [vmem:[#allocation2 + $0x2c] ss:$0 sps:$4 sm:$0x11]   ;;  %v5369_v19 = vld [vmem:[#allocation2 + $0x18] sm:$0xff]  }
  0x43   : > { %2631 = vrot.lane.b32.xlu0 %v5350_v36, %s5733_s14  ;;  %698 = vst [vmem:[#allocation2 + $0x3c] sm:$0xf] %v697_v47  ;;  %v2872_v55 = vrot.slane %v2870_v46, 1  ;;  %v2409_v59 = vrot.slane %v5360_v54, 1  ;;  %v5371_v20 = vld [vmem:[#allocation2 + $0x30] sm:$0xff]   ;;  %v2884_v23 = vrot.slane %v2882_v15, 1 }
  0x44   : > { %v5351_v38 = vld [vmem:[#allocation2 + $0xc] sm:$0xff]   ;;  %v5353_v43 = vld [vmem:[#allocation2 + $0x14] ss:$0 sps:$4 sm:$0x11]   ;;  %v2407_v58 = vsel %vm1535_vm2, %v2405_v32, %v2406_v50  ;;  %v1127_v28 = vshrl.u32 %v5369_v19, 16  ;;  %v1129_v29 = vshll.u32 %v5369_v19, 16 }
  0x45   : > { %1761 = vrot.lane.b32.xlu1 %v5351_v38, %s5735_s16  ;;  %v5352_v42 = vld [vmem:[#allocation2 + $0xc] sm:$0xfe]   ;;  %v2403_v49 = vrot.slane %v5353_v43, 1  ;;  %v5358_v52 = vld [vmem:[#allocation2 + $0x14] ss:$0 sps:$4 sm:$0x11]   ;;  %v2410_v6 = vsel %vm1535_vm2, %v2408_v30, %v2409_v59  ;;  %v2873_v9 = vor.u32 %v2872_v55, %v2868_v44  ;;  %v2885_v30 = vor.u32 %v2884_v23, %v2880_v14 }
  0x46   : > { %v2402_v48 = vrot.slane %v5352_v42, 1  ;;  %v5357_v51 = vld [vmem:[#allocation2 + $0xc] sm:$0xfe]   ;;  %v1540_v57 = vrot.slane %v5358_v52, 1  ;;  %v1131_v34 = vrot.slane %v1129_v29, 1  ;;  %v2892_v35 = vshrl.u32 %v5371_v20, 16 }
  0x47   : > { %v1539_v56 = vrot.slane %v5357_v51, 1  ;;  %v5362_v60 = vld [vmem:[#allocation2 + $0x20] ss:$0 sps:$4 sm:$0x11]   ;;  %v5365_v63 = vld [vmem:[#allocation2 + $0xc] sm:$0xff]   ;;  %v2894_v36 = vshll.u32 %v5371_v20, 16 }
  0x48   : > { %v2404_v53 = vsel %vm1535_vm2, %v2402_v48, %v2403_v49  ;;  %v5364_v62 = vld [vmem:[#allocation2 + $0x20] ss:$0 sps:$4 sm:$0x11]   ;;  %v1543_v0 = vrot.slane %v5362_v60, 1  ;;  %v1115_v4 = vshrl.u32 %v5365_v63, 16  ;;  %v1117_v5 = vshll.u32 %v5365_v63, 16 }
  0x49   : > { %1763 = vrot.lane.b32.xlu1 %v5354_v39, %s5735_s16  ;;  %2450 = vrot.lane.b32.xlu0 %v2404_v53, %s5734_s15  ;;  %v1541_v61 = vsel %vm1535_vm2, %v1539_v56, %v1540_v57  ;;  %v2875_v2 = vshll.u32 %v5364_v62, 16  ;;  %v5366_v3 = vld [vmem:[#allocation2 + $0x14] ss:$0 sps:$4 sm:$0x11]   ;;  %v316_v41 = vld [vmem:[%s5884_s13 + $0x24] sm:$0xf]  ;;  %v1132_v42 = vor.u32 %v1131_v34, %v1127_v28 }
  0x4a   : > { %v1544_v8 = vsel %vm1535_vm2, %v1542_v40, %v1543_v0  ;;  %v1119_v11 = vrot.slane %v1117_v5, 1  ;;  %v1122_v12 = vshll.u32 %v5366_v3, 16  ;;  %v5368_v13 = vld [vmem:[#allocation2 + $0x2c] ss:$0 sps:$4 sm:$0x11]   ;;  %v2896_v43 = vrot.slane %v2894_v36, 1 }
  0x4b   : > { %v2877_v10 = vrot.slane %v2875_v2, 1  ;;  %v2887_v18 = vshll.u32 %v5368_v13, 16  ;;  %v5370_v24 = vld [vmem:[#allocation2 + $0x20] ss:$0 sps:$4 sm:$0x11]   ;;  %v1139_v44 = vshrl.u32 %v5376_v37, 16 }
  0x4c   : > { %v1120_v16 = vor.u32 %v1119_v11, %v1115_v4  ;;  %v1124_v17 = vrot.slane %v1122_v12, 1  ;;  %v1134_v32 = vshll.u32 %v5370_v24, 16  ;;  %v5372_v33 = vld [vmem:[#allocation2 + $0x38] ss:$0 sps:$4 sm:$0x11]   ;;  %v5373_v46 = vld [vmem:[#allocation2 + $0x24] sm:$0xff]   ;;  %v2897_v51 = vor.u32 %v2896_v43, %v2892_v35 }
  0x4d   : > { %1586 = vrot.lane.b32.xlu1 %v1541_v61, %s5733_s14  ;;  %2452 = vrot.lane.b32.xlu0 %v2407_v58, %s5734_s15  ;;  %v2878_v22 = vsel %vm1101_vm5, %v2873_v9, %v2877_v10  ;;  %v2889_v26 = vrot.slane %v2887_v18, 1  ;;  %v2899_v40 = vshll.u32 %v5372_v33, 16  ;;  %v5374_v47 = vld [vmem:[#allocation2 + $0x30] sm:$0xfe]   ;;  %v333_v49 = vld [vmem:[%s5884_s13 + $0x68] sm:$0xf] }
  0x4e   : > { %v1125_v25 = vsel %vm1101_vm5, %v1120_v16, %v1124_v17  ;;  %v1136_v39 = vrot.slane %v1134_v32, 1  ;;  %v5375_v48 = vld [vmem:[#allocation2 + $0x38] ss:$0 sps:$4 sm:$0x11]   ;;  %v2411_v52 = vrot.slane %v5374_v47, 1  ;;  %v1141_v55 = vshll.u32 %v5376_v37, 16 }
  0x4f   : > { %v2890_v38 = vsel %vm1101_vm5, %v2885_v30, %v2889_v26  ;;  %v2901_v45 = vrot.slane %v2899_v40, 1  ;;  %v2412_v53 = vrot.slane %v5375_v48, 1  ;;  %v5377_v54 = vld [vmem:[#allocation2 + $0x2c] ss:$0 sps:$4 sm:$0x11]   ;;  %v417_v57 = vrot.slane %v5950_v31, 4 }
  0x50   : > { %v1137_v50 = vsel %vm1101_vm5, %v1132_v42, %v1136_v39  ;;  %v419_v58 = vshrl.u32 %v316_v41, 16  ;;  %v422_v59 = vshll.u32 %v316_v41, 16  ;;  %v1143_v60 = vrot.slane %v1141_v55, 1  ;;  %v700_v62 = vld [vmem:[#allocation2 + $0x44] sm:$0x1]  ;;  %v5383_v36 = vld [vmem:[#allocation2 + $0x30] sm:$0xff]  }
  0x51   : > { %1588 = vrot.lane.b32.xlu1 %v1544_v8, %s5733_s14  ;;  %2454 = vrot.lane.b32.xlu0 %v2410_v6, %s5734_s15  ;;  %v2902_v56 = vsel %vm1101_vm5, %v2897_v51, %v2901_v45  ;;  %v1146_v61 = vshll.u32 %v5377_v54, 16  ;;  %v334_v63 = vld [vmem:[%s5884_s13 + $0x6c] sm:$0xf]  ;;  %v5379_v1 = vld [vmem:[#allocation2 + $0x24] sm:$0xfe]   ;;  %v564_v2 = vshrl.u32 %v333_v49, 16  ;;  %v2413_v4 = vsel %vm1535_vm2, %v2411_v52, %v2412_v53 }
  0x52   : > { %v421_v0 = vrot.slane %v419_v58, 7  ;;  %v331_v3 = vld [vmem:[%s5884_s13 + $0x60] sm:$0xf]  ;;  %v1144_v5 = vor.u32 %v1143_v60, %v1139_v44  ;;  %v5380_v31 = vld [vmem:[#allocation2 + $0x2c] ss:$0 sps:$4 sm:$0x11]  }
  0x53   : > { %v1148_v6 = vrot.slane %v1146_v61, 1  ;;  %v1545_v9 = vrot.slane %v5379_v1, 1  ;;  %v1546_v12 = vrot.slane %v5380_v31, 1  ;;  %v566_v13 = vrot.slane %v564_v2, 7  ;;  %v332_v15 = vld [vmem:[%s5884_s13 + $0x64] sm:$0xf] }
  0x54   : > { %v424_v8 = vor.u32 %v422_v59, %v421_v0  ;;  %v426_v10 = vrot.slane %v421_v0, 4  ;;  %v567_v14 = vshll.u32 %v333_v49, 16  ;;  %v572_v18 = vshrl.u32 %v334_v63, 16  ;;  %v759_v20 = vld [vmem:[#allocation2 + $0xa8] sm:$0xf]  ;;  %v5442_v47 = vld [vmem:[%s7627_s1 + $0x40] sm:$0xff]  }
  0x55   : > { %1296 = vrot.lane.b32.xlu1 %v1125_v25, %s5734_s15  ;;  %3059 = vrot.lane.b32.xlu0 %v2878_v22, %s5735_s16  ;;  %v1149_v11 = vsel %vm1101_vm5, %v1144_v5, %v1148_v6  ;;  %v575_v19 = vshll.u32 %v334_v63, 16  ;;  %v1547_v22 = vsel %vm1535_vm2, %v1545_v9, %v1546_v12  ;;  %v570_v24 = vrot.slane %v566_v13, 4  ;;  %v763_v25 = vld [vmem:[#allocation2 + $0xb0] sm:$0x1]  ;;  %v336_v29 = vld [vmem:[%s5884_s13 + $0x74] sm:$0xf] }
  0x56   : > { %v425_v16 = vsel %vm5894_vm7, %v417_v57, %v424_v8  ;;  %v701_v17 = vsel %vm5927_vm9, %v426_v10, %v700_v62  ;;  %v569_v23 = vor.u32 %v567_v14, %v566_v13  ;;  %v547_v26 = vshrl.u32 %v331_v3, 16  ;;  %v335_v28 = vld [vmem:[%s5884_s13 + $0x70] sm:$0xf]  ;;  %v752_v35 = vld [vmem:[#allocation2 + $0x9c] sm:$0xf]  ;;  %v5445_v52 = vld [vmem:[%s7627_s1] sm:$0xff]   ;;  %5070 = vmatprep.subr.bf16.mxu0 %v5442_v47  ;;  %5280 = vmatprep.subr.bf16.mxu1 %v5442_v47 }
  0x57   : > { %699 = vst.msk [vmem:[#allocation2 + $0x40] sm:$0xf] %vm251_vm0, %v425_v16  ;;  %702 = vst [vmem:[#allocation2 + $0x44] sm:$0x1] %v701_v17  ;;  %v574_v30 = vrot.slane %v572_v18, 7  ;;  %v550_v32 = vshll.u32 %v331_v3, 16  ;;  %5071 = vmatpush3.bf16.msra.mxu0 %v5445_v52  ;;  %5288 = vmatpush3.bf16.msra.mxu1 %v5445_v52 }
  0x58   : > { %v555_v33 = vshrl.u32 %v332_v15, 16  ;;  %v558_v34 = vshll.u32 %v332_v15, 16  ;;  %v760_v37 = vsel %vm5902_vm8, %v569_v23, %v759_v20  ;;  %v756_v39 = vld [vmem:[#allocation2 + $0xa4] sm:$0x1]  ;;  %v581_v40 = vshrl.u32 %v335_v28, 16  ;;  %v5447_v57 = vld [vmem:[%s7627_s1 + $0x48] sm:$0xff]  }
  0x59   : > { %3061 = vrot.lane.b32.xlu0 %v2890_v38, %s5735_s16  ;;  %1298 = vrot.lane.b32.xlu1 %v1137_v50, %s5734_s15  ;;  %v549_v38 = vrot.slane %v547_v26, 7  ;;  %v584_v41 = vshll.u32 %v335_v28, 16  ;;  %v577_v42 = vor.u32 %v575_v19, %v574_v30  ;;  %v579_v43 = vrot.slane %v574_v30, 4  ;;  %761 = vst [vmem:[#allocation2 + $0xa8] sm:$0xf] %v760_v37  ;;  %v5450_v63 = vld [vmem:[%s7627_s1 + $0x8] sm:$0xff]  }
  0x5a   : > { %v557_v44 = vrot.slane %v555_v33, 7  ;;  %v589_v45 = vshrl.u32 %v336_v29, 16  ;;  %v583_v50 = vrot.slane %v581_v40, 7  ;;  %v592_v51 = vshll.u32 %v336_v29, 16  ;;  %v770_v62 = vld [vmem:[#allocation2 + $0xbc] sm:$0x1]  ;;  %5072 = vmatprep.subr.bf16.mxu0 %v5447_v57  ;;  %5281 = vmatprep.subr.bf16.mxu1 %v5447_v57 }
  0x5b   : > { %v552_v48 = vor.u32 %v550_v32, %v549_v38  ;;  %v553_v49 = vrot.slane %v549_v38, 4  ;;  %v578_v53 = vsel %vm5894_vm7, %v570_v24, %v577_v42  ;;  %v764_v54 = vsel %vm5927_vm9, %v579_v43, %v763_v25  ;;  %v6031_v12 = vld [vmem:[#allocation2 + $0x30] sm:$0xff]   ;;  %5073 = vmatpush3.bf16.msra.mxu0 %v5450_v63  ;;  %5289 = vmatpush3.bf16.msra.mxu1 %v5450_v63  ;;  %v5397_v28 = vld [vmem:[#allocation2 + $0x38] ss:$0 sps:$4 sm:$0x11]   ;;  %s5674_s11 = scalar_lea.vmem %s5673_s10, 8192 }
  0x5c   : > { %v560_v55 = vor.u32 %v558_v34, %v557_v44  ;;  %762 = vst.msk [vmem:[#allocation2 + $0xac] sm:$0xf] %vm251_vm0, %v578_v53  ;;  %765 = vst [vmem:[#allocation2 + $0xb0] sm:$0x1] %v764_v54  ;;  %v586_v59 = vor.u32 %v584_v41, %v583_v50  ;;  %v587_v60 = vrot.slane %v583_v50, 4  ;;  %v591_v61 = vrot.slane %v589_v45, 7 }
  0x5d   : > { %3063 = vrot.lane.b32.xlu0 %v2902_v56, %s5735_s16  ;;  %1765 = vrot.lane.b32.xlu1 %v5373_v46, %s5735_s16  ;;  %v766_v46 = vld [vmem:[#allocation2 + $0xb4] sm:$0xf]  ;;  %v562_v56 = vrot.slane %v557_v44, 4  ;;  %v753_v58 = vsel %vm5902_vm8, %v552_v48, %v752_v35  ;;  %v1151_v16 = vshrl.u32 %v6031_v12, 16  ;;  %v1153_v20 = vshll.u32 %v6031_v12, 16 }
  0x5e   : > { %v5378_v0 = vld [vmem:[#allocation2 + $0x3c] sm:$0xff]   ;;  %v561_v1 = vsel %vm5894_vm7, %v553_v49, %v560_v55  ;;  %754 = vst [vmem:[#allocation2 + $0x9c] sm:$0xf] %v753_v58  ;;  %v594_v5 = vor.u32 %v592_v51, %v591_v61  ;;  %v767_v6 = vsel %vm5902_vm8, %v586_v59, %v766_v46  ;;  %v596_v31 = vrot.slane %v591_v61, 4  ;;  %v317_v53 = vld [vmem:[%s5884_s13 + $0x28] sm:$0xf] }
  0x5f   : > { %v757_v2 = vsel %vm5927_vm9, %v562_v56, %v756_v39  ;;  %v5381_v3 = vld [vmem:[#allocation2 + $0x3c] sm:$0xff]   ;;  %755 = vst.msk [vmem:[#allocation2 + $0xa0] sm:$0xf] %vm251_vm0, %v561_v1  ;;  %768 = vst [vmem:[#allocation2 + $0xb4] sm:$0xf] %v767_v6  ;;  %v1158_v49 = vshll.u32 %v5397_v28, 16 }
  0x60   : > { %758 = vst [vmem:[#allocation2 + $0xa4] sm:$0x1] %v757_v2  ;;  %v2904_v8 = vshrl.u32 %v5381_v3, 16  ;;  %v2906_v9 = vshll.u32 %v5381_v3, 16  ;;  %v771_v13 = vsel %vm5927_vm9, %v596_v31, %v770_v62  ;;  %v5394_v32 = vld [vmem:[#allocation2 + $0x3c] sm:$0xfe]  }
  0x61   : > { %2456 = vrot.lane.b32.xlu0 %v2413_v4, %s5734_s15  ;;  %1300 = vrot.lane.b32.xlu1 %v1149_v11, %s5734_s15  ;;  %v5382_v4 = vld [vmem:[#allocation2 + $0x44] ss:$0 sps:$4 sm:$0x11]   ;;  %v595_v11 = vsel %vm5894_vm7, %v587_v60, %v594_v5  ;;  %772 = vst [vmem:[#allocation2 + $0xbc] sm:$0x1] %v771_v13  ;;  %v2414_v51 = vrot.slane %v5394_v32, 1 }
  0x62   : > { %v2911_v10 = vshll.u32 %v5382_v4, 16  ;;  %769 = vst.msk [vmem:[#allocation2 + $0xb8] sm:$0xf] %vm251_vm0, %v595_v11  ;;  %v2908_v14 = vrot.slane %v2906_v9, 1  ;;  %v318_v54 = vld [vmem:[%s5884_s13 + $0x2c] sm:$0xf] }
  0x63   : > { %v5384_v17 = vld [vmem:[#allocation2 + $0xa8] sm:$0xfe]   ;;  %v5385_v19 = vld [vmem:[#allocation2 + $0xb0] ss:$0 sps:$4 sm:$0x11]   ;;  %v428_v57 = vshrl.u32 %v317_v53, 16 }
  0x64   : > { %v2913_v15 = vrot.slane %v2911_v10, 1  ;;  %v2909_v18 = vor.u32 %v2908_v14, %v2904_v8  ;;  %v2442_v25 = vrot.slane %v5385_v19, 1  ;;  %v5395_v33 = vld [vmem:[#allocation2 + $0x44] ss:$0 sps:$4 sm:$0x11]   ;;  %v431_v58 = vshll.u32 %v317_v53, 16 }
  0x65   : > { %1590 = vrot.lane.b32.xlu1 %v1547_v22, %s5733_s14  ;;  %2633 = vrot.lane.b32.xlu0 %v5378_v0, %s5733_s14  ;;  %v2441_v22 = vrot.slane %v5384_v17, 1  ;;  %v2415_v52 = vrot.slane %v5395_v33, 1  ;;  %v436_v60 = vshrl.u32 %v318_v54, 16  ;;  %v439_v61 = vshll.u32 %v318_v54, 16  ;;  %v703_v62 = vld [vmem:[#allocation2 + $0x48] sm:$0xf] }
  0x66   : > { %v5386_v23 = vld [vmem:[#allocation2 + $0x9c] sm:$0xff]   ;;  %v2914_v24 = vsel %vm1101_vm5, %v2909_v18, %v2913_v15  ;;  %v430_v1 = vrot.slane %v428_v57, 7  ;;  %v5399_v2 = vld [vmem:[#allocation2 + $0x30] sm:$0xfe]   ;;  %v707_v5 = vld [vmem:[#allocation2 + $0x50] sm:$0x1] }
  0x67   : > { %v5387_v26 = vld [vmem:[#allocation2 + $0xa4] ss:$0 sps:$4 sm:$0x11]   ;;  %v1259_v29 = vshrl.u32 %v5386_v23, 16  ;;  %v1261_v30 = vshll.u32 %v5386_v23, 16  ;;  %v2443_v34 = vsel %vm1535_vm2, %v2441_v22, %v2442_v25  ;;  %v438_v3 = vrot.slane %v436_v60, 7 }
  0x68   : > { %v1266_v35 = vshll.u32 %v5387_v26, 16  ;;  %v5389_v39 = vld [vmem:[#allocation2 + $0x9c] sm:$0xfe]   ;;  %v5390_v40 = vld [vmem:[#allocation2 + $0xa4] ss:$0 sps:$4 sm:$0x11]   ;;  %v433_v8 = vor.u32 %v431_v58, %v430_v1  ;;  %v2416_v14 = vsel %vm1535_vm2, %v2414_v51, %v2415_v52 }
  0x69   : > { %1767 = vrot.lane.b32.xlu1 %v5383_v36, %s5735_s16  ;;  %3065 = vrot.lane.b32.xlu0 %v2914_v24, %s5735_s16  ;;  %v1155_v36 = vrot.slane %v1153_v20, 1  ;;  %v1263_v37 = vrot.slane %v1261_v30, 1  ;;  %v5388_v38 = vld [vmem:[#allocation2 + $0xb4] sm:$0xff]   ;;  %v1575_v44 = vrot.slane %v5389_v39, 1  ;;  %v1576_v45 = vrot.slane %v5390_v40, 1  ;;  %v5393_v31 = vld [vmem:[#allocation2 + $0xa8] sm:$0xff]  }
  0x6a   : > { %v1268_v41 = vrot.slane %v1266_v35, 1  ;;  %v5391_v42 = vld [vmem:[#allocation2 + $0xb4] sm:$0xff]   ;;  %v5392_v46 = vld [vmem:[#allocation2 + $0xbc] ss:$0 sps:$4 sm:$0x11]   ;;  %v434_v9 = vrot.slane %v430_v1, 4  ;;  %v441_v12 = vor.u32 %v439_v61, %v438_v3  ;;  %v704_v15 = vsel %vm5902_vm8, %v433_v8, %v703_v62 }
  0x6b   : > { %v1264_v43 = vor.u32 %v1263_v37, %v1259_v29  ;;  %v3024_v47 = vshrl.u32 %v5391_v42, 16  ;;  %v3026_v48 = vshll.u32 %v5391_v42, 16  ;;  %v3031_v56 = vshll.u32 %v5392_v46, 16  ;;  %v5400_v4 = vld [vmem:[#allocation2 + $0x38] ss:$0 sps:$4 sm:$0x11]  }
  0x6c   : > { %v1577_v59 = vsel %vm1535_vm2, %v1575_v44, %v1576_v45  ;;  %v1156_v10 = vor.u32 %v1155_v36, %v1151_v16  ;;  %v1160_v11 = vrot.slane %v1158_v49, 1  ;;  %v443_v13 = vrot.slane %v438_v3, 4  ;;  %705 = vst [vmem:[#allocation2 + $0x48] sm:$0xf] %v704_v15  ;;  %v6058_v20 = vld [vmem:[#allocation2 + $0xb4] sm:$0xfe]  }
  0x6d   : > { %2476 = vrot.lane.b32.xlu0 %v2443_v34, %s5734_s15  ;;  %v1269_v50 = vsel %vm1101_vm5, %v1264_v43, %v1268_v41  ;;  %v3028_v55 = vrot.slane %v3026_v48, 1  ;;  %v3033_v0 = vrot.slane %v3031_v56, 1  ;;  %v442_v17 = vsel %vm5894_vm7, %v434_v9, %v441_v12  ;;  %v5406_v16 = vld [vmem:[#allocation2 + $0xa8] sm:$0xff]   ;;  %v5407_v23 = vld [vmem:[#allocation2 + $0xb0] ss:$0 sps:$4 sm:$0x11]  }
  0x6e   : > { %1320 = vrot.lane.b32.xlu1 %v1269_v50, %s5734_s15  ;;  %v1548_v18 = vrot.slane %v5399_v2, 1  ;;  %v708_v19 = vsel %vm5927_vm9, %v443_v13, %v707_v5  ;;  %706 = vst.msk [vmem:[#allocation2 + $0x4c] sm:$0xf] %vm251_vm0, %v442_v17  ;;  %v1549_v22 = vrot.slane %v5400_v4, 1  ;;  %v1161_v24 = vsel %vm1101_vm5, %v1156_v10, %v1160_v11  ;;  %v337_v28 = vld [vmem:[%s5884_s13 + $0x78] sm:$0xf] }
  0x6f   : > { %v3029_v63 = vor.u32 %v3028_v55, %v3024_v47  ;;  %709 = vst [vmem:[#allocation2 + $0x50] sm:$0x1] %v708_v19  ;;  %v6064_v25 = vld [vmem:[#allocation2 + $0xbc] ss:$0 sps:$4 sm:$0x11]   ;;  %v1273_v26 = vshll.u32 %v5406_v16, 16 }
  0x70   : > { %v338_v29 = vld [vmem:[%s5884_s13 + $0x7c] sm:$0xf]  ;;  %v598_v30 = vshrl.u32 %v337_v28, 16  ;;  %v601_v32 = vshll.u32 %v337_v28, 16  ;;  %v2444_v33 = vrot.slane %v6058_v20, 1  ;;  %v1278_v34 = vshll.u32 %v5407_v23, 16 }
  0x71   : > { %2653 = vrot.lane.b32.xlu0 %v5388_v38, %s5733_s14  ;;  %v3034_v6 = vsel %vm1101_vm5, %v3029_v63, %v3033_v0  ;;  %v606_v35 = vshrl.u32 %v338_v29, 16  ;;  %v609_v36 = vshll.u32 %v338_v29, 16  ;;  %v773_v37 = vld [vmem:[#allocation2 + $0xc0] sm:$0xf]  ;;  %v1271_v38 = vshrl.u32 %v5406_v16, 16  ;;  %v6081_v63 = vld [vmem:[#allocation2 + $0xb4] sm:$0xff]  }
  0x72   : > { %1610 = vrot.lane.b32.xlu1 %v1577_v59, %s5733_s14  ;;  %v600_v39 = vrot.slane %v598_v30, 7  ;;  %v1550_v40 = vsel %vm1535_vm2, %v1548_v18, %v1549_v22  ;;  %v1275_v41 = vrot.slane %v1273_v26, 1  ;;  %v5409_v43 = vld [vmem:[#allocation2 + $0xa8] sm:$0xfe]   ;;  %v6071_v44 = vld [vmem:[#allocation2 + $0x3c] sm:$0xff]   ;;  %v2445_v46 = vrot.slane %v6064_v25, 1 }
  0x73   : > { %v608_v42 = vrot.slane %v606_v35, 7  ;;  %v5403_v45 = vld [vmem:[#allocation2 + $0x3c] sm:$0xff]   ;;  %v1280_v50 = vrot.slane %v1278_v34, 1  ;;  %v5410_v57 = vld [vmem:[#allocation2 + $0xb0] ss:$0 sps:$4 sm:$0x11]  }
  0x74   : > { %v603_v47 = vor.u32 %v601_v32, %v600_v39  ;;  %v604_v48 = vrot.slane %v600_v39, 4  ;;  %v1276_v55 = vor.u32 %v1275_v41, %v1271_v38  ;;  %v777_v59 = vld [vmem:[#allocation2 + $0xc8] sm:$0x1]  ;;  %v1578_v0 = vrot.slane %v5409_v43, 1  ;;  %v319_v15 = vld [vmem:[%s5884_s13 + $0x30] sm:$0xf] }
  0x75   : > { %3085 = vrot.lane.b32.xlu0 %v3034_v6, %s5735_s16  ;;  %v5398_v49 = vld [vmem:[#allocation2 + $0x48] sm:$0xff]   ;;  %v611_v51 = vor.u32 %v609_v36, %v608_v42  ;;  %v613_v58 = vrot.slane %v608_v42, 4  ;;  %v1165_v2 = vshll.u32 %v6071_v44, 16  ;;  %v1579_v6 = vrot.slane %v5410_v57, 1  ;;  %v5413_v22 = vld [vmem:[#allocation2 + $0xb4] sm:$0xff]  }
  0x76   : > { %1787 = vrot.lane.b32.xlu1 %v5393_v31, %s5735_s16  ;;  %v5401_v52 = vld [vmem:[#allocation2 + $0x48] sm:$0xff]   ;;  %v5402_v53 = vld [vmem:[#allocation2 + $0x50] ss:$0 sps:$4 sm:$0x11]   ;;  %v774_v54 = vsel %vm5902_vm8, %v603_v47, %v773_v37  ;;  %v1281_v5 = vsel %vm1101_vm5, %v1276_v55, %v1280_v50  ;;  %v1163_v11 = vshrl.u32 %v6071_v44, 16  ;;  %v1285_v13 = vshll.u32 %v6081_v63, 16 }
  0x77   : > { %v612_v56 = vsel %vm5894_vm7, %v604_v48, %v611_v51  ;;  %775 = vst [vmem:[#allocation2 + $0xc0] sm:$0xf] %v774_v54  ;;  %v2916_v60 = vshrl.u32 %v5401_v52, 16  ;;  %v2918_v61 = vshll.u32 %v5401_v52, 16  ;;  %v2923_v62 = vshll.u32 %v5402_v53, 16  ;;  %v6108_v52 = vld [vmem:[#allocation2 + $0xcc] sm:$0xff]  }
  0x78   : > { %776 = vst.msk [vmem:[#allocation2 + $0xc4] sm:$0xf] %vm251_vm0, %v612_v56  ;;  %v778_v1 = vsel %vm5927_vm9, %v613_v58, %v777_v59  ;;  %v6088_v31 = vld [vmem:[#allocation2 + $0x48] sm:$0xfe]   ;;  %v1167_v12 = vrot.slane %v1165_v2, 1  ;;  %v1580_v17 = vsel %vm1535_vm2, %v1578_v0, %v1579_v6  ;;  %v2446_v20 = vsel %vm1535_vm2, %v2444_v33, %v2445_v46 }
  0x79   : > { %2458 = vrot.lane.b32.xlu0 %v2416_v14, %s5734_s15  ;;  %v2920_v3 = vrot.slane %v2918_v61, 1  ;;  %v2925_v4 = vrot.slane %v2923_v62, 1  ;;  %779 = vst [vmem:[#allocation2 + $0xc8] sm:$0x1] %v778_v1  ;;  %v2417_v18 = vrot.slane %v6088_v31, 1  ;;  %v445_v25 = vshrl.u32 %v319_v15, 16 }
  0x7a   : > { %1302 = vrot.lane.b32.xlu1 %v1161_v24, %s5734_s15  ;;  %v6090_v8 = vld [vmem:[#allocation2 + $0x50] ss:$0 sps:$4 sm:$0x11]   ;;  %v5417_v10 = vld [vmem:[#allocation2 + $0x44] ss:$0 sps:$4 sm:$0x11]   ;;  %v1168_v38 = vor.u32 %v1167_v12, %v1163_v11 }
  0x7b   : > { %v2921_v9 = vor.u32 %v2920_v3, %v2916_v60  ;;  %v1170_v19 = vshll.u32 %v5417_v10, 16  ;;  %v2418_v23 = vrot.slane %v6090_v8, 1  ;;  %v320_v24 = vld [vmem:[%s5884_s13 + $0x34] sm:$0xf]  ;;  %v448_v26 = vshll.u32 %v319_v15, 16  ;;  %v5436_v1 = vld [vmem:[#allocation2 + $0x48] sm:$0xff]  }
  0x7c   : > { %v447_v35 = vrot.slane %v445_v25, 7  ;;  %v453_v36 = vshrl.u32 %v320_v24, 16  ;;  %v710_v37 = vld [vmem:[#allocation2 + $0x54] sm:$0xf]  ;;  %v456_v39 = vshll.u32 %v320_v24, 16  ;;  %v1283_v60 = vshrl.u32 %v6081_v63, 16 }
  0x7d   : > { %2635 = vrot.lane.b32.xlu0 %v5398_v49, %s5733_s14  ;;  %v2926_v14 = vsel %vm1101_vm5, %v2921_v9, %v2925_v4  ;;  %v1172_v30 = vrot.slane %v1170_v19, 1  ;;  %v5420_v46 = vld [vmem:[#allocation2 + $0x44] ss:$0 sps:$4 sm:$0x11]   ;;  %v714_v51 = vld [vmem:[#allocation2 + $0x5c] sm:$0x1]  ;;  %v2419_v6 = vsel %vm1535_vm2, %v2417_v18, %v2418_v23 }
  0x7e   : > { %1592 = vrot.lane.b32.xlu1 %v1550_v40, %s5733_s14  ;;  %v450_v41 = vor.u32 %v448_v26, %v447_v35  ;;  %v451_v42 = vrot.slane %v447_v35, 4  ;;  %v455_v43 = vrot.slane %v453_v36, 7  ;;  %v1552_v55 = vrot.slane %v5420_v46, 1  ;;  %v5427_v4 = vld [vmem:[#allocation2 + $0xbc] ss:$0 sps:$4 sm:$0x11]  }
  0x7f   : > { %v5411_v16 = vld [vmem:[#allocation2 + $0xc0] sm:$0xff]   ;;  %v1173_v53 = vsel %vm1101_vm5, %v1168_v38, %v1172_v30  ;;  %v1287_v61 = vrot.slane %v1285_v13, 1  ;;  %v3048_v62 = vshrl.u32 %v6108_v52, 16  ;;  %v3050_v0 = vshll.u32 %v6108_v52, 16  ;;  %v5423_v31 = vld [vmem:[#allocation2 + $0x48] sm:$0xff]   ;;  %v5453_v52 = vld [vmem:[%s7627_s1 + $0x50] sm:$0xff]  }
  0x80   : > { %v5408_v28 = vld [vmem:[#allocation2 + $0xc0] sm:$0xff]   ;;  %v5412_v29 = vld [vmem:[#allocation2 + $0xc8] ss:$0 sps:$4 sm:$0x11]   ;;  %v3036_v32 = vshrl.u32 %v5411_v16, 16  ;;  %v3038_v34 = vshll.u32 %v5411_v16, 16  ;;  %v458_v48 = vor.u32 %v456_v39, %v455_v43  ;;  %v711_v49 = vsel %vm5902_vm8, %v450_v41, %v710_v37  ;;  %5074 = vmatprep.subr.bf16.mxu0 %v5453_v52  ;;  %5282 = vmatprep.subr.bf16.mxu1 %v5453_v52 }
  0x81   : > { %3067 = vrot.lane.b32.xlu0 %v2926_v14, %s5735_s16  ;;  %v3043_v33 = vshll.u32 %v5412_v29, 16  ;;  %v460_v50 = vrot.slane %v455_v43, 4  ;;  %712 = vst [vmem:[#allocation2 + $0x54] sm:$0xf] %v711_v49  ;;  %v6117_v59 = vld [vmem:[#allocation2 + $0xc0] sm:$0xfe]   ;;  %v1288_v10 = vor.u32 %v1287_v61, %v1283_v60 }
  0x82   : > { %1769 = vrot.lane.b32.xlu1 %v5403_v45, %s5735_s16  ;;  %v3040_v40 = vrot.slane %v3038_v34, 1  ;;  %v5419_v45 = vld [vmem:[#allocation2 + $0x3c] sm:$0xfe]   ;;  %v459_v57 = vsel %vm5894_vm7, %v451_v42, %v458_v48  ;;  %v2447_v3 = vrot.slane %v6117_v59, 1  ;;  %v1290_v63 = vshll.u32 %v5427_v4, 16 }
  0x83   : > { %v3045_v44 = vrot.slane %v3043_v33, 1  ;;  %v1551_v54 = vrot.slane %v5419_v45, 1  ;;  %v715_v58 = vsel %vm5927_vm9, %v460_v50, %v714_v51  ;;  %713 = vst.msk [vmem:[#allocation2 + $0x58] sm:$0xf] %vm251_vm0, %v459_v57  ;;  %v5429_v8 = vld [vmem:[#allocation2 + $0xb4] sm:$0xfe]  }
  0x84   : > { %v3041_v47 = vor.u32 %v3040_v40, %v3036_v32  ;;  %716 = vst [vmem:[#allocation2 + $0x5c] sm:$0x1] %v715_v58  ;;  %v1175_v9 = vshrl.u32 %v5436_v1, 16  ;;  %v1292_v11 = vrot.slane %v1290_v63, 1  ;;  %v1581_v13 = vrot.slane %v5429_v8, 1  ;;  %v5428_v58 = vld [vmem:[#allocation2 + $0xcc] sm:$0xff]  }
  0x85   : > { %2478 = vrot.lane.b32.xlu0 %v2446_v20, %s5734_s15  ;;  %v1553_v2 = vsel %vm1535_vm2, %v1551_v54, %v1552_v55  ;;  %v5430_v12 = vld [vmem:[#allocation2 + $0xbc] ss:$0 sps:$4 sm:$0x11]   ;;  %v1177_v14 = vshll.u32 %v5436_v1, 16  ;;  %v3052_v39 = vrot.slane %v3050_v0, 1 }
  0x86   : > { %1322 = vrot.lane.b32.xlu1 %v1281_v5, %s5734_s15  ;;  %v3046_v56 = vsel %vm1101_vm5, %v3041_v47, %v3045_v44  ;;  %v5441_v5 = vld [vmem:[#allocation2] sm:$0xff]   ;;  %v5425_v20 = vld [vmem:[#allocation2 + $0xc8] ss:$0 sps:$4 sm:$0x11]   ;;  %v1582_v18 = vrot.slane %v5430_v12, 1  ;;  %v1293_v25 = vsel %vm1101_vm5, %v1288_v10, %v1292_v11 }
  0x87   : > { %909 = vst.msk [vmem:[#allocation3] sm:$0xff] %vm908_vm10, %v5441_v5  ;;  %v1179_v16 = vrot.slane %v1177_v14, 1  ;;  %v5432_v26 = vld [vmem:[#allocation2 + $0xd4] ss:$0 sps:$4 sm:$0x11]   ;;  %v2448_v36 = vrot.slane %v5425_v20, 1  ;;  %v3053_v0 = vor.u32 %v3052_v39, %v3048_v62 }
  0x88   : > { %v3055_v32 = vshll.u32 %v5432_v26, 16  ;;  %v1583_v37 = vsel %vm1535_vm2, %v1581_v13, %v1582_v18  ;;  %v5437_v40 = vld [vmem:[#allocation2 + $0x50] ss:$0 sps:$4 sm:$0x11]   ;;  %v321_v45 = vld [vmem:[%s5884_s13 + $0x38] sm:$0xf] }
  0x89   : > { %2655 = vrot.lane.b32.xlu0 %v5408_v28, %s5733_s14  ;;  %v1180_v44 = vor.u32 %v1179_v16, %v1175_v9  ;;  %v322_v46 = vld [vmem:[%s5884_s13 + $0x3c] sm:$0xf]  ;;  %v5433_v47 = vld [vmem:[#allocation2 + $0xc0] sm:$0xff]   ;;  %v1182_v48 = vshll.u32 %v5437_v40, 16  ;;  %v462_v49 = vshrl.u32 %v321_v45, 16  ;;  %v465_v50 = vshll.u32 %v321_v45, 16 }
  0x8a   : > { %1612 = vrot.lane.b32.xlu1 %v1580_v17, %s5733_s14  ;;  %v5418_v15 = vld [vmem:[#allocation2 + $0x54] sm:$0xff]   ;;  %v3057_v42 = vrot.slane %v3055_v32, 1  ;;  %v470_v51 = vshrl.u32 %v322_v46, 16  ;;  %v473_v54 = vshll.u32 %v322_v46, 16  ;;  %v717_v55 = vld [vmem:[#allocation2 + $0x60] sm:$0xf] }
  0x8b   : > { %v5421_v17 = vld [vmem:[#allocation2 + $0x54] sm:$0xff]   ;;  %v5422_v19 = vld [vmem:[#allocation2 + $0x5c] ss:$0 sps:$4 sm:$0x11]   ;;  %v1184_v59 = vrot.slane %v1182_v48, 1  ;;  %v464_v60 = vrot.slane %v462_v49, 7 }
  0x8c   : > { %v2930_v23 = vshll.u32 %v5421_v17, 16  ;;  %v2935_v24 = vshll.u32 %v5422_v19, 16  ;;  %v6135_v34 = vld [vmem:[#allocation2 + $0x54] sm:$0xfe]   ;;  %v472_v61 = vrot.slane %v470_v51, 7  ;;  %v3058_v19 = vsel %vm1101_vm5, %v3053_v0, %v3057_v42 }
  0x8d   : > { %3087 = vrot.lane.b32.xlu0 %v3046_v56, %s5735_s16  ;;  %v6139_v33 = vld [vmem:[#allocation2 + $0x5c] ss:$0 sps:$4 sm:$0x11]   ;;  %v2420_v43 = vrot.slane %v6135_v34, 1  ;;  %v6150_v57 = vld [vmem:[#allocation2 + $0x54] sm:$0xff]  }
  0x8e   : > { %1789 = vrot.lane.b32.xlu1 %v5413_v22, %s5735_s16  ;;  %v2928_v22 = vshrl.u32 %v5421_v17, 16  ;;  %v2932_v29 = vrot.slane %v2930_v23, 1  ;;  %v2937_v30 = vrot.slane %v2935_v24, 1  ;;  %v2421_v1 = vrot.slane %v6139_v33, 1  ;;  %v721_v10 = vld [vmem:[#allocation2 + $0x68] sm:$0x1] }
  0x8f   : > { %v5440_v4 = vld [vmem:[#allocation2 + $0x50] ss:$0 sps:$4 sm:$0x11]   ;;  %v475_v63 = vor.u32 %v473_v54, %v472_v61  ;;  %v477_v9 = vrot.slane %v472_v61, 4  ;;  %v1189_v11 = vshll.u32 %v6150_v57, 16 }
  0x90   : > { %v2933_v35 = vor.u32 %v2932_v29, %v2928_v22  ;;  %v1555_v8 = vrot.slane %v5440_v4, 1  ;;  %v5452_v20 = vld [vmem:[#allocation2 + $0x5c] ss:$0 sps:$4 sm:$0x11]   ;;  %v323_v16 = vld [vmem:[%s5884_s13 + $0x40] sm:$0xf]  ;;  %v2422_v42 = vsel %vm1535_vm2, %v2420_v43, %v2421_v1 }
  0x91   : > { %2460 = vrot.lane.b32.xlu0 %v2419_v6, %s5734_s15  ;;  %v467_v6 = vor.u32 %v465_v50, %v464_v60  ;;  %v722_v14 = vsel %vm5927_vm9, %v477_v9, %v721_v10  ;;  %v5455_v22 = vld [vmem:[%s7627_s1 + $0x10] sm:$0xff]   ;;  %v1191_v24 = vrot.slane %v1189_v11, 1  ;;  %v479_v26 = vshrl.u32 %v323_v16, 16  ;;  %v5457_v48 = vld [vmem:[#allocation2 + $0x5c] ss:$0 sps:$4 sm:$0x11]  }
  0x92   : > { %1304 = vrot.lane.b32.xlu1 %v1173_v53, %s5734_s15  ;;  %v2938_v41 = vsel %vm1101_vm5, %v2933_v35, %v2937_v30  ;;  %v2449_v53 = vsel %vm1535_vm2, %v2447_v3, %v2448_v36  ;;  %v1185_v3 = vsel %vm1101_vm5, %v1180_v44, %v1184_v59  ;;  %723 = vst [vmem:[#allocation2 + $0x68] sm:$0x1] %v722_v14  ;;  %v5446_v29 = vld [vmem:[#allocation2 + $0x54] sm:$0xff]   ;;  %v1194_v30 = vshll.u32 %v5452_v20, 16  ;;  %v724_v36 = vld [vmem:[#allocation2 + $0x6c] sm:$0xf] }
  0x93   : > { %v718_v13 = vsel %vm5902_vm8, %v467_v6, %v717_v55  ;;  %5075 = vmatpush3.bf16.msra.mxu0 %v5455_v22  ;;  %5290 = vmatpush3.bf16.msra.mxu1 %v5455_v22  ;;  %v481_v33 = vrot.slane %v479_v26, 7  ;;  %v1558_v6 = vrot.slane %v5457_v48, 1  ;;  %v5458_v11 = vld [vmem:[#allocation2 + $0x14] ss:$0 sps:$4 sm:$0x11]  }
  0x94   : > { %719 = vst [vmem:[#allocation2 + $0x60] sm:$0xf] %v718_v13  ;;  %v1196_v39 = vrot.slane %v1194_v30, 1 }
  0x95   : > { %2637 = vrot.lane.b32.xlu0 %v5418_v15, %s5733_s14  ;;  %v1187_v15 = vshrl.u32 %v6150_v57, 16  ;;  %v485_v46 = vrot.slane %v481_v33, 4 }
  0x96   : > { %1594 = vrot.lane.b32.xlu1 %v1553_v2, %s5733_s14  ;;  %v5439_v2 = vld [vmem:[#allocation2 + $0x48] sm:$0xfe]  }
  0x97   : > { %v1554_v62 = vrot.slane %v5439_v2, 1  ;;  %v1192_v44 = vor.u32 %v1191_v24, %v1187_v15  ;;  %v728_v15 = vld [vmem:[#allocation2 + $0x74] sm:$0x1] }
  0x99   : > { %3069 = vrot.lane.b32.xlu0 %v2938_v41, %s5735_s16  ;;  %v1556_v23 = vsel %vm1535_vm2, %v1554_v62, %v1555_v8  ;;  %v5444_v55 = vld [vmem:[#allocation2 + $0x68] ss:$0 sps:$4 sm:$0x11]   ;;  %v1197_v59 = vsel %vm1101_vm5, %v1192_v44, %v1196_v39  ;;  %v5467_v39 = vld [vmem:[%s7627_s1 + $0x60] sm:$0xff]  }
  0x9a   : > { %1771 = vrot.lane.b32.xlu1 %v5423_v31, %s5735_s16  ;;  %v468_v31 = vrot.slane %v464_v60, 4  ;;  %v2947_v1 = vshll.u32 %v5444_v55, 16  ;;  %v5449_v2 = vld [vmem:[#allocation2 + $0x68] ss:$0 sps:$4 sm:$0x11]  }
  0x9b   : > { %v2424_v62 = vrot.slane %v5449_v2, 1 }
  0x9c   : > { %v476_v12 = vsel %vm5894_vm7, %v468_v31, %v475_v63  ;;  %v2949_v52 = vrot.slane %v2947_v1, 1  ;;  %v5472_v1 = vld [vmem:[#allocation2 + $0x68] ss:$0 sps:$4 sm:$0x11]  }
  0x9d   : > { %2480 = vrot.lane.b32.xlu0 %v2449_v53, %s5734_s15  ;;  %720 = vst.msk [vmem:[#allocation2 + $0x64] sm:$0xf] %vm251_vm0, %v476_v12 }
  0x9e   : > { %1324 = vrot.lane.b32.xlu1 %v1293_v25, %s5734_s15  ;;  %v324_v25 = vld [vmem:[%s5884_s13 + $0x44] sm:$0xf] }
  0x9f   : > { %v487_v32 = vshrl.u32 %v324_v25, 16  ;;  %v490_v35 = vshll.u32 %v324_v25, 16 }
  0xa1   : > { %2657 = vrot.lane.b32.xlu0 %v5428_v58, %s5733_s14  ;;  %v489_v40 = vrot.slane %v487_v32, 7 }
  0xa2   : > { %1614 = vrot.lane.b32.xlu1 %v1583_v37, %s5733_s14  ;;  %v5459_v37 = vld [vmem:[#allocation2 + $0xc] sm:$0xff]  }
  0xa3   : > { %v492_v51 = vor.u32 %v490_v35, %v489_v40  ;;  %v2003_v53 = vshrl.u32 %v5459_v37, 16  ;;  %v2005_v31 = vshll.u32 %v5459_v37, 16  ;;  %v494_v8 = vrot.slane %v489_v40, 4  ;;  %v5465_v37 = vld [vmem:[#allocation2 + $0x18] sm:$0xff]  }
  0xa4   : > { %v5438_v50 = vld [vmem:[#allocation2 + $0x60] sm:$0xff]   ;;  %v2015_v40 = vshrl.u32 %v5465_v37, 16 }
  0xa5   : > { %3089 = vrot.lane.b32.xlu0 %v3058_v19, %s5735_s16  ;;  %v5443_v34 = vld [vmem:[#allocation2 + $0x60] sm:$0xff]   ;;  %v493_v43 = vsel %vm5894_vm7, %v485_v46, %v492_v51  ;;  %v2007_v12 = vrot.slane %v2005_v31, 1  ;;  %v2010_v19 = vshll.u32 %v5458_v11, 16  ;;  %v1206_v31 = vshll.u32 %v5472_v1, 16 }
  0xa6   : > { %1791 = vrot.lane.b32.xlu1 %v5433_v47, %s5735_s16  ;;  %v5456_v47 = vld [vmem:[#allocation2 + $0x54] sm:$0xfe]   ;;  %v5448_v58 = vld [vmem:[#allocation2 + $0x60] sm:$0xfe]   ;;  %727 = vst.msk [vmem:[#allocation2 + $0x70] sm:$0xf] %vm251_vm0, %v493_v43 }
  0xa7   : > { %v1585_v38 = vpop.permute.xlu1 %1584  ;;  %v2940_v61 = vshrl.u32 %v5443_v34, 16  ;;  %v2942_v0 = vshll.u32 %v5443_v34, 16  ;;  %v2423_v4 = vrot.slane %v5448_v58, 1  ;;  %v2008_v20 = vor.u32 %v2007_v12, %v2003_v53 }
  0xa8   : > { %v1208_v12 = vrot.slane %v1206_v31, 1 }
  0xa9   : > { %2462 = vrot.lane.b32.xlu0 %v2422_v42, %s5734_s15  ;;  %v2944_v63 = vrot.slane %v2942_v0, 1  ;;  %v2425_v26 = vsel %vm1535_vm2, %v2423_v4, %v2424_v62  ;;  %v2017_v42 = vshll.u32 %v5465_v37, 16 }
  0xaa   : > { %v1295_v28 = vpop.permute.xlu0 %1294  ;;  %1306 = vrot.lane.b32.xlu1 %v1185_v3, %s5734_s15  ;;  %v1557_v3 = vrot.slane %v5456_v47, 1  ;;  %v5471_v47 = vld [vmem:[#allocation2 + $0x60] sm:$0xff]  }
  0xab   : > { %1343 = vst.msk [vmem:[#allocation3] sm:$0xff] %vm1342_vm11, %v1295_v28  ;;  %v482_v28 = vshll.u32 %v323_v16, 16  ;;  %v2945_v14 = vor.u32 %v2944_v63, %v2940_v61  ;;  %v5463_v16 = vld [vmem:[%s7627_s1 + $0x18] sm:$0xff]   ;;  %v1199_v61 = vshrl.u32 %v5471_v47, 16  ;;  %v1201_v2 = vshll.u32 %v5471_v47, 16  ;;  %v5473_v63 = vld [vmem:[#allocation2 + $0x24] sm:$0xff]  }
  0xac   : > { %1633 = vst.msk [vmem:[#allocation3] sm:$0xff] %vm1632_vm12, %v1585_v38  ;;  %v5460_v38 = vld [vmem:[%s7627_s1 + $0x58] sm:$0xff]   ;;  %v1559_v10 = vsel %vm1535_vm2, %v1557_v3, %v1558_v6  ;;  %v5479_v47 = vld [vmem:[#allocation2 + $0x68] ss:$0 sps:$4 sm:$0x11]  }
  0xad   : > { %v484_v45 = vor.u32 %v482_v28, %v481_v33  ;;  %5076 = vmatprep.subr.bf16.mxu0 %v5460_v38  ;;  %5283 = vmatprep.subr.bf16.mxu1 %v5460_v38  ;;  %v2950_v22 = vsel %vm1101_vm5, %v2945_v14, %v2949_v52  ;;  %v5464_v28 = vld [vmem:[#allocation2 + $0x60] sm:$0xff]   ;;  %v1203_v6 = vrot.slane %v1201_v2, 1  ;;  %v5474_v52 = vld [vmem:[#allocation2 + $0x2c] ss:$0 sps:$4 sm:$0x11]   ;;  %v2027_v14 = vshrl.u32 %v5473_v63, 16 }
  0xae   : > { %v6148_v56 = vpop.permute.xlu0 %2629  ;;  %1596 = vrot.lane.b32.xlu1 %v1556_v23, %s5733_s14  ;;  %2639 = vrot.lane.b32.xlu0 %v5438_v50, %s5733_s14  ;;  %v2012_v23 = vrot.slane %v2010_v19, 1  ;;  %v5466_v33 = vld [vmem:[#allocation2 + $0x20] ss:$0 sps:$4 sm:$0x11]   ;;  %v5477_v19 = vld [vmem:[%s7627_s1 + $0x28] sm:$0xff]  }
  0xaf   : > { %v725_v54 = vsel %vm5902_vm8, %v484_v45, %v724_v36  ;;  %5077 = vmatpush3.bf16.msra.mxu0 %v5463_v16  ;;  %5291 = vmatpush3.bf16.msra.mxu1 %v5463_v16  ;;  %v2022_v44 = vshll.u32 %v5466_v33, 16  ;;  %v5470_v45 = vld [vmem:[%s7627_s1 + $0x20] sm:$0xff]   ;;  %v1204_v11 = vor.u32 %v1203_v6, %v1199_v61  ;;  %v327_v61 = vld [vmem:[%s5884_s13 + $0x50] sm:$0xf] }
  0xb0   : > { %v6155_v5 = vpop.permute.xlu1 %2627  ;;  %726 = vst [vmem:[#allocation2 + $0x6c] sm:$0xf] %v725_v54  ;;  %v2013_v32 = vsel %vm1101_vm5, %v2008_v20, %v2012_v23  ;;  %5078 = vmatprep.subr.bf16.mxu0 %v5467_v39  ;;  %5284 = vmatprep.subr.bf16.mxu1 %v5467_v39  ;;  %v2034_v20 = vshll.u32 %v5474_v52, 16 }
  0xb1   : > { %2210 = vst.msk [vmem:[#allocation3 + $0x8] sm:$0xff] %vm908_vm10, %v2013_v32  ;;  %v2024_v50 = vrot.slane %v2022_v44, 1  ;;  %v1209_v23 = vsel %vm1101_vm5, %v1204_v11, %v1208_v12  ;;  %v5478_v44 = vld [vmem:[#allocation2 + $0x60] sm:$0xfe]  }
  0xb2   : > { %1773 = vrot.lane.b32.xlu1 %v5446_v29, %s5735_s16  ;;  %3071 = vrot.lane.b32.xlu0 %v2950_v22, %s5735_s16  ;;  %v5480_v22 = vld [vmem:[#allocation2 + $0xc] sm:$0xff]   ;;  %v2036_v32 = vrot.slane %v2034_v20, 1 }
  0xb3   : > { %5079 = vmatpush3.bf16.msra.mxu0 %v5470_v45  ;;  %5292 = vmatpush3.bf16.msra.mxu1 %v5470_v45  ;;  %910 = vst.msk [vmem:[#allocation3 + $0x18] sm:$0xff] %vm908_vm10, %v5480_v22 }
  0xb5   : > { %v6173_v17 = vpop.permute.xlu0 %2631 }
  0xb6   : > { %1308 = vrot.lane.b32.xlu1 %v1197_v59, %s5734_s15  ;;  %2464 = vrot.lane.b32.xlu0 %v2425_v26, %s5734_s15 }
  0xb7   : > { %v1762_v18 = vpop.permute.xlu1 %1761  ;;  %v5461_v24 = vld [vmem:[#allocation2 + $0x6c] sm:$0xff]  }
  0xb8   : > { %1810 = vst.msk [vmem:[#allocation3] sm:$0xff] %vm1809_vm13, %v1762_v18  ;;  %v729_v18 = vsel %vm5927_vm9, %v494_v8, %v728_v15  ;;  %v5454_v30 = vld [vmem:[#allocation2 + $0x6c] sm:$0xff]   ;;  %v2952_v35 = vshrl.u32 %v5461_v24, 16  ;;  %v2954_v36 = vshll.u32 %v5461_v24, 16  ;;  %v325_v15 = vld [vmem:[%s5884_s13 + $0x48] sm:$0xf] }
  0xb9   : > { %730 = vst [vmem:[#allocation2 + $0x74] sm:$0x1] %v729_v18  ;;  %v5468_v54 = vld [vmem:[#allocation2 + $0x6c] sm:$0xfe]   ;;  %v496_v18 = vshrl.u32 %v325_v15, 16  ;;  %v499_v16 = vshll.u32 %v325_v15, 16 }
  0xba   : > { %1598 = vrot.lane.b32.xlu1 %v1559_v10, %s5733_s14  ;;  %v2956_v38 = vrot.slane %v2954_v36, 1  ;;  %2641 = vrot.lane.b32.xlu0 %v5454_v30, %s5733_s14  ;;  %v2426_v58 = vrot.slane %v5468_v54, 1  ;;  %v5475_v10 = vld [vmem:[%s7627_s1 + $0x68] sm:$0xff]   ;;  %v5481_v30 = vld [vmem:[%s7627_s1 + $0x70] sm:$0xff]  }
  0xbb   : > { %v6190_v41 = vpop.permute.xlu1 %1763  ;;  %v6195_v49 = vpop.permute.xlu0 %2450  ;;  %5080 = vmatprep.subr.bf16.mxu0 %v5475_v10  ;;  %5285 = vmatprep.subr.bf16.mxu1 %v5475_v10 }
  0xbc   : > { %2498 = vst.msk [vmem:[#allocation3 + $0x8] sm:$0xff] %vm1342_vm11, %v6195_v49  ;;  %v2019_v49 = vrot.slane %v2017_v42, 1  ;;  %5081 = vmatpush3.bf16.msra.mxu0 %v5477_v19  ;;  %5293 = vmatpush3.bf16.msra.mxu1 %v5477_v19 }
  0xbd   : > { %2675 = vst.msk [vmem:[#allocation3 + $0x8] sm:$0xff] %vm1632_vm12, %v6155_v5  ;;  %v2957_v5 = vor.u32 %v2956_v38, %v2952_v35  ;;  %v498_v35 = vrot.slane %v496_v18, 7  ;;  %5082 = vmatprep.subr.bf16.mxu0 %v5481_v30  ;;  %v5484_v38 = vld [vmem:[%s7627_s1 + $0x30] sm:$0xff]   ;;  %5286 = vmatprep.subr.bf16.mxu1 %v5481_v30  ;;  %v738_v18 = vld [vmem:[#allocation2 + $0x84] sm:$0xf] }
  0xbe   : > { %1775 = vrot.lane.b32.xlu1 %v5464_v28, %s5735_s16  ;;  %v2020_v55 = vor.u32 %v2019_v49, %v2015_v40  ;;  %v731_v28 = vld [vmem:[#allocation2 + $0x78] sm:$0xf]  ;;  %v1560_v49 = vrot.slane %v5478_v44, 1  ;;  %v5494_v44 = vld [vmem:[#allocation2 + $0x6c] sm:$0xfe]  }
  0xbf   : > { %v6203_v57 = vpop.permute.xlu1 %1586  ;;  %v6207_v60 = vpop.permute.xlu0 %2452  ;;  %v501_v40 = vor.u32 %v499_v16, %v498_v35  ;;  %v502_v42 = vrot.slane %v498_v35, 4 }
  0xc0   : > { %v5462_v46 = vld [vmem:[#allocation2 + $0x74] ss:$0 sps:$4 sm:$0x11]   ;;  %v2025_v0 = vsel %vm1101_vm5, %v2020_v55, %v2024_v50  ;;  %5083 = vmatpush3.bf16.msra.mxu0 %v5484_v38  ;;  %v5486_v50 = vld [vmem:[#allocation2 + $0x18] sm:$0xff]   ;;  %5294 = vmatpush3.bf16.msra.mxu1 %v5484_v38 }
  0xc1   : > { %v2959_v53 = vshll.u32 %v5462_v46, 16  ;;  %v5469_v34 = vld [vmem:[#allocation2 + $0x74] ss:$0 sps:$4 sm:$0x11]   ;;  %2211 = vst.msk [vmem:[#allocation3 + $0x20] sm:$0xff] %vm908_vm10, %v2025_v0  ;;  %911 = vst.msk [vmem:[#allocation3 + $0x30] sm:$0xff] %vm908_vm10, %v5486_v50 }
  0xc2   : > { %v2427_v59 = vrot.slane %v5469_v34, 1  ;;  %2499 = vst.msk [vmem:[#allocation3 + $0x20] sm:$0xff] %vm1342_vm11, %v6207_v60  ;;  %v2029_v60 = vshll.u32 %v5473_v63, 16  ;;  %1310 = vrot.lane.b32.xlu1 %v1209_v23, %s5734_s15  ;;  %v5485_v34 = vld [vmem:[#allocation2 + $0x6c] sm:$0xff]   ;;  %v1563_v50 = vrot.slane %v5494_v44, 1 }
  0xc3   : > { %v6211_v9 = vpop.permute.xlu1 %1588  ;;  %v6214_v13 = vpop.permute.xlu0 %2454  ;;  %v2961_v43 = vrot.slane %v2959_v53, 1  ;;  %2676 = vst.msk [vmem:[#allocation3 + $0x20] sm:$0xff] %vm1632_vm12, %v6148_v56  ;;  %v326_v56 = vld [vmem:[%s5884_s13 + $0x4c] sm:$0xf]  ;;  %v735_v53 = vld [vmem:[#allocation2 + $0x80] sm:$0x1] }
  0xc4   : > { %v2428_v8 = vsel %vm1535_vm2, %v2426_v58, %v2427_v59  ;;  %v2031_v24 = vrot.slane %v2029_v60, 1  ;;  %v507_v26 = vshll.u32 %v326_v56, 16  ;;  %v5492_v58 = vld [vmem:[#allocation2 + $0x74] ss:$0 sps:$4 sm:$0x11]   ;;  %v513_v60 = vshrl.u32 %v327_v61, 16 }
  0xc5   : > { %v2962_v4 = vsel %vm1101_vm5, %v2957_v5, %v2961_v43  ;;  %v1561_v5 = vrot.slane %v5479_v47, 1  ;;  %v5490_v43 = vld [vmem:[%s7627_s1 + $0x38] sm:$0xff]   ;;  %v1218_v12 = vshll.u32 %v5492_v58, 16 }
  0xc6   : > { %3073 = vrot.lane.b32.xlu0 %v2962_v4, %s5735_s16  ;;  %v2032_v37 = vor.u32 %v2031_v24, %v2027_v14  ;;  %v328_v14 = vld [vmem:[%s5884_s13 + $0x54] sm:$0xf]  ;;  %v515_v23 = vrot.slane %v513_v60, 7 }
  0xc7   : > { %v3060_v25 = vpop.permute.xlu0 %3059  ;;  %v6225_v29 = vpop.permute.xlu1 %1296  ;;  %v1562_v55 = vsel %vm1535_vm2, %v1560_v49, %v1561_v5  ;;  %v1220_v22 = vrot.slane %v1218_v12, 1  ;;  %v521_v24 = vshrl.u32 %v328_v14, 16 }
  0xc8   : > { %3107 = vst.msk [vmem:[#allocation3 + $0x8] sm:$0xff] %vm1809_vm13, %v3060_v25  ;;  %v504_v25 = vshrl.u32 %v326_v56, 16  ;;  %v2037_v45 = vsel %vm1101_vm5, %v2032_v37, %v2036_v32  ;;  %1600 = vrot.lane.b32.xlu1 %v1562_v55, %s5733_s14  ;;  %v516_v56 = vshll.u32 %v327_v61, 16  ;;  %v524_v32 = vshll.u32 %v328_v14, 16  ;;  %v330_v14 = vld [vmem:[%s5884_s13 + $0x5c] sm:$0xf] }
  0xc9   : > { %1344 = vst.msk [vmem:[#allocation3 + $0x18] sm:$0xff] %vm1342_vm11, %v6225_v29 }
  0xca   : > { %2466 = vrot.lane.b32.xlu0 %v2428_v8, %s5734_s15  ;;  %v506_v33 = vrot.slane %v504_v25, 7  ;;  %1634 = vst.msk [vmem:[#allocation3 + $0x18] sm:$0xff] %vm1632_vm12, %v6203_v57  ;;  %v3379_v25 = vld [vmem:[#allocation3] sm:$0xff]  ;;  %v518_v38 = vor.u32 %v516_v56, %v515_v23 }
  0xcb   : > { %v3062_v48 = vpop.permute.xlu0 %3061  ;;  %v6242_v51 = vpop.permute.xlu1 %1298  ;;  %1811 = vst.msk [vmem:[#allocation3 + $0x18] sm:$0xff] %vm1809_vm13, %v6190_v41  ;;  %v5487_v41 = vld [vmem:[%s7627_s1 + $0x78] sm:$0xff]  }
  0xcc   : > { %3108 = vst.msk [vmem:[#allocation3 + $0x20] sm:$0xff] %vm1809_vm13, %v3062_v48  ;;  %v509_v46 = vor.u32 %v507_v26, %v506_v33  ;;  %v511_v29 = vrot.slane %v506_v33, 4  ;;  %v732_v48 = vsel %vm5902_vm8, %v501_v40, %v731_v28  ;;  %5084 = vmatprep.subr.bf16.mxu0 %v5487_v41  ;;  %5287 = vmatprep.subr.bf16.mxu1 %v5487_v41  ;;  %v5496_v26 = vld [vmem:[#allocation2 + $0x30] sm:$0xff]   ;;  %v519_v40 = vrot.slane %v515_v23, 4 }
  0xcd   : > { %2212 = vst.msk [vmem:[#allocation3 + $0x38] sm:$0xff] %vm908_vm10, %v2037_v45  ;;  %733 = vst [vmem:[#allocation2 + $0x78] sm:$0xf] %v732_v48  ;;  %5085 = vmatpush3.bf16.msra.mxu0 %v5490_v43  ;;  %5295 = vmatpush3.bf16.msra.mxu1 %v5490_v43  ;;  %v2039_v47 = vshrl.u32 %v5496_v26, 16  ;;  %v739_v49 = vsel %vm5902_vm8, %v518_v38, %v738_v18  ;;  %v745_v18 = vld [vmem:[#allocation2 + $0x90] sm:$0xf] }
  0xce   : > { %2500 = vst.msk [vmem:[#allocation3 + $0x38] sm:$0xff] %vm1342_vm11, %v6214_v13  ;;  %v510_v57 = vsel %vm5894_vm7, %v502_v42, %v509_v46  ;;  %v736_v54 = vsel %vm5927_vm9, %v511_v29, %v735_v53  ;;  %1345 = vst.msk [vmem:[#allocation3 + $0x30] sm:$0xff] %vm1342_vm11, %v6242_v51  ;;  %v5491_v51 = vld [vmem:[#allocation2 + $0x6c] sm:$0xff]   ;;  %1777 = vrot.lane.b32.xlu1 %v5485_v34, %s5735_s16  ;;  %v523_v42 = vrot.slane %v521_v24, 7  ;;  %v2041_v34 = vshll.u32 %v5496_v26, 16 }
  0xcf   : > { %v6248_v3 = vpop.permute.xlu0 %3063  ;;  %v6253_v62 = vpop.permute.xlu1 %1765  ;;  %2677 = vst.msk [vmem:[#allocation3 + $0x38] sm:$0xff] %vm1632_vm12, %v6173_v17  ;;  %737 = vst [vmem:[#allocation2 + $0x80] sm:$0x1] %v736_v54  ;;  %v3380_v59 = vld [vmem:[#allocation3 + $0x8] sm:$0xff]  ;;  %v1211_v1 = vshrl.u32 %v5491_v51, 16  ;;  %v1213_v11 = vshll.u32 %v5491_v51, 16 }
  0xd0   : > { %734 = vst.msk [vmem:[#allocation2 + $0x7c] sm:$0xf] %vm251_vm0, %v510_v57  ;;  %3658 = vmatprep.mubr.bf16.mxu0 %v3380_v59  ;;  %v5495_v46 = vld [vmem:[#allocation2 + $0x74] ss:$0 sps:$4 sm:$0x11]   ;;  %v526_v48 = vor.u32 %v524_v32, %v523_v42  ;;  %v5498_v57 = vld [vmem:[#allocation2 + $0x24] sm:$0xff]  }
  0xd1   : > { %3109 = vst.msk [vmem:[#allocation3 + $0x38] sm:$0xff] %vm1809_vm13, %v6248_v3  ;;  %v1215_v16 = vrot.slane %v1213_v11, 1  ;;  %3659 = vmatmul.mubr.bf16.vlgmr.msra.gmra.mrb[0].mxu0 %v3379_v25  ;;  %740 = vst [vmem:[#allocation2 + $0x84] sm:$0xf] %v739_v49  ;;  %v1564_v41 = vrot.slane %v5495_v46, 1  ;;  %v528_v55 = vrot.slane %v523_v42, 4 }
  0xd2   : > { %1635 = vst.msk [vmem:[#allocation3 + $0x30] sm:$0xff] %vm1632_vm12, %v6211_v9  ;;  %v5497_v54 = vld [vmem:[#allocation2 + $0x38] ss:$0 sps:$4 sm:$0x11]   ;;  %v527_v43 = vsel %vm5894_vm7, %v519_v40, %v526_v48  ;;  %v742_v51 = vld [vmem:[#allocation2 + $0x8c] sm:$0x1] }
  0xd3   : > { %v6274_v36 = vpop.permute.xlu0 %2456  ;;  %v6281_v39 = vpop.permute.xlu1 %1300  ;;  %1812 = vst.msk [vmem:[#allocation3 + $0x30] sm:$0xff] %vm1809_vm13, %v6253_v62  ;;  %v3383_v35 = vld [vmem:[#allocation3 + $0x20] sm:$0xff]  ;;  %v1216_v33 = vor.u32 %v1215_v16, %v1211_v1  ;;  %v1565_v58 = vsel %vm1535_vm2, %v1563_v50, %v1564_v41  ;;  %v2043_v59 = vrot.slane %v2041_v34, 1  ;;  %v2046_v61 = vshll.u32 %v5497_v54, 16  ;;  %v5509_v42 = vld [vmem:[#allocation2 + $0xa8] sm:$0xff]  }
  0xd4   : > { %3666 = vmatprep.mubr.bf16.mxu0 %v3383_v35  ;;  %912 = vst.msk [vmem:[#allocation3 + $0x48] sm:$0xff] %vm908_vm10, %v5498_v57  ;;  %v538_v23 = vshrl.u32 %v330_v14, 16  ;;  %v541_v49 = vshll.u32 %v330_v14, 16 }
  0xd5   : > { %v1221_v29 = vsel %vm1101_vm5, %v1216_v33, %v1220_v22  ;;  %741 = vst.msk [vmem:[#allocation2 + $0x88] sm:$0xf] %vm251_vm0, %v527_v43 }
  0xd6   : > { %v5483_v3 = vld [vmem:[#allocation2 + $0x80] ss:$0 sps:$4 sm:$0x11]   ;;  %1312 = vrot.lane.b32.xlu1 %v1221_v29, %s5734_s15  ;;  %1346 = vst.msk [vmem:[#allocation3 + $0x48] sm:$0xff] %vm1342_vm11, %v6281_v39  ;;  %v2044_v39 = vor.u32 %v2043_v59, %v2039_v47  ;;  %v540_v47 = vrot.slane %v538_v23, 7 }
  0xd7   : > { %v6304_v13 = vpop.permute.xlu0 %2633  ;;  %v6311_v17 = vpop.permute.xlu1 %1590  ;;  %v5476_v9 = vld [vmem:[#allocation2 + $0x78] sm:$0xff]   ;;  %v2971_v52 = vshll.u32 %v5483_v3, 16  ;;  %v5489_v62 = vld [vmem:[#allocation2 + $0x80] ss:$0 sps:$4 sm:$0x11]   ;;  %v3382_v3 = vld [vmem:[#allocation3 + $0x18] sm:$0xff] }
  0xd8   : > { %v5482_v4 = vld [vmem:[#allocation2 + $0x78] sm:$0xff]   ;;  %2643 = vrot.lane.b32.xlu0 %v5476_v9, %s5733_s14  ;;  %v2430_v20 = vrot.slane %v5489_v62, 1  ;;  %v743_v9 = vsel %vm5927_vm9, %v528_v55, %v742_v51  ;;  %1636 = vst.msk [vmem:[#allocation3 + $0x48] sm:$0xff] %vm1632_vm12, %v6311_v17  ;;  %v3386_v62 = vld [vmem:[#allocation3 + $0x38] sm:$0xff]  ;;  %v543_v27 = vor.u32 %v541_v49, %v540_v47  ;;  %v2159_v55 = vshrl.u32 %v5509_v42, 16 }
  0xd9   : > { %v5488_v6 = vld [vmem:[#allocation2 + $0x78] sm:$0xfe]   ;;  %v2964_v31 = vshrl.u32 %v5482_v4, 16  ;;  %v2966_v63 = vshll.u32 %v5482_v4, 16  ;;  %v2973_v19 = vrot.slane %v2971_v52, 1  ;;  %3667 = vmatmul.mubr.bf16.gmra.mrb[4].mxu0 %v3382_v3 }
  0xda   : > { %v2429_v10 = vrot.slane %v5488_v6, 1  ;;  %744 = vst [vmem:[#allocation2 + $0x8c] sm:$0x1] %v743_v9  ;;  %v5501_v4 = vld [vmem:[#allocation2 + $0x78] sm:$0xff]   ;;  %1602 = vrot.lane.b32.xlu1 %v1565_v58, %s5733_s14  ;;  %3674 = vmatprep.mubr.bf16.mxu0 %v3386_v62  ;;  %v2161_v9 = vshll.u32 %v5509_v42, 16 }
  0xdb   : > { %v6323_v0 = vpop.permute.xlu0 %3065  ;;  %v6325_v2 = vpop.permute.xlu1 %1767  ;;  %v2968_v15 = vrot.slane %v2966_v63, 1  ;;  %v5504_v63 = vld [vmem:[#allocation2 + $0x78] sm:$0xff]   ;;  %v5505_v52 = vld [vmem:[#allocation2 + $0x80] ss:$0 sps:$4 sm:$0x11]  }
  0xdc   : > { %v2431_v53 = vsel %vm1535_vm2, %v2429_v10, %v2430_v20  ;;  %1813 = vst.msk [vmem:[#allocation3 + $0x48] sm:$0xff] %vm1809_vm13, %v6325_v2  ;;  %v329_v10 = vld [vmem:[%s5884_s13 + $0x58] sm:$0xf]  ;;  %v1223_v12 = vshrl.u32 %v5504_v63, 16  ;;  %v1225_v17 = vshll.u32 %v5504_v63, 16  ;;  %v5493_v22 = vld [vmem:[#allocation2 + $0x84] sm:$0xff]  }
  0xdd   : > { %v2969_v30 = vor.u32 %v2968_v15, %v2964_v31  ;;  %v2048_v31 = vrot.slane %v2046_v61, 1  ;;  %v530_v60 = vshrl.u32 %v329_v10, 16  ;;  %v533_v56 = vshll.u32 %v329_v10, 16  ;;  %v5499_v24 = vld [vmem:[#allocation2 + $0x84] sm:$0xff]   ;;  %v5511_v3 = vld [vmem:[#allocation2 + $0x9c] sm:$0xff]  }
  0xde   : > { %1779 = vrot.lane.b32.xlu1 %v5501_v4, %s5735_s16  ;;  %v1227_v2 = vrot.slane %v1225_v17, 1  ;;  %v5502_v26 = vld [vmem:[#allocation2 + $0x84] sm:$0xfe]   ;;  %v2976_v35 = vshrl.u32 %v5499_v24, 16  ;;  %v2978_v33 = vshll.u32 %v5499_v24, 16  ;;  %922 = vst.msk [vmem:[#allocation3 + $0x138] sm:$0xff] %vm908_vm10, %v5511_v3 }
  0xdf   : > { %v6328_v8 = vpop.permute.xlu0 %2476  ;;  %v2974_v45 = vsel %vm1101_vm5, %v2969_v30, %v2973_v19  ;;  %v2049_v11 = vsel %vm1101_vm5, %v2044_v39, %v2048_v31  ;;  %v1230_v19 = vshll.u32 %v5505_v52, 16  ;;  %v532_v20 = vrot.slane %v530_v60, 7  ;;  %v5508_v34 = vld [vmem:[#allocation2 + $0x80] ss:$0 sps:$4 sm:$0x11]   ;;  %v3385_v63 = vld [vmem:[#allocation3 + $0x30] sm:$0xff] }
  0xe0   : > { %v6331_v28 = vpop.permute.xlu1 %1320  ;;  %3075 = vrot.lane.b32.xlu0 %v2974_v45, %s5735_s16  ;;  %2213 = vst.msk [vmem:[#allocation3 + $0x50] sm:$0xff] %vm908_vm10, %v2049_v11  ;;  %v1228_v30 = vor.u32 %v1227_v2, %v1223_v12  ;;  %v2432_v44 = vrot.slane %v5502_v26, 1  ;;  %v5510_v51 = vld [vmem:[#allocation2 + $0xb0] ss:$0 sps:$4 sm:$0x11]   ;;  %v1567_v61 = vrot.slane %v5508_v34, 1 }
  0xe1   : > { %2501 = vst.msk [vmem:[#allocation3 + $0x50] sm:$0xff] %vm1342_vm11, %v6274_v36  ;;  %v5500_v25 = vld [vmem:[#allocation2 + $0x8c] ss:$0 sps:$4 sm:$0x11]   ;;  %v535_v36 = vor.u32 %v533_v56, %v532_v20  ;;  %v1232_v45 = vrot.slane %v1230_v19, 1  ;;  %v536_v46 = vrot.slane %v532_v20, 4  ;;  %3675 = vmatmul.mubr.bf16.gmra.mrb[8].mxu0 %v3385_v63 }
  0xe2   : > { %2678 = vst.msk [vmem:[#allocation3 + $0x50] sm:$0xff] %vm1632_vm12, %v6304_v13  ;;  %v2983_v38 = vshll.u32 %v5500_v25, 16  ;;  %v5503_v40 = vld [vmem:[#allocation2 + $0x8c] ss:$0 sps:$4 sm:$0x11]   ;;  %v2166_v4 = vshll.u32 %v5510_v51, 16 }
  0xe3   : > { %v6333_v37 = vpop.permute.xlu0 %2653  ;;  %3110 = vst.msk [vmem:[#allocation3 + $0x50] sm:$0xff] %vm1809_vm13, %v6323_v0  ;;  %v746_v13 = vsel %vm5902_vm8, %v535_v36, %v745_v18  ;;  %v2980_v0 = vrot.slane %v2978_v33, 1  ;;  %v2433_v48 = vrot.slane %v5503_v40, 1  ;;  %v1233_v57 = vsel %vm1101_vm5, %v1228_v30, %v1232_v45  ;;  %v749_v31 = vld [vmem:[#allocation2 + $0x98] sm:$0x1]  ;;  %v5514_v21 = vld [vmem:[#allocation2 + $0x84] sm:$0xff]  }
  0xe4   : > { %v6340_v5 = vpop.permute.xlu1 %1610  ;;  %2468 = vrot.lane.b32.xlu0 %v2431_v53, %s5734_s15  ;;  %747 = vst [vmem:[#allocation2 + $0x90] sm:$0xf] %v746_v13  ;;  %v2985_v29 = vrot.slane %v2983_v38, 1  ;;  %v5507_v53 = vld [vmem:[#allocation2 + $0x78] sm:$0xfe]   ;;  %1314 = vrot.lane.b32.xlu1 %v1233_v57, %s5734_s15  ;;  %v544_v59 = vsel %vm5894_vm7, %v536_v46, %v543_v27  ;;  %v545_v39 = vrot.slane %v540_v47, 4 }
  0xe5   : > { %v2981_v54 = vor.u32 %v2980_v0, %v2976_v35  ;;  %v1566_v43 = vrot.slane %v5507_v53, 1  ;;  %748 = vst.msk [vmem:[#allocation2 + $0x94] sm:$0xf] %vm251_vm0, %v544_v59  ;;  %v2434_v62 = vsel %vm1535_vm2, %v2432_v44, %v2433_v48  ;;  %v2163_v11 = vrot.slane %v2161_v9, 1  ;;  %v5517_v19 = vld [vmem:[#allocation2 + $0x84] sm:$0xff]   ;;  %v5522_v35 = vld [vmem:[#allocation2 + $0x3c] sm:$0xff]  }
  0xe6   : > { %v2168_v17 = vrot.slane %v2166_v4, 1  ;;  %v750_v14 = vsel %vm5927_vm9, %v545_v39, %v749_v31  ;;  %1356 = vst.msk [vmem:[#allocation3 + $0x138] sm:$0xff] %vm1342_vm11, %v6331_v28  ;;  %v5518_v20 = vld [vmem:[#allocation2 + $0x8c] ss:$0 sps:$4 sm:$0x11]   ;;  %v1235_v28 = vshrl.u32 %v5517_v19, 16 }
  0xe7   : > { %v6353_v1 = vpop.permute.xlu0 %3085  ;;  %v2986_v58 = vsel %vm1101_vm5, %v2981_v54, %v2985_v29  ;;  %v1568_v10 = vsel %vm1535_vm2, %v1566_v43, %v1567_v61  ;;  %v2164_v2 = vor.u32 %v2163_v11, %v2159_v55  ;;  %751 = vst [vmem:[#allocation2 + $0x98] sm:$0x1] %v750_v14  ;;  %1646 = vst.msk [vmem:[#allocation3 + $0x138] sm:$0xff] %vm1632_vm12, %v6340_v5  ;;  %v1242_v23 = vshll.u32 %v5518_v20, 16  ;;  %v3388_v24 = vld [vmem:[#allocation3 + $0x48] sm:$0xff]  ;;  %v5524_v43 = vld [vmem:[#allocation2 + $0x30] sm:$0xff]  }
  0xe8   : > { %v6358_v6 = vpop.permute.xlu1 %1787  ;;  %2645 = vrot.lane.b32.xlu0 %v5493_v22, %s5733_s14  ;;  %1604 = vrot.lane.b32.xlu1 %v1568_v10, %s5733_s14  ;;  %v1237_v22 = vshll.u32 %v5517_v19, 16  ;;  %v5520_v46 = vld [vmem:[#allocation2 + $0x84] sm:$0xfe]   ;;  %v2051_v48 = vshrl.u32 %v5522_v35, 16  ;;  %v2053_v55 = vshll.u32 %v5522_v35, 16  ;;  %913 = vst.msk [vmem:[#allocation3 + $0x60] sm:$0xff] %vm908_vm10, %v5524_v43 }
  0xe9   : > { %v2169_v18 = vsel %vm1101_vm5, %v2164_v2, %v2168_v17  ;;  %1823 = vst.msk [vmem:[#allocation3 + $0x138] sm:$0xff] %vm1809_vm13, %v6358_v6  ;;  %v1244_v30 = vrot.slane %v1242_v23, 1  ;;  %v1569_v53 = vrot.slane %v5520_v46, 1  ;;  %v5523_v34 = vld [vmem:[#allocation2 + $0x44] ss:$0 sps:$4 sm:$0x11]  }
  0xea   : > { %v3389_v60 = vld [vmem:[#allocation3 + $0x50] sm:$0xff]  ;;  %2223 = vst.msk [vmem:[#allocation3 + $0x140] sm:$0xff] %vm908_vm10, %v2169_v18  ;;  %v1239_v6 = vrot.slane %v1237_v22, 1  ;;  %v2055_v61 = vrot.slane %v2053_v55, 1  ;;  %v2058_v9 = vshll.u32 %v5523_v34, 16  ;;  %v5525_v3 = vld [vmem:[#allocation2 + $0x9c] sm:$0xff]  }
  0xeb   : > { %v6372_v16 = vpop.permute.xlu0 %2458  ;;  %3682 = vmatprep.mubr.bf16.mxu0 %v3389_v60  ;;  %2511 = vst.msk [vmem:[#allocation3 + $0x140] sm:$0xff] %vm1342_vm11, %v6328_v8  ;;  %v5526_v39 = vld [vmem:[#allocation2 + $0xa4] ss:$0 sps:$4 sm:$0x11]   ;;  %v3002_v17 = vshll.u32 %v5525_v3, 16  ;;  %v5519_v20 = vld [vmem:[#allocation2 + $0x9c] sm:$0xff]  }
  0xec   : > { %v6367_v15 = vpop.permute.xlu1 %1302  ;;  %3077 = vrot.lane.b32.xlu0 %v2986_v58, %s5735_s16  ;;  %1781 = vrot.lane.b32.xlu1 %v5514_v21, %s5735_s16  ;;  %v5506_v5 = vld [vmem:[#allocation2 + $0x90] sm:$0xff]   ;;  %2688 = vst.msk [vmem:[#allocation3 + $0x140] sm:$0xff] %vm1632_vm12, %v6333_v37  ;;  %v1240_v40 = vor.u32 %v1239_v6, %v1235_v28  ;;  %v2056_v63 = vor.u32 %v2055_v61, %v2051_v48  ;;  %v3000_v21 = vshrl.u32 %v5525_v3, 16  ;;  %v3007_v14 = vshll.u32 %v5526_v39, 16  ;;  %v5528_v19 = vld [vmem:[#allocation2 + $0x9c] sm:$0xfe]  }
  0xed   : > { %v5512_v25 = vld [vmem:[#allocation2 + $0x90] sm:$0xff]   ;;  %3120 = vst.msk [vmem:[#allocation3 + $0x140] sm:$0xff] %vm1809_vm13, %v6353_v1  ;;  %3683 = vmatmul.mubr.bf16.gmra.mrb[12].mxu0 %v3388_v24  ;;  %v5521_v1 = vld [vmem:[#allocation2 + $0x8c] ss:$0 sps:$4 sm:$0x11]   ;;  %v2438_v23 = vrot.slane %v5528_v19, 1 }
  0xee   : > { %v5515_v36 = vld [vmem:[#allocation2 + $0x90] sm:$0xfe]   ;;  %v5513_v38 = vld [vmem:[#allocation2 + $0x98] ss:$0 sps:$4 sm:$0x11]   ;;  %v2988_v8 = vshrl.u32 %v5512_v25, 16  ;;  %v1245_v45 = vsel %vm1101_vm5, %v1240_v40, %v1244_v30 }
  0xef   : > { %v6383_v50 = vpop.permute.xlu0 %2635  ;;  %v2990_v13 = vshll.u32 %v5512_v25, 16  ;;  %v5516_v42 = vld [vmem:[#allocation2 + $0x98] ss:$0 sps:$4 sm:$0x11]   ;;  %v2995_v37 = vshll.u32 %v5513_v38, 16  ;;  %v2435_v44 = vrot.slane %v5515_v36, 1 }
  0xf0   : > { %v6379_v32 = vpop.permute.xlu1 %1592  ;;  %2470 = vrot.lane.b32.xlu0 %v2434_v62, %s5734_s15  ;;  %v2436_v29 = vrot.slane %v5516_v42, 1  ;;  %1316 = vrot.lane.b32.xlu1 %v1245_v45, %s5734_s15  ;;  %v1570_v27 = vrot.slane %v5521_v1, 1  ;;  %1347 = vst.msk [vmem:[#allocation3 + $0x60] sm:$0xff] %vm1342_vm11, %v6367_v15  ;;  %v2060_v62 = vrot.slane %v2058_v9, 1  ;;  %v5527_v10 = vld [vmem:[#allocation2 + $0x90] sm:$0xff]   ;;  %v5538_v48 = vld [vmem:[#allocation2 + $0xa8] sm:$0xff]  }
  0xf1   : > { %v2992_v0 = vrot.slane %v2990_v13, 1  ;;  %v2997_v57 = vrot.slane %v2995_v37, 1  ;;  %1637 = vst.msk [vmem:[#allocation3 + $0x60] sm:$0xff] %vm1632_vm12, %v6379_v32  ;;  %v3418_v60 = vld [vmem:[#allocation3 + $0x138] sm:$0xff]  ;;  %v3004_v32 = vrot.slane %v3002_v17, 1  ;;  %v5537_v13 = vld [vmem:[#allocation2 + $0xa8] sm:$0xff]  }
  0xf2   : > { %v1571_v59 = vsel %vm1535_vm2, %v1569_v53, %v1570_v27  ;;  %v2437_v31 = vsel %vm1535_vm2, %v2435_v44, %v2436_v29  ;;  %v2061_v2 = vsel %vm1101_vm5, %v2056_v63, %v2060_v62  ;;  %v5529_v18 = vld [vmem:[#allocation2 + $0xa4] ss:$0 sps:$4 sm:$0x11]   ;;  %v5530_v28 = vld [vmem:[#allocation2 + $0x90] sm:$0xff]   ;;  %923 = vst.msk [vmem:[#allocation3 + $0x150] sm:$0xff] %vm908_vm10, %v5537_v13  ;;  %v3014_v61 = vshll.u32 %v5538_v48, 16 }
  0xf3   : > { %v6398_v12 = vpop.permute.xlu0 %3067  ;;  %v2993_v54 = vor.u32 %v2992_v0, %v2988_v8  ;;  %2214 = vst.msk [vmem:[#allocation3 + $0x68] sm:$0xff] %vm908_vm10, %v2061_v2  ;;  %v3005_v24 = vor.u32 %v3004_v32, %v3000_v21  ;;  %v5531_v25 = vld [vmem:[#allocation2 + $0x98] ss:$0 sps:$4 sm:$0x11]   ;;  %v1247_v6 = vshrl.u32 %v5530_v28, 16  ;;  %v1249_v30 = vshll.u32 %v5530_v28, 16 }
  0xf4   : > { %v6386_v41 = vpop.permute.xlu1 %1769  ;;  %2647 = vrot.lane.b32.xlu0 %v5506_v5, %s5733_s14  ;;  %1606 = vrot.lane.b32.xlu1 %v1571_v59, %s5733_s14  ;;  %v3419_v11 = vld [vmem:[#allocation3 + $0x140] sm:$0xff]  ;;  %2502 = vst.msk [vmem:[#allocation3 + $0x68] sm:$0xff] %vm1342_vm11, %v6372_v16  ;;  %v2439_v5 = vrot.slane %v5529_v18, 1  ;;  %v1254_v35 = vshll.u32 %v5531_v25, 16  ;;  %v5533_v40 = vld [vmem:[#allocation2 + $0x90] sm:$0xfe]  }
  0xf5   : > { %v2998_v58 = vsel %vm1101_vm5, %v2993_v54, %v2997_v57  ;;  %3762 = vmatprep.mubr.bf16.mxu1 %v3419_v11  ;;  %1814 = vst.msk [vmem:[#allocation3 + $0x60] sm:$0xff] %vm1809_vm13, %v6386_v41  ;;  %v3009_v41 = vrot.slane %v3007_v14, 1  ;;  %v5535_v38 = vld [vmem:[#allocation2 + $0xb4] sm:$0xff]   ;;  %v1251_v8 = vrot.slane %v1249_v30, 1  ;;  %v1572_v46 = vrot.slane %v5533_v40, 1  ;;  %v5540_v3 = vld [vmem:[#allocation2 + $0x9c] sm:$0xff]  }
  0xf6   : > { %3763 = vmatmul.mubr.bf16.vlgmr.msra.gmra.mrb[0].mxu1 %v3418_v60  ;;  %2679 = vst.msk [vmem:[#allocation3 + $0x68] sm:$0xff] %vm1632_vm12, %v6383_v50  ;;  %v1256_v42 = vrot.slane %v1254_v35, 1  ;;  %v5534_v50 = vld [vmem:[#allocation2 + $0x98] ss:$0 sps:$4 sm:$0x11]   ;;  %v2171_v0 = vshrl.u32 %v5535_v38, 16  ;;  %v2440_v57 = vsel %vm1535_vm2, %v2438_v23, %v2439_v5 }
  0xf7   : > { %v6414_v7 = vpop.permute.xlu0 %2478  ;;  %3111 = vst.msk [vmem:[#allocation3 + $0x68] sm:$0xff] %vm1809_vm13, %v6398_v12  ;;  %v3010_v16 = vsel %vm1101_vm5, %v3005_v24, %v3009_v41  ;;  %v1252_v45 = vor.u32 %v1251_v8, %v1247_v6  ;;  %v1573_v12 = vrot.slane %v5534_v50, 1  ;;  %v5536_v29 = vld [vmem:[#allocation2 + $0xbc] ss:$0 sps:$4 sm:$0x11]   ;;  %v2173_v1 = vshll.u32 %v5535_v38, 16 }
  0xf8   : > { %v6394_v52 = vpop.permute.xlu1 %1322  ;;  %3079 = vrot.lane.b32.xlu0 %v2998_v58, %s5735_s16  ;;  %1783 = vrot.lane.b32.xlu1 %v5527_v10, %s5735_s16  ;;  %v2178_v27 = vshll.u32 %v5536_v29, 16  ;;  %v5539_v58 = vld [vmem:[#allocation2 + $0xb0] ss:$0 sps:$4 sm:$0x11]   ;;  %v3012_v59 = vshrl.u32 %v5538_v48, 16  ;;  %v5541_v62 = vld [vmem:[#allocation2 + $0x48] sm:$0xff]  }
  0xf9   : > { %1357 = vst.msk [vmem:[#allocation3 + $0x150] sm:$0xff] %vm1342_vm11, %v6394_v52  ;;  %v1257_v53 = vsel %vm1101_vm5, %v1252_v45, %v1256_v42  ;;  %v2175_v54 = vrot.slane %v2173_v1, 1  ;;  %v5532_v52 = vld [vmem:[#allocation2 + $0xa8] sm:$0xff]   ;;  %v1574_v43 = vsel %vm1535_vm2, %v1572_v46, %v1573_v12  ;;  %v3019_v63 = vshll.u32 %v5539_v58, 16  ;;  %v5544_v41 = vld [vmem:[#allocation2 + $0xc0] sm:$0xff]   ;;  %v5546_v24 = vld [vmem:[#allocation2 + $0xb4] sm:$0xff]  }
  0xfa   : > { %v2180_v9 = vrot.slane %v2178_v27, 1  ;;  %v5542_v60 = vld [vmem:[#allocation2 + $0x50] ss:$0 sps:$4 sm:$0x11]   ;;  %v2063_v2 = vshrl.u32 %v5541_v62, 16  ;;  %v2065_v19 = vshll.u32 %v5541_v62, 16 }
  0xfb   : > { %v6427_v33 = vpop.permute.xlu0 %2655  ;;  %v3021_v14 = vrot.slane %v3019_v63, 1  ;;  %v2070_v28 = vshll.u32 %v5542_v60, 16  ;;  %v5545_v23 = vld [vmem:[#allocation2 + $0xc8] ss:$0 sps:$4 sm:$0x11]   ;;  %v2185_v30 = vshll.u32 %v5544_v41, 16 }
  0xfc   : > { %v6409_v56 = vpop.permute.xlu1 %1612  ;;  %2472 = vrot.lane.b32.xlu0 %v2437_v31, %s5734_s15  ;;  %1318 = vrot.lane.b32.xlu1 %v1257_v53, %s5734_s15  ;;  %v3016_v31 = vrot.slane %v3014_v61, 1  ;;  %v2067_v18 = vrot.slane %v2065_v19, 1  ;;  %v5547_v35 = vld [vmem:[#allocation2 + $0x54] sm:$0xff]   ;;  %924 = vst.msk [vmem:[#allocation3 + $0x168] sm:$0xff] %vm908_vm10, %v5546_v24  ;;  %v5549_v38 = vld [vmem:[#allocation2 + $0x48] sm:$0xff]   ;;  %v5552_v48 = vld [vmem:[#allocation2 + $0x60] sm:$0xff]  }
  0xfd   : > { %1647 = vst.msk [vmem:[#allocation3 + $0x150] sm:$0xff] %vm1632_vm12, %v6409_v56  ;;  %v2176_v56 = vor.u32 %v2175_v54, %v2171_v0  ;;  %v2072_v6 = vrot.slane %v2070_v28, 1  ;;  %v2187_v8 = vrot.slane %v2185_v30, 1  ;;  %v2077_v42 = vshll.u32 %v5547_v35, 16  ;;  %v5551_v12 = vld [vmem:[%s7627_s1 + $0x88] sm:$0xff]   ;;  %v5556_v53 = vld [vmem:[#allocation2 + $0x54] sm:$0xff]  }
  0xfe   : > { %v3392_v39 = vld [vmem:[#allocation3 + $0x68] sm:$0xff]  ;;  %v3017_v17 = vor.u32 %v3016_v31, %v3012_v59  ;;  %v2068_v25 = vor.u32 %v2067_v18, %v2063_v2  ;;  %915 = vst.msk [vmem:[#allocation3 + $0x90] sm:$0xff] %vm908_vm10, %v5549_v38  ;;  %v2087_v27 = vshrl.u32 %v5552_v48, 16  ;;  %916 = vst.msk [vmem:[#allocation3 + $0xa8] sm:$0xff] %vm908_vm10, %v5556_v53  ;;  %v5554_v59 = vld [vmem:[#allocation2 + $0x18] sm:$0xfe]  }
  0xff   : > { %v6433_v49 = vpop.permute.xlu0 %3087  ;;  %3690 = vmatprep.mubr.bf16.mxu0 %v3392_v39  ;;  %v2181_v10 = vsel %vm1101_vm5, %v2176_v56, %v2180_v9  ;;  %v5563_v56 = vld [vmem:[#allocation2 + $0x6c] sm:$0xff]   ;;  %v5555_v39 = vld [vmem:[#allocation2 + $0x20] ss:$0 sps:$4 sm:$0x11]  }
 0x100   : > { %v6422_v26 = vpop.permute.xlu1 %1789  ;;  %2649 = vrot.lane.b32.xlu0 %v5519_v20, %s5733_s14  ;;  %1608 = vrot.lane.b32.xlu1 %v1574_v43, %s5733_s14  ;;  %2224 = vst.msk [vmem:[#allocation3 + $0x158] sm:$0xff] %vm908_vm10, %v2181_v10  ;;  %v5543_v20 = vld [vmem:[#allocation2 + $0x3c] sm:$0xff]   ;;  %v3022_v32 = vsel %vm1101_vm5, %v3017_v17, %v3021_v14  ;;  %v3300_v62 = vrot.slane %v5555_v39, 1  ;;  %v5557_v10 = vld [vmem:[#allocation2 + $0x24] sm:$0xfe]   ;;  %v2099_v24 = vshrl.u32 %v5563_v56, 16 }
 0x101   : > { %1824 = vst.msk [vmem:[#allocation3 + $0x150] sm:$0xff] %vm1809_vm13, %v6422_v26  ;;  %v3391_v26 = vld [vmem:[#allocation3 + $0x60] sm:$0xff]  ;;  %v5558_v17 = vld [vmem:[#allocation2 + $0x2c] ss:$0 sps:$4 sm:$0x11]   ;;  %v3302_v19 = vrot.slane %v5557_v10, 1 }
 0x102   : > { %3691 = vmatmul.mubr.bf16.gmra.mrb[16].mxu0 %v3391_v26  ;;  %2512 = vst.msk [vmem:[#allocation3 + $0x158] sm:$0xff] %vm1342_vm11, %v6414_v7  ;;  %v3299_v26 = vrot.slane %v5554_v59, 1  ;;  %v3303_v18 = vrot.slane %v5558_v17, 1  ;;  %v5559_v28 = vld [vmem:[#allocation2 + $0x30] sm:$0xfe]   ;;  %v5581_v59 = vld [vmem:[#allocation2 + $0x84] sm:$0xff]  }
 0x103   : > { %v6440_v4 = vpop.permute.xlu0 %2460  ;;  %2689 = vst.msk [vmem:[#allocation3 + $0x158] sm:$0xff] %vm1632_vm12, %v6427_v33  ;;  %v2183_v33 = vshrl.u32 %v5544_v41, 16  ;;  %v5574_v38 = vld [vmem:[#allocation2 + $0x6c] sm:$0xff]   ;;  %v5572_v39 = vld [vmem:[#allocation2 + $0x60] sm:$0xfe]  }
 0x104   : > { %v6430_v47 = vpop.permute.xlu1 %1304  ;;  %3081 = vrot.lane.b32.xlu0 %v3010_v16, %s5735_s16  ;;  %1785 = vrot.lane.b32.xlu1 %v5540_v3, %s5735_s16  ;;  %3121 = vst.msk [vmem:[#allocation3 + $0x158] sm:$0xff] %vm1809_vm13, %v6433_v49  ;;  %v2190_v49 = vshll.u32 %v5545_v23, 16  ;;  %v2073_v16 = vsel %vm1101_vm5, %v2068_v25, %v2072_v6  ;;  %v3301_v2 = vsel %vm1535_vm2, %v3299_v26, %v3300_v62  ;;  %v5560_v23 = vld [vmem:[#allocation2 + $0x38] ss:$0 sps:$4 sm:$0x11]   ;;  %v3317_v62 = vrot.slane %v5572_v39, 1 }
 0x105   : > { %914 = vst.msk [vmem:[#allocation3 + $0x78] sm:$0xff] %vm908_vm10, %v5543_v20  ;;  %2215 = vst.msk [vmem:[#allocation3 + $0x80] sm:$0xff] %vm908_vm10, %v2073_v16  ;;  %v2101_v20 = vshll.u32 %v5563_v56, 16  ;;  %v5561_v25 = vld [vmem:[#allocation2 + $0x3c] sm:$0xfe]  }
 0x106   : > { %1348 = vst.msk [vmem:[#allocation3 + $0x78] sm:$0xff] %vm1342_vm11, %v6430_v47  ;;  %v2075_v47 = vshrl.u32 %v5547_v35, 16  ;;  %v2192_v13 = vrot.slane %v2190_v49, 1  ;;  %2503 = vst.msk [vmem:[#allocation3 + $0x80] sm:$0xff] %vm1342_vm11, %v6440_v4  ;;  %v3306_v35 = vrot.slane %v5560_v23, 1  ;;  %v3308_v16 = vrot.slane %v5561_v25, 1 }
 0x107   : > { %v6457_v22 = vpop.permute.xlu0 %2637  ;;  %3363 = vst.msk [vmem:[#allocation3 + $0x10] sm:$0xff] %vm908_vm10, %v3301_v2  ;;  %v2103_v6 = vrot.slane %v2101_v20, 1  ;;  %v5562_v49 = vld [vmem:[#allocation2 + $0x44] ss:$0 sps:$4 sm:$0x11]   ;;  %918 = vst.msk [vmem:[#allocation3 + $0xd8] sm:$0xff] %vm908_vm10, %v5574_v38 }
 0x108   : > { %v6435_v51 = vpop.permute.xlu1 %1594  ;;  %2474 = vrot.lane.b32.xlu0 %v2440_v57, %s5734_s15  ;;  %v3421_v40 = vld [vmem:[#allocation3 + $0x150] sm:$0xff]  ;;  %2680 = vst.msk [vmem:[#allocation3 + $0x80] sm:$0xff] %vm1632_vm12, %v6457_v22 }
 0x109   : > { %1638 = vst.msk [vmem:[#allocation3 + $0x78] sm:$0xff] %vm1632_vm12, %v6435_v51  ;;  %v5548_v51 = vld [vmem:[#allocation2 + $0x5c] ss:$0 sps:$4 sm:$0x11]   ;;  %v5579_v25 = vld [vmem:[#allocation2 + $0x84] sm:$0xfe]  }
 0x10a   : > { %v2082_v46 = vshll.u32 %v5548_v51, 16  ;;  %v3326_v38 = vrot.slane %v5579_v25, 1 }
 0x10b   : > { %v6469_v37 = vpop.permute.xlu0 %3069  ;;  %v3422_v0 = vld [vmem:[#allocation3 + $0x158] sm:$0xff] }
 0x10c   : > { %v6451_v15 = vpop.permute.xlu1 %1771  ;;  %2651 = vrot.lane.b32.xlu0 %v5532_v52, %s5733_s14  ;;  %3112 = vst.msk [vmem:[#allocation3 + $0x80] sm:$0xff] %vm1809_vm13, %v6469_v37  ;;  %3770 = vmatprep.mubr.bf16.mxu1 %v3422_v0  ;;  %v2084_v29 = vrot.slane %v2082_v46, 1  ;;  %v5553_v37 = vld [vmem:[#allocation2 + $0x68] ss:$0 sps:$4 sm:$0x11]  }
 0x10d   : > { %1815 = vst.msk [vmem:[#allocation3 + $0x78] sm:$0xff] %vm1809_vm13, %v6451_v15  ;;  %v5550_v15 = vld [vmem:[%s7627_s1 + $0x80] sm:$0xff]   ;;  %3771 = vmatmul.mubr.bf16.gmra.mrb[4].mxu1 %v3421_v40  ;;  %v2094_v43 = vshll.u32 %v5553_v37, 16  ;;  %v3309_v40 = vrot.slane %v5562_v49, 1 }
 0x10e   : > { %5210 = vmatprep.subr.bf16.mxu1 %v5550_v15  ;;  %v3381_v51 = vld [vmem:[#allocation3 + $0x10] sm:$0xff] }
 0x10f   : > { %v6484_v34 = vpop.permute.xlu0 %2480  ;;  %5211 = vmatpush3.bf16.msra.mxu1 %v5550_v15  ;;  %v2096_v3 = vrot.slane %v2094_v43, 1 }
 0x110   : > { %v6463_v36 = vpop.permute.xlu1 %1324  ;;  %3083 = vrot.lane.b32.xlu0 %v3022_v32, %s5735_s16  ;;  %5212 = vmatprep.subr.bf16.mxu1 %v5551_v12  ;;  %s242_s16 = sand.u32 1, %s5722_s22  }
 0x111   : > { %1358 = vst.msk [vmem:[#allocation3 + $0x168] sm:$0xff] %vm1342_vm11, %v6463_v36  ;;  %v2188_v36 = vor.u32 %v2187_v8, %v2183_v33  ;;  %v5570_v8 = vld [vmem:[#allocation2 + $0x78] sm:$0xff]   ;;  %s7447_s12 = sshll.u32 %s242_s16, 8  ;;  %s7585_s28 = scalar_lea.sflag [#allocation5], %s242_s16 }
 0x112   : > { %v2113_v0 = vshll.u32 %v5570_v8, 16  ;;  %s7471_s17 = scalar_lea.vmem [#allocation4], %s7447_s12 }
 0x113   : > { %v6492_v11 = vpop.permute.xlu0 %2657  ;;  %v2193_v4 = vsel %vm1101_vm5, %v2188_v36, %v2192_v13  ;;  %5213 = vmatpush3.bf16.msra.mxu1 %v5551_v12  ;;  %v3395_v31 = vld [vmem:[#allocation3 + $0x80] sm:$0xff]  ;;  %v5564_v13 = vld [vmem:[#allocation2 + $0x74] ss:$0 sps:$4 sm:$0x11]   ;;  %v5566_v36 = vld [vmem:[#allocation2 + $0x48] sm:$0xfe]  }
 0x114   : > { %v6471_v44 = vpop.permute.xlu1 %1614  ;;  %2225 = vst.msk [vmem:[#allocation3 + $0x170] sm:$0xff] %vm908_vm10, %v2193_v4  ;;  %v3394_v52 = vld [vmem:[#allocation3 + $0x78] sm:$0xff]  ;;  %3698 = vmatprep.mubr.bf16.mxu0 %v3395_v31  ;;  %v2106_v15 = vshll.u32 %v5564_v13, 16  ;;  %v3311_v12 = vrot.slane %v5566_v36, 1  ;;  %v2115_v37 = vrot.slane %v2113_v0, 1  ;;  %s4716_s19 = sshll.u32 %s7471_s17, 4  ;;  %s7575_s19 = int_to_ptr.vmem [resolvable:$true] %s4716_s19 }
 0x115   : > { %1648 = vst.msk [vmem:[#allocation3 + $0x168] sm:$0xff] %vm1632_vm12, %v6471_v44  ;;  %v2079_v44 = vrot.slane %v2077_v42, 1  ;;  %3699 = vmatmul.mubr.bf16.gmra.mrb[20].mxu0 %v3394_v52  ;;  %v3310_v42 = vsel %vm1535_vm2, %v3308_v16, %v3309_v40  ;;  %v5588_v16 = vld [vmem:[#allocation2 + $0x90] sm:$0xff]   ;;  %s5668_s29 = scalar_lea.vmem %s7575_s19, 4096  ;;  %p5675_p0 = scmp.lt.s32.totalorder %s7575_s19, %s5673_s10 }
 0x116   : > { %2513 = vst.msk [vmem:[#allocation3 + $0x170] sm:$0xff] %vm1342_vm11, %v6484_v34  ;;  %v5565_v34 = vld [vmem:[#allocation2 + $0x60] sm:$0xff]   ;;  %v2108_v46 = vrot.slane %v2106_v15, 1  ;;  %v5584_v15 = vld [vmem:[#allocation2 + $0x90] sm:$0xfe]   ;;  %v2135_v36 = vshrl.u32 %v5588_v16, 16  ;;  %p5669_p11 = scmp.ne.s32.totalorder %s7575_s19, %s5668_s29  ;;  %p5676_p1 = scmp.lt.s32.totalorder %s5674_s11, %s5668_s29 }
 0x117   : > { %v3090_v5 = vpop.permute.xlu0 %3089  ;;  %v2080_v22 = vor.u32 %v2079_v44, %v2075_v47  ;;  %2690 = vst.msk [vmem:[#allocation3 + $0x170] sm:$0xff] %vm1632_vm12, %v6492_v11  ;;  %v5567_v44 = vld [vmem:[#allocation2 + $0x50] ss:$0 sps:$4 sm:$0x11]  }
 0x118   : > { %v6486_v55 = vpop.permute.xlu1 %1791  ;;  %3122 = vst.msk [vmem:[#allocation3 + $0x170] sm:$0xff] %vm1809_vm13, %v3090_v5  ;;  %v3304_v5 = vsel %vm1535_vm2, %v3302_v19, %v3303_v18  ;;  %p5670_p12 = pnand %p5669_p11, %p5815_p5  ;;  %p5677_p2 = por %p5676_p1, %p5675_p0 }
 0x119   : > { %1825 = vst.msk [vmem:[#allocation3 + $0x168] sm:$0xff] %vm1809_vm13, %v6486_v55  ;;  %v2085_v54 = vsel %vm1101_vm5, %v2080_v22, %v2084_v29  ;;  %v2089_v55 = vshll.u32 %v5552_v48, 16  ;;  %v3312_v22 = vrot.slane %v5567_v44, 1  ;;  %v2111_v29 = vshrl.u32 %v5570_v8, 16  ;;  %v5568_v48 = vld [vmem:[#allocation2 + $0x54] sm:$0xfe]  }
 0x11a   : > { %2216 = vst.msk [vmem:[#allocation3 + $0x98] sm:$0xff] %vm908_vm10, %v2085_v54  ;;  %917 = vst.msk [vmem:[#allocation3 + $0xc0] sm:$0xff] %vm908_vm10, %v5565_v34  ;;  %v3314_v43 = vrot.slane %v5568_v48, 1  ;;  %p5671_p13 = pneg %p5670_p12 }
 0x11b   : > { %v2463_v50 = vpop.permute.xlu0 %2462  ;;  %v2091_v58 = vrot.slane %v2089_v55, 1  ;;  %3364 = vst.msk [vmem:[#allocation3 + $0x28] sm:$0xff] %vm908_vm10, %v3304_v5  ;;  %3366 = vst.msk [vmem:[#allocation3 + $0x58] sm:$0xff] %vm908_vm10, %v3310_v42  ;;  %v3313_v54 = vsel %vm1535_vm2, %v3311_v12, %v3312_v22  ;;  %v5586_v12 = vld [vmem:[#allocation2 + $0x9c] sm:$0xfe]  }
 0x11c   : > { %v1307_v21 = vpop.permute.xlu1 %1306  ;;  %2504 = vst.msk [vmem:[#allocation3 + $0x98] sm:$0xff] %vm1342_vm11, %v2463_v50  ;;  %v2104_v50 = vor.u32 %v2103_v6, %v2099_v24  ;;  %p5678_p3 = pnand %p5677_p2, %p5671_p13 }
 0x11d   : > { %1349 = vst.msk [vmem:[#allocation3 + $0x90] sm:$0xff] %vm1342_vm11, %v1307_v21  ;;  %v2092_v63 = vor.u32 %v2091_v58, %v2087_v27  ;;  %v5571_v58 = vld [vmem:[#allocation2 + $0x80] ss:$0 sps:$4 sm:$0x11]  }
 0x11e   : > { %3367 = vst.msk [vmem:[#allocation3 + $0x70] sm:$0xff] %vm908_vm10, %v3313_v54  ;;  %v5589_v54 = vld [vmem:[#allocation2 + $0x98] ss:$0 sps:$4 sm:$0x11]  }
 0x11f   : > { %v2097_v21 = vsel %vm1101_vm5, %v2092_v63, %v2096_v3  ;;  %v3425_v32 = vld [vmem:[#allocation3 + $0x170] sm:$0xff]  ;;  %v2118_v3 = vshll.u32 %v5571_v58, 16  ;;  %v2142_v58 = vshll.u32 %v5589_v54, 16 }
 0x120   : > { %v1597_v7 = vpop.permute.xlu1 %1596  ;;  %v2640_v1 = vpop.permute.xlu0 %2639  ;;  %v3424_v11 = vld [vmem:[#allocation3 + $0x168] sm:$0xff]  ;;  %2217 = vst.msk [vmem:[#allocation3 + $0xb0] sm:$0xff] %vm908_vm10, %v2097_v21  ;;  %3778 = vmatprep.mubr.bf16.mxu1 %v3425_v32  ;;  %v5573_v63 = vld [vmem:[#allocation2 + $0x68] ss:$0 sps:$4 sm:$0x11]   ;;  %v2123_v21 = vshrl.u32 %v5581_v59, 16 }
 0x121   : > { %1639 = vst.msk [vmem:[#allocation3 + $0x90] sm:$0xff] %vm1632_vm12, %v1597_v7  ;;  %2681 = vst.msk [vmem:[#allocation3 + $0x98] sm:$0xff] %vm1632_vm12, %v2640_v1  ;;  %3779 = vmatmul.mubr.bf16.gmra.mrb[8].mxu1 %v3424_v11  ;;  %v3305_v7 = vrot.slane %v5559_v28, 1  ;;  %v2109_v1 = vsel %vm1101_vm5, %v2104_v50, %v2108_v46  ;;  %v2120_v26 = vrot.slane %v2118_v3, 1  ;;  %v3318_v10 = vrot.slane %v5573_v63, 1 }
 0x122   : > { %5214 = vmatprep.mubr.msk.bf16.mxu1 %vm908_vm10, %v3381_v51  ;;  %v3384_v4 = vld [vmem:[#allocation3 + $0x28] sm:$0xff]  ;;  %2218 = vst.msk [vmem:[#allocation3 + $0xc8] sm:$0xff] %vm908_vm10, %v2109_v1  ;;  %v5575_v11 = vld [vmem:[#allocation2 + $0x6c] sm:$0xfe]   ;;  %v5577_v28 = vld [vmem:[#allocation2 + $0x78] sm:$0xfe]  }
 0x123   : > { %v3307_v47 = vsel %vm1535_vm2, %v3305_v7, %v3306_v35  ;;  %v3319_v19 = vsel %vm1535_vm2, %v3317_v62, %v3318_v10  ;;  %v3320_v20 = vrot.slane %v5575_v11, 1  ;;  %v3323_v5 = vrot.slane %v5577_v28, 1  ;;  %v5594_v11 = vld [vmem:[#allocation2 + $0xbc] ss:$0 sps:$4 sm:$0x11]  }
 0x124   : > { %v1774_v45 = vpop.permute.xlu1 %1773  ;;  %v3072_v9 = vpop.permute.xlu0 %3071  ;;  %3365 = vst.msk [vmem:[#allocation3 + $0x40] sm:$0xff] %vm908_vm10, %v3307_v47  ;;  %3369 = vst.msk [vmem:[#allocation3 + $0xa0] sm:$0xff] %vm908_vm10, %v3319_v19  ;;  %v5582_v47 = vld [vmem:[#allocation2 + $0x8c] ss:$0 sps:$4 sm:$0x11]   ;;  %v3329_v46 = vrot.slane %v5584_v15, 1 }
 0x125   : > { %1816 = vst.msk [vmem:[#allocation3 + $0x90] sm:$0xff] %vm1809_vm13, %v1774_v45  ;;  %3113 = vst.msk [vmem:[#allocation3 + $0x98] sm:$0xff] %vm1809_vm13, %v3072_v9  ;;  %v2116_v9 = vor.u32 %v2115_v37, %v2111_v29  ;;  %v3393_v2 = vld [vmem:[#allocation3 + $0x70] sm:$0xff]  ;;  %v2130_v50 = vshll.u32 %v5582_v47, 16  ;;  %v2137_v1 = vshll.u32 %v5588_v16, 16  ;;  %v3332_v37 = vrot.slane %v5586_v12, 1 }
 0x126   : > { %v5587_v29 = vld [vmem:[#allocation2 + $0xa4] ss:$0 sps:$4 sm:$0x11]   ;;  %v2144_v3 = vrot.slane %v2142_v58, 1 }
 0x127   : > { %v2121_v17 = vsel %vm1101_vm5, %v2116_v9, %v2120_v26  ;;  %v2132_v44 = vrot.slane %v2130_v50, 1  ;;  %v5599_v9 = vld [vmem:[#allocation2 + $0x9c] sm:$0xff]   ;;  %v5593_v26 = vld [vmem:[#allocation2 + $0xb4] sm:$0xfe]  }
 0x128   : > { %v1309_v57 = vpop.permute.xlu1 %1308  ;;  %v2465_v60 = vpop.permute.xlu0 %2464  ;;  %2219 = vst.msk [vmem:[#allocation3 + $0xe0] sm:$0xff] %vm908_vm10, %v2121_v17  ;;  %v3338_v19 = vrot.slane %v5593_v26, 1  ;;  %v5600_v16 = vld [vmem:[#allocation2 + $0xa4] ss:$0 sps:$4 sm:$0x11]  }
 0x129   : > { %1350 = vst.msk [vmem:[#allocation3 + $0xa8] sm:$0xff] %vm1342_vm11, %v1309_v57  ;;  %2505 = vst.msk [vmem:[#allocation3 + $0xb0] sm:$0xff] %vm1342_vm11, %v2465_v60  ;;  %5215 = vmatmul.mubr.msk.bf16.vlgmr.msra.gmra.mrb[12].mxu1 %vm908_vm10, %v3384_v4  ;;  %v5569_v57 = vld [vmem:[#allocation2 + $0x5c] ss:$0 sps:$4 sm:$0x11]   ;;  %v2125_v60 = vshll.u32 %v5581_v59, 16 }
 0x12a   : > { %v3315_v34 = vrot.slane %v5569_v57, 1  ;;  %v5590_v59 = vld [vmem:[#allocation2 + $0xa8] sm:$0xfe]  }
 0x12b   : > { %v3387_v27 = vld [vmem:[#allocation3 + $0x40] sm:$0xff]  ;;  %v2127_v6 = vrot.slane %v2125_v60, 1  ;;  %v3335_v39 = vrot.slane %v5590_v59, 1 }
 0x12c   : > { %v1599_v61 = vpop.permute.xlu1 %1598  ;;  %v3397_v41 = vld [vmem:[#allocation3 + $0x90] sm:$0xff]  ;;  %v2642_v33 = vpop.permute.xlu0 %2641  ;;  %v3398_v30 = vld [vmem:[#allocation3 + $0x98] sm:$0xff]  ;;  %5218 = vmatprep.mubr.msk.bf16.mxu1 %vm908_vm10, %v3387_v27  ;;  %v3316_v56 = vsel %vm1535_vm2, %v3314_v43, %v3315_v34  ;;  %v3399_v13 = vld [vmem:[#allocation3 + $0xa0] sm:$0xff]  ;;  %v2139_v27 = vrot.slane %v2137_v1, 1 }
 0x12d   : > { %1640 = vst.msk [vmem:[#allocation3 + $0xa8] sm:$0xff] %vm1632_vm12, %v1599_v61  ;;  %2682 = vst.msk [vmem:[#allocation3 + $0xb0] sm:$0xff] %vm1632_vm12, %v2642_v33  ;;  %3706 = vmatprep.mubr.bf16.mxu0 %v3398_v30  ;;  %v3390_v61 = vld [vmem:[#allocation3 + $0x58] sm:$0xff]  ;;  %v5580_v33 = vld [vmem:[#allocation2 + $0x8c] ss:$0 sps:$4 sm:$0x11]   ;;  %v2128_v42 = vor.u32 %v2127_v6, %v2123_v21 }
 0x12e   : > { %3707 = vmatmul.mubr.bf16.gmra.mrb[24].mxu0 %v3397_v41  ;;  %3368 = vst.msk [vmem:[#allocation3 + $0x88] sm:$0xff] %vm908_vm10, %v3316_v56  ;;  %v5578_v41 = vld [vmem:[#allocation2 + $0x80] ss:$0 sps:$4 sm:$0x11]   ;;  %v5583_v30 = vld [vmem:[#allocation2 + $0x78] sm:$0xff]   ;;  %v3327_v8 = vrot.slane %v5580_v33, 1  ;;  %v2140_v34 = vor.u32 %v2139_v27, %v2135_v36 }
 0x12f   : > { %v3324_v7 = vrot.slane %v5578_v41, 1  ;;  %919 = vst.msk [vmem:[#allocation3 + $0xf0] sm:$0xff] %vm908_vm10, %v5583_v30  ;;  %v2133_v22 = vsel %vm1101_vm5, %v2128_v42, %v2132_v44  ;;  %v5591_v56 = vld [vmem:[#allocation2 + $0xb0] ss:$0 sps:$4 sm:$0x11]   ;;  %v2149_v21 = vshll.u32 %v5599_v9, 16 }
 0x130   : > { %v1776_v14 = vpop.permute.xlu1 %1775  ;;  %v3328_v51 = vsel %vm1535_vm2, %v3326_v38, %v3327_v8  ;;  %2220 = vst.msk [vmem:[#allocation3 + $0xf8] sm:$0xff] %vm908_vm10, %v2133_v22  ;;  %v3336_v63 = vrot.slane %v5591_v56, 1  ;;  %v2145_v10 = vsel %vm1101_vm5, %v2140_v34, %v2144_v3  ;;  %v5598_v6 = vld [vmem:[#allocation2 + $0xd4] ss:$0 sps:$4 sm:$0x11]   ;;  %v2154_v42 = vshll.u32 %v5600_v16, 16 }
 0x131   : > { %1817 = vst.msk [vmem:[#allocation3 + $0xa8] sm:$0xff] %vm1809_vm13, %v1776_v14  ;;  %5219 = vmatmul.mubr.msk.bf16.gmra.mrb[16].mxu1 %vm908_vm10, %v3390_v61  ;;  %v5576_v14 = vld [vmem:[#allocation2 + $0x74] ss:$0 sps:$4 sm:$0x11]   ;;  %v3325_v49 = vsel %vm1535_vm2, %v3323_v5, %v3324_v7  ;;  %v5597_v5 = vld [vmem:[#allocation2 + $0xcc] sm:$0xfe]  }
 0x132   : > { %5222 = vmatprep.mubr.msk.bf16.mxu1 %vm908_vm10, %v3393_v2  ;;  %v3321_v18 = vrot.slane %v5576_v14, 1  ;;  %3371 = vst.msk [vmem:[#allocation3 + $0xd0] sm:$0xff] %vm908_vm10, %v3325_v49  ;;  %3372 = vst.msk [vmem:[#allocation3 + $0xe8] sm:$0xff] %vm908_vm10, %v3328_v51  ;;  %v3337_v2 = vsel %vm1535_vm2, %v3335_v39, %v3336_v63  ;;  %v2147_v7 = vshrl.u32 %v5599_v9, 16  ;;  %v2151_v33 = vrot.slane %v2149_v21, 1  ;;  %v5601_v49 = vld [vmem:[#allocation2 + $0x90] sm:$0xff]  }
 0x133   : > { %2221 = vst.msk [vmem:[#allocation3 + $0x110] sm:$0xff] %vm908_vm10, %v2145_v10  ;;  %3375 = vst.msk [vmem:[#allocation3 + $0x130] sm:$0xff] %vm908_vm10, %v3337_v2  ;;  %v3345_v38 = vrot.slane %v5598_v6, 1  ;;  %v2156_v50 = vrot.slane %v2154_v42, 1  ;;  %v4018_v6 = vld [vmem:[%s7631_s5 + $0x8] sm:$0xff] }
 0x134   : > { %v1311_v55 = vpop.permute.xlu1 %1310  ;;  %v3322_v24 = vsel %vm1535_vm2, %v3320_v20, %v3321_v18  ;;  %v3339_v20 = vrot.slane %v5594_v11, 1  ;;  %v5596_v18 = vld [vmem:[#allocation2 + $0xc8] ss:$0 sps:$4 sm:$0x11]   ;;  %921 = vst.msk [vmem:[#allocation3 + $0x120] sm:$0xff] %vm908_vm10, %v5601_v49  ;;  %v2152_v51 = vor.u32 %v2151_v33, %v2147_v7  ;;  %v5736_v33 = vmov 0.0|0.0  }
 0x135   : > { %1351 = vst.msk [vmem:[#allocation3 + $0xc0] sm:$0xff] %vm1342_vm11, %v1311_v55  ;;  %v3396_v23 = vld [vmem:[#allocation3 + $0x88] sm:$0xff]  ;;  %5268 = vmatprep.subr.bf16.mxu1 %v5736_v33 }
 0x136   : > { %3370 = vst.msk [vmem:[#allocation3 + $0xb8] sm:$0xff] %vm908_vm10, %v3322_v24  ;;  %v5592_v55 = vld [vmem:[#allocation2 + $0x84] sm:$0xff]   ;;  %v3340_v41 = vsel %vm1535_vm2, %v3338_v19, %v3339_v20  ;;  %v3342_v24 = vrot.slane %v5596_v18, 1 }
 0x137   : > { %920 = vst.msk [vmem:[#allocation3 + $0x108] sm:$0xff] %vm908_vm10, %v5592_v55  ;;  %3376 = vst.msk [vmem:[#allocation3 + $0x148] sm:$0xff] %vm908_vm10, %v3340_v41 }
 0x138   : > { %v3074_v45 = vpop.permute.xlu0 %3073  ;;  %v3400_v52 = vld [vmem:[#allocation3 + $0xa8] sm:$0xff] }
 0x139   : > { %3114 = vst.msk [vmem:[#allocation3 + $0xb0] sm:$0xff] %vm1809_vm13, %v3074_v45  ;;  %5223 = vmatmul.mubr.msk.bf16.gmra.mrb[20].mxu1 %vm908_vm10, %v3396_v23  ;;  %v5585_v45 = vld [vmem:[#allocation2 + $0x98] ss:$0 sps:$4 sm:$0x11]   ;;  %v3405_v48 = vld [vmem:[#allocation3 + $0xd0] sm:$0xff] }
 0x13a   : > { %v1601_v32 = vpop.permute.xlu1 %1600  ;;  %5226 = vmatprep.mubr.msk.bf16.mxu1 %vm908_vm10, %v3399_v13  ;;  %v3330_v4 = vrot.slane %v5585_v45, 1  ;;  %v2157_v45 = vsel %vm1101_vm5, %v2152_v51, %v2156_v50 }
 0x13b   : > { %1641 = vst.msk [vmem:[#allocation3 + $0xc0] sm:$0xff] %vm1632_vm12, %v1601_v32  ;;  %v5595_v32 = vld [vmem:[#allocation2 + $0xc0] sm:$0xfe]  }
 0x13c   : > { %v2467_v53 = vpop.permute.xlu0 %2466  ;;  %v3331_v57 = vsel %vm1535_vm2, %v3329_v46, %v3330_v4  ;;  %v3341_v23 = vrot.slane %v5595_v32, 1  ;;  %2222 = vst.msk [vmem:[#allocation3 + $0x128] sm:$0xff] %vm908_vm10, %v2157_v45 }
 0x13d   : > { %2506 = vst.msk [vmem:[#allocation3 + $0xc8] sm:$0xff] %vm1342_vm11, %v2467_v53  ;;  %v3402_v0 = vld [vmem:[#allocation3 + $0xb8] sm:$0xff]  ;;  %v3333_v53 = vrot.slane %v5587_v29, 1 }
 0x13e   : > { %3373 = vst.msk [vmem:[#allocation3 + $0x100] sm:$0xff] %vm908_vm10, %v3331_v57  ;;  %v3343_v30 = vsel %vm1535_vm2, %v3341_v23, %v3342_v24  ;;  %v3420_v44 = vld [vmem:[#allocation3 + $0x148] sm:$0xff] }
 0x13f   : > { %v3334_v43 = vsel %vm1535_vm2, %v3332_v37, %v3333_v53  ;;  %3377 = vst.msk [vmem:[#allocation3 + $0x160] sm:$0xff] %vm908_vm10, %v3343_v30 }
 0x140   : > { %v3401_v31 = vld [vmem:[#allocation3 + $0xb0] sm:$0xff]  ;;  %v1778_v35 = vpop.permute.xlu1 %1777  ;;  %3374 = vst.msk [vmem:[#allocation3 + $0x118] sm:$0xff] %vm908_vm10, %v3334_v43 }
 0x141   : > { %3714 = vmatprep.mubr.bf16.mxu0 %v3401_v31  ;;  %1818 = vst.msk [vmem:[#allocation3 + $0xc0] sm:$0xff] %vm1809_vm13, %v1778_v35  ;;  %5227 = vmatmul.mubr.msk.bf16.gmra.mrb[24].mxu1 %vm908_vm10, %v3402_v0  ;;  %v3408_v31 = vld [vmem:[#allocation3 + $0xe8] sm:$0xff]  ;;  %v3344_v35 = vrot.slane %v5597_v5, 1 }
 0x142   : > { %3715 = vmatmul.mubr.bf16.gmra.mrb[28].mxu0 %v3400_v52  ;;  %5230 = vmatprep.mubr.msk.bf16.mxu1 %vm908_vm10, %v3405_v48 }
 0x143   : > { %v3346_v13 = vsel %vm1535_vm2, %v3344_v35, %v3345_v38 }
 0x144   : > { %3378 = vst.msk [vmem:[#allocation3 + $0x178] sm:$0xff] %vm908_vm10, %v3346_v13 }
 0x145   : > { %v3411_v60 = vld [vmem:[#allocation3 + $0x100] sm:$0xff] }
 0x146   : > { %v3423_v46 = vld [vmem:[#allocation3 + $0x160] sm:$0xff] }
 0x147   : > { %v3414_v47 = vld [vmem:[#allocation3 + $0x118] sm:$0xff] }
 0x148   : > { %v1313_v61 = vpop.permute.xlu1 %1312  ;;  %v3403_v14 = vld [vmem:[#allocation3 + $0xc0] sm:$0xff] }
 0x149   : > { %1352 = vst.msk [vmem:[#allocation3 + $0xd8] sm:$0xff] %vm1342_vm11, %v1313_v61  ;;  %5231 = vmatmul.mubr.msk.bf16.gmra.mrb[28].mxu1 %vm908_vm10, %v3408_v31 }
 0x14a   : > { %v2644_v40 = vpop.permute.xlu0 %2643  ;;  %5234 = vmatprep.mubr.msk.bf16.mxu1 %vm908_vm10, %v3411_v60 }
 0x14b   : > { %2683 = vst.msk [vmem:[#allocation3 + $0xc8] sm:$0xff] %vm1632_vm12, %v2644_v40  ;;  %v3417_v40 = vld [vmem:[#allocation3 + $0x130] sm:$0xff]  ;;  %v3426_v1 = vld [vmem:[#allocation3 + $0x178] sm:$0xff] }
 0x14c   : > { %v1603_v17 = vpop.permute.xlu1 %1602 }
 0x14d   : > { %1642 = vst.msk [vmem:[#allocation3 + $0xd8] sm:$0xff] %vm1632_vm12, %v1603_v17 }
 0x150   : > { %v1780_v25 = vpop.permute.xlu1 %1779 }
 0x151   : > { %1819 = vst.msk [vmem:[#allocation3 + $0xd8] sm:$0xff] %vm1809_vm13, %v1780_v25  ;;  %5235 = vmatmul.mubr.msk.bf16.gmra.mrb[32].mxu1 %vm908_vm10, %v3414_v47  ;;  %v4017_v25 = vld [vmem:[%s7631_s5] sm:$0xff] }
 0x152   : > { %v3076_v52 = vpop.permute.xlu0 %3075  ;;  %5238 = vmatprep.mubr.msk.bf16.mxu1 %vm908_vm10, %v3417_v40  ;;  %v6670_v30 = vpack.c.bf16 %v4018_v6, %v4017_v25 }
 0x153   : > { %3115 = vst.msk [vmem:[#allocation3 + $0xc8] sm:$0xff] %vm1809_vm13, %v3076_v52 }
 0x154   : > { %5270 = vmatpush3.bf16.msra.mxu1 %v6670_v30 }
 0x155   : > { %5271 = vmatprep.subr.bf16.mxu1 %v5736_v33 }
 0x156   : > { %v2469_v62 = vpop.permute.xlu0 %2468  ;;  %v1315_v15 = vpop.permute.xlu1 %1314 }
 0x157   : > { %2507 = vst.msk [vmem:[#allocation3 + $0xe0] sm:$0xff] %vm1342_vm11, %v2469_v62  ;;  %1353 = vst.msk [vmem:[#allocation3 + $0xf0] sm:$0xff] %vm1342_vm11, %v1315_v15 }
 0x158   : > { %v3406_v22 = vld [vmem:[#allocation3 + $0xd8] sm:$0xff] }
 0x159   : > { %5239 = vmatmul.mubr.msk.bf16.gmra.mrb[36].mxu1 %vm908_vm10, %v3420_v44 }
 0x15a   : > { %v3404_v28 = vld [vmem:[#allocation3 + $0xc8] sm:$0xff]  ;;  %v2646_v8 = vpop.permute.xlu0 %2645  ;;  %v1605_v0 = vpop.permute.xlu1 %1604  ;;  %5242 = vmatprep.mubr.msk.bf16.mxu1 %vm908_vm10, %v3423_v46 }
 0x15b   : > { %3722 = vmatprep.mubr.bf16.mxu0 %v3404_v28  ;;  %2684 = vst.msk [vmem:[#allocation3 + $0xe0] sm:$0xff] %vm1632_vm12, %v2646_v8  ;;  %1643 = vst.msk [vmem:[#allocation3 + $0xf0] sm:$0xff] %vm1632_vm12, %v1605_v0 }
 0x15c   : > { %3723 = vmatmul.mubr.bf16.gmra.mrb[32].mxu0 %v3403_v14 }
 0x15e   : > { %v3078_v36 = vpop.permute.xlu0 %3077  ;;  %v1782_v12 = vpop.permute.xlu1 %1781 }
 0x15f   : > { %3116 = vst.msk [vmem:[#allocation3 + $0xe0] sm:$0xff] %vm1809_vm13, %v3078_v36  ;;  %1820 = vst.msk [vmem:[#allocation3 + $0xf0] sm:$0xff] %vm1809_vm13, %v1782_v12 }
 0x161   : > { %5243 = vmatmul.mubr.msk.bf16.gmra.mrb[40].mxu1 %vm908_vm10, %v3426_v1 }
 0x162   : > { %v2471_v4 = vpop.permute.xlu0 %2470  ;;  %v1317_v57 = vpop.permute.xlu1 %1316 }
 0x163   : > { %2508 = vst.msk [vmem:[#allocation3 + $0xf8] sm:$0xff] %vm1342_vm11, %v2471_v4  ;;  %1354 = vst.msk [vmem:[#allocation3 + $0x108] sm:$0xff] %vm1342_vm11, %v1317_v57 }
 0x166   : > { %v3407_v29 = vld [vmem:[#allocation3 + $0xe0] sm:$0xff]  ;;  %v2648_v48 = vpop.permute.xlu0 %2647  ;;  %v1607_v53 = vpop.permute.xlu1 %1606  ;;  %v3409_v55 = vld [vmem:[#allocation3 + $0xf0] sm:$0xff] }
 0x167   : > { %3730 = vmatprep.mubr.bf16.mxu0 %v3407_v29  ;;  %2685 = vst.msk [vmem:[#allocation3 + $0xf8] sm:$0xff] %vm1632_vm12, %v2648_v48  ;;  %1644 = vst.msk [vmem:[#allocation3 + $0x108] sm:$0xff] %vm1632_vm12, %v1607_v53 }
 0x168   : > { %3731 = vmatmul.mubr.bf16.gmra.mrb[36].mxu0 %v3406_v22 }
 0x16a   : > { %v3080_v37 = vpop.permute.xlu0 %3079  ;;  %v1784_v27 = vpop.permute.xlu1 %1783 }
 0x16b   : > { %3117 = vst.msk [vmem:[#allocation3 + $0xf8] sm:$0xff] %vm1809_vm13, %v3080_v37  ;;  %1821 = vst.msk [vmem:[#allocation3 + $0x108] sm:$0xff] %vm1809_vm13, %v1784_v27 }
 0x16e   : > { %v2473_v54 = vpop.permute.xlu0 %2472  ;;  %v1319_v58 = vpop.permute.xlu1 %1318 }
 0x16f   : > { %2509 = vst.msk [vmem:[#allocation3 + $0x110] sm:$0xff] %vm1342_vm11, %v2473_v54  ;;  %1355 = vst.msk [vmem:[#allocation3 + $0x120] sm:$0xff] %vm1342_vm11, %v1319_v58 }
 0x172   : > { %v2650_v52 = vpop.permute.xlu0 %2649  ;;  %v3410_v43 = vld [vmem:[#allocation3 + $0xf8] sm:$0xff]  ;;  %v1609_v61 = vpop.permute.xlu1 %1608  ;;  %v3412_v56 = vld [vmem:[#allocation3 + $0x108] sm:$0xff] }
 0x173   : > { %2686 = vst.msk [vmem:[#allocation3 + $0x110] sm:$0xff] %vm1632_vm12, %v2650_v52  ;;  %3738 = vmatprep.mubr.bf16.mxu0 %v3410_v43  ;;  %1645 = vst.msk [vmem:[#allocation3 + $0x120] sm:$0xff] %vm1632_vm12, %v1609_v61 }
 0x174   : > { %3739 = vmatmul.mubr.bf16.gmra.mrb[40].mxu0 %v3409_v55 }
 0x176   : > { %v3082_v34 = vpop.permute.xlu0 %3081  ;;  %v1786_v39 = vpop.permute.xlu1 %1785 }
 0x177   : > { %3118 = vst.msk [vmem:[#allocation3 + $0x110] sm:$0xff] %vm1809_vm13, %v3082_v34  ;;  %1822 = vst.msk [vmem:[#allocation3 + $0x120] sm:$0xff] %vm1809_vm13, %v1786_v39 }
 0x17a   : > { %v2475_v59 = vpop.permute.xlu0 %2474 }
 0x17b   : > { %2510 = vst.msk [vmem:[#allocation3 + $0x128] sm:$0xff] %vm1342_vm11, %v2475_v59 }
 0x17e   : > { %v2652_v9 = vpop.permute.xlu0 %2651  ;;  %v3413_v3 = vld [vmem:[#allocation3 + $0x110] sm:$0xff]  ;;  %v3415_v63 = vld [vmem:[#allocation3 + $0x120] sm:$0xff] }
 0x17f   : > { %2687 = vst.msk [vmem:[#allocation3 + $0x128] sm:$0xff] %vm1632_vm12, %v2652_v9  ;;  %3746 = vmatprep.mubr.bf16.mxu0 %v3413_v3  ;;  %v4020_v9 = vld [vmem:[%s7631_s5 + $0x18] sm:$0xff] }
 0x180   : > { %3747 = vmatmul.mubr.bf16.gmra.mrb[44].mxu0 %v3412_v56  ;;  %v4019_v56 = vld [vmem:[%s7631_s5 + $0x10] sm:$0xff] }
 0x182   : > { %v3084_v31 = vpop.permute.xlu0 %3083 }
 0x183   : > { %3119 = vst.msk [vmem:[#allocation3 + $0x128] sm:$0xff] %vm1809_vm13, %v3084_v31  ;;  %v6698_v31 = vpack.c.bf16 %v4020_v9, %v4019_v56 }
 0x185   : > { %5273 = vmatpush3.bf16.msra.mxu1 %v6698_v31 }
 0x186   : > { %5274 = vmatprep.subr.bf16.mxu1 %v5736_v33 }
 0x18a   : > { %v3416_v26 = vld [vmem:[#allocation3 + $0x128] sm:$0xff] }
 0x18b   : > { %3754 = vmatprep.mubr.bf16.mxu0 %v3416_v26 }
 0x18c   : > { %3755 = vmatmul.mubr.bf16.gmra.mrb[48].mxu0 %v3415_v63  ;;  %v5738_v63 = vmov 0.0  }
 0x18d   : > { %5254 = vmatprep.mubr.msk.f32.mxu1 %vm5737_vm14, %v5738_v63 }
 0x1a4   : > { %v5086_v62 = vpop.f32.mrb[0].mxu0 }
 0x1a5   : > { %v5087_v10 = vpop.f32.mrb[1].mxu0 }
 0x1a6   : > { %v6651_v11 = vadd.f32 %v5087_v10, %v5086_v62  ;;  %v5089_v21 = vpop.f32.mrb[2].mxu0  ;;  %v6705_v62 = vld [vmem:[%s7628_s2] ss:$0 sm:$0xff] }
 0x1a7   : > { %v5090_v17 = vpop.f32.mrb[3].mxu0 }
 0x1a8   : > { %v6653_v14 = vadd.f32 %v5090_v17, %v5089_v21 }
 0x1aa   : > { %v3664_v6 = vadd.f32 %v6653_v14, %v6705_v62 }
 0x1ac   : > { %v5092_v60 = vpop.f32.mrb[4].mxu0 }
 0x1ad   : > { %v5093_v2 = vpop.f32.mrb[5].mxu0 }
 0x1ae   : > { %v6655_v19 = vadd.f32 %v5093_v2, %v5092_v60  ;;  %v5095_v20 = vpop.f32.mrb[6].mxu0 }
 0x1af   : > { %v5096_v32 = vpop.f32.mrb[7].mxu0 }
 0x1b0   : > { %v6657_v18 = vadd.f32 %v5096_v32, %v5095_v20  ;;  %v3669_v60 = vadd.f32 %v6655_v19, %v6705_v62  ;;  %v3661_v32 = vadd.f32 %v6651_v11, %v6705_v62 }
 0x1b4   : > { %v5098_v28 = vpop.f32.mrb[8].mxu0 }
 0x1b5   : > { %v5099_v41 = vpop.f32.mrb[9].mxu0 }
 0x1b6   : > { %v6659_v23 = vadd.f32 %v5099_v41, %v5098_v28  ;;  %v5101_v24 = vpop.f32.mrb[10].mxu0 }
 0x1b7   : > { %v5102_v5 = vpop.f32.mrb[11].mxu0 }
 0x1b8   : > { %v6661_v7 = vadd.f32 %v5102_v5, %v5101_v24  ;;  %v3672_v24 = vadd.f32 %v6657_v18, %v6705_v62 }
 0x1c0   : > { %v5104_v35 = vpop.f32.mrb[12].mxu0 }
 0x1c1   : > { %v5105_v49 = vpop.f32.mrb[13].mxu0 }
 0x1c2   : > { %v5106_v38 = vadd.f32 %v5105_v49, %v5104_v35  ;;  %v5107_v16 = vpop.f32.mrb[14].mxu0 }
 0x1c3   : > { %v5108_v8 = vpop.f32.mrb[15].mxu0 }
 0x1c4   : > { %v6674_v47 = vadd.f32 %v5108_v8, %v5107_v16  ;;  %v3685_v16 = vadd.f32 %v5106_v38, %v6705_v62  ;;  %v3680_v38 = vadd.f32 %v6661_v7, %v6705_v62 }
 0x1c9   : > { %v5164_v40 = vpop.f32.mrb[0].mxu1 }
 0x1ca   : > { %v5165_v13 = vpop.f32.mrb[1].mxu1 }
 0x1cb   : > { %v6676_v51 = vadd.f32 %v5165_v13, %v5164_v40  ;;  %v5167_v42 = vpop.f32.mrb[2].mxu1  ;;  %v3677_v40 = vadd.f32 %v6659_v23, %v6705_v62 }
 0x1cc   : > { %v5168_v50 = vpop.f32.mrb[3].mxu1 }
 0x1cd   : > { %v6678_v15 = vadd.f32 %v5168_v50, %v5167_v42  ;;  %v3688_v50 = vadd.f32 %v6674_v47, %v6705_v62 }
 0x1d5   : > { %v5110_v45 = vpop.f32.mrb[16].mxu0 }
 0x1d6   : > { %v5111_v36 = vpop.f32.mrb[17].mxu0 }
 0x1d7   : > { %v6680_v44 = vadd.f32 %v5111_v36, %v5110_v45  ;;  %v5113_v46 = vpop.f32.mrb[18].mxu0 }
 0x1d8   : > { %v5114_v0 = vpop.f32.mrb[19].mxu0 }
 0x1d9   : > { %v6682_v4 = vadd.f32 %v5114_v0, %v5113_v46  ;;  %v3693_v47 = vadd.f32 %v6680_v44, %v6705_v62 }
 0x1e0   : > { %v5170_v12 = vpop.f32.mrb[4].mxu1 }
 0x1e1   : > { %v5171_v22 = vpop.f32.mrb[5].mxu1 }
 0x1e2   : > { %v6684_v29 = vadd.f32 %v5171_v22, %v5170_v12  ;;  %v5173_v1 = vpop.f32.mrb[6].mxu1 }
 0x1e3   : > { %v5174_v48 = vpop.f32.mrb[7].mxu1 }
 0x1e4   : > { %v6686_v57 = vadd.f32 %v5174_v48, %v5173_v1 }
 0x1e8   : > { %v5116_v37 = vpop.f32.mrb[20].mxu0 }
 0x1e9   : > { %v5117_v53 = vpop.f32.mrb[21].mxu0 }
 0x1ea   : > { %v5118_v54 = vadd.f32 %v5117_v53, %v5116_v37  ;;  %v5119_v27 = vpop.f32.mrb[22].mxu0 }
 0x1eb   : > { %v5120_v55 = vpop.f32.mrb[23].mxu0 }
 0x1ec   : > { %v5121_v52 = vadd.f32 %v5120_v55, %v5119_v27  ;;  %v3701_v48 = vadd.f32 %v5118_v54, %v6705_v62 }
 0x1ee   : > { %v3704_v55 = vadd.f32 %v5121_v52, %v6705_v62 }
 0x1f4   : > { %v5176_v43 = vpop.f32.mrb[8].mxu1 }
 0x1f5   : > { %v5177_v34 = vpop.f32.mrb[9].mxu1 }
 0x1f6   : > { %v6688_v58 = vadd.f32 %v5177_v34, %v5176_v43  ;;  %v5179_v59 = vpop.f32.mrb[10].mxu1  ;;  %v3696_v34 = vadd.f32 %v6682_v4, %v6705_v62 }
 0x1f7   : > { %v5180_v61 = vpop.f32.mrb[11].mxu1 }
 0x1f8   : > { %v6696_v3 = vadd.f32 %v5180_v61, %v5179_v59 }
 0x1fc   : > { %v5216_v20 = vpop.f32.mrb[12].mxu1 }
 0x1fd   : > { %v6713_v28 = vadd.f32 %v5216_v20, %v3669_v60  ;;  %v3821_v41 = vpop.f32.mrb[13].mxu1 }
 0x1fe   : > { %v6717_v5 = vadd.f32 %v3821_v41, %v3661_v32  ;;  %v5217_v25 = vpop.f32.mrb[14].mxu1 }
 0x1ff   : > { %v6721_v35 = vadd.f32 %v5217_v25, %v3672_v24  ;;  %v3824_v19 = vpop.f32.mrb[15].mxu1  ;;  %v3951_v4 = vsel %vm908_vm10, %v6713_v28, 0.0 }
 0x200   : > { %v6723_v49 = vadd.f32 %v3824_v19, %v3664_v6  ;;  %v3948_v44 = vsel %vm908_vm10, %v6717_v5, 0.0 }
 0x201   : > { %v5122_v39 = vpop.f32.mrb[24].mxu0 }
 0x202   : > { %v5123_v26 = vpop.f32.mrb[25].mxu0  ;;  %v3949_v59 = vsel %vm908_vm10, %v6723_v49, 0.0 }
 0x203   : > { %v5124_v10 = vadd.f32 %v5123_v26, %v5122_v39  ;;  %v5125_v21 = vpop.f32.mrb[26].mxu0  ;;  %v3950_v9 = vadd.f32 %v3949_v59, %v3948_v44 }
 0x204   : > { %v5126_v17 = vpop.f32.mrb[27].mxu0  ;;  %v5220_v8 = vpop.f32.mrb[16].mxu1 }
 0x205   : > { %v5127_v2 = vadd.f32 %v5126_v17, %v5125_v21  ;;  %v6728_v18 = vadd.f32 %v5220_v8, %v3685_v16  ;;  %v3837_v42 = vpop.f32.mrb[17].mxu1  ;;  %v3709_v26 = vadd.f32 %v5124_v10, %v6705_v62  ;;  %v3952_v20 = vadd.f32 %v3951_v4, %v3950_v9 }
 0x206   : > { %v6732_v36 = vadd.f32 %v3837_v42, %v3677_v40  ;;  %v5221_v46 = vpop.f32.mrb[18].mxu1  ;;  %v3953_v10 = vsel %vm908_vm10, %v6721_v35, 0.0 }
 0x207   : > { %v6736_v12 = vadd.f32 %v5221_v46, %v3688_v50  ;;  %v3840_v22 = vpop.f32.mrb[19].mxu1  ;;  %v3712_v24 = vadd.f32 %v5127_v2, %v6705_v62  ;;  %v3954_v16 = vadd.f32 %v3953_v10, %v3952_v20  ;;  %v3768_v20 = vadd.f32 %v6678_v15, %v6705_v62 }
 0x208   : > { %v6738_v1 = vadd.f32 %v3840_v22, %v3680_v38 }
 0x209   : > { %v3961_v9 = vsel %vm908_vm10, %v6736_v12, 0.0 }
 0x20a   : > { %v3957_v50 = vsel %vm908_vm10, %v6738_v1, 0.0 }
 0x20c   : > { %v5224_v37 = vpop.f32.mrb[20].mxu1 }
 0x20d   : > { %v6743_v53 = vadd.f32 %v5224_v37, %v3701_v48  ;;  %v3853_v27 = vpop.f32.mrb[21].mxu1 }
 0x20e   : > { %v6746_v43 = vadd.f32 %v3853_v27, %v3693_v47  ;;  %v5225_v7 = vpop.f32.mrb[22].mxu1  ;;  %v3959_v47 = vsel %vm908_vm10, %v6728_v18, 0.0 }
 0x20f   : > { %v6752_v61 = vadd.f32 %v5225_v7, %v3704_v55  ;;  %v3856_v54 = vpop.f32.mrb[23].mxu1  ;;  %v3967_v15 = vsel %vm908_vm10, %v6743_v53, 0.0 }
 0x210   : > { %v6754_v56 = vadd.f32 %v3856_v54, %v3696_v34 }
 0x214   : > { %v5228_v39 = vpop.f32.mrb[24].mxu1 }
 0x215   : > { %v5128_v11 = vpop.f32.mrb[28].mxu0  ;;  %v3869_v17 = vpop.f32.mrb[25].mxu1 }
 0x216   : > { %v5129_v13 = vpop.f32.mrb[29].mxu0  ;;  %v6765_v32 = vadd.f32 %v3869_v17, %v3709_v26  ;;  %v5229_v41 = vpop.f32.mrb[26].mxu1  ;;  %v3765_v26 = vadd.f32 %v6676_v51, %v6705_v62  ;;  %v3781_v51 = vadd.f32 %v6688_v58, %v6705_v62 }
 0x217   : > { %v5130_v14 = vadd.f32 %v5129_v13, %v5128_v11  ;;  %v5131_v45 = vpop.f32.mrb[30].mxu0  ;;  %v3872_v6 = vpop.f32.mrb[27].mxu1  ;;  %v3955_v11 = vsel %vm908_vm10, %v6732_v36, 0.0 }
 0x218   : > { %v5132_v0 = vpop.f32.mrb[31].mxu0  ;;  %v6770_v19 = vadd.f32 %v3872_v6, %v3712_v24  ;;  %v3956_v13 = vadd.f32 %v3955_v11, %v3954_v16  ;;  %v3965_v6 = vsel %vm908_vm10, %v6754_v56, 0.0 }
 0x219   : > { %v5133_v23 = vadd.f32 %v5132_v0, %v5131_v45  ;;  %v3717_v52 = vadd.f32 %v5130_v14, %v6705_v62 }
 0x21a   : > { %v3958_v0 = vadd.f32 %v3957_v50, %v3956_v13 }
 0x21b   : > { %v6762_v21 = vadd.f32 %v5228_v39, %v3717_v52  ;;  %v3720_v60 = vadd.f32 %v5133_v23, %v6705_v62  ;;  %v3963_v39 = vsel %vm908_vm10, %v6746_v43, 0.0 }
 0x21c   : > { %v5232_v8 = vpop.f32.mrb[28].mxu1  ;;  %v3960_v34 = vadd.f32 %v3959_v47, %v3958_v0  ;;  %v3784_v0 = vadd.f32 %v6696_v3, %v6705_v62  ;;  %v3776_v47 = vadd.f32 %v6686_v57, %v6705_v62 }
 0x21d   : > { %v6768_v25 = vadd.f32 %v5229_v41, %v3720_v60  ;;  %v3885_v40 = vpop.f32.mrb[29].mxu1 }
 0x21e   : > { %v5233_v42 = vpop.f32.mrb[30].mxu1  ;;  %v3962_v52 = vadd.f32 %v3961_v9, %v3960_v34 }
 0x21f   : > { %v3888_v14 = vpop.f32.mrb[31].mxu1 }
 0x220   : > { %v3964_v41 = vadd.f32 %v3963_v39, %v3962_v52  ;;  %v3969_v39 = vsel %vm908_vm10, %v6752_v61, 0.0 }
 0x222   : > { %v3966_v11 = vadd.f32 %v3965_v6, %v3964_v41 }
 0x224   : > { %v6779_v37 = vpop.f32.mrb[32].mxu1 }
 0x225   : > { %v3901_v7 = vpop.f32.mrb[33].mxu1 }
 0x226   : > { %v6786_v59 = vpop.f32.mrb[34].mxu1 }
 0x227   : > { %v3904_v44 = vpop.f32.mrb[35].mxu1 }
 0x22c   : > { %v5240_v4 = vpop.f32.mrb[36].mxu1 }
 0x22d   : > { %v6796_v17 = vadd.f32 %v5240_v4, %v3765_v26  ;;  %v6798_v60 = vpop.f32.mrb[37].mxu1 }
 0x22e   : > { %v5241_v24 = vpop.f32.mrb[38].mxu1 }
 0x22f   : > { %v5134_v2 = vpop.f32.mrb[32].mxu0  ;;  %v6804_v10 = vadd.f32 %v5241_v24, %v3768_v20  ;;  %v6806_v16 = vpop.f32.mrb[39].mxu1  ;;  %v3971_v20 = vsel %vm908_vm10, %v6765_v32, 0.0  ;;  %v3973_v24 = vsel %vm908_vm10, %v6770_v19, 0.0 }
 0x230   : > { %v5135_v45 = vpop.f32.mrb[33].mxu0 }
 0x231   : > { %v5136_v46 = vadd.f32 %v5135_v45, %v5134_v2  ;;  %v5137_v38 = vpop.f32.mrb[34].mxu0  ;;  %v3773_v2 = vadd.f32 %v6684_v29, %v6705_v62 }
 0x232   : > { %v5138_v22 = vpop.f32.mrb[35].mxu0 }
 0x233   : > { %v5139_v23 = vadd.f32 %v5138_v22, %v5137_v38  ;;  %v3725_v48 = vadd.f32 %v5136_v46, %v6705_v62  ;;  %v3968_v22 = vadd.f32 %v3967_v15, %v3966_v11  ;;  %v3975_v11 = vsel %vm908_vm10, %v6762_v21, 0.0 }
 0x234   : > { %v5244_v50 = vpop.f32.mrb[40].mxu1  ;;  %v3977_v15 = vsel %vm908_vm10, %v6768_v25, 0.0 }
 0x235   : > { %v6783_v27 = vadd.f32 %v3885_v40, %v3725_v48  ;;  %v3728_v55 = vadd.f32 %v5139_v23, %v6705_v62  ;;  %v6814_v46 = vadd.f32 %v5244_v50, %v3781_v51  ;;  %v3933_v38 = vpop.f32.mrb[41].mxu1  ;;  %v3970_v4 = vadd.f32 %v3969_v39, %v3968_v22 }
 0x236   : > { %v6818_v48 = vadd.f32 %v3933_v38, %v3773_v2  ;;  %v5245_v58 = vpop.f32.mrb[42].mxu1 }
 0x237   : > { %v6788_v54 = vadd.f32 %v3888_v14, %v3728_v55  ;;  %v6823_v34 = vadd.f32 %v5245_v58, %v3784_v0  ;;  %v3936_v9 = vpop.f32.mrb[43].mxu1  ;;  %v3972_v41 = vadd.f32 %v3971_v20, %v3970_v4  ;;  %v3979_v38 = vsel %vm908_vm10, %v6783_v27, 0.0 }
 0x238   : > { %v6825_v52 = vadd.f32 %v3936_v9, %v3776_v47 }
 0x239   : > { %v3974_v6 = vadd.f32 %v3973_v24, %v3972_v41  ;;  %v3981_v47 = vsel %vm908_vm10, %v6788_v54, 0.0 }
 0x23b   : > { %v5140_v40 = vpop.f32.mrb[36].mxu0  ;;  %v3976_v51 = vadd.f32 %v3975_v11, %v3974_v6 }
 0x23c   : > { %v5141_v13 = vpop.f32.mrb[37].mxu0 }
 0x23d   : > { %v5142_v14 = vadd.f32 %v5141_v13, %v5140_v40  ;;  %v5143_v45 = vpop.f32.mrb[38].mxu0 }
 0x23e   : > { %v5144_v23 = vpop.f32.mrb[39].mxu0 }
 0x23f   : > { %v3733_v29 = vadd.f32 %v5142_v14, %v6705_v62  ;;  %v5145_v55 = vadd.f32 %v5144_v23, %v5143_v45  ;;  %v3978_v45 = vadd.f32 %v3977_v15, %v3976_v51 }
 0x241   : > { %v6829_v3 = vadd.f32 %v5232_v8, %v3733_v29  ;;  %v3736_v26 = vadd.f32 %v5145_v55, %v6705_v62  ;;  %v3980_v58 = vadd.f32 %v3979_v38, %v3978_v45 }
 0x243   : > { %v6834_v57 = vadd.f32 %v5233_v42, %v3736_v26  ;;  %v3983_v29 = vsel %vm908_vm10, %v6829_v3, 0.0  ;;  %v3982_v9 = vadd.f32 %v3981_v47, %v3980_v58 }
 0x245   : > { %v3984_v20 = vadd.f32 %v3983_v29, %v3982_v9 }
 0x247   : > { %v5146_v40 = vpop.f32.mrb[40].mxu0 }
 0x248   : > { %v5147_v8 = vpop.f32.mrb[41].mxu0 }
 0x249   : > { %v5148_v13 = vadd.f32 %v5147_v8, %v5146_v40  ;;  %v5149_v50 = vpop.f32.mrb[42].mxu0 }
 0x24a   : > { %v5150_v2 = vpop.f32.mrb[43].mxu0 }
 0x24b   : > { %v3741_v42 = vadd.f32 %v5148_v13, %v6705_v62  ;;  %v5151_v14 = vadd.f32 %v5150_v2, %v5149_v50 }
 0x24d   : > { %v6845_v0 = vadd.f32 %v3901_v7, %v3741_v42  ;;  %v3744_v22 = vadd.f32 %v5151_v14, %v6705_v62  ;;  %v3985_v7 = vsel %vm908_vm10, %v6834_v57, 0.0 }
 0x24e   : > { %v3986_v51 = vadd.f32 %v3985_v7, %v3984_v20  ;;  %v3999_v7 = vsel %vm908_vm10, %v6796_v17, 0.0 }
 0x24f   : > { %v6848_v23 = vadd.f32 %v3904_v44, %v3744_v22  ;;  %v3987_v6 = vsel %vm908_vm10, %v6845_v0, 0.0 }
 0x250   : > { %v3988_v13 = vadd.f32 %v3987_v6, %v3986_v51  ;;  %v4007_v51 = vsel %vm908_vm10, %v6814_v46, 0.0 }
 0x251   : > { %v3989_v50 = vsel %vm908_vm10, %v6848_v23, 0.0 }
 0x252   : > { %v3990_v42 = vadd.f32 %v3989_v50, %v3988_v13  ;;  %v4009_v50 = vsel %vm908_vm10, %v6823_v34, 0.0 }
 0x253   : > { %v5152_v55 = vpop.f32.mrb[44].mxu0 }
 0x254   : > { %v5153_v39 = vpop.f32.mrb[45].mxu0 }
 0x255   : > { %v5154_v26 = vadd.f32 %v5153_v39, %v5152_v55  ;;  %v5155_v4 = vpop.f32.mrb[46].mxu0 }
 0x256   : > { %v5156_v41 = vpop.f32.mrb[47].mxu0 }
 0x257   : > { %v3749_v44 = vadd.f32 %v5154_v26, %v6705_v62  ;;  %v5157_v24 = vadd.f32 %v5156_v41, %v5155_v4 }
 0x259   : > { %v6860_v11 = vadd.f32 %v6779_v37, %v3749_v44  ;;  %v3752_v40 = vadd.f32 %v5157_v24, %v6705_v62  ;;  %v4003_v24 = vsel %vm908_vm10, %v6818_v48, 0.0 }
 0x25b   : > { %v6864_v8 = vadd.f32 %v6786_v59, %v3752_v40  ;;  %v3991_v2 = vsel %vm908_vm10, %v6860_v11, 0.0 }
 0x25c   : > { %v3992_v37 = vadd.f32 %v3991_v2, %v3990_v42 }
 0x25d   : > { %v3993_v58 = vsel %vm908_vm10, %v6864_v8, 0.0 }
 0x25e   : > { %v3994_v9 = vadd.f32 %v3993_v58, %v3992_v37 }
 0x25f   : > { %v5158_v15 = vpop.f32.mrb[48].mxu0 }
 0x260   : > { %v5159_v14 = vpop.f32.mrb[49].mxu0 }
 0x261   : > { %v5160_v45 = vadd.f32 %v5159_v14, %v5158_v15  ;;  %v5161_v38 = vpop.f32.mrb[50].mxu0 }
 0x262   : > { %v5162_v22 = vpop.f32.mrb[51].mxu0 }
 0x263   : > { %v3757_v59 = vadd.f32 %v5160_v45, %v6705_v62  ;;  %v5163_v47 = vadd.f32 %v5162_v22, %v5161_v38  ;;  %v4094_v22 = vlaneseq }
 0x265   : > { %v6874_v29 = vadd.f32 %v6798_v60, %v3757_v59  ;;  %v3760_v55 = vadd.f32 %v5163_v47, %v6705_v62  ;;  %v4001_v60 = vsel %vm908_vm10, %v6804_v10, 0.0  ;;  %v6902_v58 = vshrl.u32 %v4094_v22, 7 }
 0x267   : > { %v3995_v39 = vsel %vm908_vm10, %v6874_v29, 0.0  ;;  %v6880_v26 = vadd.f32 %v6806_v16, %v3760_v55  ;;  %v4005_v16 = vsel %vm908_vm10, %v6825_v52, 0.0  ;;  %v4096_v55 = vsub.s32 0, %v6902_v58 }
 0x268   : > { %v3996_v4 = vadd.f32 %v3995_v39, %v3994_v9 }
 0x269   : > { %v3997_v20 = vsel %vm908_vm10, %v6880_v26, 0.0 }
 0x26a   : > { %v3998_v41 = vadd.f32 %v3997_v20, %v3996_v4 }
 0x26c   : > { %v4000_v44 = vadd.f32 %v3999_v7, %v3998_v41 }
 0x26e   : > { %v4002_v62 = vadd.f32 %v4001_v60, %v4000_v44 }
 0x270   : > { %v4004_v6 = vadd.f32 %v4003_v24, %v4002_v62 }
 0x272   : > { %v4006_v40 = vadd.f32 %v4005_v16, %v4004_v6 }
 0x274   : > { %v4008_v13 = vadd.f32 %v4007_v51, %v4006_v40 }
 0x276   : > { %v4010_v2 = vadd.f32 %v4009_v50, %v4008_v13 }
 0x278   : > { %v4011_v15 = vrot.slane %v4010_v2, 4 }
 0x27a   : > { %v4012_v42 = vadd.f32 %v4011_v15, %v4010_v2 }
 0x27c   : > { %v4013_v14 = vrot.slane %v4012_v42, 2 }
 0x27e   : > { %v4014_v45 = vadd.f32 %v4013_v14, %v4012_v42 }
 0x280   : > { %v4015_v38 = vrot.slane %v4014_v45, 1 }
 0x282   : > { %v4016_v37 = vadd.f32 %v4015_v38, %v4014_v45 }
 0x284   : > { %5255 = vmatmul.mubr.msk.f32.vlgmr.msra.gmra.mrb[44].mxu1 %vm908_vm10, %v4016_v37 }
 0x285   : > { %5276 = vmatpush3.bf16.msra.mxu1 %v6670_v30  ;;  %5265 = vmatprep.mubr.msk.f32.mxu1 %vm5737_vm14, %v5738_v63 }
 0x286   : > { %5277 = vmatprep.subr.bf16.mxu1 %v5736_v33 }
 0x289   : > { %5279 = vmatpush3.bf16.msra.mxu1 %v6698_v31 }
 0x357   : > { %v4090_v59 = vpop.f32.mrb[44].mxu1 }
 0x358   : > { %v5256_v47 = vpop.f32.mrb[45].mxu1  ;;  %v6907_v9 = vrot.slane %v4090_v59, %v4096_v55 }
 0x35a   : > { %v6911_v30 = vsub.f32 %v6717_v5, %v6907_v9  ;;  %v6915_v33 = vsub.f32 %v6723_v49, %v6907_v9  ;;  %v6919_v31 = vsub.f32 %v6713_v28, %v6907_v9  ;;  %v6923_v63 = vsub.f32 %v6721_v35, %v6907_v9 }
 0x35b   : > { %v6931_v5 = vsub.f32 %v6732_v36, %v6907_v9  ;;  %v6937_v28 = vsub.f32 %v6738_v1, %v6907_v9  ;;  %v6945_v44 = vsub.f32 %v6728_v18, %v6907_v9  ;;  %v6952_v1 = vsub.f32 %v6736_v12, %v6907_v9 }
 0x35c   : > { %v4130_v39 = vmul.f32 %v6911_v30, %v6911_v30  ;;  %v4131_v4 = vmul.f32 %v6915_v33, %v6915_v33  ;;  %v4132_v49 = vmul.f32 %v6919_v31, %v6919_v31  ;;  %v4133_v35 = vmul.f32 %v6923_v63, %v6923_v63 }
 0x35d   : > { %v4134_v36 = vmul.f32 %v6931_v5, %v6931_v5  ;;  %v4135_v24 = vmul.f32 %v6937_v28, %v6937_v28  ;;  %v6959_v18 = vsub.f32 %v6746_v43, %v6907_v9  ;;  %v4136_v40 = vmul.f32 %v6945_v44, %v6945_v44 }
 0x35e   : > { %v4162_v20 = vsel %vm908_vm10, %v4130_v39, 0.0  ;;  %v4163_v41 = vsel %vm908_vm10, %v4131_v4, 0.0  ;;  %v4165_v60 = vsel %vm908_vm10, %v4132_v49, 0.0  ;;  %v4167_v6 = vsel %vm908_vm10, %v4133_v35, 0.0 }
 0x35f   : > { %v4164_v7 = vadd.f32 %v4163_v41, %v4162_v20  ;;  %v4169_v51 = vsel %vm908_vm10, %v4134_v36, 0.0  ;;  %v6966_v12 = vsub.f32 %v6754_v56, %v6907_v9  ;;  %v4137_v50 = vmul.f32 %v6952_v1, %v6952_v1 }
 0x360   : > { %v4171_v2 = vsel %vm908_vm10, %v4135_v24, 0.0  ;;  %v6973_v43 = vsub.f32 %v6743_v53, %v6907_v9  ;;  %v4138_v42 = vmul.f32 %v6959_v18, %v6959_v18  ;;  %v4173_v14 = vsel %vm908_vm10, %v4136_v40, 0.0 }
 0x361   : > { %v4166_v62 = vadd.f32 %v4165_v60, %v4164_v7  ;;  %v6980_v56 = vsub.f32 %v6752_v61, %v6907_v9  ;;  %v4139_v38 = vmul.f32 %v6966_v12, %v6966_v12  ;;  %v4175_v37 = vsel %vm908_vm10, %v4137_v50, 0.0 }
 0x362   : > { %v6987_v53 = vsub.f32 %v6765_v32, %v6907_v9  ;;  %v4140_v59 = vmul.f32 %v6973_v43, %v6973_v43  ;;  %v4177_v47 = vsel %vm908_vm10, %v4138_v42, 0.0  ;;  %v6994_v61 = vsub.f32 %v6770_v19, %v6907_v9 }
 0x363   : > { %v4168_v16 = vadd.f32 %v4167_v6, %v4166_v62  ;;  %v4141_v4 = vmul.f32 %v6980_v56, %v6980_v56  ;;  %v4179_v49 = vsel %vm908_vm10, %v4139_v38, 0.0  ;;  %v7001_v32 = vsub.f32 %v6762_v21, %v6907_v9 }
 0x364   : > { %v4142_v20 = vmul.f32 %v6987_v53, %v6987_v53  ;;  %v4181_v41 = vsel %vm908_vm10, %v4140_v59, 0.0  ;;  %v7008_v19 = vsub.f32 %v6768_v25, %v6907_v9  ;;  %v4143_v36 = vmul.f32 %v6994_v61, %v6994_v61 }
 0x365   : > { %v4170_v13 = vadd.f32 %v4169_v51, %v4168_v16  ;;  %v4183_v60 = vsel %vm908_vm10, %v4141_v4, 0.0  ;;  %v7015_v21 = vsub.f32 %v6783_v27, %v6907_v9  ;;  %v4144_v24 = vmul.f32 %v7001_v32, %v7001_v32 }
 0x366   : > { %v4185_v6 = vsel %vm908_vm10, %v4142_v20, 0.0  ;;  %v7022_v25 = vsub.f32 %v6788_v54, %v6907_v9  ;;  %v4145_v40 = vmul.f32 %v7008_v19, %v7008_v19  ;;  %v4187_v51 = vsel %vm908_vm10, %v4143_v36, 0.0 }
 0x367   : > { %v4172_v15 = vadd.f32 %v4171_v2, %v4170_v13  ;;  %v7029_v27 = vsub.f32 %v6829_v3, %v6907_v9  ;;  %v4146_v50 = vmul.f32 %v7015_v21, %v7015_v21  ;;  %v4189_v2 = vsel %vm908_vm10, %v4144_v24, 0.0 }
 0x368   : > { %v7036_v54 = vsub.f32 %v6834_v57, %v6907_v9  ;;  %v4147_v42 = vmul.f32 %v7022_v25, %v7022_v25  ;;  %v7043_v3 = vsub.f32 %v6845_v0, %v6907_v9  ;;  %v7050_v57 = vsub.f32 %v6848_v23, %v6907_v9 }
 0x369   : > { %v4174_v45 = vadd.f32 %v4173_v14, %v4172_v15  ;;  %v4191_v14 = vsel %vm908_vm10, %v4145_v40, 0.0  ;;  %v4148_v38 = vmul.f32 %v7029_v27, %v7029_v27  ;;  %v7057_v0 = vsub.f32 %v6860_v11, %v6907_v9 }
 0x36a   : > { %v4149_v59 = vmul.f32 %v7036_v54, %v7036_v54  ;;  %v4150_v4 = vmul.f32 %v7043_v3, %v7043_v3  ;;  %v7064_v23 = vsub.f32 %v6864_v8, %v6907_v9  ;;  %v4151_v20 = vmul.f32 %v7050_v57, %v7050_v57 }
 0x36b   : > { %v4176_v22 = vadd.f32 %v4175_v37, %v4174_v45  ;;  %v4193_v37 = vsel %vm908_vm10, %v4146_v50, 0.0  ;;  %v7071_v11 = vsub.f32 %v6874_v29, %v6907_v9  ;;  %v4152_v36 = vmul.f32 %v7057_v0, %v7057_v0 }
 0x36c   : > { %v7078_v8 = vsub.f32 %v6880_v26, %v6907_v9  ;;  %v4153_v24 = vmul.f32 %v7064_v23, %v7064_v23  ;;  %v7085_v29 = vsub.f32 %v6796_v17, %v6907_v9  ;;  %v7092_v26 = vsub.f32 %v6804_v10, %v6907_v9 }
 0x36d   : > { %v4178_v39 = vadd.f32 %v4177_v47, %v4176_v22  ;;  %v4195_v47 = vsel %vm908_vm10, %v4147_v42, 0.0  ;;  %v4154_v40 = vmul.f32 %v7071_v11, %v7071_v11  ;;  %v7099_v17 = vsub.f32 %v6818_v48, %v6907_v9 }
 0x36e   : > { %v4155_v50 = vmul.f32 %v7078_v8, %v7078_v8  ;;  %v4156_v42 = vmul.f32 %v7085_v29, %v7085_v29  ;;  %v7106_v10 = vsub.f32 %v6825_v52, %v6907_v9  ;;  %v7113_v48 = vsub.f32 %v6814_v46, %v6907_v9 }
 0x36f   : > { %v4180_v35 = vadd.f32 %v4179_v49, %v4178_v39  ;;  %v4197_v49 = vsel %vm908_vm10, %v4148_v38, 0.0  ;;  %v4157_v38 = vmul.f32 %v7092_v26, %v7092_v26  ;;  %v4129_v52 = vsub.f32 %v6823_v34, %v6907_v9 }
 0x371   : > { %v4182_v7 = vadd.f32 %v4181_v41, %v4180_v35  ;;  %v4199_v41 = vsel %vm908_vm10, %v4149_v59, 0.0  ;;  %v4158_v59 = vmul.f32 %v7099_v17, %v7099_v17 }
 0x373   : > { %v4184_v62 = vadd.f32 %v4183_v60, %v4182_v7  ;;  %v4201_v60 = vsel %vm908_vm10, %v4150_v4, 0.0  ;;  %v4159_v4 = vmul.f32 %v7106_v10, %v7106_v10  ;;  %v4217_v46 = vsel %vm908_vm10, %v4158_v59, 0.0 }
 0x375   : > { %v4186_v16 = vadd.f32 %v4185_v6, %v4184_v62  ;;  %v4203_v6 = vsel %vm908_vm10, %v4151_v20, 0.0  ;;  %v4160_v20 = vmul.f32 %v7113_v48, %v7113_v48 }
 0x377   : > { %v4188_v13 = vadd.f32 %v4187_v51, %v4186_v16  ;;  %v4205_v51 = vsel %vm908_vm10, %v4152_v36, 0.0  ;;  %v4219_v36 = vsel %vm908_vm10, %v4159_v4, 0.0 }
 0x379   : > { %v4190_v15 = vadd.f32 %v4189_v2, %v4188_v13  ;;  %v4207_v2 = vsel %vm908_vm10, %v4153_v24, 0.0 }
 0x37b   : > { %v4192_v45 = vadd.f32 %v4191_v14, %v4190_v15  ;;  %v4209_v14 = vsel %vm908_vm10, %v4154_v40, 0.0 }
 0x37d   : > { %v4194_v22 = vadd.f32 %v4193_v37, %v4192_v45  ;;  %v4211_v37 = vsel %vm908_vm10, %v4155_v50, 0.0 }
 0x37f   : > { %v4196_v39 = vadd.f32 %v4195_v47, %v4194_v22  ;;  %v4213_v47 = vsel %vm908_vm10, %v4156_v42, 0.0 }
 0x381   : > { %v4198_v35 = vadd.f32 %v4197_v49, %v4196_v39  ;;  %v4215_v49 = vsel %vm908_vm10, %v4157_v38, 0.0 }
 0x383   : > { %v4200_v7 = vadd.f32 %v4199_v41, %v4198_v35 }
 0x385   : > { %v4202_v62 = vadd.f32 %v4201_v60, %v4200_v7  ;;  %v4161_v7 = vmul.f32 %v4129_v52, %v4129_v52 }
 0x387   : > { %v4204_v16 = vadd.f32 %v4203_v6, %v4202_v62  ;;  %v4221_v62 = vsel %vm908_vm10, %v4160_v20, 0.0  ;;  %v4223_v34 = vsel %vm908_vm10, %v4161_v7, 0.0 }
 0x389   : > { %v4206_v13 = vadd.f32 %v4205_v51, %v4204_v16 }
 0x38b   : > { %v4208_v15 = vadd.f32 %v4207_v2, %v4206_v13 }
 0x38d   : > { %v4210_v45 = vadd.f32 %v4209_v14, %v4208_v15 }
 0x38f   : > { %v4212_v22 = vadd.f32 %v4211_v37, %v4210_v45  ;;  %v4305_v45 = vld [vmem:[%s7629_s3] sm:$0x1] }
 0x391   : > { %v4214_v39 = vadd.f32 %v4213_v47, %v4212_v22 }
 0x393   : > { %v4216_v35 = vadd.f32 %v4215_v49, %v4214_v39 }
 0x395   : > { %v4218_v41 = vadd.f32 %v4217_v46, %v4216_v35 }
 0x397   : > { %v4220_v60 = vadd.f32 %v4219_v36, %v4218_v41 }
 0x399   : > { %v4222_v24 = vadd.f32 %v4221_v62, %v4220_v60 }
 0x39b   : > { %v4224_v9 = vadd.f32 %v4223_v34, %v4222_v24 }
 0x39d   : > { %v4225_v6 = vrot.slane %v4224_v9, 4 }
 0x39f   : > { %v4226_v16 = vadd.f32 %v4225_v6, %v4224_v9 }
 0x3a1   : > { %v4227_v40 = vrot.slane %v4226_v16, 2 }
 0x3a3   : > { %v4228_v51 = vadd.f32 %v4227_v40, %v4226_v16 }
 0x3a5   : > { %v4229_v13 = vrot.slane %v4228_v51, 1 }
 0x3a7   : > { %v4230_v50 = vadd.f32 %v4229_v13, %v4228_v51 }
 0x3a9   : > { %5266 = vmatmul.mubr.msk.f32.vlgmr.msra.gmra.mrb[46].mxu1 %vm908_vm10, %v4230_v50 }
 0x47c   : > { %v4300_v2 = vpop.f32.mrb[46].mxu1 }
 0x47d   : > { %v5267_v15 = vpop.f32.mrb[47].mxu1  ;;  %v4301_v42 = vadd.f32 1e-05, %v4300_v2 }
 0x47f   : > { %5602 = vrsqrt.f32 %v4301_v42 }
 0x489   : > { %v5603_v14 = vpop.eup %5602 }
 0x48a   : > { %v4306_v38 = vmul.f32 %v5603_v14, %v4305_v45 }
 0x48c   : > { %v4310_v37 = vrot.slane %v4306_v38, %v4096_v55 }
 0x48e   : > { %v4311_v22 = vmul.f32 %v4310_v37, %v6911_v30  ;;  %v4312_v59 = vmul.f32 %v4310_v37, %v6915_v33  ;;  %v4313_v47 = vmul.f32 %v4310_v37, %v6919_v31  ;;  %v4314_v39 = vmul.f32 %v4310_v37, %v6923_v63 }
 0x48f   : > { %v4315_v4 = vmul.f32 %v4310_v37, %v6931_v5  ;;  %v4316_v49 = vmul.f32 %v4310_v37, %v6937_v28  ;;  %v4317_v35 = vmul.f32 %v4310_v37, %v6945_v44  ;;  %v4318_v20 = vmul.f32 %v4310_v37, %v6952_v1  ;;  %v7155_v44 = vld [vmem:[%s7630_s4] ss:$0 sm:$0xff] }
 0x490   : > { %v4319_v46 = vmul.f32 %v4310_v37, %v6959_v18  ;;  %v4320_v58 = vmul.f32 %v4310_v37, %v6966_v12  ;;  %v4321_v55 = vmul.f32 %v4310_v37, %v6973_v43  ;;  %v4322_v30 = vmul.f32 %v4310_v37, %v6980_v56 }
 0x491   : > { %v4323_v33 = vmul.f32 %v4310_v37, %v6987_v53  ;;  %v4324_v31 = vmul.f32 %v4310_v37, %v6994_v61  ;;  %v4325_v63 = vmul.f32 %v4310_v37, %v7001_v32  ;;  %v4326_v5 = vmul.f32 %v4310_v37, %v7008_v19 }
 0x492   : > { %v4327_v28 = vmul.f32 %v4310_v37, %v7015_v21  ;;  %v4328_v1 = vmul.f32 %v4310_v37, %v7022_v25  ;;  %v4329_v18 = vmul.f32 %v4310_v37, %v7029_v27  ;;  %v4330_v12 = vmul.f32 %v4310_v37, %v7036_v54 }
 0x493   : > { %v4331_v43 = vmul.f32 %v4310_v37, %v7043_v3  ;;  %v4332_v56 = vmul.f32 %v4310_v37, %v7050_v57  ;;  %v4333_v53 = vmul.f32 %v4310_v37, %v7057_v0  ;;  %v4334_v61 = vmul.f32 %v4310_v37, %v7064_v23 }
 0x494   : > { %v4335_v32 = vmul.f32 %v4310_v37, %v7071_v11  ;;  %v4336_v19 = vmul.f32 %v4310_v37, %v7078_v8  ;;  %v4337_v21 = vmul.f32 %v4310_v37, %v7085_v29  ;;  %v4338_v25 = vmul.f32 %v4310_v37, %v7092_v26 }
 0x495   : > { %v4339_v27 = vmul.f32 %v4310_v37, %v7099_v17  ;;  %v4340_v54 = vmul.f32 %v4310_v37, %v7106_v10  ;;  %v4341_v3 = vmul.f32 %v4310_v37, %v7113_v48  ;;  %v4342_v41 = vmul.f32 %v4310_v37, %v4129_v52 }
 0x496   : > { %v7172_v57 = vadd.f32 %v7155_v44, %v4311_v22  ;;  %v7175_v0 = vadd.f32 %v7155_v44, %v4312_v59  ;;  %v7178_v23 = vadd.f32 %v7155_v44, %v4313_v47  ;;  %v7181_v11 = vadd.f32 %v7155_v44, %v4314_v39 }
 0x497   : > { %v7184_v8 = vadd.f32 %v7155_v44, %v4315_v4  ;;  %v7187_v29 = vadd.f32 %v7155_v44, %v4316_v49  ;;  %v7190_v26 = vadd.f32 %v7155_v44, %v4317_v35  ;;  %v7193_v17 = vadd.f32 %v7155_v44, %v4318_v20 }
 0x498   : > { %7689 = vst [vmem:[#allocation7_spill] sm:$0xff] %v7172_v57  ;;  %7690 = vst [vmem:[#allocation8_spill] sm:$0xff] %v7175_v0  ;;  %v7196_v10 = vadd.f32 %v7155_v44, %v4319_v46  ;;  %v7199_v48 = vadd.f32 %v7155_v44, %v4320_v58  ;;  %v7202_v52 = vadd.f32 %v7155_v44, %v4321_v55  ;;  %v7262_v37 = vmul.f32 0.5, %v7172_v57 }
 0x499   : > { %7691 = vst [vmem:[#allocation9_spill] sm:$0xff] %v7178_v23  ;;  %7692 = vst [vmem:[#allocation10_spill] sm:$0xff] %v7181_v11  ;;  %v7205_v7 = vadd.f32 %v7155_v44, %v4322_v30  ;;  %v7208_v36 = vadd.f32 %v7155_v44, %v4323_v33  ;;  %v7211_v60 = vadd.f32 %v7155_v44, %v4324_v31  ;;  %v7265_v22 = vmul.f32 0.5, %v7175_v0 }
 0x49a   : > { %7693 = vst [vmem:[#allocation11_spill] sm:$0xff] %v7184_v8  ;;  %7694 = vst [vmem:[#allocation12_spill] sm:$0xff] %v7187_v29  ;;  %v7214_v62 = vadd.f32 %v7155_v44, %v4325_v63  ;;  %v7217_v24 = vadd.f32 %v7155_v44, %v4326_v5  ;;  %v7220_v34 = vadd.f32 %v7155_v44, %v4327_v28  ;;  %v7268_v59 = vmul.f32 0.5, %v7178_v23 }
 0x49b   : > { %7695 = vst [vmem:[#allocation13_spill] sm:$0xff] %v7190_v26  ;;  %7696 = vst [vmem:[#allocation14_spill] sm:$0xff] %v7196_v10  ;;  %v7223_v9 = vadd.f32 %v7155_v44, %v4328_v1  ;;  %v7226_v6 = vadd.f32 %v7155_v44, %v4329_v18  ;;  %v7229_v16 = vadd.f32 %v7155_v44, %v4330_v12  ;;  %v7271_v47 = vmul.f32 0.5, %v7181_v11 }
 0x49c   : > { %7697 = vst [vmem:[#allocation15_spill] sm:$0xff] %v7199_v48  ;;  %7698 = vst [vmem:[#allocation16_spill] sm:$0xff] %v7202_v52  ;;  %v7232_v40 = vadd.f32 %v7155_v44, %v4331_v43  ;;  %v7235_v51 = vadd.f32 %v7155_v44, %v4332_v56  ;;  %v7238_v13 = vadd.f32 %v7155_v44, %v4333_v53  ;;  %v7274_v39 = vmul.f32 0.5, %v7184_v8 }
 0x49d   : > { %7699 = vst [vmem:[#allocation17_spill] sm:$0xff] %v7211_v60  ;;  %7700 = vst [vmem:[#allocation18_spill] sm:$0xff] %v7214_v62  ;;  %v7241_v50 = vadd.f32 %v7155_v44, %v4334_v61  ;;  %v7244_v2 = vadd.f32 %v7155_v44, %v4335_v32  ;;  %v7247_v15 = vadd.f32 %v7155_v44, %v4336_v19  ;;  %v7277_v4 = vmul.f32 0.5, %v7187_v29 }
 0x49e   : > { %7701 = vst [vmem:[#allocation19_spill] sm:$0xff] %v7223_v9  ;;  %7702 = vst [vmem:[#allocation20_spill] sm:$0xff] %v7226_v6  ;;  %v7250_v42 = vadd.f32 %v7155_v44, %v4337_v21  ;;  %v7253_v14 = vadd.f32 %v7155_v44, %v4338_v25  ;;  %v7256_v45 = vadd.f32 %v7155_v44, %v4339_v27  ;;  %v7280_v49 = vmul.f32 0.5, %v7190_v26 }
 0x49f   : > { %7703 = vst [vmem:[#allocation21_spill] sm:$0xff] %v7229_v16  ;;  %7704 = vst [vmem:[#allocation22_spill] sm:$0xff] %v7232_v40  ;;  %v7259_v38 = vadd.f32 %v7155_v44, %v4340_v54  ;;  %v7283_v35 = vmul.f32 0.5, %v7193_v17  ;;  %v7286_v20 = vmul.f32 0.5, %v7196_v10  ;;  %v7289_v46 = vmul.f32 0.5, %v7199_v48 }
 0x4a0   : > { %7705 = vst [vmem:[#allocation23_spill] sm:$0xff] %v7235_v51  ;;  %7706 = vst [vmem:[#allocation24_spill] sm:$0xff] %v7238_v13  ;;  %v7292_v58 = vmul.f32 0.5, %v7202_v52  ;;  %v7295_v55 = vmul.f32 0.5, %v7205_v7  ;;  %v7298_v30 = vmul.f32 0.5, %v7208_v36  ;;  %v7301_v33 = vmul.f32 0.5, %v7211_v60 }
 0x4a1   : > { %7707 = vst [vmem:[#allocation25_spill] sm:$0xff] %v7241_v50  ;;  %7708 = vst [vmem:[#allocation26_spill] sm:$0xff] %v7244_v2  ;;  %v4414_v31 = vmul.f32 0.044715, %v7172_v57  ;;  %v7305_v63 = vmul.f32 0.5, %v7214_v62  ;;  %v7308_v5 = vmul.f32 0.5, %v7217_v24  ;;  %v7315_v18 = vadd.f32 %v7155_v44, %v4341_v3 }
 0x4a2   : > { %7709 = vst [vmem:[#allocation27_spill] sm:$0xff] %v7247_v15  ;;  %7710 = vst [vmem:[#allocation28_spill] sm:$0xff] %v7250_v42  ;;  %v7311_v28 = vmul.f32 0.5, %v7220_v34  ;;  %v4415_v1 = vmul.f32 0.044715, %v7175_v0  ;;  %v7321_v53 = vadd.f32 %v7155_v44, %v4342_v41 }
 0x4a3   : > { %7711 = vst [vmem:[#allocation29_spill] sm:$0xff] %v7253_v14  ;;  %7712 = vst [vmem:[#allocation30_spill] sm:$0xff] %v7256_v45  ;;  %v4416_v12 = vmul.f32 0.044715, %v7178_v23  ;;  %v4417_v43 = vmul.f32 0.044715, %v7181_v11  ;;  %v4446_v54 = vmul.f32 %v4414_v31, %v7172_v57 }
 0x4a4   : > { %7713 = vst [vmem:[#allocation31_spill] sm:$0xff] %v7262_v37  ;;  %7714 = vst [vmem:[#allocation32_spill] sm:$0xff] %v7265_v22  ;;  %v4418_v56 = vmul.f32 0.044715, %v7184_v8  ;;  %v4419_v61 = vmul.f32 0.044715, %v7187_v29  ;;  %v4447_v41 = vmul.f32 %v4415_v1, %v7175_v0 }
 0x4a5   : > { %7715 = vst [vmem:[#allocation33_spill] sm:$0xff] %v7268_v59  ;;  %7716 = vst [vmem:[#allocation34_spill] sm:$0xff] %v7271_v47  ;;  %v4420_v32 = vmul.f32 0.044715, %v7190_v26  ;;  %v4421_v19 = vmul.f32 0.044715, %v7193_v17 }
 0x4a6   : > { %7717 = vst [vmem:[#allocation35_spill] sm:$0xff] %v7274_v39  ;;  %7718 = vst [vmem:[#allocation36_spill] sm:$0xff] %v7277_v4  ;;  %v4422_v21 = vmul.f32 0.044715, %v7196_v10  ;;  %v4423_v25 = vmul.f32 0.044715, %v7199_v48  ;;  %v4451_v47 = vmul.f32 %v4419_v61, %v7187_v29 }
 0x4a7   : > { %7719 = vst [vmem:[#allocation37_spill] sm:$0xff] %v7280_v49  ;;  %7720 = vst [vmem:[#allocation38_spill] sm:$0xff] %v7283_v35  ;;  %v4424_v27 = vmul.f32 0.044715, %v7202_v52  ;;  %v4425_v3 = vmul.f32 0.044715, %v7205_v7  ;;  %v4450_v49 = vmul.f32 %v4418_v56, %v7184_v8  ;;  %v4452_v37 = vmul.f32 %v4420_v32, %v7190_v26 }
 0x4a8   : > { %7721 = vst [vmem:[#allocation39_spill] sm:$0xff] %v7286_v20  ;;  %7722 = vst [vmem:[#allocation40_spill] sm:$0xff] %v7289_v46  ;;  %v4427_v44 = vmul.f32 0.044715, %v7211_v60  ;;  %v4432_v31 = vmul.f32 0.044715, %v7226_v6  ;;  %v4449_v46 = vmul.f32 %v4417_v43, %v7181_v11  ;;  %v4454_v0 = vmul.f32 %v4422_v21, %v7196_v10 }
 0x4a9   : > { %7723 = vst [vmem:[#allocation41_spill] sm:$0xff] %v7292_v58  ;;  %7724 = vst [vmem:[#allocation42_spill] sm:$0xff] %v7295_v55  ;;  %v4431_v55 = vmul.f32 0.044715, %v7223_v9  ;;  %v4433_v58 = vmul.f32 0.044715, %v7229_v16  ;;  %v4455_v61 = vmul.f32 %v4423_v25, %v7199_v48  ;;  %v4456_v29 = vmul.f32 %v4424_v27, %v7202_v52 }
 0x4aa   : > { %7725 = vst [vmem:[#allocation43_spill] sm:$0xff] %v7298_v30  ;;  %7726 = vst [vmem:[#allocation44_spill] sm:$0xff] %v7301_v33  ;;  %v4430_v33 = vmul.f32 0.044715, %v7220_v34  ;;  %v4448_v30 = vmul.f32 %v4416_v12, %v7178_v23  ;;  %v4434_v20 = vmul.f32 0.044715, %v7232_v40  ;;  %v4453_v23 = vmul.f32 %v4421_v19, %v7193_v17 }
 0x4ab   : > { %7727 = vst [vmem:[#allocation45_spill] sm:$0xff] %v7305_v63  ;;  %7728 = vst [vmem:[#allocation46_spill] sm:$0xff] %v7308_v5  ;;  %v4428_v5 = vmul.f32 0.044715, %v7214_v62  ;;  %v4429_v63 = vmul.f32 0.044715, %v7217_v24  ;;  %v4457_v57 = vmul.f32 %v4425_v3, %v7205_v7  ;;  %v4459_v32 = vmul.f32 %v4427_v44, %v7211_v60 }
 0x4ac   : > { %7729 = vst [vmem:[#allocation47_spill] sm:$0xff] %v7311_v28  ;;  %7730 = vst [vmem:[#allocation48_spill] sm:$0xff] %v7315_v18  ;;  %v4426_v28 = vmul.f32 0.044715, %v7208_v36  ;;  %v4435_v1 = vmul.f32 0.044715, %v7235_v51  ;;  %v4463_v19 = vmul.f32 %v4431_v55, %v7223_v9  ;;  %v4464_v21 = vmul.f32 %v4432_v31, %v7226_v6 }
 0x4ad   : > { %7731 = vst [vmem:[#allocation49_spill] sm:$0xff] %v7321_v53  ;;  %v4436_v35 = vmul.f32 0.044715, %v7238_v13  ;;  %v4437_v4 = vmul.f32 0.044715, %v7241_v50  ;;  %v4460_v26 = vmul.f32 %v4428_v5, %v7214_v62  ;;  %v4465_v25 = vmul.f32 %v4433_v58, %v7229_v16  ;;  %v7732_v9 = vld [vmem:[#allocation30_spill] sm:$0xff] }
 0x4ae   : > { %v4438_v12 = vmul.f32 0.044715, %v7244_v2  ;;  %v4439_v39 = vmul.f32 0.044715, %v7247_v15  ;;  %v4440_v59 = vmul.f32 0.044715, %v7250_v42  ;;  %v4466_v27 = vmul.f32 %v4434_v20, %v7232_v40 }
 0x4af   : > { %v4441_v43 = vmul.f32 0.044715, %v7253_v14  ;;  %v4442_v22 = vmul.f32 0.044715, %v7256_v45  ;;  %v4443_v11 = vmul.f32 0.044715, %v7259_v38  ;;  %v4458_v45 = vmul.f32 %v4426_v28, %v7208_v36 }
 0x4b0   : > { %v4444_v56 = vmul.f32 0.044715, %v7315_v18  ;;  %v4445_v8 = vmul.f32 0.044715, %v7321_v53  ;;  %v4461_v18 = vmul.f32 %v4429_v63, %v7217_v24  ;;  %v4462_v53 = vmul.f32 %v4430_v33, %v7220_v34 }
 0x4b1   : > { %v4467_v3 = vmul.f32 %v4435_v1, %v7235_v51  ;;  %v4468_v28 = vmul.f32 %v4436_v35, %v7238_v13  ;;  %v4469_v44 = vmul.f32 %v4437_v4, %v7241_v50  ;;  %v4470_v5 = vmul.f32 %v4438_v12, %v7244_v2  ;;  %v7735_v51 = vld [vmem:[#allocation7_spill] sm:$0xff]  ;;  %v7736_v13 = vld [vmem:[#allocation8_spill] sm:$0xff]  ;;  %v7737_v50 = vld [vmem:[#allocation9_spill] sm:$0xff] }
 0x4b2   : > { %v4471_v63 = vmul.f32 %v4439_v39, %v7247_v15  ;;  %v4472_v33 = vmul.f32 %v4440_v59, %v7250_v42  ;;  %v4473_v55 = vmul.f32 %v4441_v43, %v7253_v14  ;;  %v4474_v31 = vmul.f32 %v4442_v22, %v7732_v9  ;;  %v7738_v2 = vld [vmem:[#allocation10_spill] sm:$0xff]  ;;  %v7739_v15 = vld [vmem:[#allocation11_spill] sm:$0xff]  ;;  %v7740_v42 = vld [vmem:[#allocation12_spill] sm:$0xff] }
 0x4b3   : > { %v4475_v58 = vmul.f32 %v4443_v11, %v7259_v38  ;;  %v7733_v16 = vld [vmem:[#allocation48_spill] sm:$0xff]  ;;  %v4478_v35 = vmul.f32 %v4446_v54, %v7735_v51  ;;  %v4479_v4 = vmul.f32 %v4447_v41, %v7736_v13  ;;  %v4480_v12 = vmul.f32 %v4448_v30, %v7737_v50  ;;  %v7741_v14 = vld [vmem:[#allocation13_spill] sm:$0xff] }
 0x4b4   : > { %v4476_v20 = vmul.f32 %v4444_v56, %v7733_v16  ;;  %v7734_v40 = vld [vmem:[#allocation49_spill] sm:$0xff]  ;;  %v4481_v39 = vmul.f32 %v4449_v46, %v7738_v2  ;;  %v4482_v59 = vmul.f32 %v4450_v49, %v7739_v15  ;;  %v4483_v43 = vmul.f32 %v4451_v47, %v7740_v42 }
 0x4b5   : > { %v4477_v1 = vmul.f32 %v4445_v8, %v7734_v40  ;;  %v4484_v22 = vmul.f32 %v4452_v37, %v7741_v14  ;;  %v4485_v11 = vmul.f32 %v4453_v23, %v7193_v17  ;;  %v4486_v56 = vmul.f32 %v4454_v0, %v7196_v10  ;;  %v7742_v40 = vld [vmem:[#allocation19_spill] sm:$0xff]  ;;  %v7743_v10 = vld [vmem:[#allocation21_spill] sm:$0xff] }
 0x4b6   : > { %v4487_v8 = vmul.f32 %v4455_v61, %v7199_v48  ;;  %v4488_v54 = vmul.f32 %v4456_v29, %v7202_v52  ;;  %v4489_v41 = vmul.f32 %v4457_v57, %v7205_v7  ;;  %v4490_v30 = vmul.f32 %v4458_v45, %v7208_v36  ;;  %v7744_v48 = vld [vmem:[#allocation22_spill] sm:$0xff]  ;;  %v7745_v52 = vld [vmem:[#allocation23_spill] sm:$0xff] }
 0x4b7   : > { %v4491_v46 = vmul.f32 %v4459_v32, %v7211_v60  ;;  %v4492_v49 = vmul.f32 %v4460_v26, %v7214_v62  ;;  %v4493_v47 = vmul.f32 %v4461_v18, %v7217_v24  ;;  %v4494_v37 = vmul.f32 %v4462_v53, %v7220_v34  ;;  %v7746_v60 = vld [vmem:[#allocation24_spill] sm:$0xff]  ;;  %v7747_v62 = vld [vmem:[#allocation25_spill] sm:$0xff] }
 0x4b8   : > { %v4495_v23 = vmul.f32 %v4463_v19, %v7742_v40  ;;  %v4496_v0 = vmul.f32 %v4464_v21, %v7226_v6  ;;  %v4497_v61 = vmul.f32 %v4465_v25, %v7743_v10  ;;  %v4498_v29 = vmul.f32 %v4466_v27, %v7744_v48  ;;  %v7748_v40 = vld [vmem:[#allocation26_spill] sm:$0xff]  ;;  %v7749_v6 = vld [vmem:[#allocation27_spill] sm:$0xff]  ;;  %v7750_v10 = vld [vmem:[#allocation28_spill] sm:$0xff] }
 0x4b9   : > { %v4499_v57 = vmul.f32 %v4467_v3, %v7745_v52  ;;  %v4510_v45 = vadd.f32 %v4478_v35, %v7735_v51  ;;  %v4511_v32 = vadd.f32 %v4479_v4, %v7736_v13  ;;  %v4500_v26 = vmul.f32 %v4468_v28, %v7746_v60  ;;  %v7751_v52 = vld [vmem:[#allocation29_spill] sm:$0xff] }
 0x4ba   : > { %v4501_v18 = vmul.f32 %v4469_v44, %v7747_v62  ;;  %v4512_v53 = vadd.f32 %v4480_v12, %v7737_v50  ;;  %v4513_v19 = vadd.f32 %v4481_v39, %v7738_v2  ;;  %v4502_v21 = vmul.f32 %v4470_v5, %v7748_v40  ;;  %v7752_v4 = vld [vmem:[#allocation49_spill] sm:$0xff]  ;;  %v7753_v39 = vld [vmem:[#allocation14_spill] sm:$0xff] }
 0x4bb   : > { %v4503_v25 = vmul.f32 %v4471_v63, %v7749_v6  ;;  %v4504_v27 = vmul.f32 %v4472_v33, %v7750_v10  ;;  %v4514_v3 = vadd.f32 %v4482_v59, %v7739_v15  ;;  %v4505_v51 = vmul.f32 %v4473_v55, %v7751_v52  ;;  %v7754_v59 = vld [vmem:[#allocation15_spill] sm:$0xff] }
 0x4bc   : > { %v4506_v13 = vmul.f32 %v4474_v31, %v7732_v9  ;;  %v4507_v28 = vmul.f32 %v4475_v58, %v7259_v38  ;;  %v4515_v44 = vadd.f32 %v4483_v43, %v7740_v42  ;;  %v4508_v50 = vmul.f32 %v4476_v20, %v7733_v16  ;;  %v7755_v58 = vld [vmem:[#allocation16_spill] sm:$0xff] }
 0x4bd   : > { %v4516_v2 = vadd.f32 %v4484_v22, %v7741_v14  ;;  %v4542_v35 = vmul.f32 0.7978846, %v4510_v45  ;;  %v4543_v5 = vmul.f32 0.7978846, %v4511_v32  ;;  %v4509_v63 = vmul.f32 %v4477_v1, %v7752_v4  ;;  %v7756_v22 = vld [vmem:[#allocation17_spill] sm:$0xff] }
 0x4be   : > { %v4517_v33 = vadd.f32 %v4485_v11, %v7193_v17  ;;  %v4544_v12 = vmul.f32 0.7978846, %v4512_v53  ;;  %v4545_v15 = vmul.f32 0.7978846, %v4513_v19  ;;  %v4518_v55 = vadd.f32 %v4486_v56, %v7753_v39  ;;  %v7757_v11 = vld [vmem:[#allocation18_spill] sm:$0xff] }
 0x4bf   : > { %v4519_v31 = vadd.f32 %v4487_v8, %v7754_v59  ;;  %v4546_v9 = vmul.f32 0.7978846, %v4514_v3  ;;  %5604 = vtanh.f32 %v4542_v35  ;;  %v4520_v42 = vadd.f32 %v4488_v54, %v7755_v58  ;;  %v7758_v54 = vld [vmem:[#allocation19_spill] sm:$0xff] }
 0x4c0   : > { %v4521_v20 = vadd.f32 %v4489_v41, %v7205_v7  ;;  %v4547_v43 = vmul.f32 0.7978846, %v4515_v44  ;;  %5606 = vtanh.f32 %v4543_v5  ;;  %v4522_v14 = vadd.f32 %v4490_v30, %v7208_v36  ;;  %v7759_v41 = vld [vmem:[#allocation20_spill] sm:$0xff]  ;;  %v7760_v36 = vld [vmem:[#allocation21_spill] sm:$0xff]  ;;  %v7761_v3 = vld [vmem:[#allocation23_spill] sm:$0xff] }
 0x4c1   : > { %v4523_v1 = vadd.f32 %v4491_v46, %v7756_v22  ;;  %v4548_v17 = vmul.f32 0.7978846, %v4516_v2  ;;  %5608 = vtanh.f32 %v4544_v12  ;;  %v4524_v45 = vadd.f32 %v4492_v49, %v7757_v11  ;;  %v7762_v44 = vld [vmem:[#allocation30_spill] sm:$0xff]  ;;  %v7763_v59 = vld [vmem:[#allocation31_spill] sm:$0xff] }
 0x4c2   : > { %v4525_v56 = vadd.f32 %v4493_v47, %v7217_v24  ;;  %v4549_v8 = vmul.f32 0.7978846, %v4517_v33  ;;  %5610 = vtanh.f32 %v4545_v15  ;;  %v4526_v32 = vadd.f32 %v4494_v37, %v7220_v34 }
 0x4c3   : > { %v4527_v53 = vadd.f32 %v4495_v23, %v7758_v54  ;;  %v4550_v7 = vmul.f32 0.7978846, %v4518_v55  ;;  %5612 = vtanh.f32 %v4546_v9  ;;  %v4528_v19 = vadd.f32 %v4496_v0, %v7759_v41 }
 0x4c4   : > { %v4529_v30 = vadd.f32 %v4497_v61, %v7760_v36  ;;  %v4551_v46 = vmul.f32 0.7978846, %v4519_v31  ;;  %5614 = vtanh.f32 %v4547_v43  ;;  %v4530_v49 = vadd.f32 %v4498_v29, %v7744_v48 }
 0x4c5   : > { %v4531_v24 = vadd.f32 %v4499_v57, %v7761_v3  ;;  %v4552_v47 = vmul.f32 0.7978846, %v4520_v42  ;;  %5616 = vtanh.f32 %v4548_v17  ;;  %v4532_v34 = vadd.f32 %v4500_v26, %v7746_v60 }
 0x4c6   : > { %v4533_v37 = vadd.f32 %v4501_v18, %v7747_v62  ;;  %v4553_v23 = vmul.f32 0.7978846, %v4521_v20  ;;  %5618 = vtanh.f32 %v4549_v8  ;;  %v7440_v9 = vadd.f32 %v4502_v21, %v7748_v40  ;;  %v7764_v20 = vld [vmem:[#allocation32_spill] sm:$0xff]  ;;  %v7766_v8 = vld [vmem:[#allocation34_spill] sm:$0xff] }
 0x4c7   : > { %v7443_v0 = vadd.f32 %v4503_v25, %v7749_v6  ;;  %v4554_v61 = vmul.f32 0.7978846, %v4522_v14  ;;  %5620 = vtanh.f32 %v4550_v7  ;;  %v7450_v29 = vadd.f32 %v4504_v27, %v7750_v10 }
 0x4c8   : > { %v7453_v57 = vadd.f32 %v4505_v51, %v7751_v52  ;;  %v4555_v26 = vmul.f32 0.7978846, %v4523_v1  ;;  %5622 = vtanh.f32 %v4551_v46  ;;  %v7456_v21 = vadd.f32 %v4506_v13, %v7762_v44  ;;  %v7765_v1 = vld [vmem:[#allocation33_spill] sm:$0xff] }
 0x4c9   : > { %v5605_v18 = vpop.eup %5604  ;;  %v7459_v25 = vadd.f32 %v4507_v28, %v7259_v38  ;;  %v4556_v2 = vmul.f32 0.7978846, %v4524_v45  ;;  %5624 = vtanh.f32 %v4552_v47  ;;  %v7462_v5 = vadd.f32 %v4508_v50, %v7733_v16 }
 0x4ca   : > { %v5607_v35 = vpop.eup %5606  ;;  %v4557_v27 = vmul.f32 0.7978846, %v4525_v56  ;;  %5626 = vtanh.f32 %v4553_v23  ;;  %v4606_v33 = vadd.f32 1.0, %v5605_v18  ;;  %v7465_v12 = vadd.f32 %v4509_v63, %v7752_v4 }
 0x4cb   : > { %v5609_v51 = vpop.eup %5608  ;;  %v4558_v15 = vmul.f32 0.7978846, %v4526_v32  ;;  %5628 = vtanh.f32 %v4554_v61  ;;  %v4607_v13 = vadd.f32 1.0, %v5607_v35  ;;  %v4559_v28 = vmul.f32 0.7978846, %v4527_v53  ;;  %v7768_v61 = vld [vmem:[#allocation36_spill] sm:$0xff] }
 0x4cc   : > { %v5611_v39 = vpop.eup %5610  ;;  %5630 = vtanh.f32 %v4555_v26  ;;  %v4608_v55 = vadd.f32 1.0, %v5609_v51  ;;  %v4638_v31 = vmul.f32 %v4606_v33, %v7763_v59  ;;  %v4560_v50 = vmul.f32 0.7978846, %v4528_v19  ;;  %v7769_v35 = vld [vmem:[#allocation37_spill] sm:$0xff] }
 0x4cd   : > { %v5613_v58 = vpop.eup %5612  ;;  %5632 = vtanh.f32 %v4556_v2  ;;  %v4609_v42 = vadd.f32 1.0, %v5611_v39  ;;  %v4639_v43 = vmul.f32 %v4607_v13, %v7764_v20  ;;  %v4561_v22 = vmul.f32 0.7978846, %v4529_v30  ;;  %v7767_v30 = vld [vmem:[#allocation35_spill] sm:$0xff] }
 0x4ce   : > { %v5615_v14 = vpop.eup %5614  ;;  %5634 = vtanh.f32 %v4557_v27  ;;  %v4610_v63 = vadd.f32 1.0, %v5613_v58  ;;  %v4640_v17 = vmul.f32 %v4608_v55, %v7765_v1  ;;  %4670 = vst.msk [vmem:[%s7471_s17] sm:$0xff] %vm908_vm10, %v4638_v31  ;;  %v4562_v45 = vmul.f32 0.7978846, %v4530_v49  ;;  %v7771_v55 = vld [vmem:[#allocation39_spill] sm:$0xff] }
 0x4cf   : > { %v5617_v11 = vpop.eup %5616  ;;  %5636 = vtanh.f32 %v4558_v15  ;;  %v4611_v56 = vadd.f32 1.0, %v5615_v14  ;;  %v4641_v32 = vmul.f32 %v4609_v42, %v7766_v8  ;;  %4671 = vst.msk [vmem:[%s7471_s17 + $0x8] sm:$0xff] %vm908_vm10, %v4639_v43  ;;  %v4563_v7 = vmul.f32 0.7978846, %v4531_v24  ;;  %v7770_v15 = vld [vmem:[#allocation38_spill] sm:$0xff]  ;;  %v7773_v14 = vld [vmem:[#allocation41_spill] sm:$0xff] }
 0x4d0   : > { %v5619_v53 = vpop.eup %5618  ;;  %5638 = vtanh.f32 %v4559_v28  ;;  %v4612_v19 = vadd.f32 1.0, %v5617_v11  ;;  %v4642_v46 = vmul.f32 %v4610_v63, %v7767_v30  ;;  %4672 = vst.msk [vmem:[%s7471_s17 + $0x10] sm:$0xff] %vm908_vm10, %v4640_v17  ;;  %v4564_v23 = vmul.f32 0.7978846, %v4532_v34  ;;  %v7774_v17 = vld [vmem:[#allocation42_spill] sm:$0xff]  ;;  %v7775_v8 = vld [vmem:[#allocation43_spill] sm:$0xff] }
 0x4d1   : > { %v5621_v47 = vpop.eup %5620  ;;  %5640 = vtanh.f32 %v4560_v50  ;;  %v4613_v49 = vadd.f32 1.0, %v5619_v53  ;;  %v4643_v26 = vmul.f32 %v4611_v56, %v7768_v61  ;;  %4673 = vst.msk [vmem:[%s7471_s17 + $0x18] sm:$0xff] %vm908_vm10, %v4641_v32  ;;  %v4565_v2 = vmul.f32 0.7978846, %v4533_v37  ;;  %v7772_v50 = vld [vmem:[#allocation40_spill] sm:$0xff] }
 0x4d2   : > { %v5623_v18 = vpop.eup %5622  ;;  %5642 = vtanh.f32 %v4561_v22  ;;  %v4614_v24 = vadd.f32 1.0, %v5621_v47  ;;  %v4644_v27 = vmul.f32 %v4612_v19, %v7769_v35  ;;  %4674 = vst.msk [vmem:[%s7471_s17 + $0x20] sm:$0xff] %vm908_vm10, %v4642_v46  ;;  %v4566_v51 = vmul.f32 0.7978846, %v7440_v9  ;;  %v7776_v19 = vld [vmem:[#allocation44_spill] sm:$0xff] }
 0x4d3   : > { %v5625_v33 = vpop.eup %5624  ;;  %5644 = vtanh.f32 %v4562_v45  ;;  %v4615_v34 = vadd.f32 1.0, %v5623_v18  ;;  %v4645_v13 = vmul.f32 %v4613_v49, %v7770_v15  ;;  %4675 = vst.msk [vmem:[%s7471_s17 + $0x28] sm:$0xff] %vm908_vm10, %v4643_v26  ;;  %v4567_v37 = vmul.f32 0.7978846, %v7443_v0  ;;  %v7778_v18 = vld [vmem:[#allocation46_spill] sm:$0xff] }
 0x4d4   : > { %v5627_v39 = vpop.eup %5626  ;;  %5646 = vtanh.f32 %v4563_v7  ;;  %v4616_v28 = vadd.f32 1.0, %v5625_v33  ;;  %v4646_v59 = vmul.f32 %v4614_v24, %v7771_v55  ;;  %4676 = vst.msk [vmem:[%s7471_s17 + $0x30] sm:$0xff] %vm908_vm10, %v4644_v27  ;;  %v4568_v9 = vmul.f32 0.7978846, %v7450_v29  ;;  %v7779_v27 = vld [vmem:[#allocation47_spill] sm:$0xff] }
 0x4d5   : > { %v5629_v31 = vpop.eup %5628  ;;  %5648 = vtanh.f32 %v4564_v23  ;;  %v4617_v58 = vadd.f32 1.0, %v5627_v39  ;;  %v4647_v42 = vmul.f32 %v4615_v34, %v7772_v50  ;;  %4677 = vst.msk [vmem:[%s7471_s17 + $0x38] sm:$0xff] %vm908_vm10, %v4645_v13  ;;  %v4569_v0 = vmul.f32 0.7978846, %v7453_v57  ;;  %v7777_v23 = vld [vmem:[#allocation45_spill] sm:$0xff] }
 0x4d6   : > { %v5631_v20 = vpop.eup %5630  ;;  %5650 = vtanh.f32 %v4565_v2  ;;  %v4618_v43 = vadd.f32 1.0, %v5629_v31  ;;  %v4648_v22 = vmul.f32 %v4616_v28, %v7773_v14  ;;  %4678 = vst.msk [vmem:[%s7471_s17 + $0x40] sm:$0xff] %vm908_vm10, %v4646_v59  ;;  %v4570_v29 = vmul.f32 0.7978846, %v7456_v21 }
 0x4d7   : > { %v5633_v63 = vpop.eup %5632  ;;  %5652 = vtanh.f32 %v4566_v51  ;;  %v4619_v1 = vadd.f32 1.0, %v5631_v20  ;;  %v4649_v11 = vmul.f32 %v4617_v58, %v7774_v17  ;;  %4679 = vst.msk [vmem:[%s7471_s17 + $0x48] sm:$0xff] %vm908_vm10, %v4647_v42  ;;  %v4571_v57 = vmul.f32 0.7978846, %v7459_v25 }
 0x4d8   : > { %v5635_v45 = vpop.eup %5634  ;;  %5654 = vtanh.f32 %v4567_v37  ;;  %v4620_v56 = vadd.f32 1.0, %v5633_v63  ;;  %v4650_v32 = vmul.f32 %v4618_v43, %v7775_v8  ;;  %4680 = vst.msk [vmem:[%s7471_s17 + $0x50] sm:$0xff] %vm908_vm10, %v4648_v22  ;;  %v4572_v21 = vmul.f32 0.7978846, %v7462_v5 }
 0x4d9   : > { %v5637_v53 = vpop.eup %5636  ;;  %5656 = vtanh.f32 %v4568_v9  ;;  %v4621_v7 = vadd.f32 1.0, %v5635_v45  ;;  %v4651_v30 = vmul.f32 %v4619_v1, %v7776_v19  ;;  %4681 = vst.msk [vmem:[%s7471_s17 + $0x58] sm:$0xff] %vm908_vm10, %v4649_v11  ;;  %v4573_v25 = vmul.f32 0.7978846, %v7465_v12 }
 0x4da   : > { %v5639_v46 = vpop.eup %5638  ;;  %5658 = vtanh.f32 %v4569_v0  ;;  %v4622_v47 = vadd.f32 1.0, %v5637_v53  ;;  %v4652_v49 = vmul.f32 %v4620_v56, %v7777_v23  ;;  %4682 = vst.msk [vmem:[%s7471_s17 + $0x60] sm:$0xff] %vm908_vm10, %v4650_v32  ;;  %v4399_v5 = vmul.f32 0.5, %v7758_v54 }
 0x4db   : > { %v5641_v61 = vpop.eup %5640  ;;  %5660 = vtanh.f32 %v4570_v29  ;;  %v4623_v26 = vadd.f32 1.0, %v5639_v46  ;;  %v4653_v2 = vmul.f32 %v4621_v7, %v7778_v18  ;;  %4683 = vst.msk [vmem:[%s7471_s17 + $0x68] sm:$0xff] %vm908_vm10, %v4651_v30  ;;  %v4400_v12 = vmul.f32 0.5, %v7759_v41 }
 0x4dc   : > { %v5643_v24 = vpop.eup %5642  ;;  %5662 = vtanh.f32 %v4571_v57  ;;  %v4624_v35 = vadd.f32 1.0, %v5641_v61  ;;  %v4654_v33 = vmul.f32 %v4622_v47, %v7779_v27  ;;  %4684 = vst.msk [vmem:[%s7471_s17 + $0x70] sm:$0xff] %vm908_vm10, %v4652_v49  ;;  %v4401_v54 = vmul.f32 0.5, %v7760_v36 }
 0x4dd   : > { %v5645_v51 = vpop.eup %5644  ;;  %5664 = vtanh.f32 %v4572_v21  ;;  %v4625_v34 = vadd.f32 1.0, %v5643_v24  ;;  %v4655_v15 = vmul.f32 %v4623_v26, %v4399_v5  ;;  %4685 = vst.msk [vmem:[%s7471_s17 + $0x78] sm:$0xff] %vm908_vm10, %v4653_v2  ;;  %v4402_v41 = vmul.f32 0.5, %v7744_v48 }
 0x4de   : > { %v5647_v13 = vpop.eup %5646  ;;  %5666 = vtanh.f32 %v4573_v25  ;;  %v4626_v39 = vadd.f32 1.0, %v5645_v51  ;;  %v4656_v37 = vmul.f32 %v4624_v35, %v4400_v12  ;;  %4686 = vst.msk [vmem:[%s7471_s17 + $0x80] sm:$0xff] %vm908_vm10, %v4654_v33  ;;  %v4403_v55 = vmul.f32 0.5, %v7761_v3 }
 0x4df   : > { %v5649_v28 = vpop.eup %5648  ;;  %v4627_v59 = vadd.f32 1.0, %v5647_v13  ;;  %v4657_v36 = vmul.f32 %v4625_v34, %v4401_v54  ;;  %4687 = vst.msk [vmem:[%s7471_s17 + $0x88] sm:$0xff] %vm908_vm10, %v4655_v15  ;;  %v4404_v9 = vmul.f32 0.5, %v7746_v60  ;;  %v4405_v42 = vmul.f32 0.5, %v7747_v62 }
 0x4e0   : > { %v5651_v31 = vpop.eup %5650  ;;  %v4628_v58 = vadd.f32 1.0, %v5649_v28  ;;  %v4658_v50 = vmul.f32 %v4626_v39, %v4402_v41  ;;  %4688 = vst.msk [vmem:[%s7471_s17 + $0x90] sm:$0xff] %vm908_vm10, %v4656_v37  ;;  %v4406_v43 = vmul.f32 0.5, %v7748_v40  ;;  %v4407_v63 = vmul.f32 0.5, %v7749_v6 }
 0x4e1   : > { %v5653_v48 = vpop.eup %5652  ;;  %v4629_v20 = vadd.f32 1.0, %v5651_v31  ;;  %v4659_v0 = vmul.f32 %v4627_v59, %v4403_v55  ;;  %4689 = vst.msk [vmem:[%s7471_s17 + $0x98] sm:$0xff] %vm908_vm10, %v4657_v36  ;;  %v4408_v17 = vmul.f32 0.5, %v7750_v10  ;;  %v4409_v57 = vmul.f32 0.5, %v7751_v52 }
 0x4e2   : > { %v5655_v3 = vpop.eup %5654  ;;  %v4630_v14 = vadd.f32 1.0, %v5653_v48  ;;  %v4660_v22 = vmul.f32 %v4628_v58, %v4404_v9  ;;  %4690 = vst.msk [vmem:[%s7471_s17 + $0xa0] sm:$0xff] %vm908_vm10, %v4658_v50  ;;  %v4410_v32 = vmul.f32 0.5, %v7762_v44  ;;  %v4411_v7 = vmul.f32 0.5, %v7259_v38 }
 0x4e3   : > { %v5657_v60 = vpop.eup %5656  ;;  %v4631_v29 = vadd.f32 1.0, %v5655_v3  ;;  %v4661_v1 = vmul.f32 %v4629_v20, %v4405_v42  ;;  %4691 = vst.msk [vmem:[%s7471_s17 + $0xa8] sm:$0xff] %vm908_vm10, %v4659_v0  ;;  %v4412_v44 = vmul.f32 0.5, %v7733_v16  ;;  %v4413_v38 = vmul.f32 0.5, %v7752_v4 }
 0x4e4   : > { %v5659_v62 = vpop.eup %5658  ;;  %v4632_v11 = vadd.f32 1.0, %v5657_v60  ;;  %v4662_v45 = vmul.f32 %v4630_v14, %v4406_v43  ;;  %4692 = vst.msk [vmem:[%s7471_s17 + $0xb0] sm:$0xff] %vm908_vm10, %v4660_v22 }
 0x4e5   : > { %v5661_v40 = vpop.eup %5660  ;;  %v4633_v56 = vadd.f32 1.0, %v5659_v62  ;;  %v4663_v6 = vmul.f32 %v4631_v29, %v4407_v63  ;;  %4693 = vst.msk [vmem:[%s7471_s17 + $0xb8] sm:$0xff] %vm908_vm10, %v4661_v1 }
 0x4e6   : > { %v5663_v8 = vpop.eup %5662  ;;  %v4634_v53 = vadd.f32 1.0, %v5661_v40  ;;  %v4664_v10 = vmul.f32 %v4632_v11, %v4408_v17  ;;  %4694 = vst.msk [vmem:[%s7471_s17 + $0xc0] sm:$0xff] %vm908_vm10, %v4662_v45 }
 0x4e7   : > { %v5665_v21 = vpop.eup %5664  ;;  %v4635_v19 = vadd.f32 1.0, %v5663_v8  ;;  %v4665_v30 = vmul.f32 %v4633_v56, %v4409_v57  ;;  %4695 = vst.msk [vmem:[%s7471_s17 + $0xc8] sm:$0xff] %vm908_vm10, %v4663_v6 }
 0x4e8   : > { %v5667_v52 = vpop.eup %5666  ;;  %v4636_v46 = vadd.f32 1.0, %v5665_v21  ;;  %v4666_v25 = vmul.f32 %v4634_v53, %v4410_v32  ;;  %4696 = vst.msk [vmem:[%s7471_s17 + $0xd0] sm:$0xff] %vm908_vm10, %v4664_v10 }
 0x4e9   : > { %v4637_v47 = vadd.f32 1.0, %v5667_v52  ;;  %v4667_v23 = vmul.f32 %v4635_v19, %v4411_v7  ;;  %4697 = vst.msk [vmem:[%s7471_s17 + $0xd8] sm:$0xff] %vm908_vm10, %v4665_v30 }
 0x4ea   : > { %v4668_v49 = vmul.f32 %v4636_v46, %v4412_v44  ;;  %4698 = vst.msk [vmem:[%s7471_s17 + $0xe0] sm:$0xff] %vm908_vm10, %v4666_v25 }
 0x4eb   : > { %v4669_v16 = vmul.f32 %v4637_v47, %v4413_v38  ;;  %4699 = vst.msk [vmem:[%s7471_s17 + $0xe8] sm:$0xff] %vm908_vm10, %v4667_v23 }
 0x4ec   : > { %4700 = vst.msk [vmem:[%s7471_s17 + $0xf0] sm:$0xff] %vm908_vm10, %v4668_v49 }
 0x4ed   : > { %4701 = vst.msk [vmem:[%s7471_s17 + $0xf8] sm:$0xff] %vm908_vm10, %v4669_v16 }
 0x4ee   : > { %5681 = shalt.err (!%p5678_p3)
}
 0x4ef   : > { %s5682_s13 = scalar_lea.hbm %s7573_s26, 4096  ;;  %s5686_s16 = scalar_lea.hbm %s7632_s6, 8192 }
 0x4f0   : > { %p5683_p4 = scmp.ne.s32.totalorder %s7573_s26, %s5682_s13  ;;  %p5687_p9 = scmp.lt.u32.totalorder %s7573_s26, %s7632_s6 }
 0x4f1   : > { %p5688_p10 = scmp.lt.u32.totalorder %s5686_s16, %s5682_s13  ;;  %p5690_p12 = scmp.lt.u32.totalorder %s5682_s13, %s7573_s26 }
 0x4f2   : > { %p5684_p7 = pnand %p5683_p4, %p5815_p5 }
 0x4f3   : > { %p5689_p11 = por %p5688_p10, %p5687_p9 }
 0x4f4   : > { %p5685_p8 = pneg %p5684_p7 }
 0x4f5   : > { %p5691_p13 = por %p5690_p12, %p5689_p11 }
 0x4f7   : > { %p5692_p0 = pnand %p5691_p13, %p5685_p8 }
 0x4f9   : > { %5695 = shalt.err (!%p5692_p0)
}
 0x4fa   : > { %s5740_s18 = smov 128   ;;  %s5741_s25 = smov 8  }
 0x4fb   : > { %5296 = dma.vmem_to_hbm [thread:$0]  (%p5815_p5), %s7575_s19, 4096, %s7573_s26, %s7585_s28, %s5740_s18, %s5740_s18, %s5741_s25  }
 0x4fc PF: > { %p5302_p1 = scmp.ge.s32.totalorder %s5730_s24, 2  ;;  %s4731_s20 = sand.u32 1, %s5718_s21  }
 0x4fd   : > { %s4732_s29 = scalar_lea.sflag [#allocation5], %s4731_s20 }
 0x4fe   : > { %p5299_p2 = pnand %p5302_p1, %p5819_p6 }
 0x500   : > { %5713 = dma.done.wait (!%p5299_p2), %s4732_s29, 4096  }
 0x501   : > { %5715 = vsyncadd (!%p5299_p2), %s4732_s29, 4294963200  ;;  %p16_p3 = scmp.ge.s32.totalorder %s5802_s27, 4   ;;  %s7780_s21 = smov %s5722_s22 }
 0x502   : > { %s7781_s22 = smov %s5726_s23  ;;  %s7782_s23 = smov %s5813_s30 }
 0x503   : > { %s7783_s24 = smov %s5802_s27  ;;  %18 = sbr.rel (!%p16_p3) target bundleno = 3 (0x3), region = 81 }
 0x50a   :  { %4737 = vsyncpa [#allocation5], 1 }
 0x50b   :  { %4739 = vsyncpa [#allocation5 + $0x1], 1 }

</bundles_post_ra>
